<compile_context>
chip_gen: v5e
topology: v5e:2x2
jax: 0.10.0
libtpu: 0.0.40
codegen_flags: <defaults>
</compile_context>

<pallas_src>
import jax
import jax.numpy as jnp
from jax.experimental import pallas as pl
from jax.experimental.pallas import tpu as pltpu

F32 = jnp.float32
BF16 = jnp.bfloat16


# ---------------------------------------------------------------------------
# Fused kernel: whole forward for B images (grid axis = batch tiles).
#
# Row orderings within one tile (B images):
#   xp  : (kh2, kw2, kh3, kw3, b, h3, w3)  x lanes (k1h, k1w, c0)=12     -> 64B rows
#   a1  : same rows                        x 128
#   a2  : (kh3, kw3, b, h3, w3)            x 256                         -> 16B rows
#   a3  : (b, h3, w3)                      x 512                         ->  4B rows
#   rec : (b, h3, w3) x lanes (k3h, k3w, k2h, k2w, k1h, k1w, c0) = 192
# where h0 = 8*h3 + 4*kh3 + 2*kh2 + k1h (same for w).  With this ordering every
# layer's im2col slab is a lane/sublane-aligned slice+concat of the previous
# activation, and each layer is exactly one MXU dot.
# ---------------------------------------------------------------------------
def _fused_sae_kernel(xp_ref, m2_ref, m3_ref,
                      w1_ref, b1_ref, w2_ref, b2_ref, w3_ref, b3_ref,
                      wt3_ref, bt3_ref, wt2_ref, bt2_ref, wt1_ref, bt1_ref,
                      a3_ref, rec_ref):
    rows3 = a3_ref.shape[0]        # 4*B   rows (b, h3, w3)
    rows2 = 4 * rows3              # 16*B  rows (kh3, kw3, b, h3, w3)

    def mm(a, w_ref):              # bf16 MXU matmul, f32 accumulate
        return jnp.dot(a.astype(BF16), w_ref[...], preferred_element_type=F32)

    # ---- ae1: Conv2d(3,128,2,2) + ReLU (input pre-im2col'd in the wrapper) ---
    a1 = jnp.maximum(mm(xp_ref[...], w1_ref) + b1_ref[...], 0.0)       # (64B,128)
    a1 = (a1 * m2_ref[...].astype(F32)).astype(BF16)                   # denoise ae2 input

    # ---- ae2: Conv2d(128,256,2,2) + ReLU — 2x2 taps concatenated along K -----
    slab2 = jnp.concatenate(
        [a1[t * rows2:(t + 1) * rows2, :] for t in range(4)], axis=1)  # (16B,512)
    a2 = jnp.maximum(mm(slab2, w2_ref) + b2_ref[...], 0.0)             # (16B,256)
    a2 = (a2 * m3_ref[...].astype(F32)).astype(BF16)                   # denoise ae3 input

    # ---- ae3: Conv2d(256,512,2,2) + ReLU -------------------------------------
    slab3 = jnp.concatenate(
        [a2[t * rows3:(t + 1) * rows3, :] for t in range(4)], axis=1)  # (4B,1024)
    a3 = jnp.maximum(mm(slab3, w3_ref) + b3_ref[...], 0.0)             # (4B,512)
    a3_ref[...] = a3

    # ---- reconstruct: ConvT(512->256) -> ConvT(256->128) -> ConvT(128->3) ----
    # ConvT3: taps merged into output lanes (k3h,k3w,c2) -> one dot.
    t3 = jnp.maximum(mm(a3, wt3_ref) + bt3_ref[...], 0.0).astype(BF16)       # (4B,1024)
    # ConvT2: gather the 4 (k3) lane groups into rows -> one dot, lanes (k2h,k2w,c1).
    slab_t2 = jnp.concatenate(
        [t3[:, t * 256:(t + 1) * 256] for t in range(4)], axis=0)            # (16B,256)
    t2 = jnp.maximum(mm(slab_t2, wt2_ref) + bt2_ref[...], 0.0).astype(BF16)  # (16B,512)
    # ConvT1: block-diagonal single dot over all 16 (k3,k2) positions;
    # output lanes are the packed (k3h,k3w,k2h,k2w,k1h,k1w,c0) = 192 real values.
    slab_t1 = jnp.concatenate(
        [t2[k3 * rows3:(k3 + 1) * rows3, k2 * 128:(k2 + 1) * 128]
         for k3 in range(4) for k2 in range(4)], axis=1)                     # (4B,2048)
    rec = jnp.maximum(mm(slab_t1, wt1_ref) + bt1_ref[...], 0.0)              # (4B,192)
    rec_ref[...] = rec.astype(rec_ref.dtype)


# ---------------------------------------------------------------------------
# Wrapper-side layout plumbing (all on tiny arrays) + one pallas_call.
# ---------------------------------------------------------------------------
def _mask_field(key, shape):
    # x * (N(0, 0.1) > -0.1), same distribution as the torch code (JAX RNG).
    return (jax.random.normal(key, shape, F32) * 0.1 > -0.1).astype(F32)


def _draw_masks(key, n):
    k1, k2, k3 = jax.random.split(key, 3)
    return (_mask_field(k1, (n, 16, 16, 3)),
            _mask_field(k2, (n, 8, 8, 128)),
            _mask_field(k3, (n, 4, 4, 256)))


def _pack_params(params):
    # conv weights -> (kh, kw, cin) merged along K (rows), cout on lanes
    w1m = params["w1"].transpose(2, 3, 1, 0).reshape(12, 128).astype(BF16)
    w2m = params["w2"].transpose(2, 3, 1, 0).reshape(512, 256).astype(BF16)
    w3m = params["w3"].transpose(2, 3, 1, 0).reshape(1024, 512).astype(BF16)
    b1 = params["b1"].reshape(1, 128).astype(F32)
    b2 = params["b2"].reshape(1, 256).astype(F32)
    b3 = params["b3"].reshape(1, 512).astype(F32)
    # convT weights -> cin on rows, (kh, kw, cout) merged on lanes
    wt3m = params["wt3"].transpose(0, 2, 3, 1).reshape(512, 1024).astype(BF16)
    wt2m = params["wt2"].transpose(0, 2, 3, 1).reshape(256, 512).astype(BF16)
    # convT1 as a block-diagonal (16x) weight: input lanes (k3,k2,c1)=2048,
    # output lanes (k3,k2,k1h,k1w,c0)=192 -> single dot, zero output padding.
    wt1s = params["wt1"].transpose(0, 2, 3, 1).reshape(128, 12)
    wt1blk = jnp.kron(jnp.eye(16, dtype=F32), wt1s).astype(BF16)       # (2048,192)
    bt3m = jnp.tile(params["bt3"], 4).reshape(1, 1024).astype(F32)
    bt2m = jnp.tile(params["bt2"], 4).reshape(1, 512).astype(F32)
    bt1m = jnp.tile(params["bt1"], 64).reshape(1, 192).astype(F32)
    return (w1m, b1, w2m, b2, w3m, b3, wt3m, bt3m, wt2m, bt2m, wt1blk, bt1m)


def stacked_autoencoder_forward(params, x_nchw, noise_key, batch_tile=16):
    """Eval-mode forward: returns (a3, reconstruct(a3)) in NCHW, like the torch module."""
    N, C, H, W = x_nchw.shape
    assert (C, H, W) == (3, 16, 16), "kernel is specialised to 3x16x16 inputs"

    # Batch tile B: folded into the sublane (M) dim of every dot.
    bt = max(1, min(batch_tile, N))
    if bt < N and bt % 2:          # multi-step grid needs 4*bt divisible by 8
        bt += 1
    T = pl.cdiv(N, bt)
    Npad = T * bt

    m1, m2, m3 = _draw_masks(noise_key, N)
    x = jnp.transpose(x_nchw, (0, 2, 3, 1)).astype(F32) * m1           # denoised ae1 input
    if Npad != N:
        pad = ((0, Npad - N),) + ((0, 0),) * 3
        x = jnp.pad(x, pad)
        m2 = jnp.pad(m2, pad)
        m3 = jnp.pad(m3, pad)

    # im2col of layer 1: rows (tile, kh2, kw2, kh3, kw3, b, h3, w3), lanes (k1h,k1w,c0)
    xr = x.reshape(T, bt, 2, 2, 2, 2, 2, 2, 2, 2, 3)
    #              t   b  h3 kh3 kh2 k1h w3 kw3 kw2 k1w c
    xp = xr.transpose(0, 4, 8, 3, 7, 1, 2, 6, 5, 9, 10).reshape(Npad * 64, 12).astype(BF16)

    # denoise masks in the kernel's row layouts (bf16 is exact for 0/1)
    m2r = m2.reshape(T, bt, 2, 2, 2, 2, 2, 2, 128)     # (t,b,h3,kh3,kh2,w3,kw3,kw2,c)
    m2b = m2r.transpose(0, 4, 7, 3, 6, 1, 2, 5, 8).reshape(Npad * 64, 128).astype(BF16)
    m3r = m3.reshape(T, bt, 2, 2, 2, 2, 256)           # (t,b,h3,kh3,w3,kw3,c)
    m3b = m3r.transpose(0, 3, 5, 1, 2, 4, 6).reshape(Npad * 16, 256).astype(BF16)

    ops = (xp, m2b, m3b) + _pack_params(params)

    flops = 2 * Npad * (64 * 12 * 128 + 16 * 512 * 256 + 4 * 1024 * 512
                        + 4 * 512 * 1024 + 16 * 256 * 512 + 4 * 2048 * 192)
    bytes_accessed = int(sum(o.size * o.dtype.itemsize for o in ops)
                         + 4 * Npad * 512 * 4 + 4 * Npad * 192 * 2)

    a3_blk, rec_blk = pl.pallas_call(
        _fused_sae_kernel,
        out_shape=(jax.ShapeDtypeStruct((4 * Npad, 512), F32),
                   jax.ShapeDtypeStruct((4 * Npad, 192), BF16)),
        grid_spec=pltpu.PrefetchScalarGridSpec(
            num_scalar_prefetch=0,
            grid=(T,),
            in_specs=[
                pl.BlockSpec((64 * bt, 12), lambda i: (i, 0)),     # xp  (im2col of x)
                pl.BlockSpec((64 * bt, 128), lambda i: (i, 0)),    # mask applied to a1
                pl.BlockSpec((16 * bt, 256), lambda i: (i, 0)),    # mask applied to a2
                pl.BlockSpec((12, 128), lambda i: (0, 0)),         # w1
                pl.BlockSpec((1, 128), lambda i: (0, 0)),          # b1
                pl.BlockSpec((512, 256), lambda i: (0, 0)),        # w2 (taps merged on K)
                pl.BlockSpec((1, 256), lambda i: (0, 0)),          # b2
                pl.BlockSpec((1024, 512), lambda i: (0, 0)),       # w3 (taps merged on K)
                pl.BlockSpec((1, 512), lambda i: (0, 0)),          # b3
                pl.BlockSpec((512, 1024), lambda i: (0, 0)),       # wt3 (taps merged on N)
                pl.BlockSpec((1, 1024), lambda i: (0, 0)),         # bt3
                pl.BlockSpec((256, 512), lambda i: (0, 0)),        # wt2 (taps merged on N)
                pl.BlockSpec((1, 512), lambda i: (0, 0)),          # bt2
                pl.BlockSpec((2048, 192), lambda i: (0, 0)),       # wt1 block-diagonal
                pl.BlockSpec((1, 192), lambda i: (0, 0)),          # bt1
            ],
            out_specs=[
                pl.BlockSpec((4 * bt, 512), lambda i: (i, 0)),     # a3
                pl.BlockSpec((4 * bt, 192), lambda i: (i, 0)),     # rec (packed, bf16)
            ],
        ),
        compiler_params=pltpu.CompilerParams(
            dimension_semantics=("parallel",)),
        cost_estimate=pl.CostEstimate(flops=flops, transcendentals=0,
                                      bytes_accessed=bytes_accessed),
    )(*ops)

    # decode a3: rows (n, h3, w3) -> NCHW (n, 512, 2, 2)
    a3 = a3_blk.reshape(Npad, 2, 2, 512)[:N].transpose(0, 3, 1, 2)
    # decode rec: rows (n, h3, w3), lanes (k3h,k3w,k2h,k2w,k1h,k1w,c);
    #   h0 = 8*h3 + 4*k3h + 2*k2h + k1h, w0 likewise.
    r = rec_blk.astype(F32).reshape(Npad, 2, 2, 2, 2, 2, 2, 2, 2, 3)[:N]
    rec = r.transpose(0, 9, 1, 3, 5, 7, 2, 4, 6, 8).reshape(N, 3, 16, 16)
    return a3, rec


# ---------------------------------------------------------------------------
# Independent pure-JAX reference (NHWC patch math) for correctness checking.
# ---------------------------------------------------------------------------
def _mm_ref(a, w):
    return jnp.dot(a.astype(BF16), w.astype(BF16), preferred_element_type=F32)


def _conv2x2_relu_ref(x, w_oihw, b):
    Nb, H, W, C = x.shape
    Cout = w_oihw.shape[0]
    p = x.reshape(Nb, H // 2, 2, W // 2, 2, C).transpose(0, 1, 3, 2, 4, 5)
    p = p.reshape(Nb * (H // 2) * (W // 2), 4 * C)
    wm = w_oihw.transpose(2, 3, 1, 0).reshape(4 * C, Cout)
    y = jnp.maximum(_mm_ref(p, wm) + b.reshape(1, -1), 0.0)
    return y.reshape(Nb, H // 2, W // 2, Cout)


def _convT2x2_relu_ref(x, w_iohw, b):
    Nb, H, W, C = x.shape
    Cout = w_iohw.shape[1]
    wm = w_iohw.transpose(0, 2, 3, 1).reshape(C, 4 * Cout)
    y = _mm_ref(x.reshape(Nb * H * W, C), wm) + jnp.tile(b, 4).reshape(1, -1)
    y = jnp.maximum(y, 0.0).reshape(Nb, H, W, 2, 2, Cout).transpose(0, 1, 3, 2, 4, 5)
    return y.reshape(Nb, 2 * H, 2 * W, Cout)


def stacked_autoencoder_reference(params, x_nchw, noise_key):
    N = x_nchw.shape[0]
    m1, m2, m3 = _draw_masks(noise_key, N)
    x = jnp.transpose(x_nchw, (0, 2, 3, 1)).astype(F32)
    a1 = _conv2x2_relu_ref(x * m1, params["w1"], params["b1"])
    a2 = _conv2x2_relu_ref(a1 * m2, params["w2"], params["b2"])
    a3 = _conv2x2_relu_ref(a2 * m3, params["w3"], params["b3"])
    r2 = _convT2x2_relu_ref(a3, params["wt3"], params["bt3"])
    r1 = _convT2x2_relu_ref(r2, params["wt2"], params["bt2"])
    r0 = _convT2x2_relu_ref(r1, params["wt1"], params["bt1"])
    return jnp.transpose(a3, (0, 3, 1, 2)), jnp.transpose(r0, (0, 3, 1, 2))


# ---------------------------------------------------------------------------
# Deterministic parameter init (PyTorch-default-style uniform bounds)
# ---------------------------------------------------------------------------
def _init_conv(key, cin, cout):
    k1, k2 = jax.random.split(key)
    bound = 1.0 / jnp.sqrt(cin * 4.0)
    w = jax.random.uniform(k1, (cout, cin, 2, 2), F32, -bound, bound)
    b = jax.random.uniform(k2, (cout,), F32, -bound, bound)
    return w, b


def _init_convT(key, cin, cout):
    k1, k2 = jax.random.split(key)
    bound = 1.0 / jnp.sqrt(cout * 4.0)
    w = jax.random.uniform(k1, (cin, cout, 2, 2), F32, -bound, bound)
    b = jax.random.uniform(k2, (cout,), F32, -bound, bound)
    return w, b


def init_params(key):
    ks = jax.random.split(key, 6)
    p = {}
    p["w1"], p["b1"] = _init_conv(ks[0], 3, 128)       # ae1 fwd : Conv2d(3,128,2,2)
    p["w2"], p["b2"] = _init_conv(ks[1], 128, 256)     # ae2 fwd : Conv2d(128,256,2,2)
    p["w3"], p["b3"] = _init_conv(ks[2], 256, 512)     # ae3 fwd : Conv2d(256,512,2,2)
    p["wt1"], p["bt1"] = _init_convT(ks[3], 128, 3)    # ae1 bwd : ConvT(128,3,2,2)
    p["wt2"], p["bt2"] = _init_convT(ks[4], 256, 128)  # ae2 bwd : ConvT(256,128,2,2)
    p["wt3"], p["bt3"] = _init_convT(ks[5], 512, 256)  # ae3 bwd : ConvT(512,256,2,2)
    return p


if __name__ == "__main__":
    key = jax.random.PRNGKey(0)
    kx, kp, kn = jax.random.split(key, 3)
    params = init_params(kp)

    fwd = jax.jit(stacked_autoencoder_forward, static_argnames=("batch_tile",))
    ref = jax.jit(stacked_autoencoder_reference)

    # --- small demo batch (single grid step) -------------------------------
    x = jax.random.normal(kx, (2, 3, 16, 16), F32)     # NCHW
    a3, x_rec = fwd(params, x, kn)
    jax.block_until_ready((a3, x_rec))
    assert a3.shape == (2, 512, 2, 2), a3.shape
    assert x_rec.shape == (2, 3, 16, 16), x_rec.shape

    a3_ref, x_rec_ref = ref(params, x, kn)
    err_a3 = float(jnp.max(jnp.abs(a3 - a3_ref)))
    err_rec = float(jnp.max(jnp.abs(x_rec - x_rec_ref)))
    assert jnp.allclose(a3, a3_ref, atol=2e-2, rtol=2e-2), err_a3
    assert jnp.allclose(x_rec, x_rec_ref, atol=2e-2, rtol=2e-2), err_rec

    # --- multi-step grid + batch-padding path (N=6, tile=4 -> grid=(2,)) ----
    x2 = jax.random.normal(jax.random.PRNGKey(1), (6, 3, 16, 16), F32)
    a3b, recb = fwd(params, x2, kn, batch_tile=4)
    jax.block_until_ready((a3b, recb))
    a3b_ref, recb_ref = ref(params, x2, kn)
    assert jnp.allclose(a3b, a3b_ref, atol=2e-2, rtol=2e-2), \
        float(jnp.max(jnp.abs(a3b - a3b_ref)))
    assert jnp.allclose(recb, recb_ref, atol=2e-2, rtol=2e-2), \
        float(jnp.max(jnp.abs(recb - recb_ref)))

    print("KERNEL_OK")
</pallas_src>

<mosaic_0001>
module attributes {stable_mosaic.version = 11 : i64} {
  func.func @_fused_sae_kernel(%arg0: i32, %arg1: memref<128x12xbf16, #tpu.memory_space<vmem>>, %arg2: memref<128x128xbf16, #tpu.memory_space<vmem>>, %arg3: memref<32x256xbf16, #tpu.memory_space<vmem>>, %arg4: memref<12x128xbf16, #tpu.memory_space<vmem>>, %arg5: memref<1x128xf32, #tpu.memory_space<vmem>>, %arg6: memref<512x256xbf16, #tpu.memory_space<vmem>>, %arg7: memref<1x256xf32, #tpu.memory_space<vmem>>, %arg8: memref<1024x512xbf16, #tpu.memory_space<vmem>>, %arg9: memref<1x512xf32, #tpu.memory_space<vmem>>, %arg10: memref<512x1024xbf16, #tpu.memory_space<vmem>>, %arg11: memref<1x1024xf32, #tpu.memory_space<vmem>>, %arg12: memref<256x512xbf16, #tpu.memory_space<vmem>>, %arg13: memref<1x512xf32, #tpu.memory_space<vmem>>, %arg14: memref<2048x192xbf16, #tpu.memory_space<vmem>>, %arg15: memref<1x192xf32, #tpu.memory_space<vmem>>, %arg16: memref<8x512xf32, #tpu.memory_space<vmem>>, %arg17: memref<8x192xbf16, #tpu.memory_space<vmem>>) attributes {dimension_semantics = [#tpu.dimension_semantics<parallel>], iteration_bounds = array<i64: 1>, scalar_prefetch = 0 : i64, scratch_operands = 0 : i64, tpu.core_type = #tpu.core_type<tc>, window_params = [{transform_indices = @transform_0, window_bounds = array<i64: 128, 12>}, {transform_indices = @transform_1, window_bounds = array<i64: 128, 128>}, {transform_indices = @transform_2, window_bounds = array<i64: 32, 256>}, {pipeline_mode = #tpu.pipeline_mode<synchronous>, transform_indices = @transform_3, window_bounds = array<i64: 12, 128>}, {pipeline_mode = #tpu.pipeline_mode<synchronous>, transform_indices = @transform_4, window_bounds = array<i64: 1, 128>}, {pipeline_mode = #tpu.pipeline_mode<synchronous>, transform_indices = @transform_5, window_bounds = array<i64: 512, 256>}, {pipeline_mode = #tpu.pipeline_mode<synchronous>, transform_indices = @transform_6, window_bounds = array<i64: 1, 256>}, {pipeline_mode = #tpu.pipeline_mode<synchronous>, transform_indices = @transform_7, window_bounds = array<i64: 1024, 512>}, {pipeline_mode = #tpu.pipeline_mode<synchronous>, transform_indices = @transform_8, window_bounds = array<i64: 1, 512>}, {pipeline_mode = #tpu.pipeline_mode<synchronous>, transform_indices = @transform_9, window_bounds = array<i64: 512, 1024>}, {pipeline_mode = #tpu.pipeline_mode<synchronous>, transform_indices = @transform_10, window_bounds = array<i64: 1, 1024>}, {pipeline_mode = #tpu.pipeline_mode<synchronous>, transform_indices = @transform_11, window_bounds = array<i64: 256, 512>}, {pipeline_mode = #tpu.pipeline_mode<synchronous>, transform_indices = @transform_12, window_bounds = array<i64: 1, 512>}, {pipeline_mode = #tpu.pipeline_mode<synchronous>, transform_indices = @transform_13, window_bounds = array<i64: 2048, 192>}, {pipeline_mode = #tpu.pipeline_mode<synchronous>, transform_indices = @transform_14, window_bounds = array<i64: 1, 192>}, {transform_indices = @transform_15, window_bounds = array<i64: 8, 512>}, {transform_indices = @transform_16, window_bounds = array<i64: 8, 192>}]} {
    %c0 = arith.constant 0 : index
    %c0_0 = arith.constant 0 : index
    %0 = vector.load %arg1[%c0, %c0_0] : memref<128x12xbf16, #tpu.memory_space<vmem>>, vector<128x12xbf16>
    %c0_1 = arith.constant 0 : index
    %c0_2 = arith.constant 0 : index
    %1 = vector.load %arg4[%c0_1, %c0_2] : memref<12x128xbf16, #tpu.memory_space<vmem>>, vector<12x128xbf16>
    %cst = arith.constant dense<0.000000e+00> : vector<128x128xf32>
    %2 = tpu.matmul %0, %1, %cst {dimension_numbers = #tpu.dot_dimension_numbers<[1], [0], [0], [1], [0, 0, 1, 1], [], []>} : vector<128x12xbf16>, vector<12x128xbf16>, vector<128x128xf32> -> vector<128x128xf32>
    %c0_3 = arith.constant 0 : index
    %c0_4 = arith.constant 0 : index
    %3 = vector.load %arg5[%c0_3, %c0_4] : memref<1x128xf32, #tpu.memory_space<vmem>>, vector<1x128xf32>
    %4 = vector.broadcast %3 : vector<1x128xf32> to vector<128x128xf32>
    %5 = arith.addf %2, %4 : vector<128x128xf32>
    %cst_5 = arith.constant 0.000000e+00 : f32
    %6 = vector.broadcast %cst_5 : f32 to vector<128x128xf32>
    %7 = arith.maximumf %5, %6 : vector<128x128xf32>
    %c0_6 = arith.constant 0 : index
    %c0_7 = arith.constant 0 : index
    %8 = vector.load %arg2[%c0_6, %c0_7] : memref<128x128xbf16, #tpu.memory_space<vmem>>, vector<128x128xbf16>
    %9 = arith.extf %8 : vector<128x128xbf16> to vector<128x128xf32>
    %10 = arith.mulf %7, %9 : vector<128x128xf32>
    %11 = arith.truncf %10 : vector<128x128xf32> to vector<128x128xbf16>
    %12 = vector.extract_strided_slice %11 {offsets = [0, 0], sizes = [32, 128], strides = [1, 1]} : vector<128x128xbf16> to vector<32x128xbf16>
    %13 = vector.extract_strided_slice %11 {offsets = [32, 0], sizes = [32, 128], strides = [1, 1]} : vector<128x128xbf16> to vector<32x128xbf16>
    %14 = vector.extract_strided_slice %11 {offsets = [64, 0], sizes = [32, 128], strides = [1, 1]} : vector<128x128xbf16> to vector<32x128xbf16>
    %15 = vector.extract_strided_slice %11 {offsets = [96, 0], sizes = [32, 128], strides = [1, 1]} : vector<128x128xbf16> to vector<32x128xbf16>
    %16 = tpu.concatenate %12, %13, %14, %15 in 1 : vector<32x128xbf16>, vector<32x128xbf16>, vector<32x128xbf16>, vector<32x128xbf16> -> vector<32x512xbf16>
    %c0_8 = arith.constant 0 : index
    %c0_9 = arith.constant 0 : index
    %17 = vector.load %arg6[%c0_8, %c0_9] : memref<512x256xbf16, #tpu.memory_space<vmem>>, vector<512x256xbf16>
    %cst_10 = arith.constant dense<0.000000e+00> : vector<32x256xf32>
    %18 = tpu.matmul %16, %17, %cst_10 {dimension_numbers = #tpu.dot_dimension_numbers<[1], [0], [0], [1], [0, 0, 1, 1], [], []>} : vector<32x512xbf16>, vector<512x256xbf16>, vector<32x256xf32> -> vector<32x256xf32>
    %c0_11 = arith.constant 0 : index
    %c0_12 = arith.constant 0 : index
    %19 = vector.load %arg7[%c0_11, %c0_12] : memref<1x256xf32, #tpu.memory_space<vmem>>, vector<1x256xf32>
    %20 = vector.broadcast %19 : vector<1x256xf32> to vector<32x256xf32>
    %21 = arith.addf %18, %20 : vector<32x256xf32>
    %cst_13 = arith.constant 0.000000e+00 : f32
    %22 = vector.broadcast %cst_13 : f32 to vector<32x256xf32>
    %23 = arith.maximumf %21, %22 : vector<32x256xf32>
    %c0_14 = arith.constant 0 : index
    %c0_15 = arith.constant 0 : index
    %24 = vector.load %arg3[%c0_14, %c0_15] : memref<32x256xbf16, #tpu.memory_space<vmem>>, vector<32x256xbf16>
    %25 = arith.extf %24 : vector<32x256xbf16> to vector<32x256xf32>
    %26 = arith.mulf %23, %25 : vector<32x256xf32>
    %27 = arith.truncf %26 : vector<32x256xf32> to vector<32x256xbf16>
    %28 = vector.extract_strided_slice %27 {offsets = [0, 0], sizes = [8, 256], strides = [1, 1]} : vector<32x256xbf16> to vector<8x256xbf16>
    %29 = vector.extract_strided_slice %27 {offsets = [8, 0], sizes = [8, 256], strides = [1, 1]} : vector<32x256xbf16> to vector<8x256xbf16>
    %30 = vector.extract_strided_slice %27 {offsets = [16, 0], sizes = [8, 256], strides = [1, 1]} : vector<32x256xbf16> to vector<8x256xbf16>
    %31 = vector.extract_strided_slice %27 {offsets = [24, 0], sizes = [8, 256], strides = [1, 1]} : vector<32x256xbf16> to vector<8x256xbf16>
    %32 = tpu.concatenate %28, %29, %30, %31 in 1 : vector<8x256xbf16>, vector<8x256xbf16>, vector<8x256xbf16>, vector<8x256xbf16> -> vector<8x1024xbf16>
    %c0_16 = arith.constant 0 : index
    %c0_17 = arith.constant 0 : index
    %33 = vector.load %arg8[%c0_16, %c0_17] : memref<1024x512xbf16, #tpu.memory_space<vmem>>, vector<1024x512xbf16>
    %cst_18 = arith.constant dense<0.000000e+00> : vector<8x512xf32>
    %34 = tpu.matmul %32, %33, %cst_18 {dimension_numbers = #tpu.dot_dimension_numbers<[1], [0], [0], [1], [0, 0, 1, 1], [], []>} : vector<8x1024xbf16>, vector<1024x512xbf16>, vector<8x512xf32> -> vector<8x512xf32>
    %c0_19 = arith.constant 0 : index
    %c0_20 = arith.constant 0 : index
    %35 = vector.load %arg9[%c0_19, %c0_20] : memref<1x512xf32, #tpu.memory_space<vmem>>, vector<1x512xf32>
    %36 = vector.broadcast %35 : vector<1x512xf32> to vector<8x512xf32>
    %37 = arith.addf %34, %36 : vector<8x512xf32>
    %cst_21 = arith.constant 0.000000e+00 : f32
    %38 = vector.broadcast %cst_21 : f32 to vector<8x512xf32>
    %39 = arith.maximumf %37, %38 : vector<8x512xf32>
    %c0_22 = arith.constant 0 : index
    %c0_23 = arith.constant 0 : index
    %40 = vector.load %arg16[%c0_22, %c0_23] : memref<8x512xf32, #tpu.memory_space<vmem>>, vector<8x512xf32>
    tpu.vector_store %arg16[%c0_22, %c0_23], %39 {strides = array<i32>} : memref<8x512xf32, #tpu.memory_space<vmem>>, vector<8x512xf32>,
    %41 = arith.truncf %39 : vector<8x512xf32> to vector<8x512xbf16>
    %c0_24 = arith.constant 0 : index
    %c0_25 = arith.constant 0 : index
    %42 = vector.load %arg10[%c0_24, %c0_25] : memref<512x1024xbf16, #tpu.memory_space<vmem>>, vector<512x1024xbf16>
    %cst_26 = arith.constant dense<0.000000e+00> : vector<8x1024xf32>
    %43 = tpu.matmul %41, %42, %cst_26 {dimension_numbers = #tpu.dot_dimension_numbers<[1], [0], [0], [1], [0, 0, 1, 1], [], []>} : vector<8x512xbf16>, vector<512x1024xbf16>, vector<8x1024xf32> -> vector<8x1024xf32>
    %c0_27 = arith.constant 0 : index
    %c0_28 = arith.constant 0 : index
    %44 = vector.load %arg11[%c0_27, %c0_28] : memref<1x1024xf32, #tpu.memory_space<vmem>>, vector<1x1024xf32>
    %45 = vector.broadcast %44 : vector<1x1024xf32> to vector<8x1024xf32>
    %46 = arith.addf %43, %45 : vector<8x1024xf32>
    %cst_29 = arith.constant 0.000000e+00 : f32
    %47 = vector.broadcast %cst_29 : f32 to vector<8x1024xf32>
    %48 = arith.maximumf %46, %47 : vector<8x1024xf32>
    %49 = arith.truncf %48 : vector<8x1024xf32> to vector<8x1024xbf16>
    %50 = vector.extract_strided_slice %49 {offsets = [0, 0], sizes = [8, 256], strides = [1, 1]} : vector<8x1024xbf16> to vector<8x256xbf16>
    %51 = vector.extract_strided_slice %49 {offsets = [0, 256], sizes = [8, 256], strides = [1, 1]} : vector<8x1024xbf16> to vector<8x256xbf16>
    %52 = vector.extract_strided_slice %49 {offsets = [0, 512], sizes = [8, 256], strides = [1, 1]} : vector<8x1024xbf16> to vector<8x256xbf16>
    %53 = vector.extract_strided_slice %49 {offsets = [0, 768], sizes = [8, 256], strides = [1, 1]} : vector<8x1024xbf16> to vector<8x256xbf16>
    %54 = tpu.concatenate %50, %51, %52, %53 in 0 : vector<8x256xbf16>, vector<8x256xbf16>, vector<8x256xbf16>, vector<8x256xbf16> -> vector<32x256xbf16>
    %c0_30 = arith.constant 0 : index
    %c0_31 = arith.constant 0 : index
    %55 = vector.load %arg12[%c0_30, %c0_31] : memref<256x512xbf16, #tpu.memory_space<vmem>>, vector<256x512xbf16>
    %cst_32 = arith.constant dense<0.000000e+00> : vector<32x512xf32>
    %56 = tpu.matmul %54, %55, %cst_32 {dimension_numbers = #tpu.dot_dimension_numbers<[1], [0], [0], [1], [0, 0, 1, 1], [], []>} : vector<32x256xbf16>, vector<256x512xbf16>, vector<32x512xf32> -> vector<32x512xf32>
    %c0_33 = arith.constant 0 : index
    %c0_34 = arith.constant 0 : index
    %57 = vector.load %arg13[%c0_33, %c0_34] : memref<1x512xf32, #tpu.memory_space<vmem>>, vector<1x512xf32>
    %58 = vector.broadcast %57 : vector<1x512xf32> to vector<32x512xf32>
    %59 = arith.addf %56, %58 : vector<32x512xf32>
    %cst_35 = arith.constant 0.000000e+00 : f32
    %60 = vector.broadcast %cst_35 : f32 to vector<32x512xf32>
    %61 = arith.maximumf %59, %60 : vector<32x512xf32>
    %62 = arith.truncf %61 : vector<32x512xf32> to vector<32x512xbf16>
    %63 = vector.extract_strided_slice %62 {offsets = [0, 0], sizes = [8, 128], strides = [1, 1]} : vector<32x512xbf16> to vector<8x128xbf16>
    %64 = vector.extract_strided_slice %62 {offsets = [0, 128], sizes = [8, 128], strides = [1, 1]} : vector<32x512xbf16> to vector<8x128xbf16>
    %65 = vector.extract_strided_slice %62 {offsets = [0, 256], sizes = [8, 128], strides = [1, 1]} : vector<32x512xbf16> to vector<8x128xbf16>
    %66 = vector.extract_strided_slice %62 {offsets = [0, 384], sizes = [8, 128], strides = [1, 1]} : vector<32x512xbf16> to vector<8x128xbf16>
    %67 = vector.extract_strided_slice %62 {offsets = [8, 0], sizes = [8, 128], strides = [1, 1]} : vector<32x512xbf16> to vector<8x128xbf16>
    %68 = vector.extract_strided_slice %62 {offsets = [8, 128], sizes = [8, 128], strides = [1, 1]} : vector<32x512xbf16> to vector<8x128xbf16>
    %69 = vector.extract_strided_slice %62 {offsets = [8, 256], sizes = [8, 128], strides = [1, 1]} : vector<32x512xbf16> to vector<8x128xbf16>
    %70 = vector.extract_strided_slice %62 {offsets = [8, 384], sizes = [8, 128], strides = [1, 1]} : vector<32x512xbf16> to vector<8x128xbf16>
    %71 = vector.extract_strided_slice %62 {offsets = [16, 0], sizes = [8, 128], strides = [1, 1]} : vector<32x512xbf16> to vector<8x128xbf16>
    %72 = vector.extract_strided_slice %62 {offsets = [16, 128], sizes = [8, 128], strides = [1, 1]} : vector<32x512xbf16> to vector<8x128xbf16>
    %73 = vector.extract_strided_slice %62 {offsets = [16, 256], sizes = [8, 128], strides = [1, 1]} : vector<32x512xbf16> to vector<8x128xbf16>
    %74 = vector.extract_strided_slice %62 {offsets = [16, 384], sizes = [8, 128], strides = [1, 1]} : vector<32x512xbf16> to vector<8x128xbf16>
    %75 = vector.extract_strided_slice %62 {offsets = [24, 0], sizes = [8, 128], strides = [1, 1]} : vector<32x512xbf16> to vector<8x128xbf16>
    %76 = vector.extract_strided_slice %62 {offsets = [24, 128], sizes = [8, 128], strides = [1, 1]} : vector<32x512xbf16> to vector<8x128xbf16>
    %77 = vector.extract_strided_slice %62 {offsets = [24, 256], sizes = [8, 128], strides = [1, 1]} : vector<32x512xbf16> to vector<8x128xbf16>
    %78 = vector.extract_strided_slice %62 {offsets = [24, 384], sizes = [8, 128], strides = [1, 1]} : vector<32x512xbf16> to vector<8x128xbf16>
    %79 = tpu.concatenate %63, %64, %65, %66, %67, %68, %69, %70, %71, %72, %73, %74, %75, %76, %77, %78 in 1 : vector<8x128xbf16>, vector<8x128xbf16>, vector<8x128xbf16>, vector<8x128xbf16>, vector<8x128xbf16>, vector<8x128xbf16>, vector<8x128xbf16>, vector<8x128xbf16>, vector<8x128xbf16>, vector<8x128xbf16>, vector<8x128xbf16>, vector<8x128xbf16>, vector<8x128xbf16>, vector<8x128xbf16>, vector<8x128xbf16>, vector<8x128xbf16> -> vector<8x2048xbf16>
    %c0_36 = arith.constant 0 : index
    %c0_37 = arith.constant 0 : index
    %80 = vector.load %arg14[%c0_36, %c0_37] : memref<2048x192xbf16, #tpu.memory_space<vmem>>, vector<2048x192xbf16>
    %cst_38 = arith.constant dense<0.000000e+00> : vector<8x192xf32>
    %81 = tpu.matmul %79, %80, %cst_38 {dimension_numbers = #tpu.dot_dimension_numbers<[1], [0], [0], [1], [0, 0, 1, 1], [], []>} : vector<8x2048xbf16>, vector<2048x192xbf16>, vector<8x192xf32> -> vector<8x192xf32>
    %c0_39 = arith.constant 0 : index
    %c0_40 = arith.constant 0 : index
    %82 = vector.load %arg15[%c0_39, %c0_40] : memref<1x192xf32, #tpu.memory_space<vmem>>, vector<1x192xf32>
    %83 = vector.broadcast %82 : vector<1x192xf32> to vector<8x192xf32>
    %84 = arith.addf %81, %83 : vector<8x192xf32>
    %cst_41 = arith.constant 0.000000e+00 : f32
    %85 = vector.broadcast %cst_41 : f32 to vector<8x192xf32>
    %86 = arith.maximumf %84, %85 : vector<8x192xf32>
    %87 = arith.truncf %86 : vector<8x192xf32> to vector<8x192xbf16>
    %c0_42 = arith.constant 0 : index
    %c0_43 = arith.constant 0 : index
    %88 = vector.load %arg17[%c0_42, %c0_43] : memref<8x192xbf16, #tpu.memory_space<vmem>>, vector<8x192xbf16>
    tpu.vector_store %arg17[%c0_42, %c0_43], %87 {strides = array<i32>} : memref<8x192xbf16, #tpu.memory_space<vmem>>, vector<8x192xbf16>,
    return
  }
  func.func @transform_0(%arg0: i32) -> (i32, i32) {
    %c0_i32 = arith.constant 0 : i32
    %c0_i32_0 = arith.constant 0 : i32
    return %arg0, %c0_i32 : i32, i32
  }
  func.func @transform_1(%arg0: i32) -> (i32, i32) {
    %c0_i32 = arith.constant 0 : i32
    %c0_i32_0 = arith.constant 0 : i32
    return %arg0, %c0_i32 : i32, i32
  }
  func.func @transform_2(%arg0: i32) -> (i32, i32) {
    %c0_i32 = arith.constant 0 : i32
    %c0_i32_0 = arith.constant 0 : i32
    return %arg0, %c0_i32 : i32, i32
  }
  func.func @transform_3(%arg0: i32) -> (i32, i32) {
    %c0_i32 = arith.constant 0 : i32
    %c0_i32_0 = arith.constant 0 : i32
    %c0_i32_1 = arith.constant 0 : i32
    return %c0_i32, %c0_i32_0 : i32, i32
  }
  func.func @transform_4(%arg0: i32) -> (i32, i32) {
    %c0_i32 = arith.constant 0 : i32
    %c0_i32_0 = arith.constant 0 : i32
    %c0_i32_1 = arith.constant 0 : i32
    return %c0_i32, %c0_i32_0 : i32, i32
  }
  func.func @transform_5(%arg0: i32) -> (i32, i32) {
    %c0_i32 = arith.constant 0 : i32
    %c0_i32_0 = arith.constant 0 : i32
    %c0_i32_1 = arith.constant 0 : i32
    return %c0_i32, %c0_i32_0 : i32, i32
  }
  func.func @transform_6(%arg0: i32) -> (i32, i32) {
    %c0_i32 = arith.constant 0 : i32
    %c0_i32_0 = arith.constant 0 : i32
    %c0_i32_1 = arith.constant 0 : i32
    return %c0_i32, %c0_i32_0 : i32, i32
  }
  func.func @transform_7(%arg0: i32) -> (i32, i32) {
    %c0_i32 = arith.constant 0 : i32
    %c0_i32_0 = arith.constant 0 : i32
    %c0_i32_1 = arith.constant 0 : i32
    return %c0_i32, %c0_i32_0 : i32, i32
  }
  func.func @transform_8(%arg0: i32) -> (i32, i32) {
    %c0_i32 = arith.constant 0 : i32
    %c0_i32_0 = arith.constant 0 : i32
    %c0_i32_1 = arith.constant 0 : i32
    return %c0_i32, %c0_i32_0 : i32, i32
  }
  func.func @transform_9(%arg0: i32) -> (i32, i32) {
    %c0_i32 = arith.constant 0 : i32
    %c0_i32_0 = arith.constant 0 : i32
    %c0_i32_1 = arith.constant 0 : i32
    return %c0_i32, %c0_i32_0 : i32, i32
  }
  func.func @transform_10(%arg0: i32) -> (i32, i32) {
    %c0_i32 = arith.constant 0 : i32
    %c0_i32_0 = arith.constant 0 : i32
    %c0_i32_1 = arith.constant 0 : i32
    return %c0_i32, %c0_i32_0 : i32, i32
  }
  func.func @transform_11(%arg0: i32) -> (i32, i32) {
    %c0_i32 = arith.constant 0 : i32
    %c0_i32_0 = arith.constant 0 : i32
    %c0_i32_1 = arith.constant 0 : i32
    return %c0_i32, %c0_i32_0 : i32, i32
  }
  func.func @transform_12(%arg0: i32) -> (i32, i32) {
    %c0_i32 = arith.constant 0 : i32
    %c0_i32_0 = arith.constant 0 : i32
    %c0_i32_1 = arith.constant 0 : i32
    return %c0_i32, %c0_i32_0 : i32, i32
  }
  func.func @transform_13(%arg0: i32) -> (i32, i32) {
    %c0_i32 = arith.constant 0 : i32
    %c0_i32_0 = arith.constant 0 : i32
    %c0_i32_1 = arith.constant 0 : i32
    return %c0_i32, %c0_i32_0 : i32, i32
  }
  func.func @transform_14(%arg0: i32) -> (i32, i32) {
    %c0_i32 = arith.constant 0 : i32
    %c0_i32_0 = arith.constant 0 : i32
    %c0_i32_1 = arith.constant 0 : i32
    return %c0_i32, %c0_i32_0 : i32, i32
  }
  func.func @transform_15(%arg0: i32) -> (i32, i32) {
    %c0_i32 = arith.constant 0 : i32
    %c0_i32_0 = arith.constant 0 : i32
    return %arg0, %c0_i32 : i32, i32
  }
  func.func @transform_16(%arg0: i32) -> (i32, i32) {
    %c0_i32 = arith.constant 0 : i32
    %c0_i32_0 = arith.constant 0 : i32
    return %arg0, %c0_i32 : i32, i32
  }
}

</mosaic_0001>

<bundles_post_ra>
// kernel: mul.84
= control target key start
LH: loop header
LB: loop body
LE: loop exit
PB: predicated region body
PF: predicated region fallthrough
CT: control target
= control target key end

     0   :  { %s72_s0 = inlined_call_operand.vmem [shape: f32[128,2,2,3], index: 0, kind: input, shape index: {}]   ;;  %s73_s1 = inlined_call_operand.vmem [shape: f32[128,12], index: 1, kind: output, shape index: {}]  }
   0x1   :  { %v32_v0 = vld [vmem:[%s72_s0 + $0xc] sm:$0xf]  ;;  %v33_v1 = vld [vmem:[%s72_s0 + $0x8] sm:$0xf]  ;;  %v34_v2 = vld [vmem:[%s72_s0 + $0x4] sm:$0xf] }
   0x2   :  { %7 = vst [vmem:[#allocation0 + $0x8] sm:$0xf] %v32_v0  ;;  %v16_v3 = vld [vmem:[%s72_s0] sm:$0xf] }
   0x3   :  { %11 = vst [vmem:[#allocation0 + $0x18] sm:$0xf] %v33_v1 }
   0x4   :  { %15 = vst [vmem:[#allocation0] sm:$0xf] %v34_v2 }
   0x5   :  { %17 = vst [vmem:[#allocation0 + $0x10] sm:$0xf] %v16_v3 }
   0x9   :  { %v29_v4 = vld [vmem:[#allocation0 + $0x8] sm:$0x7]  }
   0xa   :  { %v25_v5 = vld [vmem:[#allocation0 + $0x18] sm:$0x7]   ;;  %37 = vst [vmem:[%s73_s1 + $0x9] sm:$0x7] %v29_v4  }
   0xb   :  { %v21_v6 = vld [vmem:[#allocation0] sm:$0x7]   ;;  %36 = vst [vmem:[%s73_s1 + $0x6] sm:$0x7] %v25_v5  }
   0xc   :  { %v18_v7 = vld [vmem:[#allocation0 + $0x10] sm:$0x7]   ;;  %35 = vst [vmem:[%s73_s1 + $0x3] sm:$0x7] %v21_v6  }
   0xd   :  { %19 = vst [vmem:[%s73_s1] sm:$0x7] %v18_v7  }

// kernel: tile.28
= control target key start
LH: loop header
LB: loop body
LE: loop exit
PB: predicated region body
PF: predicated region fallthrough
CT: control target
= control target key end

     0   :  { %s64_s0 = inlined_call_operand.vmem [shape: f32[3], index: 0, kind: input, shape index: {}]   ;;  %s65_s1 = inlined_call_operand.vmem [shape: f32[64,3], index: 1, kind: output, shape index: {}]  }
   0x1   :  { %v4_v0 = vld [vmem:[%s64_s0] ss:$0 sm:$0xff] }
   0x2   :  { %5 = vst [vmem:[%s65_s1] sm:$0xff] %v4_v0 }
   0x3   :  { %20 = vst [vmem:[%s65_s1 + $0x8] sm:$0xff] %v4_v0 }
   0x4   :  { %21 = vst [vmem:[%s65_s1 + $0x10] sm:$0xff] %v4_v0 }
   0x5   :  { %22 = vst [vmem:[%s65_s1 + $0x18] sm:$0xff] %v4_v0 }
   0x6   :  { %23 = vst [vmem:[%s65_s1 + $0x20] sm:$0xff] %v4_v0 }
   0x7   :  { %24 = vst [vmem:[%s65_s1 + $0x28] sm:$0xff] %v4_v0 }
   0x8   :  { %25 = vst [vmem:[%s65_s1 + $0x30] sm:$0xff] %v4_v0 }
   0x9   :  { %26 = vst [vmem:[%s65_s1 + $0x38] sm:$0xff] %v4_v0 }

// kernel: tile.29
= control target key start
LH: loop header
LB: loop body
LE: loop exit
PB: predicated region body
PF: predicated region fallthrough
CT: control target
= control target key end

     0   :  { %vm9_vm0 = vcmask 15360   ;;  %s551_s12 = smov 126   ;;  %s552_s13 = smov 120   ;;  %vm3_vm1 = vcmask 23552   ;;  %vm13_vm2 = vcmask 7168   ;;  %vm16_vm3 = vcmask 1048560   ;;  %s825_s0 = inlined_call_operand.vmem [shape: f32[64,3], index: 0, kind: input, shape index: {}]   ;;  %s826_s1 = inlined_call_operand.vmem [shape: f32[1,192], index: 1, kind: output, shape index: {}]  }
   0x1   :  { %v423_v0 = vld [vmem:[%s825_s0 + $0x2a] sm:$0x1]   ;;  %v426_v3 = vld [vmem:[%s825_s0 + $0x28] sm:$0x1]   ;;  %v428_v4 = vld [vmem:[%s825_s0 + $0x26] sm:$0x1]  }
   0x2   :  { %v424_v1 = vld [vmem:[%s825_s0 + $0x2a] sm:$0x1]   ;;  %26 = vrot.lane.b32.xlu1 %v426_v3, %s552_s13  ;;  %s553_s16 = smov 114   ;;  %v425_v5 = vld [vmem:[%s825_s0 + $0x29] sm:$0x1]   ;;  %s554_s21 = smov 123  }
   0x3   :  { %v10_v2 = vsel %vm9_vm0, %v424_v1, %v423_v0  ;;  %38 = vrot.lane.b32.xlu2 %v428_v4, %s553_s16  ;;  %v427_v6 = vld [vmem:[%s825_s0 + $0x27] sm:$0x1]   ;;  %s555_s22 = smov 117   ;;  %v429_v7 = vld [vmem:[%s825_s0 + $0x25] sm:$0x1]   ;;  %s556_s25 = smov 111  }
   0x4   :  { %11 = vrot.lane.b32.xlu0 %v10_v2, %s551_s12  ;;  %v430_v8 = vld [vmem:[%s825_s0 + $0x24] sm:$0x1]   ;;  %v431_v9 = vld [vmem:[%s825_s0 + $0x23] sm:$0x1]   ;;  %s557_s30 = smov 108   ;;  %s558_s2 = smov 105  }
   0x5   :  { %v432_v10 = vld [vmem:[%s825_s0 + $0x22] sm:$0x1]   ;;  %s559_s5 = smov 102   ;;  %v433_v11 = vld [vmem:[%s825_s0 + $0x21] sm:$0x1]   ;;  %s560_s10 = smov 99  }
   0x6   :  { %v434_v12 = vld [vmem:[%s825_s0 + $0x20] sm:$0x1]   ;;  %s561_s11 = smov 96   ;;  %v435_v13 = vld [vmem:[%s825_s0 + $0x1f] sm:$0x1]   ;;  %s562_s14 = smov 93  }
   0x7   :  { %v436_v14 = vld [vmem:[%s825_s0 + $0x1e] sm:$0x1]   ;;  %v437_v15 = vld [vmem:[%s825_s0 + $0x1d] sm:$0x1]   ;;  %s563_s19 = smov 90   ;;  %s564_s20 = smov 87  }
   0x8   :  { %v438_v16 = vld [vmem:[%s825_s0 + $0x1c] sm:$0x1]   ;;  %s565_s23 = smov 84   ;;  %v439_v17 = vld [vmem:[%s825_s0 + $0x1b] sm:$0x1]   ;;  %s566_s28 = smov 81  }
   0x9   :  { %v440_v18 = vld [vmem:[%s825_s0 + $0x1a] sm:$0x1]   ;;  %s567_s29 = smov 78   ;;  %v441_v19 = vld [vmem:[%s825_s0 + $0x19] sm:$0x1]   ;;  %s568_s3 = smov 75  }
   0xa   :  { %32 = vrot.lane.b32.xlu1 %v427_v6, %s555_s22  ;;  %v442_v20 = vld [vmem:[%s825_s0 + $0x18] sm:$0x1]   ;;  %v443_v21 = vld [vmem:[%s825_s0 + $0x17] sm:$0x1]   ;;  %s569_s8 = smov 72   ;;  %s570_s9 = smov 69  }
   0xb   :  { %44 = vrot.lane.b32.xlu2 %v429_v7, %s556_s25  ;;  %v444_v22 = vld [vmem:[%s825_s0 + $0x16] sm:$0x1]   ;;  %s571_s12 = smov 66   ;;  %v445_v23 = vld [vmem:[%s825_s0 + $0x15] sm:$0x1]   ;;  %s572_s17 = smov 63  }
   0xc   :  { %20 = vrot.lane.b32.xlu0 %v425_v5, %s554_s21  ;;  %v446_v24 = vld [vmem:[%s825_s0 + $0x3f] sm:$0x1]   ;;  %s573_s18 = smov 61   ;;  %v447_v25 = vld [vmem:[%s825_s0 + $0x14] sm:$0x1]   ;;  %s574_s21 = smov 60  }
   0xd   :  { %v448_v26 = vld [vmem:[%s825_s0 + $0x3e] sm:$0x1]   ;;  %v449_v27 = vld [vmem:[%s825_s0 + $0x13] sm:$0x1]   ;;  %s575_s26 = smov 58   ;;  %s576_s27 = smov 57  }
   0xe   :  { %v450_v28 = vld [vmem:[%s825_s0 + $0x3d] sm:$0x1]   ;;  %v451_v29 = vld [vmem:[%s825_s0 + $0x12] sm:$0x1]   ;;  %v452_v30 = vld [vmem:[%s825_s0 + $0x3c] sm:$0x1]  }
   0xf   :  { %s578_s6 = smov 54   ;;  %s579_s7 = smov 52   ;;  %v453_v31 = vld [vmem:[%s825_s0 + $0x11] sm:$0x1]   ;;  %v454_v32 = vld [vmem:[%s825_s0 + $0x3b] sm:$0x1]  }
  0x10   :  { %v455_v33 = vld [vmem:[%s825_s0 + $0x10] sm:$0x1]   ;;  %s581_s15 = smov 49   ;;  %s582_s16 = smov 48   ;;  %v456_v34 = vld [vmem:[%s825_s0 + $0x3a] sm:$0x1]  }
  0x11   :  { %v2_v35 = vld [vmem:[%s825_s0] sm:$0x1]   ;;  %v457_v36 = vld [vmem:[%s825_s0 + $0xf] sm:$0x1]   ;;  %v458_v37 = vld [vmem:[%s825_s0 + $0x39] sm:$0x1]  }
  0x12   :  { %56 = vrot.lane.b32.xlu1 %v431_v9, %s558_s2  ;;  %4 = vst.msk [vmem:[#allocation0] sm:$0x1] %vm3_vm1, %v2_v35   ;;  %v459_v38 = vld [vmem:[%s825_s0 + $0xe] sm:$0x1]   ;;  %v460_v39 = vld [vmem:[%s825_s0 + $0x38] sm:$0x1]  }
  0x13   :  { %62 = vrot.lane.b32.xlu2 %v432_v10, %s559_s5  ;;  %v461_v40 = vld [vmem:[%s825_s0 + $0xd] sm:$0x1]   ;;  %v462_v42 = vld [vmem:[%s825_s0 + $0x37] sm:$0x1]   ;;  %v463_v43 = vld [vmem:[%s825_s0 + $0xc] sm:$0x1]  }
  0x14   :  { %50 = vrot.lane.b32.xlu0 %v430_v8, %s557_s30  ;;  %s577_s30 = smov 55   ;;  %v464_v44 = vld [vmem:[%s825_s0 + $0x36] sm:$0x1]   ;;  %v465_v46 = vld [vmem:[%s825_s0 + $0xb] sm:$0x1]   ;;  %s593_s24 = smov 31  }
  0x15   :  { %v466_v47 = vld [vmem:[%s825_s0 + $0x35] sm:$0x1]   ;;  %v467_v48 = vld [vmem:[%s825_s0 + $0xa] sm:$0x1]   ;;  %s594_s25 = smov 30   ;;  %s596_s4 = smov 27  }
  0x16   :  { %v468_v50 = vld [vmem:[%s825_s0 + $0x34] sm:$0x1]   ;;  %v469_v53 = vld [vmem:[%s825_s0 + $0x9] sm:$0x1]   ;;  %v470_v54 = vld [vmem:[%s825_s0 + $0x33] sm:$0x1]  }
  0x17   :  { %s597_s5 = smov 25   ;;  %vm22_vm4 = vcmask 1032152   ;;  %v471_v56 = vld [vmem:[%s825_s0 + $0x8] sm:$0x1]   ;;  %vm28_vm5 = vcmask 1007552   ;;  %vm34_vm6 = vcmask 982952  }
  0x18   :  { %vm40_vm7 = vcmask 958352   ;;  %vm46_vm8 = vcmask 933752   ;;  %v472_v59 = vld [vmem:[%s825_s0 + $0x32] sm:$0x1]   ;;  %v473_v60 = vld [vmem:[%s825_s0 + $0x7] sm:$0x1]  }
  0x19   :  { %s599_s13 = smov 22   ;;  %vm52_vm9 = vcmask 909152   ;;  %v474_v62 = vld [vmem:[%s825_s0 + $0x31] sm:$0x1]   ;;  %vm58_vm10 = vcmask 884552   ;;  %vm64_vm11 = vcmask 859952  }
  0x1a   :  { %74 = vrot.lane.b32.xlu1 %v434_v12, %s561_s11  ;;  %v475_v1 = vld [vmem:[%s825_s0 + $0x6] sm:$0x1]   ;;  %v476_v2 = vld [vmem:[%s825_s0 + $0x30] sm:$0x1]   ;;  %s602_s22 = smov 18   ;;  %vm70_vm12 = vcmask 835352  }
  0x1b   :  { %80 = vrot.lane.b32.xlu2 %v435_v13, %s562_s14  ;;  %s600_s14 = smov 21   ;;  %v477_v4 = vld [vmem:[%s825_s0 + $0x5] sm:$0x1]   ;;  %vm76_vm13 = vcmask 810752   ;;  %vm82_vm14 = vcmask 786152   ;;  %s605_s2 = smov 13  }
  0x1c   :  { %68 = vrot.lane.b32.xlu0 %v433_v11, %s560_s10  ;;  %s580_s10 = smov 51   ;;  %v478_v7 = vld [vmem:[%s825_s0 + $0x2f] sm:$0x1]   ;;  %v479_v8 = vld [vmem:[%s825_s0 + $0x4] sm:$0x1]   ;;  %vm88_vm15 = vcmask 761552  }
  0x1d   :  { %v480_v10 = vld [vmem:[%s825_s0 + $0x2e] sm:$0x1]   ;;  %vm94_vm0 = vcmask 736952   ;;  %vm100_vm1 = vcmask 712352   ;;  %v481_v13 = vld [vmem:[%s825_s0 + $0x3] sm:$0x1]  }
  0x1e   :  { %s608_s11 = smov 9  }
  0x22   :  { %92 = vrot.lane.b32.xlu1 %v437_v15, %s564_s20  ;;  %s611_s20 = smov 4  }
  0x23   :  { %98 = vrot.lane.b32.xlu2 %v438_v16, %s565_s23  ;;  %s603_s23 = smov 16   ;;  %v483_v16 = vld [vmem:[%s825_s0 + $0x2] sm:$0x1]  }
  0x24   :  { %86 = vrot.lane.b32.xlu0 %v436_v14, %s563_s19  ;;  %s592_s19 = smov 33   ;;  %v482_v14 = vld [vmem:[%s825_s0 + $0x2d] sm:$0x1]  }
  0x2a   :  { %110 = vrot.lane.b32.xlu1 %v440_v18, %s567_s29 }
  0x2b   :  { %116 = vrot.lane.b32.xlu2 %v441_v19, %s568_s3  ;;  %s606_s3 = smov 12   ;;  %v484_v19 = vld [vmem:[%s825_s0 + $0x2c] sm:$0x1]  }
  0x2c   :  { %104 = vrot.lane.b32.xlu0 %v439_v17, %s566_s28  ;;  %s595_s28 = smov 28  }
  0x32   :  { %128 = vrot.lane.b32.xlu1 %v443_v21, %s570_s9 }
  0x33   :  { %134 = vrot.lane.b32.xlu2 %v444_v22, %s571_s12  ;;  %s609_s12 = smov 7   ;;  %v486_v22 = vld [vmem:[%s825_s0 + $0x2b] sm:$0x1]  }
  0x34   :  { %122 = vrot.lane.b32.xlu0 %v442_v20, %s569_s8  ;;  %s598_s8 = smov 24   ;;  %v485_v20 = vld [vmem:[%s825_s0 + $0x1] sm:$0x1]   ;;  %s613_s0 = smov 1  }
  0x3a   :  { %146 = vrot.lane.b32.xlu1 %v446_v24, %s573_s18 }
  0x3b   :  { %153 = vrot.lane.b32.xlu2 %v447_v25, %s574_s21  ;;  %s583_s21 = smov 46  }
  0x3c   :  { %140 = vrot.lane.b32.xlu0 %v445_v23, %s572_s17  ;;  %s601_s17 = smov 19  }
  0x42   :  { %166 = vrot.lane.b32.xlu1 %v449_v27, %s576_s27  ;;  %s585_s27 = smov 43  }
  0x43   :  { %172 = vrot.lane.b32.xlu2 %v450_v28, %s577_s30  ;;  %s586_s30 = smov 42  }
  0x44   :  { %159 = vrot.lane.b32.xlu0 %v448_v26, %s575_s26  ;;  %s584_s26 = smov 45  }
  0x4a   :  { %185 = vrot.lane.b32.xlu1 %v452_v30, %s579_s7  ;;  %s588_s7 = smov 39  }
  0x4b   :  { %192 = vrot.lane.b32.xlu2 %v453_v31, %s580_s10  ;;  %s589_s10 = smov 37  }
  0x4c   :  { %179 = vrot.lane.b32.xlu0 %v451_v29, %s578_s6  ;;  %s587_s6 = smov 40  }
  0x52   :  { %205 = vrot.lane.b32.xlu1 %v455_v33, %s582_s16  ;;  %s591_s16 = smov 34  }
  0x53   :  { %211 = vrot.lane.b32.xlu2 %v456_v34, %s583_s21  ;;  %s612_s21 = smov 3  }
  0x54   :  { %198 = vrot.lane.b32.xlu0 %v454_v32, %s581_s15  ;;  %s590_s15 = smov 36  }
  0x5a   :  { %224 = vrot.lane.b32.xlu1 %v458_v37, %s585_s27 }
  0x5b   :  { %231 = vrot.lane.b32.xlu2 %v459_v38, %s586_s30 }
  0x5c   :  { %218 = vrot.lane.b32.xlu0 %v457_v36, %s584_s26  ;;  %s604_s26 = smov 15  }
  0x5d   :  { %v39_v41 = vpop.permute.xlu2 %38  }
  0x62   :  { %244 = vrot.lane.b32.xlu1 %v461_v40, %s588_s7 }
  0x63   :  { %250 = vrot.lane.b32.xlu2 %v462_v42, %s589_s10 }
  0x64   :  { %237 = vrot.lane.b32.xlu0 %v460_v39, %s587_s6  ;;  %s607_s6 = smov 10  }
  0x65   :  { %v45_v45 = vpop.permute.xlu2 %44  }
  0x6a   :  { %263 = vrot.lane.b32.xlu1 %v464_v44, %s591_s16 }
  0x6b   :  { %270 = vrot.lane.b32.xlu2 %v465_v46, %s592_s19 }
  0x6c   :  { %257 = vrot.lane.b32.xlu0 %v463_v43, %s590_s15  ;;  %s610_s15 = smov 6  }
  0x6d   :  { %v63_v49 = vpop.permute.xlu2 %62  }
  0x72   :  { %283 = vrot.lane.b32.xlu1 %v467_v48, %s594_s25 }
  0x73   :  { %289 = vrot.lane.b32.xlu2 %v468_v50, %s595_s28 }
  0x74   :  { %276 = vrot.lane.b32.xlu0 %v466_v47, %s593_s24  ;;  %v27_v52 = vpop.permute.xlu1 %26  }
  0x75   :  { %v81_v55 = vpop.permute.xlu2 %80  }
  0x76   :  { %v12_v51 = vpop.permute.xlu0 %11  }
  0x77   :  { %15 = vst.msk [vmem:[#allocation0 + $0x8] sm:$0x1] %vm13_vm2, %v12_v51   ;;  %vm106_vm2 = vcmask 687752  }
  0x78   :  { %17 = vst.msk [vmem:[#allocation0] sm:$0x1] %vm16_vm3, %v12_v51   ;;  %vm112_vm3 = vcmask 663152  }
  0x7a   :  { %302 = vrot.lane.b32.xlu1 %v470_v54, %s597_s5 }
  0x7b   :  { %309 = vrot.lane.b32.xlu2 %v471_v56, %s598_s8 }
  0x7c   :  { %296 = vrot.lane.b32.xlu0 %v469_v53, %s596_s4  ;;  %v33_v58 = vpop.permute.xlu1 %32  }
  0x7d   :  { %v99_v61 = vpop.permute.xlu2 %98  }
  0x7e   :  { %v21_v57 = vpop.permute.xlu0 %20  }
  0x7f   :  { %23 = vst.msk [vmem:[#allocation0] sm:$0x1] %vm22_vm4, %v21_v57   ;;  %vm118_vm4 = vcmask 638552  }
  0x80   :  { %29 = vst.msk [vmem:[#allocation0] sm:$0x1] %vm28_vm5, %v27_v52   ;;  %vm124_vm5 = vcmask 613952  }
  0x81   :  { %35 = vst.msk [vmem:[#allocation0] sm:$0x1] %vm34_vm6, %v33_v58   ;;  %vm130_vm6 = vcmask 589352  }
  0x82   :  { %41 = vst.msk [vmem:[#allocation0] sm:$0x1] %vm40_vm7, %v39_v41   ;;  %322 = vrot.lane.b32.xlu1 %v473_v60, %s600_s14  ;;  %vm136_vm7 = vcmask 564752  }
  0x83   :  { %47 = vst.msk [vmem:[#allocation0] sm:$0x1] %vm46_vm8, %v45_v45   ;;  %328 = vrot.lane.b32.xlu2 %v474_v62, %s601_s17  ;;  %vm142_vm8 = vcmask 540152  }
  0x84   :  { %315 = vrot.lane.b32.xlu0 %v472_v59, %s599_s13  ;;  %v57_v0 = vpop.permute.xlu1 %56  }
  0x85   :  { %v117_v3 = vpop.permute.xlu2 %116  }
  0x86   :  { %v51_v63 = vpop.permute.xlu0 %50  }
  0x87   :  { %53 = vst.msk [vmem:[#allocation0] sm:$0x1] %vm52_vm9, %v51_v63   ;;  %vm155_vm9 = vcmask 515552  }
  0x88   :  { %59 = vst.msk [vmem:[#allocation0] sm:$0x1] %vm58_vm10, %v57_v0   ;;  %vm148_vm10 = vcmask 523752  }
  0x89   :  { %65 = vst.msk [vmem:[#allocation0] sm:$0x1] %vm64_vm11, %v63_v49   ;;  %vm161_vm11 = vcmask 499152  }
  0x8a   :  { %341 = vrot.lane.b32.xlu1 %v476_v2, %s603_s23 }
  0x8b   :  { %348 = vrot.lane.b32.xlu2 %v477_v4, %s604_s26 }
  0x8c   :  { %335 = vrot.lane.b32.xlu0 %v475_v1, %s602_s22  ;;  %v75_v6 = vpop.permute.xlu1 %74  }
  0x8d   :  { %v135_v9 = vpop.permute.xlu2 %134  }
  0x8e   :  { %v69_v5 = vpop.permute.xlu0 %68  }
  0x8f   :  { %71 = vst.msk [vmem:[#allocation0] sm:$0x1] %vm70_vm12, %v69_v5   ;;  %vm174_vm12 = vcmask 474552  }
  0x90   :  { %77 = vst.msk [vmem:[#allocation0] sm:$0x1] %vm76_vm13, %v75_v6   ;;  %vm168_vm13 = vcmask 490952  }
  0x91   :  { %83 = vst.msk [vmem:[#allocation0] sm:$0x1] %vm82_vm14, %v81_v55   ;;  %vm181_vm14 = vcmask 466352  }
  0x92   :  { %361 = vrot.lane.b32.xlu1 %v479_v8, %s606_s3 }
  0x93   :  { %367 = vrot.lane.b32.xlu2 %v480_v10, %s607_s6 }
  0x94   :  { %354 = vrot.lane.b32.xlu0 %v478_v7, %s605_s2  ;;  %v93_v12 = vpop.permute.xlu1 %92  }
  0x95   :  { %v154_v15 = vpop.permute.xlu2 %153  }
  0x96   :  { %v87_v11 = vpop.permute.xlu0 %86  }
  0x97   :  { %89 = vst.msk [vmem:[#allocation0] sm:$0x1] %vm88_vm15, %v87_v11   ;;  %vm194_vm15 = vcmask 441752  }
  0x98   :  { %95 = vst.msk [vmem:[#allocation0] sm:$0x1] %vm94_vm0, %v93_v12   ;;  %vm187_vm0 = vcmask 449952  }
  0x99   :  { %101 = vst.msk [vmem:[#allocation0] sm:$0x1] %vm100_vm1, %v99_v61   ;;  %vm200_vm1 = vcmask 425352  }
  0x9a   :  { %380 = vrot.lane.b32.xlu1 %v482_v14, %s609_s12 }
  0x9b   :  { %387 = vrot.lane.b32.xlu2 %v483_v16, %s610_s15 }
  0x9c   :  { %374 = vrot.lane.b32.xlu0 %v481_v13, %s608_s11  ;;  %v111_v18 = vpop.permute.xlu1 %110  }
  0x9d   :  { %v173_v21 = vpop.permute.xlu2 %172  }
  0x9e   :  { %v105_v17 = vpop.permute.xlu0 %104  }
  0x9f   :  { %107 = vst.msk [vmem:[#allocation0] sm:$0x1] %vm106_vm2, %v105_v17   ;;  %vm213_vm2 = vcmask 400752  }
  0xa0   :  { %113 = vst.msk [vmem:[#allocation0] sm:$0x1] %vm112_vm3, %v111_v18   ;;  %vm207_vm3 = vcmask 417152  }
  0xa1   :  { %119 = vst.msk [vmem:[#allocation0] sm:$0x1] %vm118_vm4, %v117_v3   ;;  %vm220_vm4 = vcmask 392552  }
  0xa2   :  { %400 = vrot.lane.b32.xlu1 %v485_v20, %s612_s21 }
  0xa3   :  { %406 = vrot.lane.b32.xlu2 %v486_v22, %s613_s0 }
  0xa4   :  { %393 = vrot.lane.b32.xlu0 %v484_v19, %s611_s20  ;;  %v129_v24 = vpop.permute.xlu1 %128  }
  0xa5   :  { %v193_v25 = vpop.permute.xlu2 %192  }
  0xa6   :  { %v123_v23 = vpop.permute.xlu0 %122  }
  0xa7   :  { %125 = vst.msk [vmem:[#allocation0] sm:$0x1] %vm124_vm5, %v123_v23   ;;  %vm233_vm5 = vcmask 367952  }
  0xa8   :  { %131 = vst.msk [vmem:[#allocation0] sm:$0x1] %vm130_vm6, %v129_v24   ;;  %vm226_vm6 = vcmask 376152  }
  0xa9   :  { %137 = vst.msk [vmem:[#allocation0] sm:$0x1] %vm136_vm7, %v135_v9   ;;  %vm239_vm7 = vcmask 351552  }
  0xac   :  { %v147_v27 = vpop.permute.xlu1 %146  }
  0xad   :  { %150 = vst.msk [vmem:[#allocation0 + $0x8] sm:$0x1] %vm148_vm10, %v147_v27   ;;  %v212_v28 = vpop.permute.xlu2 %211   ;;  %vm259_vm10 = vcmask 318752  }
  0xae   :  { %v141_v26 = vpop.permute.xlu0 %140  }
  0xaf   :  { %143 = vst.msk [vmem:[#allocation0] sm:$0x1] %vm142_vm8, %v141_v26   ;;  %vm252_vm8 = vcmask 326952  }
  0xb0   :  { %156 = vst.msk [vmem:[#allocation0] sm:$0x1] %vm155_vm9, %v154_v15   ;;  %vm246_vm9 = vcmask 343352  }
  0xb4   :  { %v167_v30 = vpop.permute.xlu1 %166  }
  0xb5   :  { %169 = vst.msk [vmem:[#allocation0] sm:$0x1] %vm168_vm13, %v167_v30   ;;  %v232_v31 = vpop.permute.xlu2 %231   ;;  %vm278_vm13 = vcmask 277752  }
  0xb6   :  { %v160_v29 = vpop.permute.xlu0 %159  }
  0xb7   :  { %163 = vst.msk [vmem:[#allocation0 + $0x8] sm:$0x1] %vm161_vm11, %v160_v29   ;;  %vm272_vm11 = vcmask 294152  }
  0xb8   :  { %176 = vst.msk [vmem:[#allocation0 + $0x8] sm:$0x1] %vm174_vm12, %v173_v21   ;;  %vm265_vm12 = vcmask 302352  }
  0xbc   :  { %v186_v33 = vpop.permute.xlu1 %185  }
  0xbd   :  { %189 = vst.msk [vmem:[#allocation0 + $0x8] sm:$0x1] %vm187_vm0, %v186_v33   ;;  %v251_v34 = vpop.permute.xlu2 %250   ;;  %vm298_vm0 = vcmask 244952  }
  0xbe   :  { %v180_v32 = vpop.permute.xlu0 %179  }
  0xbf   :  { %182 = vst.msk [vmem:[#allocation0] sm:$0x1] %vm181_vm14, %v180_v32   ;;  %vm291_vm14 = vcmask 253152  }
  0xc0   :  { %195 = vst.msk [vmem:[#allocation0] sm:$0x1] %vm194_vm15, %v193_v25   ;;  %vm285_vm15 = vcmask 269552  }
  0xc4   :  { %v206_v36 = vpop.permute.xlu1 %205  }
  0xc5   :  { %208 = vst.msk [vmem:[#allocation0] sm:$0x1] %vm207_vm3, %v206_v36   ;;  %v271_v37 = vpop.permute.xlu2 %270   ;;  %vm317_vm3 = vcmask 203952  }
  0xc6   :  { %v199_v35 = vpop.permute.xlu0 %198  }
  0xc7   :  { %202 = vst.msk [vmem:[#allocation0 + $0x8] sm:$0x1] %vm200_vm1, %v199_v35   ;;  %vm311_vm1 = vcmask 220352  }
  0xc8   :  { %215 = vst.msk [vmem:[#allocation0 + $0x8] sm:$0x1] %vm213_vm2, %v212_v28   ;;  %vm304_vm2 = vcmask 228552  }
  0xcc   :  { %v225_v39 = vpop.permute.xlu1 %224  }
  0xcd   :  { %228 = vst.msk [vmem:[#allocation0 + $0x8] sm:$0x1] %vm226_vm6, %v225_v39   ;;  %v290_v40 = vpop.permute.xlu2 %289   ;;  %vm337_vm6 = vcmask 171152  }
  0xce   :  { %v219_v38 = vpop.permute.xlu0 %218  }
  0xcf   :  { %221 = vst.msk [vmem:[#allocation0] sm:$0x1] %vm220_vm4, %v219_v38   ;;  %vm330_vm4 = vcmask 179352  }
  0xd0   :  { %234 = vst.msk [vmem:[#allocation0] sm:$0x1] %vm233_vm5, %v232_v31   ;;  %vm324_vm5 = vcmask 195752  }
  0xd4   :  { %v245_v42 = vpop.permute.xlu1 %244  }
  0xd5   :  { %247 = vst.msk [vmem:[#allocation0] sm:$0x1] %vm246_vm9, %v245_v42   ;;  %v310_v43 = vpop.permute.xlu2 %309   ;;  %vm356_vm9 = vcmask 130152  }
  0xd6   :  { %v238_v41 = vpop.permute.xlu0 %237  }
  0xd7   :  { %241 = vst.msk [vmem:[#allocation0 + $0x8] sm:$0x1] %vm239_vm7, %v238_v41   ;;  %vm350_vm7 = vcmask 146552  }
  0xd8   :  { %254 = vst.msk [vmem:[#allocation0 + $0x8] sm:$0x1] %vm252_vm8, %v251_v34   ;;  %vm343_vm8 = vcmask 154752  }
  0xdc   :  { %v264_v45 = vpop.permute.xlu1 %263  }
  0xdd   :  { %267 = vst.msk [vmem:[#allocation0 + $0x8] sm:$0x1] %vm265_vm12, %v264_v45   ;;  %v329_v46 = vpop.permute.xlu2 %328   ;;  %vm376_vm12 = vcmask 97352  }
  0xde   :  { %v258_v44 = vpop.permute.xlu0 %257  }
  0xdf   :  { %260 = vst.msk [vmem:[#allocation0] sm:$0x1] %vm259_vm10, %v258_v44   ;;  %vm369_vm10 = vcmask 105552  }
  0xe0   :  { %273 = vst.msk [vmem:[#allocation0] sm:$0x1] %vm272_vm11, %v271_v37   ;;  %vm363_vm11 = vcmask 121952  }
  0xe4   :  { %v284_v48 = vpop.permute.xlu1 %283  }
  0xe5   :  { %286 = vst.msk [vmem:[#allocation0] sm:$0x1] %vm285_vm15, %v284_v48   ;;  %v349_v49 = vpop.permute.xlu2 %348   ;;  %vm395_vm15 = vcmask 56352  }
  0xe6   :  { %v277_v47 = vpop.permute.xlu0 %276  }
  0xe7   :  { %280 = vst.msk [vmem:[#allocation0 + $0x8] sm:$0x1] %vm278_vm13, %v277_v47   ;;  %vm389_vm13 = vcmask 72752  }
  0xe8   :  { %293 = vst.msk [vmem:[#allocation0 + $0x8] sm:$0x1] %vm291_vm14, %v290_v40   ;;  %vm382_vm14 = vcmask 80952  }
  0xec   :  { %v303_v51 = vpop.permute.xlu1 %302  }
  0xed   :  { %306 = vst.msk [vmem:[#allocation0 + $0x8] sm:$0x1] %vm304_vm2, %v303_v51   ;;  %v368_v52 = vpop.permute.xlu2 %367  }
  0xee   :  { %v297_v50 = vpop.permute.xlu0 %296  }
  0xef   :  { %299 = vst.msk [vmem:[#allocation0] sm:$0x1] %vm298_vm0, %v297_v50   ;;  %vm408_vm0 = vcmask 31752  }
  0xf0   :  { %312 = vst.msk [vmem:[#allocation0] sm:$0x1] %vm311_vm1, %v310_v43   ;;  %vm402_vm1 = vcmask 48152  }
  0xf4   :  { %v323_v54 = vpop.permute.xlu1 %322  }
  0xf5   :  { %325 = vst.msk [vmem:[#allocation0] sm:$0x1] %vm324_vm5, %v323_v54   ;;  %v388_v55 = vpop.permute.xlu2 %387  }
  0xf6   :  { %v316_v53 = vpop.permute.xlu0 %315  }
  0xf7   :  { %319 = vst.msk [vmem:[#allocation0 + $0x8] sm:$0x1] %vm317_vm3, %v316_v53  }
  0xf8   :  { %332 = vst.msk [vmem:[#allocation0 + $0x8] sm:$0x1] %vm330_vm4, %v329_v46  }
  0xfc   :  { %v342_v57 = vpop.permute.xlu1 %341  }
  0xfd   :  { %345 = vst.msk [vmem:[#allocation0 + $0x8] sm:$0x1] %vm343_vm8, %v342_v57   ;;  %v407_v58 = vpop.permute.xlu2 %406  }
  0xfe   :  { %v336_v56 = vpop.permute.xlu0 %335  }
  0xff   :  { %338 = vst.msk [vmem:[#allocation0] sm:$0x1] %vm337_vm6, %v336_v56  }
 0x100   :  { %351 = vst.msk [vmem:[#allocation0] sm:$0x1] %vm350_vm7, %v349_v49  }
 0x104   :  { %v362_v60 = vpop.permute.xlu1 %361  }
 0x105   :  { %364 = vst.msk [vmem:[#allocation0] sm:$0x1] %vm363_vm11, %v362_v60  }
 0x106   :  { %v355_v59 = vpop.permute.xlu0 %354  }
 0x107   :  { %358 = vst.msk [vmem:[#allocation0 + $0x8] sm:$0x1] %vm356_vm9, %v355_v59  }
 0x108   :  { %371 = vst.msk [vmem:[#allocation0 + $0x8] sm:$0x1] %vm369_vm10, %v368_v52  }
 0x10c   :  { %v381_v62 = vpop.permute.xlu1 %380  }
 0x10d   :  { %384 = vst.msk [vmem:[#allocation0 + $0x8] sm:$0x1] %vm382_vm14, %v381_v62  }
 0x10e   :  { %v375_v61 = vpop.permute.xlu0 %374  }
 0x10f   :  { %377 = vst.msk [vmem:[#allocation0] sm:$0x1] %vm376_vm12, %v375_v61  }
 0x110   :  { %390 = vst.msk [vmem:[#allocation0] sm:$0x1] %vm389_vm13, %v388_v55  }
 0x114   :  { %v401_v0 = vpop.permute.xlu1 %400  }
 0x115   :  { %403 = vst.msk [vmem:[#allocation0] sm:$0x1] %vm402_vm1, %v401_v0  }
 0x116   :  { %v394_v63 = vpop.permute.xlu0 %393  }
 0x117   :  { %397 = vst.msk [vmem:[#allocation0 + $0x8] sm:$0x1] %vm395_vm15, %v394_v63  }
 0x118   :  { %410 = vst.msk [vmem:[#allocation0 + $0x8] sm:$0x1] %vm408_vm0, %v407_v58  }
 0x11c   :  { %v413_v2 = vld [vmem:[#allocation0] sm:$0x1] }
 0x11d   :  { %416 = vst [vmem:[%s826_s1] sm:$0x1] %v413_v2 }
 0x11f   :  { %v418_v1 = vld [vmem:[#allocation0 + $0x8] sm:$0x1] }
 0x120   :  { %487 = vst [vmem:[%s826_s1 + $0x1] sm:$0x1] %v418_v1 }

// kernel: tile.23
= control target key start
LH: loop header
LB: loop body
LE: loop exit
PB: predicated region body
PF: predicated region fallthrough
CT: control target
= control target key end

     0   :  { %s22_s0 = inlined_call_operand.vmem [shape: f32[128], index: 0, kind: input, shape index: {}]   ;;  %s23_s1 = inlined_call_operand.vmem [shape: f32[4,128], index: 1, kind: output, shape index: {}]  }
   0x1   :  { %v4_v0 = vld [vmem:[%s22_s0] ss:$0 sm:$0xff] }
   0x2   :  { %5 = vst [vmem:[%s23_s1] sm:$0xf] %v4_v0 }

// kernel: stacked_autoencoder_forward.1
= control target key start
LH: loop header
LB: loop body
LE: loop exit
PB: predicated region body
PF: predicated region fallthrough
CT: control target
= control target key end

     0   :  { %vm145_vm0 = vcmask 1045504   ;;  %vm120_vm1 = vcmask 97280   ;;  %vm4904_vm2 = vcmask 1043456   ;;  %vm7484_vm3 = vcmask 523268   ;;  %s18182_s3 = inlined_call_operand.vmem [shape: bf16[12,128], index: 3, kind: input, shape index: {}]   ;;  %s18183_s0 = inlined_call_operand.vmem [shape: bf16[128,12], index: 0, kind: input, shape index: {}]   ;;  %s18184_s4 = inlined_call_operand.vmem [shape: f32[1,128], index: 4, kind: input, shape index: {}]   ;;  %s18185_s5 = inlined_call_operand.vmem [shape: bf16[512,256], index: 5, kind: input, shape index: {}]   ;;  %s18186_s1 = inlined_call_operand.vmem [shape: bf16[128,128], index: 1, kind: input, shape index: {}]   ;;  %s18187_s7 = inlined_call_operand.vmem [shape: bf16[1024,512], index: 7, kind: input, shape index: {}]   ;;  %s18188_s6 = inlined_call_operand.vmem [shape: f32[1,256], index: 6, kind: input, shape index: {}]   ;;  %s18189_s2 = inlined_call_operand.vmem [shape: bf16[32,256], index: 2, kind: input, shape index: {}]   ;;  %s18190_s8 = inlined_call_operand.vmem [shape: f32[1,512], index: 8, kind: input, shape index: {}]   ;;  %s18191_s9 = inlined_call_operand.vmem [shape: bf16[512,1024], index: 9, kind: input, shape index: {}]   ;;  %s18192_s15 = inlined_call_operand.vmem [shape: f32[8,512], index: 15, kind: output, shape index: {0}]   ;;  %s18193_s10 = inlined_call_operand.vmem [shape: f32[1,1024], index: 10, kind: input, shape index: {}]   ;;  %s18194_s11 = inlined_call_operand.vmem [shape: bf16[256,512], index: 11, kind: input, shape index: {}]   ;;  %s18195_s13 = inlined_call_operand.vmem [shape: bf16[2048,192], index: 13, kind: input, shape index: {}]   ;;  %s18196_s12 = inlined_call_operand.vmem [shape: f32[1,512], index: 12, kind: input, shape index: {}]   ;;  %s18197_s14 = inlined_call_operand.vmem [shape: f32[1,192], index: 14, kind: input, shape index: {}]   ;;  %s18198_s16 = inlined_call_operand.vmem [shape: bf16[8,192], index: 16, kind: output, shape index: {1}]  }
   0x1   :  { %18200 = sst [smem:[#allocation2_spill]] %s18182_s3  ;;  %v11123_v4 = vld [vmem:[%s18183_s0] sm:$0xff]  ;;  %v11124_v5 = vld [vmem:[%s18183_s0 + $0x8] sm:$0xff]  ;;  %v11125_v6 = vld [vmem:[%s18183_s0 + $0x10] sm:$0xff] }
   0x2   :  { %s18201_s23 = sld [smem:[#allocation2_spill]]  ;;  %v11126_v7 = vld [vmem:[%s18183_s0 + $0x18] sm:$0xff]  ;;  %v11127_v8 = vld [vmem:[%s18183_s0 + $0x20] sm:$0xff]  ;;  %v11128_v9 = vld [vmem:[%s18183_s0 + $0x28] sm:$0xff] }
   0x3   :  { %v7597_v10 = vld [vmem:[%s18185_s5 + $0x70] sm:$0xf]  ;;  %v11147_v11 = vld [vmem:[%s18185_s5 + $0x74] sm:$0xf0]  ;;  %v7589_v12 = vld [vmem:[%s18185_s5 + $0x60] sm:$0xf] }
   0x4   :  { %v7598_v13 = vor.u32 %v11147_v11, %v7597_v10  ;;  %v11145_v14 = vld [vmem:[%s18185_s5 + $0x64] sm:$0xf0]  ;;  %v7581_v16 = vld [vmem:[%s18185_s5 + $0x50] sm:$0xf]  ;;  %v11143_v17 = vld [vmem:[%s18185_s5 + $0x54] sm:$0xf0] }
   0x5   :  { %v7590_v15 = vor.u32 %v11145_v14, %v7589_v12  ;;  %v7582_v18 = vor.u32 %v11143_v17, %v7581_v16  ;;  %v11129_v19 = vld [vmem:[%s18183_s0 + $0x30] sm:$0xff]  ;;  %v7573_v20 = vld [vmem:[%s18185_s5 + $0x40] sm:$0xf]  ;;  %v11141_v21 = vld [vmem:[%s18185_s5 + $0x44] sm:$0xf0] }
   0x6   :  { %716 = vmatpush.bf16.msra.mxu1 %v7598_v13  ;;  %v7574_v22 = vor.u32 %v11141_v21, %v7573_v20  ;;  %v7565_v23 = vld [vmem:[%s18185_s5 + $0x30] sm:$0xf]  ;;  %v11139_v24 = vld [vmem:[%s18185_s5 + $0x34] sm:$0xf0]  ;;  %v7557_v26 = vld [vmem:[%s18185_s5 + $0x20] sm:$0xf] }
   0x7   :  { %v7566_v25 = vor.u32 %v11139_v24, %v7565_v23  ;;  %v11137_v27 = vld [vmem:[%s18185_s5 + $0x24] sm:$0xf0]  ;;  %v7549_v29 = vld [vmem:[%s18185_s5 + $0x10] sm:$0xf]  ;;  %v11135_v30 = vld [vmem:[%s18185_s5 + $0x14] sm:$0xf0] }
   0x8   :  { %v7529_v0 = vld [vmem:[%s18201_s23] sm:$0xf]  ;;  %v11131_v1 = vld [vmem:[%s18201_s23] sm:$0x30]  ;;  %v7558_v28 = vor.u32 %v11137_v27, %v7557_v26  ;;  %v7550_v31 = vor.u32 %v11135_v30, %v7549_v29  ;;  %v11130_v32 = vld [vmem:[%s18183_s0 + $0x38] sm:$0xff] }
   0x9   :  { %v7530_v2 = vor.u32 %v11131_v1, %v7529_v0  ;;  %v7541_v33 = vld [vmem:[%s18185_s5] sm:$0xf]  ;;  %v11133_v34 = vld [vmem:[%s18185_s5 + $0x4] sm:$0xf0]  ;;  %v7661_v36 = vld [vmem:[%s18185_s5 + $0xf0] sm:$0xf] }
   0xa   :  { %717 = vmatpush.bf16.msra.mxu1 %v7590_v15  ;;  %v7542_v35 = vor.u32 %v11133_v34, %v7541_v33  ;;  %v11163_v37 = vld [vmem:[%s18185_s5 + $0xf4] sm:$0xf0]  ;;  %v7653_v39 = vld [vmem:[%s18185_s5 + $0xe0] sm:$0xf]  ;;  %v11161_v40 = vld [vmem:[%s18185_s5 + $0xe4] sm:$0xf0] }
   0xb   :  { %v147_v3 = vsel %vm145_vm0, %v7530_v2, 0  ;;  %v7662_v38 = vor.u32 %v11163_v37, %v7661_v36  ;;  %v7654_v41 = vor.u32 %v11161_v40, %v7653_v39  ;;  %v7645_v42 = vld [vmem:[%s18185_s5 + $0xd0] sm:$0xf]  ;;  %v11159_v43 = vld [vmem:[%s18185_s5 + $0xd4] sm:$0xf0]  ;;  %v12029_v51 = vld [vmem:[%s18186_s1] sm:$0xff]  }
   0xc   :  { %156 = vmatpush.bf16.msra.mxu0 %v147_v3  ;;  %v7646_v44 = vor.u32 %v11159_v43, %v7645_v42  ;;  %v12263_v45 = vld [vmem:[%s18184_s4] ss:$0 sm:$0xff]  ;;  %v11157_v47 = vld [vmem:[%s18185_s5 + $0xc4] sm:$0xf0]  ;;  %v7629_v52 = vld [vmem:[%s18185_s5 + $0xb0] sm:$0xf]  ;;  %v12030_v56 = vunpack.c.l.bf16 %v12029_v51  ;;  %v12031_v63 = vunpack.c.h.bf16 %v12029_v51 }
   0xd   :  { %735 = vmatpush.bf16.msra.mxu2 %v7662_v38  ;;  %v7637_v46 = vld [vmem:[%s18185_s5 + $0xc0] sm:$0xf]  ;;  %v11155_v53 = vld [vmem:[%s18185_s5 + $0xb4] sm:$0xf0]  ;;  %v11153_v58 = vld [vmem:[%s18185_s5 + $0xa4] sm:$0xf0] }
   0xe   :  { %718 = vmatpush.bf16.msra.mxu1 %v7582_v18  ;;  %v7638_v49 = vor.u32 %v11157_v47, %v7637_v46  ;;  %v7630_v54 = vor.u32 %v11155_v53, %v7629_v52  ;;  %v7621_v57 = vld [vmem:[%s18185_s5 + $0xa0] sm:$0xf]  ;;  %v7613_v1 = vld [vmem:[%s18185_s5 + $0x90] sm:$0xf]  ;;  %v11151_v2 = vld [vmem:[%s18185_s5 + $0x94] sm:$0xf0] }
   0xf   :  { %7531 = vmatmul.msk.bf16.vlgmr.msra.gmra.mxu0 %vm120_vm1, %v11123_v4  ;;  %v7622_v60 = vor.u32 %v11153_v58, %v7621_v57  ;;  %v7614_v3 = vor.u32 %v11151_v2, %v7613_v1  ;;  %v12060_v14 = vld [vmem:[%s18186_s1 + $0x8] sm:$0xff]   ;;  %v7725_v16 = vld [vmem:[%s18185_s5 + $0x170] sm:$0xf]  ;;  %v11179_v17 = vld [vmem:[%s18185_s5 + $0x174] sm:$0xf0] }
  0x10   :  { %v7726_v18 = vor.u32 %v11179_v17, %v7725_v16  ;;  %v7599_v20 = vld [vmem:[%s18185_s5 + $0x78] sm:$0xf0]  ;;  %v7717_v24 = vld [vmem:[%s18185_s5 + $0x160] sm:$0xf]  ;;  %v11144_v26 = vld [vmem:[%s18185_s5 + $0x64] sm:$0xf] }
  0x11   :  { %736 = vmatpush.bf16.msra.mxu2 %v7654_v41  ;;  %v7591_v29 = vld [vmem:[%s18185_s5 + $0x68] sm:$0xf0]  ;;  %v11175_v36 = vld [vmem:[%s18185_s5 + $0x154] sm:$0xf0]  ;;  %v11142_v38 = vld [vmem:[%s18185_s5 + $0x54] sm:$0xf] }
  0x12   :  { %719 = vmatpush.bf16.msra.mxu1 %v7574_v22  ;;  %v12034_v22 = vunpack.c.l.bf16 %v12060_v14  ;;  %754 = vmatpush.bf16.msra.mxu3 %v7726_v18  ;;  %v7594_v33 = vor.u32 %v11144_v26, %v7591_v29  ;;  %v7583_v39 = vld [vmem:[%s18185_s5 + $0x58] sm:$0xf0]  ;;  %v11173_v46 = vld [vmem:[%s18185_s5 + $0x144] sm:$0xf0]  ;;  %v11140_v47 = vld [vmem:[%s18185_s5 + $0x44] sm:$0xf] }
  0x13   :  { %v7586_v42 = vor.u32 %v11142_v38, %v7583_v39  ;;  %v7693_v57 = vld [vmem:[%s18185_s5 + $0x130] sm:$0xf]  ;;  %v11171_v58 = vld [vmem:[%s18185_s5 + $0x134] sm:$0xf0]  ;;  %v7685_v1 = vld [vmem:[%s18185_s5 + $0x120] sm:$0xf] }
  0x14   :  { %v11169_v2 = vld [vmem:[%s18185_s5 + $0x124] sm:$0xf0]  ;;  %v11134_v16 = vld [vmem:[%s18185_s5 + $0x14] sm:$0xf]  ;;  %v7551_v17 = vld [vmem:[%s18185_s5 + $0x18] sm:$0xf0] }
  0x15   :  { %737 = vmatpush.bf16.msra.mxu2 %v7646_v44  ;;  %v7701_v44 = vld [vmem:[%s18185_s5 + $0x140] sm:$0xf]  ;;  %v12062_v29 = vld [vmem:[%s18186_s1 + $0x18] sm:$0xff]   ;;  %v11162_v39 = vld [vmem:[%s18185_s5 + $0xf4] sm:$0xf] }
  0x16   :  { %720 = vmatpush.bf16.msra.mxu1 %v7566_v25  ;;  %v11177_v25 = vld [vmem:[%s18185_s5 + $0x164] sm:$0xf0]  ;;  %vm7485_vm4 = vmor %vm7484_vm3, %vm4904_vm2 }
  0x19   :  { %738 = vmatpush.bf16.msra.mxu2 %v7638_v49  ;;  %v7702_v49 = vor.u32 %v11173_v46, %v7701_v44  ;;  %v7781_v46 = vld [vmem:[%s18185_s5 + $0x1e0] sm:$0xf] }
  0x1a   :  { %721 = vmatpush.bf16.msra.mxu1 %v7558_v28  ;;  %v7718_v28 = vor.u32 %v11177_v25, %v7717_v24  ;;  %v11132_v24 = vld [vmem:[%s18185_s5 + $0x4] sm:$0xf] }
  0x1c   :  { %755 = vmatpush.bf16.msra.mxu3 %v7718_v28 }
  0x1d   :  { %739 = vmatpush.bf16.msra.mxu2 %v7630_v54 }
  0x1e   :  { %722 = vmatpush.bf16.msra.mxu1 %v7550_v31 }
  0x1f   :  { %7532 = vmatmul.msk.bf16.gmra.mxu0 %vm120_vm1, %v11124_v5 }
  0x21   :  { %740 = vmatpush.bf16.msra.mxu2 %v7622_v60  ;;  %v11138_v60 = vld [vmem:[%s18185_s5 + $0x34] sm:$0xf] }
  0x22   :  { %723 = vmatpush.bf16.msra.mxu1 %v7542_v35  ;;  %v7709_v35 = vld [vmem:[%s18185_s5 + $0x150] sm:$0xf] }
  0x23   :  { %v7710_v37 = vor.u32 %v11175_v36, %v7709_v35  ;;  %v7789_v35 = vld [vmem:[%s18185_s5 + $0x1f0] sm:$0xf]  ;;  %v11195_v36 = vld [vmem:[%s18185_s5 + $0x1f4] sm:$0xf0] }
  0x24   :  { %v7790_v38 = vor.u32 %v11195_v36, %v7789_v35  ;;  %v7759_v35 = vld [vmem:[%s18185_s5 + $0x1b8] sm:$0xf0] }
  0x25   :  { %741 = vmatpush.bf16.msra.mxu2 %v7614_v3  ;;  %756 = vmatpush.bf16.msra.mxu3 %v7710_v37  ;;  %v11136_v3 = vld [vmem:[%s18185_s5 + $0x24] sm:$0xf]  ;;  %v12042_v37 = vunpack.c.l.bf16 %v12062_v29 }
  0x26   :  { %773 = vmatpush.bf16.msrb.mxu1 %v7790_v38  ;;  %v11185_v38 = vld [vmem:[%s18185_s5 + $0x1a4] sm:$0xf0] }
  0x29   :  { %757 = vmatpush.bf16.msra.mxu3 %v7702_v49 }
  0x2f   :  { %7533 = vmatmul.msk.bf16.gmra.mxu0 %vm120_vm1, %v11125_v6 }
  0x3f   :  { %7534 = vmatmul.msk.bf16.gmra.mxu0 %vm120_vm1, %v11126_v7  ;;  %v7605_v7 = vld [vmem:[%s18185_s5 + $0x80] sm:$0xf] }
  0x4f   :  { %7535 = vmatmul.msk.bf16.gmra.mxu0 %vm120_vm1, %v11127_v8  ;;  %v11149_v8 = vld [vmem:[%s18185_s5 + $0x84] sm:$0xf0] }
  0x50   :  { %v7606_v10 = vor.u32 %v11149_v8, %v7605_v7 }
  0x52   :  { %742 = vmatpush.bf16.msra.mxu2 %v7606_v10 }
  0x5f   :  { %7536 = vmatmul.msk.bf16.gmra.mxu0 %vm120_vm1, %v11128_v9 }
  0x6f   :  { %7537 = vmatmul.msk.bf16.gmra.mxu0 %vm120_vm1, %v11129_v19  ;;  %v11146_v19 = vld [vmem:[%s18185_s5 + $0x74] sm:$0xf] }
  0x70   :  { %v7602_v23 = vor.u32 %v11146_v19, %v7599_v20  ;;  %v7554_v20 = vor.u32 %v11134_v16, %v7551_v17  ;;  %v7639_v16 = vld [vmem:[%s18185_s5 + $0xc8] sm:$0xf0]  ;;  %v11188_v17 = vld [vmem:[%s18185_s5 + $0x1c4] sm:$0xf] }
  0x72   :  { %792 = vmatpush.bf16.msrb.mxu2 %v7602_v23  ;;  %v11165_v23 = vld [vmem:[%s18185_s5 + $0x104] sm:$0xf0] }
  0x76   :  { %793 = vmatpush.bf16.msrb.mxu2 %v7594_v33 }
  0x7a   :  { %794 = vmatpush.bf16.msrb.mxu2 %v7586_v42 }
  0x7f   :  { %7538 = vmatmul.msk.bf16.gmra.mxu0 %vm120_vm1, %v11130_v32  ;;  %v12035_v32 = vunpack.c.h.bf16 %v12060_v14 }
  0x8c   :  { %v158_v48 = vpop.f32.mrf.mxu0 }
  0x8d   :  { %v159_v50 = vadd.f32 %v12263_v45, %v158_v48 }
  0x8f   :  { %v198_v55 = vmax.f32 %v159_v50, 0.0  ;;  %v7575_v50 = vld [vmem:[%s18185_s5 + $0x48] sm:$0xf0] }
  0x90   :  { %v7578_v54 = vor.u32 %v11140_v47, %v7575_v50  ;;  %v11193_v47 = vld [vmem:[%s18185_s5 + $0x1e4] sm:$0xf0] }
  0x91   :  { %v246_v61 = vmul.f32 %v12030_v56, %v198_v55  ;;  %v12061_v55 = vld [vmem:[%s18186_s1 + $0x10] sm:$0xff]  }
  0x92   :  { %795 = vmatpush.bf16.msrb.mxu2 %v7578_v54  ;;  %v7783_v54 = vld [vmem:[%s18185_s5 + $0x1e8] sm:$0xf0] }
  0x93   :  { %v262_v4 = vpack.c.bf16 %v246_v61, %v246_v61  ;;  %v7567_v61 = vld [vmem:[%s18185_s5 + $0x38] sm:$0xf0] }
  0x94   :  { %v160_v59 = vpop.f32.mrf.mxu0 }
  0x95   :  { %v161_v62 = vadd.f32 %v12263_v45, %v160_v59  ;;  %v282_v12 = vunpack.c.l.b16 %v262_v4  ;;  %v7694_v59 = vor.u32 %v11171_v58, %v7693_v57  ;;  %v12043_v57 = vunpack.c.h.bf16 %v12062_v29 }
  0x97   :  { %v199_v0 = vmax.f32 %v161_v62, 0.0  ;;  %758 = vmatpush.bf16.msra.mxu3 %v7694_v59 }
  0x99   :  { %v247_v5 = vmul.f32 %v12031_v63, %v199_v0  ;;  %v12038_v63 = vunpack.c.l.bf16 %v12061_v55  ;;  %v7570_v0 = vor.u32 %v11138_v60, %v7567_v61  ;;  %v7773_v61 = vld [vmem:[%s18185_s5 + $0x1d0] sm:$0xf] }
  0x9b   :  { %v263_v6 = vpack.c.bf16 %v247_v5, %v247_v5  ;;  %796 = vmatpush.bf16.msrb.mxu2 %v7570_v0  ;;  %v7686_v5 = vor.u32 %v11169_v2, %v7685_v1  ;;  %v11158_v1 = vld [vmem:[%s18185_s5 + $0xd4] sm:$0xf]  ;;  %v7647_v2 = vld [vmem:[%s18185_s5 + $0xd8] sm:$0xf0] }
  0x9c   :  { %v163_v9 = vpop.f32.mrf.mxu0 }
  0x9d   :  { %v164_v11 = vadd.f32 %v12263_v45, %v163_v9  ;;  %v283_v13 = vunpack.c.l.b16 %v263_v6  ;;  %v7559_v6 = vld [vmem:[%s18185_s5 + $0x28] sm:$0xf0]  ;;  %v12039_v9 = vunpack.c.h.bf16 %v12061_v55  ;;  %759 = vmatpush.bf16.msra.mxu3 %v7686_v5  ;;  %v7650_v5 = vor.u32 %v11158_v1, %v7647_v2  ;;  %v7733_v1 = vld [vmem:[%s18185_s5 + $0x180] sm:$0xf]  ;;  %v11181_v2 = vld [vmem:[%s18185_s5 + $0x184] sm:$0xf0] }
  0x9e   :  { %v7562_v10 = vor.u32 %v11136_v3, %v7559_v6  ;;  %v11190_v3 = vld [vmem:[%s18185_s5 + $0x1d4] sm:$0xf]  ;;  %v7775_v6 = vld [vmem:[%s18185_s5 + $0x1d8] sm:$0xf0] }
  0x9f   :  { %v12304_v15 = vpack.c.b16 %v283_v13, %v282_v12  ;;  %v200_v21 = vmax.f32 %v164_v11, 0.0  ;;  %v7677_v12 = vld [vmem:[%s18185_s5 + $0x110] sm:$0xf]  ;;  %v11167_v13 = vld [vmem:[%s18185_s5 + $0x114] sm:$0xf0] }
  0xa0   :  { %797 = vmatpush.bf16.msrb.mxu2 %v7562_v10  ;;  %v7678_v14 = vor.u32 %v11167_v13, %v7677_v12  ;;  %v11189_v10 = vld [vmem:[%s18185_s5 + $0x1c4] sm:$0xf0] }
  0xa1   :  { %724 = vmatmul.bf16.vlgmr.msra.gmra.mxu1 %v12304_v15  ;;  %v248_v30 = vmul.f32 %v12034_v22, %v200_v21  ;;  %v7669_v22 = vld [vmem:[%s18185_s5 + $0x100] sm:$0xf] }
  0xa2   :  { %760 = vmatpush.bf16.msra.mxu3 %v7678_v14  ;;  %v7670_v26 = vor.u32 %v11165_v23, %v7669_v22 }
  0xa3   :  { %v264_v40 = vpack.c.bf16 %v248_v30, %v248_v30 }
  0xa4   :  { %v165_v27 = vpop.f32.mrf.mxu0  ;;  %798 = vmatpush.bf16.msrb.mxu2 %v7554_v20  ;;  %v12063_v20 = vld [vmem:[%s18186_s1 + $0x20] sm:$0xff]  }
  0xa5   :  { %v166_v31 = vadd.f32 %v12263_v45, %v165_v27  ;;  %v284_v52 = vunpack.c.l.b16 %v264_v40  ;;  %v7543_v27 = vld [vmem:[%s18185_s5 + $0x8] sm:$0xf0]  ;;  %v7663_v40 = vld [vmem:[%s18185_s5 + $0xf8] sm:$0xf0] }
  0xa6   :  { %761 = vmatpush.bf16.msra.mxu3 %v7670_v26  ;;  %v7666_v42 = vor.u32 %v11162_v39, %v7663_v40  ;;  %v7757_v26 = vld [vmem:[%s18185_s5 + $0x1b0] sm:$0xf]  ;;  %v11152_v39 = vld [vmem:[%s18185_s5 + $0xa4] sm:$0xf] }
  0xa7   :  { %v201_v34 = vmax.f32 %v166_v31, 0.0 }
  0xa9   :  { %v249_v41 = vmul.f32 %v12035_v32, %v201_v34  ;;  %v7546_v32 = vor.u32 %v11132_v24, %v7543_v27  ;;  %v11187_v27 = vld [vmem:[%s18185_s5 + $0x1b4] sm:$0xf0] }
  0xaa   :  { %811 = vmatpush.bf16.msrb.mxu3 %v7666_v42  ;;  %v7758_v29 = vor.u32 %v11187_v27, %v7757_v26 }
  0xab   :  { %v265_v43 = vpack.c.bf16 %v249_v41, %v249_v41  ;;  %799 = vmatpush.bf16.msrb.mxu2 %v7546_v32  ;;  %v11194_v41 = vld [vmem:[%s18185_s5 + $0x1f4] sm:$0xf] }
  0xac   :  { %v168_v48 = vpop.f32.mrf.mxu0  ;;  %v11186_v32 = vld [vmem:[%s18185_s5 + $0x1b4] sm:$0xf] }
  0xad   :  { %v169_v51 = vadd.f32 %v12263_v45, %v168_v48  ;;  %v285_v53 = vunpack.c.l.b16 %v265_v43  ;;  %v7791_v43 = vld [vmem:[%s18185_s5 + $0x1f8] sm:$0xf0]  ;;  %v11160_v48 = vld [vmem:[%s18185_s5 + $0xe4] sm:$0xf]  ;;  %v7762_v36 = vor.u32 %v11186_v32, %v7759_v35 }
  0xae   :  { %v7794_v44 = vor.u32 %v11194_v41, %v7791_v43  ;;  %v7623_v43 = vld [vmem:[%s18185_s5 + $0xa8] sm:$0xf0] }
  0xaf   :  { %v12360_v56 = vpack.c.b16 %v285_v53, %v284_v52  ;;  %v202_v62 = vmax.f32 %v169_v51, 0.0  ;;  %v7782_v51 = vor.u32 %v11193_v47, %v7781_v46  ;;  %v7655_v52 = vld [vmem:[%s18185_s5 + $0xe8] sm:$0xf0]  ;;  %v11192_v53 = vld [vmem:[%s18185_s5 + $0x1e4] sm:$0xf] }
  0xb0   :  { %v7658_v58 = vor.u32 %v11160_v48, %v7655_v52  ;;  %v7786_v59 = vor.u32 %v11192_v53, %v7783_v54  ;;  %v7751_v46 = vld [vmem:[%s18185_s5 + $0x1a8] sm:$0xf0]  ;;  %v12047_v48 = vunpack.c.h.bf16 %v12063_v20  ;;  %v7741_v52 = vld [vmem:[%s18185_s5 + $0x190] sm:$0xf]  ;;  %v11183_v53 = vld [vmem:[%s18185_s5 + $0x194] sm:$0xf0] }
  0xb1   :  { %729 = vmatmul.bf16.gmra.mxu1 %v12360_v56  ;;  %v250_v7 = vmul.f32 %v12038_v63, %v202_v62  ;;  %v11191_v62 = vld [vmem:[%s18185_s5 + $0x1d4] sm:$0xf0] }
  0xb2   :  { %774 = vmatpush.bf16.msrb.mxu1 %v7782_v51  ;;  %812 = vmatpush.bf16.msrb.mxu3 %v7658_v58  ;;  %v7774_v0 = vor.u32 %v11191_v62, %v7773_v61  ;;  %v7615_v58 = vld [vmem:[%s18185_s5 + $0x98] sm:$0xf0] }
  0xb3   :  { %v266_v18 = vpack.c.bf16 %v250_v7, %v250_v7  ;;  %v7778_v7 = vor.u32 %v11190_v3, %v7775_v6  ;;  %v7743_v62 = vld [vmem:[%s18185_s5 + $0x198] sm:$0xf0]  ;;  %v11148_v3 = vld [vmem:[%s18185_s5 + $0x84] sm:$0xf]  ;;  %v7734_v6 = vor.u32 %v11181_v2, %v7733_v1 }
  0xb4   :  { %v170_v4 = vpop.f32.mrf.mxu0 }
  0xb5   :  { %v171_v8 = vadd.f32 %v12263_v45, %v170_v4  ;;  %v294_v30 = vunpack.c.l.b16 %v266_v18  ;;  %v7767_v18 = vld [vmem:[%s18185_s5 + $0x1c8] sm:$0xf0] }
  0xb6   :  { %775 = vmatpush.bf16.msrb.mxu1 %v7774_v0  ;;  %813 = vmatpush.bf16.msrb.mxu3 %v7650_v5  ;;  %v7770_v23 = vor.u32 %v11188_v17, %v7767_v18  ;;  %v11178_v17 = vld [vmem:[%s18185_s5 + $0x174] sm:$0xf]  ;;  %v7727_v18 = vld [vmem:[%s18185_s5 + $0x178] sm:$0xf0] }
  0xb7   :  { %v203_v11 = vmax.f32 %v171_v8, 0.0 }
  0xb9   :  { %v251_v19 = vmul.f32 %v12039_v9, %v203_v11  ;;  %v7765_v9 = vld [vmem:[%s18185_s5 + $0x1c0] sm:$0xf]  ;;  %v11156_v11 = vld [vmem:[%s18185_s5 + $0xc4] sm:$0xf] }
  0xba   :  { %v7766_v14 = vor.u32 %v11189_v10, %v7765_v9  ;;  %v7642_v22 = vor.u32 %v11156_v11, %v7639_v16  ;;  %v7735_v9 = vld [vmem:[%s18185_s5 + $0x188] sm:$0xf0] }
  0xbb   :  { %v267_v21 = vpack.c.bf16 %v251_v19, %v251_v19 }
  0xbc   :  { %v173_v25 = vpop.f32.mrf.mxu0  ;;  %776 = vmatpush.bf16.msrb.mxu1 %v7766_v14  ;;  %814 = vmatpush.bf16.msrb.mxu3 %v7642_v22  ;;  %v12064_v14 = vld [vmem:[%s18186_s1 + $0x28] sm:$0xff]  }
  0xbd   :  { %v174_v28 = vadd.f32 %v12263_v45, %v173_v25  ;;  %v295_v31 = vunpack.c.l.b16 %v267_v21 }
  0xbf   :  { %v204_v33 = vmax.f32 %v174_v28, 0.0  ;;  %v12416_v34 = vpack.c.b16 %v295_v31, %v294_v30  ;;  %v12046_v28 = vunpack.c.l.bf16 %v12063_v20  ;;  %v11154_v30 = vld [vmem:[%s18185_s5 + $0xb4] sm:$0xf]  ;;  %v7631_v31 = vld [vmem:[%s18185_s5 + $0xb8] sm:$0xf0]  ;;  %v12050_v20 = vunpack.c.l.bf16 %v12064_v14 }
  0xc0   :  { %777 = vmatpush.bf16.msrb.mxu1 %v7758_v29 }
  0xc1   :  { %743 = vmatmul.bf16.vlgmr.msra.gmra.mxu2 %v12416_v34  ;;  %v252_v49 = vmul.f32 %v12042_v37, %v204_v33  ;;  %v7634_v33 = vor.u32 %v11154_v30, %v7631_v31  ;;  %v7749_v37 = vld [vmem:[%s18185_s5 + $0x1a0] sm:$0xf]  ;;  %v7711_v31 = vld [vmem:[%s18185_s5 + $0x158] sm:$0xf0] }
  0xc2   :  { %849 = vmatpush.bf16.msra.mxu2 %v7794_v44  ;;  %v7750_v42 = vor.u32 %v11185_v38, %v7749_v37  ;;  %v11184_v44 = vld [vmem:[%s18185_s5 + $0x1a4] sm:$0xf]  ;;  %v7703_v37 = vld [vmem:[%s18185_s5 + $0x148] sm:$0xf0] }
  0xc3   :  { %v268_v63 = vpack.c.bf16 %v252_v49, %v252_v49  ;;  %815 = vmatpush.bf16.msrb.mxu3 %v7634_v33  ;;  %v7626_v49 = vor.u32 %v11152_v39, %v7623_v43 }
  0xc4   :  { %v175_v50 = vpop.f32.mrf.mxu0  ;;  %778 = vmatpush.bf16.msrb.mxu1 %v7750_v42 }
  0xc5   :  { %v176_v55 = vadd.f32 %v12263_v45, %v175_v50  ;;  %v296_v13 = vunpack.c.l.b16 %v268_v63  ;;  %v7754_v50 = vor.u32 %v11184_v44, %v7751_v46  ;;  %v12065_v44 = vld [vmem:[%s18186_s1 + $0x30] sm:$0xff]  }
  0xc6   :  { %850 = vmatpush.bf16.msra.mxu2 %v7786_v59  ;;  %v11182_v59 = vld [vmem:[%s18185_s5 + $0x194] sm:$0xf] }
  0xc7   :  { %v205_v60 = vmax.f32 %v176_v55, 0.0  ;;  %816 = vmatpush.bf16.msrb.mxu3 %v7626_v49  ;;  %v7742_v55 = vor.u32 %v11183_v53, %v7741_v52  ;;  %v7746_v63 = vor.u32 %v11182_v59, %v7743_v62  ;;  %v11168_v52 = vld [vmem:[%s18185_s5 + $0x124] sm:$0xf]  ;;  %v7687_v53 = vld [vmem:[%s18185_s5 + $0x128] sm:$0xf0] }
  0xc9   :  { %v253_v4 = vmul.f32 %v12043_v57, %v205_v60  ;;  %v11150_v57 = vld [vmem:[%s18185_s5 + $0x94] sm:$0xf]  ;;  %779 = vmatpush.bf16.msrb.mxu1 %v7742_v55 }
  0xca   :  { %851 = vmatpush.bf16.msra.mxu2 %v7778_v7  ;;  %v7618_v61 = vor.u32 %v11150_v57, %v7615_v58  ;;  %v7607_v7 = vld [vmem:[%s18185_s5 + $0x88] sm:$0xf0]  ;;  %v11166_v57 = vld [vmem:[%s18185_s5 + $0x114] sm:$0xf] }
  0xcb   :  { %v269_v8 = vpack.c.bf16 %v253_v4, %v253_v4 }
  0xcc   :  { %v178_v12 = vpop.f32.mrf.mxu0  ;;  %817 = vmatpush.bf16.msrb.mxu3 %v7618_v61 }
  0xcd   :  { %v179_v19 = vadd.f32 %v12263_v45, %v178_v12  ;;  %v297_v21 = vunpack.c.l.b16 %v269_v8  ;;  %v11180_v8 = vld [vmem:[%s18185_s5 + $0x184] sm:$0xf]  ;;  %v7610_v12 = vor.u32 %v11148_v3, %v7607_v7  ;;  %780 = vmatpush.bf16.msrb.mxu1 %v7734_v6 }
  0xce   :  { %852 = vmatpush.bf16.msra.mxu2 %v7770_v23  ;;  %v11176_v23 = vld [vmem:[%s18185_s5 + $0x164] sm:$0xf] }
  0xcf   :  { %v206_v24 = vmax.f32 %v179_v19, 0.0  ;;  %v12496_v25 = vpack.c.b16 %v297_v21, %v296_v13  ;;  %v7738_v13 = vor.u32 %v11180_v8, %v7735_v9  ;;  %v7730_v21 = vor.u32 %v11178_v17, %v7727_v18  ;;  %v11164_v3 = vld [vmem:[%s18185_s5 + $0x104] sm:$0xf]  ;;  %v12066_v9 = vld [vmem:[%s18186_s1 + $0x38] sm:$0xff]  }
  0xd0   :  { %818 = vmatpush.bf16.msrb.mxu3 %v7610_v12  ;;  %v12058_v12 = vunpack.c.l.bf16 %v12066_v9  ;;  %v12059_v18 = vunpack.c.h.bf16 %v12066_v9  ;;  %v7957_v9 = vld [vmem:[%s18187_s7 + $0x140] sm:$0xf] }
  0xd1   :  { %748 = vmatmul.bf16.gmra.mxu2 %v12496_v25  ;;  %v254_v40 = vmul.f32 %v12046_v28, %v206_v24  ;;  %830 = vmatpush.bf16.msra.mxu1 %v7730_v21  ;;  %v7719_v24 = vld [vmem:[%s18185_s5 + $0x168] sm:$0xf0]  ;;  %v12051_v28 = vunpack.c.h.bf16 %v12064_v14 }
  0xd2   :  { %853 = vmatpush.bf16.msra.mxu2 %v7762_v36  ;;  %v7722_v29 = vor.u32 %v11176_v23, %v7719_v24  ;;  %v11172_v36 = vld [vmem:[%s18185_s5 + $0x144] sm:$0xf] }
  0xd3   :  { %v270_v54 = vpack.c.bf16 %v254_v40, %v254_v40  ;;  %v7706_v39 = vor.u32 %v11172_v36, %v7703_v37  ;;  %v7877_v36 = vld [vmem:[%s18187_s7 + $0xa0] sm:$0xf]  ;;  %v11218_v37 = vld [vmem:[%s18187_s7 + $0xac] sm:$0xf0] }
  0xd4   :  { %v180_v41 = vpop.f32.mrf.mxu0 }
  0xd5   :  { %v181_v47 = vadd.f32 %v12263_v45, %v180_v41  ;;  %v306_v5 = vunpack.c.l.b16 %v270_v54  ;;  %831 = vmatpush.bf16.msra.mxu1 %v7722_v29  ;;  %v7690_v54 = vor.u32 %v11168_v52, %v7687_v53  ;;  %v11246_v53 = vld [vmem:[%s18187_s7 + $0x18c] sm:$0xf0] }
  0xd6   :  { %854 = vmatpush.bf16.msra.mxu2 %v7754_v50  ;;  %v12054_v50 = vunpack.c.l.bf16 %v12065_v44 }
  0xd7   :  { %v207_v51 = vmax.f32 %v181_v47, 0.0  ;;  %v11170_v47 = vld [vmem:[%s18185_s5 + $0x134] sm:$0xf] }
  0xd9   :  { %v255_v60 = vmul.f32 %v12047_v48, %v207_v51  ;;  %v7695_v48 = vld [vmem:[%s18185_s5 + $0x138] sm:$0xf0] }
  0xda   :  { %855 = vmatpush.bf16.msra.mxu2 %v7746_v63  ;;  %v7698_v51 = vor.u32 %v11170_v47, %v7695_v48  ;;  %v7861_v48 = vld [vmem:[%s18187_s7 + $0x80] sm:$0xf] }
  0xdb   :  { %v271_v0 = vpack.c.bf16 %v255_v60, %v255_v60  ;;  %v12055_v60 = vunpack.c.h.bf16 %v12065_v44  ;;  %v11290_v44 = vld [vmem:[%s18187_s7 + $0x2ec] sm:$0xf0] }
  0xdc   :  { %v183_v4 = vpop.f32.mrf.mxu0 }
  0xdd   :  { %v184_v10 = vadd.f32 %v12263_v45, %v183_v4  ;;  %v307_v11 = vunpack.c.l.b16 %v271_v0  ;;  %v7671_v4 = vld [vmem:[%s18185_s5 + $0x108] sm:$0xf0] }
  0xde   :  { %856 = vmatpush.bf16.msra.mxu2 %v7738_v13  ;;  %v7674_v8 = vor.u32 %v11164_v3, %v7671_v4  ;;  %v8421_v3 = vld [vmem:[%s18187_s7 + $0x4e0] sm:$0xf]  ;;  %v11354_v4 = vld [vmem:[%s18187_s7 + $0x4ec] sm:$0xf0] }
  0xdf   :  { %v12576_v16 = vpack.c.b16 %v307_v11, %v306_v5  ;;  %v208_v19 = vmax.f32 %v184_v10, 0.0 }
  0xe1   :  { %762 = vmatmul.bf16.vlgmr.msra.gmra.mxu3 %v12576_v16  ;;  %800 = vmatmul.bf16.vlgmr.msrb.gmra.mxu2 %v12304_v15  ;;  %v256_v26 = vmul.f32 %v12050_v20, %v208_v19  ;;  %v11174_v15 = vld [vmem:[%s18185_s5 + $0x154] sm:$0xf] }
  0xe2   :  { %v7714_v35 = vor.u32 %v11174_v15, %v7711_v31  ;;  %v7893_v15 = vld [vmem:[%s18187_s7 + $0xc0] sm:$0xf]  ;;  %v11222_v31 = vld [vmem:[%s18187_s7 + $0xcc] sm:$0xf0] }
  0xe3   :  { %v272_v32 = vpack.c.bf16 %v256_v26, %v256_v26 }
  0xe4   :  { %v185_v22 = vpop.f32.mrf.mxu0  ;;  %832 = vmatpush.bf16.msra.mxu1 %v7714_v35  ;;  %v11254_v35 = vld [vmem:[%s18187_s7 + $0x1cc] sm:$0xf0] }
  0xe5   :  { %v186_v27 = vadd.f32 %v12263_v45, %v185_v22  ;;  %v308_v42 = vunpack.c.l.b16 %v272_v32  ;;  %v8021_v32 = vld [vmem:[%s18187_s7 + $0x1c0] sm:$0xf] }
  0xe7   :  { %v209_v30 = vmax.f32 %v186_v27, 0.0  ;;  %v11226_v27 = vld [vmem:[%s18187_s7 + $0xec] sm:$0xf0] }
  0xe8   :  { %833 = vmatpush.bf16.msra.mxu1 %v7706_v39  ;;  %v8005_v39 = vld [vmem:[%s18187_s7 + $0x1a0] sm:$0xf] }
  0xe9   :  { %v257_v33 = vmul.f32 %v12051_v28, %v209_v30  ;;  %v8037_v28 = vld [vmem:[%s18187_s7 + $0x1e0] sm:$0xf] }
  0xeb   :  { %v273_v38 = vpack.c.bf16 %v257_v33, %v257_v33  ;;  %v7894_v33 = vor.u32 %v11222_v31, %v7893_v15 }
  0xec   :  { %v188_v40 = vpop.f32.mrf.mxu0  ;;  %834 = vmatpush.bf16.msra.mxu1 %v7698_v51 }
  0xed   :  { %v189_v41 = vadd.f32 %v12263_v45, %v188_v40  ;;  %v309_v43 = vunpack.c.l.b16 %v273_v38  ;;  %v8022_v38 = vor.u32 %v11254_v35, %v8021_v32  ;;  %v11250_v40 = vld [vmem:[%s18187_s7 + $0x1ac] sm:$0xf0]  ;;  %v7797_v35 = vld [vmem:[%s18187_s7] sm:$0xf] }
  0xef   :  { %v311_v46 = vpack.c.b16 %v309_v43, %v308_v42  ;;  %v210_v49 = vmax.f32 %v189_v41, 0.0  ;;  %v8165_v41 = vld [vmem:[%s18187_s7 + $0x2e0] sm:$0xf]  ;;  %v7878_v43 = vor.u32 %v11218_v37, %v7877_v36  ;;  %v11198_v36 = vld [vmem:[%s18187_s7 + $0xc] sm:$0xf0] }
  0xf0   :  { %835 = vmatpush.bf16.msra.mxu1 %v7690_v54  ;;  %v8166_v47 = vor.u32 %v11290_v44, %v8165_v41  ;;  %v8149_v54 = vld [vmem:[%s18187_s7 + $0x2c0] sm:$0xf]  ;;  %v11270_v41 = vld [vmem:[%s18187_s7 + $0x24c] sm:$0xf0] }
  0xf1   :  { %767 = vmatmul.bf16.gmra.mxu3 %v311_v46  ;;  %805 = vmatmul.bf16.gmra.mxu2 %v12360_v56  ;;  %v7679_v56 = vld [vmem:[%s18185_s5 + $0x118] sm:$0xf0]  ;;  %v258_v58 = vmul.f32 %v12054_v50, %v210_v49  ;;  %v11214_v49 = vld [vmem:[%s18187_s7 + $0x8c] sm:$0xf0]  ;;  %v7989_v50 = vld [vmem:[%s18187_s7 + $0x180] sm:$0xf] }
  0xf2   :  { %v7682_v62 = vor.u32 %v11166_v57, %v7679_v56  ;;  %2500 = vmatpush.bf16.msrb.mxu2 %v8166_v47  ;;  %v7862_v52 = vor.u32 %v11214_v49, %v7861_v48  ;;  %v7990_v57 = vor.u32 %v11246_v53, %v7989_v50  ;;  %v7925_v37 = vld [vmem:[%s18187_s7 + $0x100] sm:$0xf]  ;;  %v11342_v47 = vld [vmem:[%s18187_s7 + $0x48c] sm:$0xf0] }
  0xf3   :  { %v274_v63 = vpack.c.bf16 %v258_v58, %v258_v58  ;;  %v7845_v58 = vld [vmem:[%s18187_s7 + $0x60] sm:$0xf]  ;;  %v11322_v50 = vld [vmem:[%s18187_s7 + $0x3ec] sm:$0xf0] }
  0xf4   :  { %v190_v55 = vpop.f32.mrf.mxu0  ;;  %836 = vmatpush.bf16.msra.mxu1 %v7682_v62  ;;  %v7973_v62 = vld [vmem:[%s18187_s7 + $0x160] sm:$0xf]  ;;  %v11386_v53 = vld [vmem:[%s18187_s7 + $0x5ec] sm:$0xf0] }
  0xf5   :  { %v191_v59 = vadd.f32 %v12263_v45, %v190_v55  ;;  %v318_v5 = vunpack.c.l.b16 %v274_v63  ;;  %v11286_v55 = vld [vmem:[%s18187_s7 + $0x2cc] sm:$0xf0]  ;;  %v8293_v48 = vld [vmem:[%s18187_s7 + $0x3e0] sm:$0xf] }
  0xf6   :  { %v8150_v56 = vor.u32 %v11286_v55, %v8149_v54  ;;  %v11242_v63 = vld [vmem:[%s18187_s7 + $0x16c] sm:$0xf0]  ;;  %v8294_v54 = vor.u32 %v11322_v50, %v8293_v48  ;;  %v8485_v48 = vld [vmem:[%s18187_s7 + $0x560] sm:$0xf] }
  0xf7   :  { %v211_v61 = vmax.f32 %v191_v59, 0.0  ;;  %v11210_v59 = vld [vmem:[%s18187_s7 + $0x6c] sm:$0xf0] }
  0xf8   :  { %837 = vmatpush.bf16.msra.mxu1 %v7674_v8  ;;  %2501 = vmatpush.bf16.msrb.mxu2 %v8150_v56  ;;  %v11206_v8 = vld [vmem:[%s18187_s7 + $0x4c] sm:$0xf0] }
  0xf9   :  { %v259_v0 = vmul.f32 %v12055_v60, %v211_v61  ;;  %v7846_v61 = vor.u32 %v11210_v59, %v7845_v58  ;;  %v11266_v56 = vld [vmem:[%s18187_s7 + $0x22c] sm:$0xf0] }
  0xfa   :  { %v11370_v50 = vld [vmem:[%s18187_s7 + $0x56c] sm:$0xf0] }
  0xfb   :  { %v275_v1 = vpack.c.bf16 %v259_v0, %v259_v0  ;;  %v8133_v0 = vld [vmem:[%s18187_s7 + $0x2a0] sm:$0xf] }
  0xfc   :  { %v193_v2 = vpop.f32.mrf.mxu0 }
  0xfd   :  { %v319_v6 = vunpack.c.l.b16 %v275_v1  ;;  %v194_v7 = vadd.f32 %v12263_v45, %v193_v2  ;;  %v7974_v1 = vor.u32 %v11242_v63, %v7973_v62  ;;  %v11282_v2 = vld [vmem:[%s18187_s7 + $0x2ac] sm:$0xf0]  ;;  %v8277_v63 = vld [vmem:[%s18187_s7 + $0x3c0] sm:$0xf] }
  0xfe   :  { %v11338_v62 = vld [vmem:[%s18187_s7 + $0x46c] sm:$0xf0] }
  0xff   :  { %v322_v10 = vpack.c.b16 %v319_v6, %v318_v5  ;;  %v212_v11 = vmax.f32 %v194_v7, 0.0  ;;  %v8134_v5 = vor.u32 %v11282_v2, %v8133_v0  ;;  %v8422_v6 = vor.u32 %v11354_v4, %v8421_v3  ;;  %v7829_v7 = vld [vmem:[%s18187_s7 + $0x40] sm:$0xf]  ;;  %v11382_v3 = vld [vmem:[%s18187_s7 + $0x5cc] sm:$0xf0] }
 0x100   :  { %v8533_v2 = vld [vmem:[%s18187_s7 + $0x5c0] sm:$0xf] }
 0x101   :  { %781 = vmatmul.bf16.vlgmr.msrb.gmra.mxu1 %v322_v10  ;;  %819 = vmatmul.bf16.vlgmr.msrb.gmra.mxu3 %v12416_v34  ;;  %v260_v14 = vmul.f32 %v12058_v12, %v212_v11  ;;  %v11238_v11 = vld [vmem:[%s18187_s7 + $0x14c] sm:$0xf0]  ;;  %v8117_v12 = vld [vmem:[%s18187_s7 + $0x280] sm:$0xf] }
 0x102   :  { %857 = vmatmul.bf16.vlgmr.msra.gmra.mxu2 %v322_v10  ;;  %2526 = vmatpush.bf16.msrb.mxu0 %v8422_v6  ;;  %v7830_v10 = vor.u32 %v11206_v8, %v7829_v7  ;;  %v8053_v6 = vld [vmem:[%s18187_s7 + $0x200] sm:$0xf]  ;;  %v11262_v7 = vld [vmem:[%s18187_s7 + $0x20c] sm:$0xf0] }
 0x103   :  { %v276_v20 = vpack.c.bf16 %v260_v14, %v260_v14  ;;  %2502 = vmatpush.bf16.msrb.mxu2 %v8134_v5  ;;  %v7958_v14 = vor.u32 %v11238_v11, %v7957_v9  ;;  %v8534_v5 = vor.u32 %v11382_v3, %v8533_v2  ;;  %v8341_v8 = vld [vmem:[%s18187_s7 + $0x440] sm:$0xf]  ;;  %v8054_v11 = vor.u32 %v11262_v7, %v8053_v6  ;;  %v11366_v2 = vld [vmem:[%s18187_s7 + $0x54c] sm:$0xf0]  ;;  %v11220_v7 = vld [vmem:[%s18187_s7 + $0xc4] sm:$0xf] }
 0x104   :  { %v195_v13 = vpop.f32.mrf.mxu0  ;;  %v8629_v3 = vld [vmem:[%s18187_s7 + $0x680] sm:$0xf] }
 0x105   :  { %v196_v17 = vadd.f32 %v12263_v45, %v195_v13  ;;  %v320_v23 = vunpack.c.l.b16 %v276_v20  ;;  %v7909_v45 = vld [vmem:[%s18187_s7 + $0xe0] sm:$0xf]  ;;  %v11278_v13 = vld [vmem:[%s18187_s7 + $0x28c] sm:$0xf0] }
 0x106   :  { %v7910_v29 = vor.u32 %v11226_v27, %v7909_v45  ;;  %v11234_v45 = vld [vmem:[%s18187_s7 + $0x12c] sm:$0xf0]  ;;  %v8101_v27 = vld [vmem:[%s18187_s7 + $0x260] sm:$0xf] }
 0x107   :  { %v213_v19 = vmax.f32 %v196_v17, 0.0  ;;  %v8118_v17 = vor.u32 %v11278_v13, %v8117_v12  ;;  %v11334_v12 = vld [vmem:[%s18187_s7 + $0x44c] sm:$0xf0]  ;;  %v8261_v13 = vld [vmem:[%s18187_s7 + $0x3a0] sm:$0xf] }
 0x108   :  { %2474 = vmatpush.bf16.msra.mxu3 %v7910_v29  ;;  %v11274_v29 = vld [vmem:[%s18187_s7 + $0x26c] sm:$0xf0] }
 0x109   :  { %v261_v21 = vmul.f32 %v12059_v18, %v213_v19  ;;  %v8405_v18 = vld [vmem:[%s18187_s7 + $0x4c0] sm:$0xf]  ;;  %v11350_v19 = vld [vmem:[%s18187_s7 + $0x4cc] sm:$0xf0]  ;;  %2503 = vmatpush.bf16.msrb.mxu2 %v8118_v17  ;;  %v8102_v32 = vor.u32 %v11274_v29, %v8101_v27  ;;  %v8342_v17 = vor.u32 %v11334_v12, %v8341_v8  ;;  %v7895_v8 = vld [vmem:[%s18187_s7 + $0xd0] sm:$0xf0] }
 0x10a   :  { %v11330_v27 = vld [vmem:[%s18187_s7 + $0x42c] sm:$0xf0]  ;;  %v8245_v29 = vld [vmem:[%s18187_s7 + $0x380] sm:$0xf] }
 0x10b   :  { %v277_v22 = vpack.c.bf16 %v261_v21, %v261_v21  ;;  %v8406_v21 = vor.u32 %v11350_v19, %v8405_v18  ;;  %v8517_v19 = vld [vmem:[%s18187_s7 + $0x5a0] sm:$0xf] }
 0x10c   :  { %2475 = vmatpush.bf16.msra.mxu3 %v7894_v33 }
 0x10d   :  { %v321_v24 = vunpack.c.l.b16 %v277_v22  ;;  %v7813_v22 = vld [vmem:[%s18187_s7 + $0x20] sm:$0xf]  ;;  %2527 = vmatpush.bf16.msrb.mxu0 %v8406_v21  ;;  %2504 = vmatpush.bf16.msrb.mxu2 %v8102_v32  ;;  %v11378_v21 = vld [vmem:[%s18187_s7 + $0x5ac] sm:$0xf0] }
 0x10f   :  { %v323_v26 = vpack.c.b16 %v321_v24, %v320_v23  ;;  %v11202_v23 = vld [vmem:[%s18187_s7 + $0x2c] sm:$0xf0] }
 0x110   :  { %2476 = vmatpush.bf16.msra.mxu3 %v7878_v43  ;;  %v7814_v24 = vor.u32 %v11202_v23, %v7813_v22  ;;  %v8677_v22 = vld [vmem:[%s18187_s7 + $0x6e0] sm:$0xf]  ;;  %v8518_v23 = vor.u32 %v11378_v21, %v8517_v19  ;;  %v11362_v21 = vld [vmem:[%s18187_s7 + $0x52c] sm:$0xf0] }
 0x111   :  { %786 = vmatmul.bf16.gmra.mxu1 %v323_v26  ;;  %824 = vmatmul.bf16.gmra.mxu3 %v12496_v25  ;;  %v11258_v25 = vld [vmem:[%s18187_s7 + $0x1ec] sm:$0xf0] }
 0x112   :  { %862 = vmatmul.bf16.gmra.mxu2 %v323_v26  ;;  %v7941_v26 = vld [vmem:[%s18187_s7 + $0x120] sm:$0xf] }
 0x114   :  { %2477 = vmatpush.bf16.msra.mxu3 %v7862_v52  ;;  %v8549_v52 = vld [vmem:[%s18187_s7 + $0x5e0] sm:$0xf] }
 0x115   :  { %v8550_v55 = vor.u32 %v11386_v53, %v8549_v52  ;;  %v8645_v52 = vld [vmem:[%s18187_s7 + $0x6a0] sm:$0xf]  ;;  %v11410_v53 = vld [vmem:[%s18187_s7 + $0x6ac] sm:$0xf0] }
 0x118   :  { %2478 = vmatpush.bf16.msra.mxu3 %v7846_v61  ;;  %v8357_v61 = vld [vmem:[%s18187_s7 + $0x460] sm:$0xf] }
 0x119   :  { %v8358_v0 = vor.u32 %v11338_v62, %v8357_v61  ;;  %v8213_v62 = vld [vmem:[%s18187_s7 + $0x340] sm:$0xf] }
 0x11c   :  { %2479 = vmatpush.bf16.msra.mxu3 %v7830_v10 }
 0x11e   :  { %v12686_v42 = vpop.f32.mrf.mxu1 }
 0x120   :  { %2480 = vmatpush.bf16.msra.mxu3 %v7814_v24  ;;  %v11418_v24 = vld [vmem:[%s18187_s7 + $0x6ec] sm:$0xf0] }
 0x121   :  { %838 = vmatmul.bf16.vlgmr.msra.gmra.mxu1 %v12576_v16  ;;  %v8038_v16 = vor.u32 %v11258_v25, %v8037_v28  ;;  %v7942_v28 = vor.u32 %v11234_v45, %v7941_v26  ;;  %v8389_v25 = vld [vmem:[%s18187_s7 + $0x4a0] sm:$0xf]  ;;  %v8678_v26 = vor.u32 %v11418_v24, %v8677_v22 }
 0x122   :  { %v8325_v45 = vld [vmem:[%s18187_s7 + $0x420] sm:$0xf] }
 0x123   :  { %2487 = vmatpush.bf16.msrb.mxu1 %v8038_v16  ;;  %v11346_v16 = vld [vmem:[%s18187_s7 + $0x4ac] sm:$0xf0]  ;;  %v8613_v22 = vld [vmem:[%s18187_s7 + $0x660] sm:$0xf] }
 0x124   :  { %v8390_v33 = vor.u32 %v11346_v16, %v8389_v25  ;;  %v11310_v25 = vld [vmem:[%s18187_s7 + $0x38c] sm:$0xf0]  ;;  %v8501_v16 = vld [vmem:[%s18187_s7 + $0x580] sm:$0xf] }
 0x125   :  { %v8246_v32 = vor.u32 %v11310_v25, %v8245_v29  ;;  %v8181_v25 = vld [vmem:[%s18187_s7 + $0x300] sm:$0xf] }
 0x126   :  { %v12717_v60 = vpop.f32.mrf.mxu1  ;;  %2528 = vmatpush.bf16.msrb.mxu0 %v8390_v33  ;;  %v11374_v33 = vld [vmem:[%s18187_s7 + $0x58c] sm:$0xf0] }
 0x127   :  { %2488 = vmatpush.bf16.msrb.mxu1 %v8022_v38  ;;  %v7798_v38 = vor.u32 %v11198_v36, %v7797_v35  ;;  %v8661_v35 = vld [vmem:[%s18187_s7 + $0x6c0] sm:$0xf]  ;;  %v11414_v36 = vld [vmem:[%s18187_s7 + $0x6cc] sm:$0xf0] }
 0x129   :  { %2481 = vmatpush.bf16.msra.mxu3 %v7798_v38  ;;  %v8502_v38 = vor.u32 %v11374_v33, %v8501_v16  ;;  %v11294_v16 = vld [vmem:[%s18187_s7 + $0x30c] sm:$0xf0] }
 0x12a   :  { %v8182_v33 = vor.u32 %v11294_v16, %v8181_v25 }
 0x12d   :  { %2513 = vmatpush.bf16.msrb.mxu3 %v8294_v54 }
 0x12e   :  { %v12787_v15 = vpop.f32.mrf.mxu1 }
 0x131   :  { %843 = vmatmul.bf16.gmra.mxu1 %v311_v46  ;;  %v8006_v46 = vor.u32 %v11250_v40, %v8005_v39  ;;  %v11230_v39 = vld [vmem:[%s18187_s7 + $0x10c] sm:$0xf0]  ;;  %v8085_v40 = vld [vmem:[%s18187_s7 + $0x240] sm:$0xf] }
 0x132   :  { %v7926_v43 = vor.u32 %v11230_v39, %v7925_v37  ;;  %v8086_v44 = vor.u32 %v11270_v41, %v8085_v40  ;;  %v8662_v39 = vor.u32 %v11414_v36, %v8661_v35  ;;  %v8309_v40 = vld [vmem:[%s18187_s7 + $0x400] sm:$0xf]  ;;  %v11326_v41 = vld [vmem:[%s18187_s7 + $0x40c] sm:$0xf0] }
 0x133   :  { %2489 = vmatpush.bf16.msrb.mxu1 %v8006_v46  ;;  %v8373_v46 = vld [vmem:[%s18187_s7 + $0x480] sm:$0xf]  ;;  %v11358_v35 = vld [vmem:[%s18187_s7 + $0x50c] sm:$0xf0] }
 0x134   :  { %v8374_v49 = vor.u32 %v11342_v47, %v8373_v46  ;;  %2505 = vmatpush.bf16.msrb.mxu2 %v8086_v44  ;;  %v8310_v44 = vor.u32 %v11326_v41, %v8309_v40  ;;  %v8229_v46 = vld [vmem:[%s18187_s7 + $0x360] sm:$0xf]  ;;  %v11306_v47 = vld [vmem:[%s18187_s7 + $0x36c] sm:$0xf0]  ;;  %v11212_v41 = vld [vmem:[%s18187_s7 + $0x84] sm:$0xf] }
 0x135   :  { %v8597_v36 = vld [vmem:[%s18187_s7 + $0x640] sm:$0xf] }
 0x136   :  { %2529 = vmatpush.bf16.msrb.mxu0 %v8374_v49  ;;  %v12862_v9 = vpop.f32.mrf.mxu1  ;;  %v8230_v49 = vor.u32 %v11306_v47, %v8229_v46 }
 0x137   :  { %2490 = vmatpush.bf16.msrb.mxu1 %v7990_v57  ;;  %v8069_v57 = vld [vmem:[%s18187_s7 + $0x220] sm:$0xf] }
 0x138   :  { %v8070_v59 = vor.u32 %v11266_v56, %v8069_v57  ;;  %v8646_v57 = vor.u32 %v11410_v53, %v8645_v52  ;;  %v11224_v56 = vld [vmem:[%s18187_s7 + $0xe4] sm:$0xf]  ;;  %v7847_v52 = vld [vmem:[%s18187_s7 + $0x70] sm:$0xf0]  ;;  %v390_v53 = vld [vmem:[%s18188_s6] sm:$0x3] }
 0x13a   :  { %2506 = vmatpush.bf16.msrb.mxu2 %v8070_v59  ;;  %2530 = vmatpush.bf16.msrb.mxu0 %v8358_v0  ;;  %v7911_v59 = vld [vmem:[%s18187_s7 + $0xf0] sm:$0xf0]  ;;  %v8469_v0 = vld [vmem:[%s18187_s7 + $0x540] sm:$0xf] }
 0x13b   :  { %2491 = vmatpush.bf16.msrb.mxu1 %v7974_v1  ;;  %v11318_v1 = vld [vmem:[%s18187_s7 + $0x3cc] sm:$0xf0]  ;;  %v7914_v61 = vor.u32 %v11224_v56, %v7911_v59  ;;  %v8565_v59 = vld [vmem:[%s18187_s7 + $0x600] sm:$0xf] }
 0x13c   :  { %v8278_v4 = vor.u32 %v11318_v1, %v8277_v63  ;;  %v11302_v63 = vld [vmem:[%s18187_s7 + $0x34c] sm:$0xf0] }
 0x13d   :  { %v8214_v1 = vor.u32 %v11302_v63, %v8213_v62  ;;  %v11204_v62 = vld [vmem:[%s18187_s7 + $0x44] sm:$0xf]  ;;  %v13053_v63 = vperm.slane %v390_v53, 0 }
 0x13e   :  { %2514 = vmatpush.bf16.msrb.mxu3 %v8278_v4  ;;  %2507 = vmatpush.bf16.msrb.mxu2 %v8054_v11  ;;  %v11406_v4 = vld [vmem:[%s18187_s7 + $0x68c] sm:$0xf0]  ;;  %v7898_v11 = vor.u32 %v11220_v7, %v7895_v8  ;;  %v11200_v7 = vld [vmem:[%s18187_s7 + $0x24] sm:$0xf]  ;;  %v7815_v8 = vld [vmem:[%s18187_s7 + $0x30] sm:$0xf0] }
 0x13f   :  { %2492 = vmatpush.bf16.msrb.mxu1 %v7958_v14  ;;  %v11314_v14 = vld [vmem:[%s18187_s7 + $0x3ac] sm:$0xf0]  ;;  %2531 = vmatpush.bf16.msrb.mxu0 %v8342_v17  ;;  %v8630_v6 = vor.u32 %v11406_v4, %v8629_v3 }
 0x140   :  { %v8262_v18 = vor.u32 %v11314_v14, %v8261_v13  ;;  %v8197_v14 = vld [vmem:[%s18187_s7 + $0x320] sm:$0xf]  ;;  %v11298_v17 = vld [vmem:[%s18187_s7 + $0x32c] sm:$0xf0] }
 0x141   :  { %v8198_v19 = vor.u32 %v11298_v17, %v8197_v14 }
 0x142   :  { %2515 = vmatpush.bf16.msrb.mxu3 %v8262_v18  ;;  %2552 = vmatpush.bf16.msra.mxu2 %v8678_v26  ;;  %v8453_v18 = vld [vmem:[%s18187_s7 + $0x520] sm:$0xf] }
 0x143   :  { %2493 = vmatpush.bf16.msrb.mxu1 %v7942_v28  ;;  %v8326_v28 = vor.u32 %v11330_v27, %v8325_v45  ;;  %v8454_v24 = vor.u32 %v11362_v21, %v8453_v18  ;;  %v11216_v45 = vld [vmem:[%s18187_s7 + $0xa4] sm:$0xf]  ;;  %v7879_v27 = vld [vmem:[%s18187_s7 + $0xb0] sm:$0xf0] }
 0x144   :  { %v12643_v34 = vpop.f32.mrf.mxu2  ;;  %v7799_v21 = vld [vmem:[%s18187_s7 + $0x10] sm:$0xf0] }
 0x145   :  { %2532 = vmatpush.bf16.msrb.mxu0 %v8326_v28  ;;  %v7882_v28 = vor.u32 %v11216_v45, %v7879_v27 }
 0x146   :  { %2516 = vmatpush.bf16.msrb.mxu3 %v8246_v32  ;;  %2553 = vmatpush.bf16.msra.mxu2 %v8662_v39  ;;  %v8437_v32 = vld [vmem:[%s18187_s7 + $0x500] sm:$0xf] }
 0x147   :  { %2494 = vmatpush.bf16.msrb.mxu1 %v7926_v43  ;;  %v8438_v39 = vor.u32 %v11358_v35, %v8437_v32 }
 0x149   :  { %2533 = vmatpush.bf16.msrb.mxu0 %v8310_v44  ;;  %v7863_v44 = vld [vmem:[%s18187_s7 + $0x90] sm:$0xf0] }
 0x14a   :  { %2517 = vmatpush.bf16.msrb.mxu3 %v8230_v49  ;;  %2554 = vmatpush.bf16.msra.mxu2 %v8646_v57  ;;  %v7866_v46 = vor.u32 %v11212_v41, %v7863_v44  ;;  %v11394_v49 = vld [vmem:[%s18187_s7 + $0x62c] sm:$0xf0]  ;;  %v731_v41 = vadd.f32 %v12787_v15, %v13053_v63 }
 0x14b   :  { %2539 = vmatpush.bf16.msra.mxu1 %v8550_v55  ;;  %v8486_v55 = vor.u32 %v11370_v50, %v8485_v48  ;;  %v8581_v48 = vld [vmem:[%s18187_s7 + $0x620] sm:$0xf]  ;;  %v11208_v50 = vld [vmem:[%s18187_s7 + $0x64] sm:$0xf] }
 0x14c   :  { %v12657_v30 = vpop.f32.mrf.mxu2  ;;  %v8582_v57 = vor.u32 %v11394_v49, %v8581_v48  ;;  %v7850_v56 = vor.u32 %v11208_v50, %v7847_v52  ;;  %v11256_v48 = vld [vmem:[%s18187_s7 + $0x1e4] sm:$0xf]  ;;  %v8039_v49 = vld [vmem:[%s18187_s7 + $0x1f0] sm:$0xf0] }
 0x14d   :  { %2578 = vmatpush.bf16.msra.mxu0 %v7914_v61  ;;  %v11390_v61 = vld [vmem:[%s18187_s7 + $0x60c] sm:$0xf0] }
 0x14e   :  { %2518 = vmatpush.bf16.msrb.mxu3 %v8214_v1  ;;  %2555 = vmatpush.bf16.msra.mxu2 %v8630_v6  ;;  %v13062_v6 = vperm.slane %v390_v53, 1 }
 0x14f   :  { %2540 = vmatpush.bf16.msra.mxu1 %v8534_v5  ;;  %v8470_v5 = vor.u32 %v11366_v2, %v8469_v0  ;;  %v7831_v0 = vld [vmem:[%s18187_s7 + $0x50] sm:$0xf0]  ;;  %v8566_v2 = vor.u32 %v11390_v61, %v8565_v59 }
 0x150   :  { %v7834_v3 = vor.u32 %v11204_v62, %v7831_v0 }
 0x151   :  { %2579 = vmatpush.bf16.msra.mxu0 %v7898_v11  ;;  %v7818_v11 = vor.u32 %v11200_v7, %v7815_v8 }
 0x152   :  { %2519 = vmatpush.bf16.msrb.mxu3 %v8198_v19  ;;  %v11196_v19 = vld [vmem:[%s18187_s7 + $0x4] sm:$0xf] }
 0x153   :  { %2541 = vmatpush.bf16.msra.mxu1 %v8518_v23  ;;  %v11402_v23 = vld [vmem:[%s18187_s7 + $0x66c] sm:$0xf0] }
 0x154   :  { %v12700_v51 = vpop.f32.mrf.mxu2  ;;  %v8614_v26 = vor.u32 %v11402_v23, %v8613_v22  ;;  %v7802_v22 = vor.u32 %v11196_v19, %v7799_v21  ;;  %v733_v19 = vadd.f32 %v12862_v9, %v13053_v63  ;;  %v11248_v9 = vld [vmem:[%s18187_s7 + $0x1a4] sm:$0xf] }
 0x155   :  { %2580 = vmatpush.bf16.msra.mxu0 %v7882_v28  ;;  %v750_v15 = vadd.f32 %v12700_v51, %v731_v41  ;;  %v11244_v41 = vld [vmem:[%s18187_s7 + $0x184] sm:$0xf] }
 0x156   :  { %2556 = vmatpush.bf16.msra.mxu2 %v8614_v26  ;;  %2520 = vmatpush.bf16.msrb.mxu3 %v8182_v33 }
 0x157   :  { %2542 = vmatpush.bf16.msra.mxu1 %v8502_v38  ;;  %v11398_v38 = vld [vmem:[%s18187_s7 + $0x64c] sm:$0xf0] }
 0x158   :  { %v8598_v40 = vor.u32 %v11398_v38, %v8597_v36 }
 0x159   :  { %2581 = vmatpush.bf16.msra.mxu0 %v7866_v46 }
 0x15a   :  { %2557 = vmatpush.bf16.msra.mxu2 %v8598_v40 }
 0x15b   :  { %2543 = vmatpush.bf16.msra.mxu1 %v8486_v55 }
 0x15c   :  { %v12761_v20 = vpop.f32.mrf.mxu2 }
 0x15d   :  { %2582 = vmatpush.bf16.msra.mxu0 %v7850_v56 }
 0x15e   :  { %2558 = vmatpush.bf16.msra.mxu2 %v8582_v57 }
 0x15f   :  { %2544 = vmatpush.bf16.msra.mxu1 %v8470_v5  ;;  %v726_v5 = vadd.f32 %v12686_v42, %v13053_v63 }
 0x161   :  { %2583 = vmatpush.bf16.msra.mxu0 %v7834_v3  ;;  %v745_v14 = vadd.f32 %v12643_v34, %v726_v5  ;;  %v728_v34 = vadd.f32 %v12717_v60, %v13053_v63  ;;  %v11446_v3 = vld [vmem:[%s18187_s7 + $0x7cc] sm:$0xf0]  ;;  %v8007_v63 = vld [vmem:[%s18187_s7 + $0x1b0] sm:$0xf0] }
 0x162   :  { %2559 = vmatpush.bf16.msra.mxu2 %v8566_v2  ;;  %v8789_v2 = vld [vmem:[%s18187_s7 + $0x7c0] sm:$0xf] }
 0x163   :  { %2545 = vmatpush.bf16.msra.mxu1 %v8454_v24  ;;  %v747_v27 = vadd.f32 %v12657_v30, %v728_v34 }
 0x164   :  { %v12789_v31 = vpop.f32.mrf.mxu3  ;;  %v12833_v58 = vpop.f32.mrf.mxu2 }
 0x165   :  { %v764_v18 = vadd.f32 %v12789_v31, %v745_v14  ;;  %v802_v42 = vadd.f32 %v12833_v58, %v13062_v6  ;;  %2584 = vmatpush.bf16.msra.mxu0 %v7818_v11  ;;  %v876_v31 = vld [vmem:[%s18189_s2] sm:$0xff]  ;;  %v8023_v11 = vld [vmem:[%s18187_s7 + $0x1d0] sm:$0xf0] }
 0x166   :  { %v880_v25 = vunpack.c.l.bf16 %v876_v31  ;;  %v881_v32 = vunpack.c.h.bf16 %v876_v31 }
 0x167   :  { %2546 = vmatpush.bf16.msra.mxu1 %v8438_v39  ;;  %v877_v39 = vld [vmem:[%s18189_s2 + $0x8] sm:$0xff] }
 0x168   :  { %v882_v52 = vunpack.c.l.bf16 %v877_v39  ;;  %v883_v56 = vunpack.c.h.bf16 %v877_v39 }
 0x169   :  { %2585 = vmatpush.bf16.msra.mxu0 %v7802_v22 }
 0x16c   :  { %v12864_v10 = vpop.f32.mrf.mxu3  ;;  %v12911_v37 = vpop.f32.mrf.mxu2 }
 0x16d   :  { %v804_v33 = vadd.f32 %v12911_v37, %v13062_v6 }
 0x174   :  { %v12939_v54 = vpop.f32.mrf.mxu3  ;;  %v12971_v12 = vpop.f32.mrf.mxu2 }
 0x175   :  { %v769_v62 = vadd.f32 %v12939_v54, %v750_v15  ;;  %v807_v51 = vadd.f32 %v12971_v12, %v13062_v6  ;;  %v11252_v54 = vld [vmem:[%s18187_s7 + $0x1c4] sm:$0xf]  ;;  %v878_v12 = vld [vmem:[%s18189_s2 + $0x10] sm:$0xff] }
 0x17c   :  { %v12999_v29 = vpop.f32.mrf.mxu3  ;;  %v13042_v55 = vpop.f32.mrf.mxu2 }
 0x17d   :  { %v809_v39 = vadd.f32 %v13042_v55, %v13062_v6  ;;  %v8151_v55 = vld [vmem:[%s18187_s7 + $0x2d0] sm:$0xf0] }
 0x17e   :  { %v12919_v43 = vpop.f32.mrf.mxu1 }
 0x17f   :  { %v783_v23 = vadd.f32 %v12919_v43, %v764_v18  ;;  %v766_v43 = vadd.f32 %v12864_v10, %v747_v27  ;;  %v8805_v10 = vld [vmem:[%s18187_s7 + $0x7e0] sm:$0xf]  ;;  %v11288_v27 = vld [vmem:[%s18187_s7 + $0x2e4] sm:$0xf] }
 0x181   :  { %v868_v28 = vmax.f32 %v783_v23, 0.0  ;;  %v8790_v23 = vor.u32 %v11446_v3, %v8789_v2 }
 0x183   :  { %v888_v38 = vmul.f32 %v880_v25, %v868_v28  ;;  %v8167_v28 = vld [vmem:[%s18187_s7 + $0x2f0] sm:$0xf0] }
 0x184   :  { %v820_v1 = vpop.f32.mrf.mxu3 }
 0x185   :  { %v858_v17 = vpop.f32.mrf.mxu2  ;;  %v821_v24 = vadd.f32 %v820_v1, %v802_v42  ;;  %v8042_v1 = vor.u32 %v11256_v48, %v8039_v49 }
 0x186   :  { %v12973_v13 = vpop.f32.mrf.mxu1 }
 0x187   :  { %v785_v35 = vadd.f32 %v12973_v13, %v766_v43  ;;  %v11450_v13 = vld [vmem:[%s18187_s7 + $0x7ec] sm:$0xf0] }
 0x188   :  { %v8806_v0 = vor.u32 %v11450_v13, %v8805_v10 }
 0x189   :  { %v870_v50 = vmax.f32 %v785_v35, 0.0  ;;  %v8010_v35 = vor.u32 %v11248_v9, %v8007_v63  ;;  %v7959_v9 = vld [vmem:[%s18187_s7 + $0x150] sm:$0xf0]  ;;  %v11276_v63 = vld [vmem:[%s18187_s7 + $0x284] sm:$0xf] }
 0x18b   :  { %v890_v14 = vmul.f32 %v882_v52, %v870_v50  ;;  %v8741_v50 = vld [vmem:[%s18187_s7 + $0x760] sm:$0xf]  ;;  %v11434_v52 = vld [vmem:[%s18187_s7 + $0x76c] sm:$0xf0] }
 0x18c   :  { %v822_v58 = vpop.f32.mrf.mxu3 }
 0x18d   :  { %v860_v36 = vpop.f32.mrf.mxu2  ;;  %v823_v30 = vadd.f32 %v822_v58, %v804_v33  ;;  %v11442_v58 = vld [vmem:[%s18187_s7 + $0x7ac] sm:$0xf0] }
 0x18e   :  { %v13025_v47 = vpop.f32.mrf.mxu1 }
 0x194   :  { %v825_v53 = vpop.f32.mrf.mxu3 }
 0x195   :  { %v826_v18 = vadd.f32 %v825_v53, %v807_v51  ;;  %v863_v21 = vpop.f32.mrf.mxu2  ;;  %v11240_v53 = vld [vmem:[%s18187_s7 + $0x164] sm:$0xf] }
 0x196   :  { %v13058_v4 = vpop.f32.mrf.mxu1 }
 0x19d   :  { %v865_v51 = vpop.f32.mrf.mxu2 }
 0x19e   :  { %v839_v26 = vpop.f32.mrf.mxu1 }
 0x19f   :  { %v840_v45 = vadd.f32 %v839_v26, %v821_v24  ;;  %v8026_v24 = vor.u32 %v11252_v54, %v8023_v11  ;;  %v752_v26 = vadd.f32 %v12761_v20, %v733_v19 }
 0x1a1   :  { %v859_v16 = vadd.f32 %v858_v17, %v840_v45  ;;  %v788_v17 = vadd.f32 %v13025_v47, %v769_v62  ;;  %v8773_v47 = vld [vmem:[%s18187_s7 + $0x7a0] sm:$0xf]  ;;  %v884_v45 = vunpack.c.l.bf16 %v878_v12  ;;  %v771_v33 = vadd.f32 %v12999_v29, %v752_v26  ;;  %v7975_v62 = vld [vmem:[%s18187_s7 + $0x170] sm:$0xf0] }
 0x1a2   :  { %v8774_v20 = vor.u32 %v11442_v58, %v8773_v47  ;;  %v8170_v29 = vor.u32 %v11288_v27, %v8167_v28  ;;  %v8119_v26 = vld [vmem:[%s18187_s7 + $0x290] sm:$0xf0]  ;;  %v11348_v28 = vld [vmem:[%s18187_s7 + $0x4c4] sm:$0xf] }
 0x1a3   :  { %v869_v60 = vmax.f32 %v859_v16, 0.0  ;;  %v872_v25 = vmax.f32 %v788_v17, 0.0  ;;  %v790_v10 = vadd.f32 %v13058_v4, %v771_v33  ;;  %v11352_v17 = vld [vmem:[%s18187_s7 + $0x4e4] sm:$0xf]  ;;  %v8122_v33 = vor.u32 %v11276_v63, %v8119_v26  ;;  %v8343_v26 = vld [vmem:[%s18187_s7 + $0x450] sm:$0xf0] }
 0x1a4   :  { %v11332_v63 = vld [vmem:[%s18187_s7 + $0x444] sm:$0xf] }
 0x1a5   :  { %v889_v40 = vmul.f32 %v881_v32, %v869_v60  ;;  %v885_v32 = vunpack.c.h.bf16 %v878_v12  ;;  %v827_v60 = vpop.f32.mrf.mxu3  ;;  %v892_v6 = vmul.f32 %v884_v45, %v872_v25  ;;  %v874_v2 = vmax.f32 %v790_v10, 0.0  ;;  %v8423_v12 = vld [vmem:[%s18187_s7 + $0x4f0] sm:$0xf0] }
 0x1a6   :  { %v841_v44 = vpop.f32.mrf.mxu1  ;;  %v828_v13 = vadd.f32 %v827_v60, %v809_v39  ;;  %v8426_v58 = vor.u32 %v11352_v17, %v8423_v12  ;;  %v8407_v25 = vld [vmem:[%s18187_s7 + $0x4d0] sm:$0xf0]  ;;  %v8709_v60 = vld [vmem:[%s18187_s7 + $0x720] sm:$0xf]  ;;  %v11272_v39 = vld [vmem:[%s18187_s7 + $0x264] sm:$0xf] }
 0x1a7   :  { %v896_v37 = vpack.c.bf16 %v889_v40, %v888_v38  ;;  %v842_v46 = vadd.f32 %v841_v44, %v823_v30  ;;  %v11438_v38 = vld [vmem:[%s18187_s7 + $0x78c] sm:$0xf0]  ;;  %v7991_v44 = vld [vmem:[%s18187_s7 + $0x190] sm:$0xf0]  ;;  %v11316_v12 = vld [vmem:[%s18187_s7 + $0x3c4] sm:$0xf] }
 0x1a8   :  { %v7994_v15 = vor.u32 %v11244_v41, %v7991_v44  ;;  %v11344_v41 = vld [vmem:[%s18187_s7 + $0x4a4] sm:$0xf]  ;;  %v8391_v44 = vld [vmem:[%s18187_s7 + $0x4b0] sm:$0xf0] }
 0x1a9   :  { %v861_v57 = vadd.f32 %v860_v36, %v842_v46  ;;  %v901_v59 = vunpack.c.l.b16 %v896_v37  ;;  %v902_v61 = vunpack.c.h.b16 %v896_v37  ;;  %v8757_v36 = vld [vmem:[%s18187_s7 + $0x780] sm:$0xf]  ;;  %v11284_v37 = vld [vmem:[%s18187_s7 + $0x2c4] sm:$0xf]  ;;  %v879_v46 = vld [vmem:[%s18189_s2 + $0x18] sm:$0xff] }
 0x1aa   :  { %v8758_v49 = vor.u32 %v11438_v38, %v8757_v36  ;;  %v886_v3 = vunpack.c.l.bf16 %v879_v46  ;;  %v887_v54 = vunpack.c.h.bf16 %v879_v46  ;;  %v8410_v36 = vor.u32 %v11348_v28, %v8407_v25  ;;  %v7943_v38 = vld [vmem:[%s18187_s7 + $0x130] sm:$0xf0]  ;;  %v11376_v25 = vld [vmem:[%s18187_s7 + $0x5a4] sm:$0xf] }
 0x1ab   :  { %v871_v5 = vmax.f32 %v861_v57, 0.0  ;;  %v13118_v7 = vpack.c.b16 %v901_v59, %v901_v59  ;;  %v13120_v8 = vpack.c.b16 %v902_v61, %v902_v61  ;;  %v8154_v59 = vor.u32 %v11284_v37, %v8151_v55  ;;  %v8693_v37 = vld [vmem:[%s18187_s7 + $0x700] sm:$0xf]  ;;  %v8359_v17 = vld [vmem:[%s18187_s7 + $0x470] sm:$0xf0] }
 0x1ac   :  { %v894_v45 = vmul.f32 %v886_v3, %v874_v2  ;;  %v8263_v28 = vld [vmem:[%s18187_s7 + $0x3b0] sm:$0xf0] }
 0x1ad   :  { %v891_v42 = vmul.f32 %v883_v56, %v871_v5  ;;  %2482 = vmatmul.bf16.vlgmr.msra.gmra.mxu3 %v13118_v7  ;;  %2495 = vmatmul.bf16.vlgmr.msrb.gmra.mxu1 %v13120_v8 }
 0x1ae   :  { %2565 = vmatpush.bf16.msra.mxu3 %v8806_v0  ;;  %2591 = vmatpush.bf16.msrb.mxu1 %v8042_v1  ;;  %v844_v22 = vpop.f32.mrf.mxu1  ;;  %v11280_v0 = vld [vmem:[%s18187_s7 + $0x2a4] sm:$0xf]  ;;  %v8135_v1 = vld [vmem:[%s18187_s7 + $0x2b0] sm:$0xf0] }
 0x1af   :  { %v13139_v34 = vpack.c.bf16 %v891_v42, %v890_v14  ;;  %v845_v31 = vadd.f32 %v844_v22, %v826_v18  ;;  %v8742_v18 = vor.u32 %v11434_v52, %v8741_v50  ;;  %v7978_v42 = vor.u32 %v11240_v53, %v7975_v62  ;;  %v8087_v50 = vld [vmem:[%s18187_s7 + $0x250] sm:$0xf0]  ;;  %v11340_v52 = vld [vmem:[%s18187_s7 + $0x484] sm:$0xf] }
 0x1b0   :  { %v8138_v19 = vor.u32 %v11280_v0, %v8135_v1  ;;  %v8375_v53 = vld [vmem:[%s18187_s7 + $0x490] sm:$0xf0] }
 0x1b1   :  { %v864_v16 = vadd.f32 %v863_v21, %v845_v31  ;;  %v908_v43 = vunpack.c.l.b16 %v13139_v34  ;;  %v909_v61 = vunpack.c.h.b16 %v13139_v34  ;;  %v8725_v21 = vld [vmem:[%s18187_s7 + $0x740] sm:$0xf]  ;;  %v11430_v34 = vld [vmem:[%s18187_s7 + $0x74c] sm:$0xf0]  ;;  %v11236_v31 = vld [vmem:[%s18187_s7 + $0x144] sm:$0xf]  ;;  %v8378_v3 = vor.u32 %v11340_v52, %v8375_v53 }
 0x1b2   :  { %2566 = vmatpush.bf16.msra.mxu3 %v8790_v23  ;;  %2592 = vmatpush.bf16.msrb.mxu1 %v8026_v24  ;;  %v8551_v62 = vld [vmem:[%s18187_s7 + $0x5f0] sm:$0xf0]  ;;  %v11368_v52 = vld [vmem:[%s18187_s7 + $0x564] sm:$0xf] }
 0x1b3   :  { %v873_v30 = vmax.f32 %v864_v16, 0.0  ;;  %v13167_v40 = vpack.c.b16 %v908_v43, %v908_v43  ;;  %v13214_v23 = vpack.c.b16 %v909_v61, %v909_v61  ;;  %v8726_v16 = vor.u32 %v11430_v34, %v8725_v21  ;;  %v11384_v61 = vld [vmem:[%s18187_s7 + $0x5e4] sm:$0xf]  ;;  %v8487_v53 = vld [vmem:[%s18187_s7 + $0x570] sm:$0xf0] }
 0x1b4   :  { %v7962_v43 = vor.u32 %v11236_v31, %v7959_v9  ;;  %v11260_v34 = vld [vmem:[%s18187_s7 + $0x204] sm:$0xf]  ;;  %v8055_v9 = vld [vmem:[%s18187_s7 + $0x210] sm:$0xf0] }
 0x1b5   :  { %v893_v48 = vmul.f32 %v885_v32, %v873_v30  ;;  %2508 = vmatmul.bf16.vlgmr.msrb.gmra.mxu2 %v13167_v40  ;;  %v8103_v30 = vld [vmem:[%s18187_s7 + $0x270] sm:$0xf0] }
 0x1b6   :  { %2567 = vmatpush.bf16.msra.mxu3 %v8774_v20  ;;  %2593 = vmatpush.bf16.msrb.mxu1 %v8010_v35  ;;  %v846_v4 = vpop.f32.mrf.mxu1  ;;  %v11426_v20 = vld [vmem:[%s18187_s7 + $0x72c] sm:$0xf0]  ;;  %v11232_v35 = vld [vmem:[%s18187_s7 + $0x124] sm:$0xf]  ;;  %v8106_v46 = vor.u32 %v11272_v39, %v8103_v30 }
 0x1b7   :  { %v898_v57 = vpack.c.bf16 %v893_v48, %v892_v6  ;;  %2604 = vmatpush.bf16.msrb.mxu2 %v8170_v29  ;;  %v847_v56 = vadd.f32 %v846_v4, %v828_v13  ;;  %v8710_v10 = vor.u32 %v11426_v20, %v8709_v60  ;;  %v7946_v6 = vor.u32 %v11232_v35, %v7943_v38  ;;  %v11422_v13 = vld [vmem:[%s18187_s7 + $0x70c] sm:$0xf0]  ;;  %v11228_v48 = vld [vmem:[%s18187_s7 + $0x104] sm:$0xf]  ;;  %v7927_v4 = vld [vmem:[%s18187_s7 + $0x110] sm:$0xf0] }
 0x1b8   :  { %v7930_v0 = vor.u32 %v11228_v48, %v7927_v4  ;;  %v8346_v60 = vor.u32 %v11332_v63, %v8343_v26  ;;  %v11328_v35 = vld [vmem:[%s18187_s7 + $0x424] sm:$0xf]  ;;  %v8311_v48 = vld [vmem:[%s18187_s7 + $0x410] sm:$0xf0] }
 0x1b9   :  { %v866_v5 = vadd.f32 %v865_v51, %v847_v56  ;;  %v915_v11 = vunpack.c.l.b16 %v898_v57  ;;  %v916_v14 = vunpack.c.h.b16 %v898_v57  ;;  %v11320_v57 = vld [vmem:[%s18187_s7 + $0x3e4] sm:$0xf]  ;;  %v8295_v56 = vld [vmem:[%s18187_s7 + $0x3f0] sm:$0xf0] }
 0x1ba   :  { %2568 = vmatpush.bf16.msra.mxu3 %v8758_v49  ;;  %2594 = vmatpush.bf16.msrb.mxu1 %v7994_v15  ;;  %v8394_v49 = vor.u32 %v11344_v41, %v8391_v44  ;;  %v11268_v15 = vld [vmem:[%s18187_s7 + $0x244] sm:$0xf]  ;;  %v8298_v51 = vor.u32 %v11320_v57, %v8295_v56  ;;  %v8503_v44 = vld [vmem:[%s18187_s7 + $0x590] sm:$0xf0] }
 0x1bb   :  { %v875_v22 = vmax.f32 %v866_v5, 0.0  ;;  %2605 = vmatpush.bf16.msrb.mxu2 %v8154_v59  ;;  %v13216_v24 = vpack.c.b16 %v915_v11, %v915_v11  ;;  %v13218_v47 = vpack.c.b16 %v916_v14, %v916_v14  ;;  %v8694_v59 = vor.u32 %v11422_v13, %v8693_v37  ;;  %v11264_v5 = vld [vmem:[%s18187_s7 + $0x224] sm:$0xf]  ;;  %v8663_v37 = vld [vmem:[%s18187_s7 + $0x6d0] sm:$0xf0] }
 0x1bc   :  { %v8090_v1 = vor.u32 %v11268_v15, %v8087_v50  ;;  %v11336_v11 = vld [vmem:[%s18187_s7 + $0x464] sm:$0xf]  ;;  %v8554_v14 = vor.u32 %v11384_v61, %v8551_v62  ;;  %v8231_v50 = vld [vmem:[%s18187_s7 + $0x370] sm:$0xf0]  ;;  %v11227_v61 = vld [vmem:[%s18187_s7 + $0xf4] sm:$0xf0] }
 0x1bd   :  { %v895_v27 = vmul.f32 %v887_v54, %v875_v22  ;;  %2521 = vmatmul.bf16.vlgmr.msrb.gmra.mxu3 %v13214_v23  ;;  %2534 = vmatmul.bf16.vlgmr.msrb.gmra.mxu0 %v13216_v24  ;;  %v8071_v54 = vld [vmem:[%s18187_s7 + $0x230] sm:$0xf0]  ;;  %v8362_v31 = vor.u32 %v11336_v11, %v8359_v17  ;;  %v11308_v30 = vld [vmem:[%s18187_s7 + $0x384] sm:$0xf] }
 0x1be   :  { %2547 = vmatmul.bf16.vlgmr.msra.gmra.mxu1 %v13218_v47  ;;  %2569 = vmatpush.bf16.msra.mxu3 %v8742_v18  ;;  %v8279_v18 = vld [vmem:[%s18187_s7 + $0x3d0] sm:$0xf0]  ;;  %v8074_v22 = vor.u32 %v11264_v5, %v8071_v54  ;;  %v11372_v41 = vld [vmem:[%s18187_s7 + $0x584] sm:$0xf] }
 0x1bf   :  { %v899_v32 = vpack.c.bf16 %v895_v27, %v894_v45  ;;  %2595 = vmatpush.bf16.msrb.mxu1 %v7978_v42  ;;  %2606 = vmatpush.bf16.msrb.mxu2 %v8138_v19  ;;  %v11380_v42 = vld [vmem:[%s18187_s7 + $0x5c4] sm:$0xf]  ;;  %v8535_v19 = vld [vmem:[%s18187_s7 + $0x5d0] sm:$0xf0]  ;;  %v8506_v4 = vor.u32 %v11372_v41, %v8503_v44 }
 0x1c0   :  { %2630 = vmatpush.bf16.msrb.mxu0 %v8426_v58  ;;  %v8282_v58 = vor.u32 %v11316_v12, %v8279_v18  ;;  %v8538_v45 = vor.u32 %v11380_v42, %v8535_v19  ;;  %v11312_v27 = vld [vmem:[%s18187_s7 + $0x3a4] sm:$0xf]  ;;  %v8647_v56 = vld [vmem:[%s18187_s7 + $0x6b0] sm:$0xf0]  ;;  %v7901_v12 = vld [vmem:[%s18187_s7 + $0xc8] sm:$0xf] }
 0x1c1   :  { %v922_v29 = vunpack.c.l.b16 %v899_v32  ;;  %v923_v2 = vunpack.c.h.b16 %v899_v32  ;;  %v11416_v32 = vld [vmem:[%s18187_s7 + $0x6e4] sm:$0xf]  ;;  %v8266_v20 = vor.u32 %v11312_v27, %v8263_v28  ;;  %v8471_v11 = vld [vmem:[%s18187_s7 + $0x550] sm:$0xf0]  ;;  %v11223_v18 = vld [vmem:[%s18187_s7 + $0xd4] sm:$0xf0] }
 0x1c2   :  { %2570 = vmatpush.bf16.msra.mxu3 %v8726_v16  ;;  %v8519_v16 = vld [vmem:[%s18187_s7 + $0x5b0] sm:$0xf0]  ;;  %v11324_v13 = vld [vmem:[%s18187_s7 + $0x404] sm:$0xf]  ;;  %v7885_v27 = vld [vmem:[%s18187_s7 + $0xa8] sm:$0xf] }
 0x1c3   :  { %2596 = vmatpush.bf16.msrb.mxu1 %v7962_v43  ;;  %2607 = vmatpush.bf16.msrb.mxu2 %v8122_v33  ;;  %v13271_v55 = vpack.c.b16 %v922_v29, %v922_v29  ;;  %v13331_v21 = vpack.c.b16 %v923_v2, %v923_v2  ;;  %v8679_v43 = vld [vmem:[%s18187_s7 + $0x6f0] sm:$0xf0]  ;;  %v8058_v33 = vor.u32 %v11260_v34, %v8055_v9  ;;  %v11304_v15 = vld [vmem:[%s18187_s7 + $0x364] sm:$0xf]  ;;  %v11219_v28 = vld [vmem:[%s18187_s7 + $0xb4] sm:$0xf0] }
 0x1c4   :  { %2631 = vmatpush.bf16.msrb.mxu0 %v8410_v36  ;;  %v8327_v36 = vld [vmem:[%s18187_s7 + $0x430] sm:$0xf0]  ;;  %v8522_v38 = vor.u32 %v11376_v25, %v8519_v16  ;;  %v8682_v39 = vor.u32 %v11416_v32, %v8679_v43  ;;  %v11408_v57 = vld [vmem:[%s18187_s7 + $0x6a4] sm:$0xf]  ;;  %v8314_v62 = vor.u32 %v11324_v13, %v8311_v48  ;;  %v7902_v9 = vor.u32 %v11223_v18, %v7901_v12  ;;  %v8173_v12 = vld [vmem:[%s18187_s7 + $0x2e8] sm:$0xf] }
 0x1c5   :  { %2560 = vmatmul.bf16.vlgmr.msra.gmra.mxu2 %v13271_v55  ;;  %v8247_v29 = vld [vmem:[%s18187_s7 + $0x390] sm:$0xf0]  ;;  %v8650_v2 = vor.u32 %v11408_v57, %v8647_v56  ;;  %v11364_v5 = vld [vmem:[%s18187_s7 + $0x544] sm:$0xf]  ;;  %v8029_v56 = vld [vmem:[%s18187_s7 + $0x1c8] sm:$0xf] }
 0x1c6   :  { %2571 = vmatpush.bf16.msra.mxu3 %v8710_v10  ;;  %v11412_v10 = vld [vmem:[%s18187_s7 + $0x6c4] sm:$0xf]  ;;  %v8631_v17 = vld [vmem:[%s18187_s7 + $0x690] sm:$0xf0]  ;;  %v8474_v19 = vor.u32 %v11364_v5, %v8471_v11  ;;  %v11291_v18 = vld [vmem:[%s18187_s7 + $0x2f4] sm:$0xf0] }
 0x1c7   :  { %2597 = vmatpush.bf16.msrb.mxu1 %v7946_v6  ;;  %2608 = vmatpush.bf16.msrb.mxu2 %v8106_v46  ;;  %v8330_v6 = vor.u32 %v11328_v35, %v8327_v36  ;;  %v8250_v46 = vor.u32 %v11308_v30, %v8247_v29  ;;  %v11296_v34 = vld [vmem:[%s18187_s7 + $0x324] sm:$0xf]  ;;  %v8455_v63 = vld [vmem:[%s18187_s7 + $0x530] sm:$0xf0]  ;;  %v7886_v35 = vor.u32 %v11219_v28, %v7885_v27  ;;  %v11215_v30 = vld [vmem:[%s18187_s7 + $0x94] sm:$0xf0] }
 0x1c8   :  { %2632 = vmatpush.bf16.msrb.mxu0 %v8394_v49  ;;  %v8666_v49 = vor.u32 %v11412_v10, %v8663_v37  ;;  %v11400_v26 = vld [vmem:[%s18187_s7 + $0x664] sm:$0xf]  ;;  %v8807_v41 = vld [vmem:[%s18187_s7 + $0x7f0] sm:$0xf0]  ;;  %v8045_v10 = vld [vmem:[%s18187_s7 + $0x1e8] sm:$0xf] }
 0x1c9   :  { %v11292_v16 = vld [vmem:[%s18187_s7 + $0x304] sm:$0xf]  ;;  %v11259_v37 = vld [vmem:[%s18187_s7 + $0x1f4] sm:$0xf0]  ;;  %v8791_v57 = vld [vmem:[%s18187_s7 + $0x7d0] sm:$0xf0] }
 0x1ca   :  { %2572 = vmatpush.bf16.msra.mxu3 %v8694_v59  ;;  %v7917_v59 = vld [vmem:[%s18187_s7 + $0xe8] sm:$0xf]  ;;  %v11396_v36 = vld [vmem:[%s18187_s7 + $0x644] sm:$0xf]  ;;  %v8775_v11 = vld [vmem:[%s18187_s7 + $0x7b0] sm:$0xf0] }
 0x1cb   :  { %2598 = vmatpush.bf16.msrb.mxu1 %v7930_v0  ;;  %2609 = vmatpush.bf16.msrb.mxu2 %v8090_v1  ;;  %v8234_v0 = vor.u32 %v11304_v15, %v8231_v50  ;;  %v8490_v1 = vor.u32 %v11368_v52, %v8487_v53  ;;  %v7918_v54 = vor.u32 %v11227_v61, %v7917_v59  ;;  %v11448_v29 = vld [vmem:[%s18187_s7 + $0x7e4] sm:$0xf]  ;;  %v7853_v15 = vld [vmem:[%s18187_s7 + $0x68] sm:$0xf]  ;;  %v11211_v52 = vld [vmem:[%s18187_s7 + $0x74] sm:$0xf0] }
 0x1cc   :  { %2633 = vmatpush.bf16.msrb.mxu0 %v8378_v3  ;;  %v11300_v3 = vld [vmem:[%s18187_s7 + $0x344] sm:$0xf]  ;;  %v8810_v48 = vor.u32 %v11448_v29, %v8807_v41  ;;  %v8046_v50 = vor.u32 %v11259_v37, %v8045_v10  ;;  %v11255_v59 = vld [vmem:[%s18187_s7 + $0x1d4] sm:$0xf0]  ;;  %v8157_v28 = vld [vmem:[%s18187_s7 + $0x2c8] sm:$0xf] }
 0x1cd   :  { %2573 = vmatmul.bf16.vlgmr.msra.gmra.mxu3 %v13331_v21  ;;  %2586 = vmatmul.bf16.vlgmr.msra.gmra.mxu0 %v13118_v7  ;;  %v11444_v53 = vld [vmem:[%s18187_s7 + $0x7c4] sm:$0xf]  ;;  %v8030_v5 = vor.u32 %v11255_v59, %v8029_v56  ;;  %v11247_v27 = vld [vmem:[%s18187_s7 + $0x194] sm:$0xf0]  ;;  %v8429_v41 = vld [vmem:[%s18187_s7 + $0x4e8] sm:$0xf] }
 0x1ce   :  { %2617 = vmatpush.bf16.msrb.mxu3 %v8298_v51  ;;  %2599 = vmatmul.bf16.vlgmr.msrb.gmra.mxu1 %v13120_v8  ;;  %v8215_v51 = vld [vmem:[%s18187_s7 + $0x350] sm:$0xf0]  ;;  %v11283_v29 = vld [vmem:[%s18187_s7 + $0x2b4] sm:$0xf0] }
 0x1cf   :  { %2643 = vmatpush.bf16.msra.mxu1 %v8554_v14  ;;  %2610 = vmatpush.bf16.msrb.mxu2 %v8074_v22  ;;  %v11404_v14 = vld [vmem:[%s18187_s7 + $0x684] sm:$0xf]  ;;  %v8218_v42 = vor.u32 %v11300_v3, %v8215_v51  ;;  %v7837_v3 = vld [vmem:[%s18187_s7 + $0x48] sm:$0xf]  ;;  %v11207_v51 = vld [vmem:[%s18187_s7 + $0x54] sm:$0xf0] }
 0x1d0   :  { %2634 = vmatpush.bf16.msrb.mxu0 %v8362_v31  ;;  %v8634_v22 = vor.u32 %v11404_v14, %v8631_v17  ;;  %v8199_v31 = vld [vmem:[%s18187_s7 + $0x330] sm:$0xf0]  ;;  %v8013_v14 = vld [vmem:[%s18187_s7 + $0x1a8] sm:$0xf]  ;;  %v11251_v17 = vld [vmem:[%s18187_s7 + $0x1b4] sm:$0xf0] }
 0x1d1   :  { %v8202_v25 = vor.u32 %v11296_v34, %v8199_v31  ;;  %v7821_v34 = vld [vmem:[%s18187_s7 + $0x28] sm:$0xf]  ;;  %v11203_v31 = vld [vmem:[%s18187_s7 + $0x34] sm:$0xf0] }
 0x1d2   :  { %2618 = vmatpush.bf16.msrb.mxu3 %v8282_v58  ;;  %v11360_v58 = vld [vmem:[%s18187_s7 + $0x524] sm:$0xf] }
 0x1d3   :  { %2644 = vmatpush.bf16.msra.mxu1 %v8538_v45  ;;  %2611 = vmatpush.bf16.msrb.mxu2 %v8058_v33  ;;  %v8615_v45 = vld [vmem:[%s18187_s7 + $0x670] sm:$0xf0]  ;;  %v8458_v32 = vor.u32 %v11360_v58, %v8455_v63  ;;  %v8014_v58 = vor.u32 %v11251_v17, %v8013_v14  ;;  %v11436_v63 = vld [vmem:[%s18187_s7 + $0x784] sm:$0xf] }
 0x1d4   :  { %2635 = vmatpush.bf16.msrb.mxu0 %v8346_v60  ;;  %v8618_v43 = vor.u32 %v11400_v26, %v8615_v45  ;;  %v8183_v33 = vld [vmem:[%s18187_s7 + $0x310] sm:$0xf0]  ;;  %v11356_v60 = vld [vmem:[%s18187_s7 + $0x504] sm:$0xf]  ;;  %v7997_v45 = vld [vmem:[%s18187_s7 + $0x188] sm:$0xf] }
 0x1d5   :  { %v8186_v44 = vor.u32 %v11292_v16, %v8183_v33  ;;  %v8759_v26 = vld [vmem:[%s18187_s7 + $0x790] sm:$0xf0]  ;;  %v7822_v16 = vor.u32 %v11203_v31, %v7821_v34  ;;  %v11199_v33 = vld [vmem:[%s18187_s7 + $0x14] sm:$0xf0]  ;;  %v11420_v17 = vld [vmem:[%s18187_s7 + $0x704] sm:$0xf] }
 0x1d6   :  { %2619 = vmatpush.bf16.msrb.mxu3 %v8266_v20  ;;  %2612 = vmatmul.bf16.vlgmr.msrb.gmra.mxu2 %v13167_v40  ;;  %v8439_v20 = vld [vmem:[%s18187_s7 + $0x510] sm:$0xf0]  ;;  %v8093_v31 = vld [vmem:[%s18187_s7 + $0x248] sm:$0xf] }
 0x1d7   :  { %2645 = vmatpush.bf16.msra.mxu1 %v8522_v38  ;;  %2656 = vmatpush.bf16.msra.mxu2 %v8682_v39  ;;  %v8599_v38 = vld [vmem:[%s18187_s7 + $0x650] sm:$0xf0]  ;;  %v7869_v39 = vld [vmem:[%s18187_s7 + $0x88] sm:$0xf] }
 0x1d8   :  { %2636 = vmatpush.bf16.msrb.mxu0 %v8330_v6  ;;  %v8442_v6 = vor.u32 %v11356_v60, %v8439_v20  ;;  %v7870_v13 = vor.u32 %v11215_v30, %v7869_v39  ;;  %v7998_v60 = vor.u32 %v11247_v27, %v7997_v45  ;;  %v11243_v39 = vld [vmem:[%s18187_s7 + $0x174] sm:$0xf0]  ;;  %v8141_v30 = vld [vmem:[%s18187_s7 + $0x2a8] sm:$0xf] }
 0x1d9   :  { %v11323_v45 = vld [vmem:[%s18187_s7 + $0x3f4] sm:$0xf0] }
 0x1da   :  { %2620 = vmatpush.bf16.msrb.mxu3 %v8250_v46  ;;  %v8602_v46 = vor.u32 %v11396_v36, %v8599_v38  ;;  %v8743_v36 = vld [vmem:[%s18187_s7 + $0x770] sm:$0xf0]  ;;  %v7981_v38 = vld [vmem:[%s18187_s7 + $0x168] sm:$0xf] }
 0x1db   :  { %2646 = vmatpush.bf16.msra.mxu1 %v8506_v4  ;;  %2657 = vmatpush.bf16.msra.mxu2 %v8666_v49  ;;  %v11392_v4 = vld [vmem:[%s18187_s7 + $0x624] sm:$0xf]  ;;  %v8583_v49 = vld [vmem:[%s18187_s7 + $0x630] sm:$0xf0] }
 0x1dc   :  { %2637 = vmatpush.bf16.msrb.mxu0 %v8314_v62  ;;  %v8586_v61 = vor.u32 %v11392_v4, %v8583_v49  ;;  %v11388_v62 = vld [vmem:[%s18187_s7 + $0x604] sm:$0xf]  ;;  %v7965_v4 = vld [vmem:[%s18187_s7 + $0x148] sm:$0xf] }
 0x1de   :  { %2621 = vmatpush.bf16.msrb.mxu3 %v8234_v0  ;;  %v7854_v0 = vor.u32 %v11211_v52, %v7853_v15  ;;  %v11239_v15 = vld [vmem:[%s18187_s7 + $0x154] sm:$0xf0] }
 0x1df   :  { %2647 = vmatpush.bf16.msra.mxu1 %v8490_v1  ;;  %2658 = vmatpush.bf16.msra.mxu2 %v8650_v2  ;;  %v8794_v1 = vor.u32 %v11444_v53, %v8791_v57  ;;  %v8567_v2 = vld [vmem:[%s18187_s7 + $0x610] sm:$0xf0]  ;;  %v11279_v52 = vld [vmem:[%s18187_s7 + $0x294] sm:$0xf0]  ;;  %v8413_v53 = vld [vmem:[%s18187_s7 + $0x4c8] sm:$0xf]  ;;  %v7966_v59 = vor.u32 %v11239_v15, %v7965_v4 }
 0x1e0   :  { %2682 = vmatpush.bf16.msra.mxu0 %v7918_v54  ;;  %v11440_v54 = vld [vmem:[%s18187_s7 + $0x7a4] sm:$0xf]  ;;  %v11351_v57 = vld [vmem:[%s18187_s7 + $0x4d4] sm:$0xf0] }
 0x1e1   :  { %2638 = vmatmul.bf16.vlgmr.msrb.gmra.mxu0 %v13216_v24  ;;  %v11315_v15 = vld [vmem:[%s18187_s7 + $0x3b4] sm:$0xf0] }
 0x1e2   :  { %2622 = vmatpush.bf16.msrb.mxu3 %v8218_v42  ;;  %v8570_v42 = vor.u32 %v11388_v62, %v8567_v2  ;;  %v11424_v62 = vld [vmem:[%s18187_s7 + $0x724] sm:$0xf]  ;;  %v8414_v2 = vor.u32 %v11351_v57, %v8413_v53  ;;  %v8685_v53 = vld [vmem:[%s18187_s7 + $0x6e8] sm:$0xf]  ;;  %v11419_v57 = vld [vmem:[%s18187_s7 + $0x6f4] sm:$0xf0] }
 0x1e3   :  { %2648 = vmatpush.bf16.msra.mxu1 %v8474_v19  ;;  %2659 = vmatpush.bf16.msra.mxu2 %v8634_v22  ;;  %v7838_v19 = vor.u32 %v11207_v51, %v7837_v3  ;;  %v8778_v22 = vor.u32 %v11440_v54, %v8775_v11  ;;  %v11235_v3 = vld [vmem:[%s18187_s7 + $0x134] sm:$0xf0]  ;;  %v8109_v51 = vld [vmem:[%s18187_s7 + $0x268] sm:$0xf] }
 0x1e4   :  { %2683 = vmatpush.bf16.msra.mxu0 %v7902_v9  ;;  %v8174_v9 = vor.u32 %v11291_v18, %v8173_v12  ;;  %v8397_v54 = vld [vmem:[%s18187_s7 + $0x4a8] sm:$0xf]  ;;  %v11347_v11 = vld [vmem:[%s18187_s7 + $0x4b4] sm:$0xf0] }
 0x1e5   :  { %v8398_v34 = vor.u32 %v11347_v11, %v8397_v54  ;;  %v11375_v54 = vld [vmem:[%s18187_s7 + $0x594] sm:$0xf0]  ;;  %v8669_v11 = vld [vmem:[%s18187_s7 + $0x6c8] sm:$0xf] }
 0x1e6   :  { %2623 = vmatpush.bf16.msrb.mxu3 %v8202_v25  ;;  %v11287_v25 = vld [vmem:[%s18187_s7 + $0x2d4] sm:$0xf0] }
 0x1e7   :  { %2649 = vmatpush.bf16.msra.mxu1 %v8458_v32  ;;  %2660 = vmatpush.bf16.msra.mxu2 %v8618_v43  ;;  %v8762_v32 = vor.u32 %v11436_v63, %v8759_v26  ;;  %v7805_v43 = vld [vmem:[%s18187_s7 + $0x8] sm:$0xf]  ;;  %v8158_v20 = vor.u32 %v11287_v25, %v8157_v28  ;;  %v11343_v63 = vld [vmem:[%s18187_s7 + $0x494] sm:$0xf0] }
 0x1e8   :  { %2684 = vmatpush.bf16.msra.mxu0 %v7886_v35  ;;  %v11432_v35 = vld [vmem:[%s18187_s7 + $0x764] sm:$0xf]  ;;  %v7806_v10 = vor.u32 %v11199_v33, %v7805_v43  ;;  %v8301_v26 = vld [vmem:[%s18187_s7 + $0x3e8] sm:$0xf]  ;;  %v11387_v25 = vld [vmem:[%s18187_s7 + $0x5f4] sm:$0xf0] }
 0x1e9   :  { %v8746_v37 = vor.u32 %v11432_v35, %v8743_v36  ;;  %v8557_v28 = vld [vmem:[%s18187_s7 + $0x5e8] sm:$0xf]  ;;  %v8302_v33 = vor.u32 %v11323_v45, %v8301_v26  ;;  %v11411_v26 = vld [vmem:[%s18187_s7 + $0x6b4] sm:$0xf0]  ;;  %v11225_v45 = vld [vmem:[%s18187_s7 + $0xec] sm:$0xf] }
 0x1ea   :  { %2624 = vmatpush.bf16.msrb.mxu3 %v8186_v44  ;;  %v11355_v44 = vld [vmem:[%s18187_s7 + $0x4f4] sm:$0xf0]  ;;  %v8365_v35 = vld [vmem:[%s18187_s7 + $0x468] sm:$0xf]  ;;  %v8558_v36 = vor.u32 %v11387_v25, %v8557_v28 }
 0x1eb   :  { %2650 = vmatpush.bf16.msra.mxu1 %v8442_v6  ;;  %2661 = vmatpush.bf16.msra.mxu2 %v8602_v46  ;;  %v7982_v6 = vor.u32 %v11243_v39, %v7981_v38  ;;  %v8142_v46 = vor.u32 %v11283_v29, %v8141_v30  ;;  %v8430_v49 = vor.u32 %v11355_v44, %v8429_v41  ;;  %v11339_v38 = vld [vmem:[%s18187_s7 + $0x474] sm:$0xf0]  ;;  %v8285_v39 = vld [vmem:[%s18187_s7 + $0x3c8] sm:$0xf] }
 0x1ec   :  { %2685 = vmatpush.bf16.msra.mxu0 %v7870_v13  ;;  %v11428_v13 = vld [vmem:[%s18187_s7 + $0x744] sm:$0xf]  ;;  %v11319_v30 = vld [vmem:[%s18187_s7 + $0x3d4] sm:$0xf0]  ;;  %v8541_v29 = vld [vmem:[%s18187_s7 + $0x5c8] sm:$0xf] }
 0x1ed   :  { %2625 = vmatmul.bf16.vlgmr.msrb.gmra.mxu3 %v13214_v23  ;;  %v11383_v41 = vld [vmem:[%s18187_s7 + $0x5d4] sm:$0xf0] }
 0x1ee   :  { %2669 = vmatpush.bf16.msra.mxu3 %v8810_v48  ;;  %2651 = vmatmul.bf16.vlgmr.msra.gmra.mxu1 %v13218_v47  ;;  %v8727_v48 = vld [vmem:[%s18187_s7 + $0x750] sm:$0xf0]  ;;  %v8542_v4 = vor.u32 %v11383_v41, %v8541_v29 }
 0x1ef   :  { %2695 = vmatpush.bf16.msrb.mxu1 %v8046_v50  ;;  %2662 = vmatpush.bf16.msra.mxu2 %v8586_v61  ;;  %v8125_v50 = vld [vmem:[%s18187_s7 + $0x288] sm:$0xf]  ;;  %v8730_v56 = vor.u32 %v11428_v13, %v8727_v48  ;;  %v11335_v48 = vld [vmem:[%s18187_s7 + $0x454] sm:$0xf0] }
 0x1f0   :  { %2686 = vmatpush.bf16.msra.mxu0 %v7854_v0  ;;  %v8126_v61 = vor.u32 %v11279_v52, %v8125_v50  ;;  %v8711_v0 = vld [vmem:[%s18187_s7 + $0x730] sm:$0xf0]  ;;  %v8349_v13 = vld [vmem:[%s18187_s7 + $0x448] sm:$0xf]  ;;  %v11379_v52 = vld [vmem:[%s18187_s7 + $0x5b4] sm:$0xf0] }
 0x1f1   :  { %v8714_v14 = vor.u32 %v11424_v62, %v8711_v0  ;;  %v8525_v50 = vld [vmem:[%s18187_s7 + $0x5a8] sm:$0xf]  ;;  %v11331_v0 = vld [vmem:[%s18187_s7 + $0x434] sm:$0xf0] }
 0x1f2   :  { %2670 = vmatpush.bf16.msra.mxu3 %v8794_v1  ;;  %v7949_v1 = vld [vmem:[%s18187_s7 + $0x128] sm:$0xf] }
 0x1f3   :  { %2696 = vmatpush.bf16.msrb.mxu1 %v8030_v5  ;;  %2663 = vmatpush.bf16.msra.mxu2 %v8570_v42  ;;  %v11275_v5 = vld [vmem:[%s18187_s7 + $0x274] sm:$0xf0]  ;;  %v7950_v12 = vor.u32 %v11235_v3, %v7949_v1  ;;  %v8695_v42 = vld [vmem:[%s18187_s7 + $0x710] sm:$0xf0]  ;;  %v8333_v62 = vld [vmem:[%s18187_s7 + $0x428] sm:$0xf]  ;;  %v8526_v1 = vor.u32 %v11379_v52, %v8525_v50 }
 0x1f4   :  { %2687 = vmatpush.bf16.msra.mxu0 %v7838_v19  ;;  %v8110_v18 = vor.u32 %v11275_v5, %v8109_v51  ;;  %v7933_v19 = vld [vmem:[%s18187_s7 + $0x108] sm:$0xf]  ;;  %v8698_v27 = vor.u32 %v11420_v17, %v8695_v42  ;;  %v11311_v51 = vld [vmem:[%s18187_s7 + $0x394] sm:$0xf0]  ;;  %v8334_v17 = vor.u32 %v11331_v0, %v8333_v62 }
 0x1f5   :  { %v8253_v3 = vld [vmem:[%s18187_s7 + $0x388] sm:$0xf]  ;;  %v11327_v42 = vld [vmem:[%s18187_s7 + $0x414] sm:$0xf0] }
 0x1f6   :  { %2671 = vmatpush.bf16.msra.mxu3 %v8778_v22  ;;  %2664 = vmatmul.bf16.vlgmr.msra.gmra.mxu2 %v13271_v55  ;;  %v11231_v22 = vld [vmem:[%s18187_s7 + $0x114] sm:$0xf0]  ;;  %v8509_v5 = vld [vmem:[%s18187_s7 + $0x588] sm:$0xf] }
 0x1f7   :  { %2697 = vmatpush.bf16.msrb.mxu1 %v8014_v58  ;;  %2708 = vmatpush.bf16.msrb.mxu2 %v8174_v9  ;;  %v11271_v58 = vld [vmem:[%s18187_s7 + $0x254] sm:$0xf0]  ;;  %v8381_v9 = vld [vmem:[%s18187_s7 + $0x488] sm:$0xf] }
 0x1f8   :  { %2688 = vmatpush.bf16.msra.mxu0 %v7822_v16  ;;  %v7934_v16 = vor.u32 %v11231_v22, %v7933_v19  ;;  %v8382_v43 = vor.u32 %v11343_v63, %v8381_v9  ;;  %v8510_v19 = vor.u32 %v11375_v54, %v8509_v5  ;;  %v11371_v9 = vld [vmem:[%s18187_s7 + $0x574] sm:$0xf0]  ;;  %v8653_v63 = vld [vmem:[%s18187_s7 + $0x6a8] sm:$0xf] }
 0x1f9   :  { %v8189_v52 = vld [vmem:[%s18187_s7 + $0x308] sm:$0xf]  ;;  %v11451_v5 = vld [vmem:[%s18187_s7 + $0x7f4] sm:$0xf0] }
 0x1fa   :  { %2672 = vmatpush.bf16.msra.mxu3 %v8762_v32  ;;  %v8094_v32 = vor.u32 %v11271_v58, %v8093_v31  ;;  %v11307_v31 = vld [vmem:[%s18187_s7 + $0x374] sm:$0xf0]  ;;  %v8493_v58 = vld [vmem:[%s18187_s7 + $0x568] sm:$0xf] }
 0x1fb   :  { %2698 = vmatpush.bf16.msrb.mxu1 %v7998_v60  ;;  %2709 = vmatpush.bf16.msrb.mxu2 %v8158_v20  ;;  %v8077_v60 = vld [vmem:[%s18187_s7 + $0x228] sm:$0xf]  ;;  %v11267_v20 = vld [vmem:[%s18187_s7 + $0x234] sm:$0xf0] }
 0x1fc   :  { %2689 = vmatpush.bf16.msra.mxu0 %v7806_v10  ;;  %v8078_v44 = vor.u32 %v11267_v20, %v8077_v60  ;;  %v8061_v10 = vld [vmem:[%s18187_s7 + $0x208] sm:$0xf] }
 0x1fd   :  { %v8477_v60 = vld [vmem:[%s18187_s7 + $0x548] sm:$0xf] }
 0x1fe   :  { %2673 = vmatpush.bf16.msra.mxu3 %v8746_v37  ;;  %v8366_v37 = vor.u32 %v11339_v38, %v8365_v35  ;;  %v11367_v35 = vld [vmem:[%s18187_s7 + $0x554] sm:$0xf0]  ;;  %v8605_v0 = vld [vmem:[%s18187_s7 + $0x648] sm:$0xf] }
 0x1ff   :  { %2699 = vmatpush.bf16.msrb.mxu1 %v7982_v6  ;;  %2710 = vmatpush.bf16.msrb.mxu2 %v8142_v46  ;;  %v8286_v6 = vor.u32 %v11319_v30, %v8285_v39  ;;  %v11263_v46 = vld [vmem:[%s18187_s7 + $0x214] sm:$0xf0]  ;;  %v11221_v39 = vld [vmem:[%s18187_s7 + $0xcc] sm:$0xf]  ;;  %v7903_v30 = vld [vmem:[%s18187_s7 + $0xd8] sm:$0xf0]  ;;  %v8478_v41 = vor.u32 %v11367_v35, %v8477_v60 }
 0x200   :  { %2734 = vmatpush.bf16.msrb.mxu0 %v8430_v49  ;;  %v8269_v49 = vld [vmem:[%s18187_s7 + $0x3a8] sm:$0xf]  ;;  %v11407_v38 = vld [vmem:[%s18187_s7 + $0x694] sm:$0xf0] }
 0x201   :  { %2690 = vmatmul.bf16.vlgmr.msra.gmra.mxu0 %v13118_v7  ;;  %v11443_v35 = vld [vmem:[%s18187_s7 + $0x7b4] sm:$0xf0] }
 0x202   :  { %2674 = vmatpush.bf16.msra.mxu3 %v8730_v56  ;;  %v8062_v56 = vor.u32 %v11263_v46, %v8061_v10  ;;  %v8205_v10 = vld [vmem:[%s18187_s7 + $0x328] sm:$0xf]  ;;  %v7906_v46 = vor.u32 %v11221_v39, %v7903_v30  ;;  %v11289_v39 = vld [vmem:[%s18187_s7 + $0x2ec] sm:$0xf]  ;;  %v8175_v30 = vld [vmem:[%s18187_s7 + $0x2f8] sm:$0xf0] }
 0x203   :  { %2700 = vmatpush.bf16.msrb.mxu1 %v7966_v59  ;;  %2711 = vmatpush.bf16.msrb.mxu2 %v8126_v61  ;;  %v8350_v59 = vor.u32 %v11335_v48, %v8349_v13  ;;  %v8270_v61 = vor.u32 %v11315_v15, %v8269_v49  ;;  %v11363_v13 = vld [vmem:[%s18187_s7 + $0x534] sm:$0xf0]  ;;  %v8621_v48 = vld [vmem:[%s18187_s7 + $0x668] sm:$0xf]  ;;  %v11217_v49 = vld [vmem:[%s18187_s7 + $0xac] sm:$0xf] }
 0x204   :  { %2735 = vmatpush.bf16.msrb.mxu0 %v8414_v2  ;;  %v8686_v2 = vor.u32 %v11419_v57, %v8685_v53  ;;  %v7887_v15 = vld [vmem:[%s18187_s7 + $0xb8] sm:$0xf0] }
 0x205   :  { %v7890_v62 = vor.u32 %v11217_v49, %v7887_v15  ;;  %v11245_v49 = vld [vmem:[%s18187_s7 + $0x18c] sm:$0xf]  ;;  %v7999_v15 = vld [vmem:[%s18187_s7 + $0x198] sm:$0xf0] }
 0x206   :  { %2675 = vmatpush.bf16.msra.mxu3 %v8714_v14  ;;  %v11415_v14 = vld [vmem:[%s18187_s7 + $0x6d4] sm:$0xf0] }
 0x207   :  { %2701 = vmatpush.bf16.msrb.mxu1 %v7950_v12  ;;  %2712 = vmatpush.bf16.msrb.mxu2 %v8110_v18  ;;  %v8254_v12 = vor.u32 %v11311_v51, %v8253_v3  ;;  %v8317_v18 = vld [vmem:[%s18187_s7 + $0x408] sm:$0xf]  ;;  %v8670_v22 = vor.u32 %v11415_v14, %v8669_v11  ;;  %v7871_v3 = vld [vmem:[%s18187_s7 + $0x98] sm:$0xf0]  ;;  %v11257_v11 = vld [vmem:[%s18187_s7 + $0x1ec] sm:$0xf] }
 0x208   :  { %2736 = vmatpush.bf16.msrb.mxu0 %v8398_v34  ;;  %v8237_v34 = vld [vmem:[%s18187_s7 + $0x368] sm:$0xf]  ;;  %v8318_v28 = vor.u32 %v11327_v42, %v8317_v18  ;;  %v8047_v14 = vld [vmem:[%s18187_s7 + $0x1f8] sm:$0xf0] }
 0x209   :  { %v8238_v25 = vor.u32 %v11307_v31, %v8237_v34  ;;  %v8813_v51 = vld [vmem:[%s18187_s7 + $0x7e8] sm:$0xf]  ;;  %v11209_v34 = vld [vmem:[%s18187_s7 + $0x6c] sm:$0xf]  ;;  %v8050_v31 = vor.u32 %v11257_v11, %v8047_v14  ;;  %v8431_v14 = vld [vmem:[%s18187_s7 + $0x4f8] sm:$0xf0] }
 0x20a   :  { %2676 = vmatpush.bf16.msra.mxu3 %v8698_v27  ;;  %v7919_v27 = vld [vmem:[%s18187_s7 + $0xf8] sm:$0xf0]  ;;  %v8814_v42 = vor.u32 %v11451_v5, %v8813_v51  ;;  %v11281_v5 = vld [vmem:[%s18187_s7 + $0x2ac] sm:$0xf] }
 0x20b   :  { %2702 = vmatpush.bf16.msrb.mxu1 %v7934_v16  ;;  %2713 = vmatpush.bf16.msrb.mxu2 %v8094_v32  ;;  %v8494_v16 = vor.u32 %v11371_v9, %v8493_v58  ;;  %v8654_v32 = vor.u32 %v11411_v26, %v8653_v63  ;;  %v7922_v20 = vor.u32 %v11225_v45, %v7919_v27  ;;  %v7855_v58 = vld [vmem:[%s18187_s7 + $0x78] sm:$0xf0]  ;;  %v8797_v9 = vld [vmem:[%s18187_s7 + $0x7c8] sm:$0xf]  ;;  %v11447_v63 = vld [vmem:[%s18187_s7 + $0x7d4] sm:$0xf0] }
 0x20c   :  { %2737 = vmatpush.bf16.msrb.mxu0 %v8382_v43  ;;  %v8221_v43 = vld [vmem:[%s18187_s7 + $0x348] sm:$0xf]  ;;  %v11253_v26 = vld [vmem:[%s18187_s7 + $0x1cc] sm:$0xf]  ;;  %v8031_v45 = vld [vmem:[%s18187_s7 + $0x1d8] sm:$0xf0] }
 0x20d   :  { %2677 = vmatmul.bf16.vlgmr.msra.gmra.mxu3 %v13331_v21  ;;  %v8034_v60 = vor.u32 %v11253_v26, %v8031_v45  ;;  %v7983_v51 = vld [vmem:[%s18187_s7 + $0x178] sm:$0xf0]  ;;  %v11353_v11 = vld [vmem:[%s18187_s7 + $0x4ec] sm:$0xf] }
 0x20e   :  { %2721 = vmatpush.bf16.msrb.mxu3 %v8302_v33  ;;  %2703 = vmatmul.bf16.vlgmr.msrb.gmra.mxu1 %v13120_v8  ;;  %v11303_v33 = vld [vmem:[%s18187_s7 + $0x354] sm:$0xf0]  ;;  %v8127_v26 = vld [vmem:[%s18187_s7 + $0x298] sm:$0xf0]  ;;  %v11349_v45 = vld [vmem:[%s18187_s7 + $0x4cc] sm:$0xf] }
 0x20f   :  { %2747 = vmatpush.bf16.msra.mxu1 %v8558_v36  ;;  %2714 = vmatpush.bf16.msrb.mxu2 %v8078_v44  ;;  %v8637_v36 = vld [vmem:[%s18187_s7 + $0x688] sm:$0xf]  ;;  %v8222_v29 = vor.u32 %v11303_v33, %v8221_v43  ;;  %v11205_v43 = vld [vmem:[%s18187_s7 + $0x4c] sm:$0xf]  ;;  %v7839_v33 = vld [vmem:[%s18187_s7 + $0x58] sm:$0xf0] }
 0x210   :  { %2738 = vmatpush.bf16.msrb.mxu0 %v8366_v37  ;;  %v8638_v44 = vor.u32 %v11407_v38, %v8637_v36  ;;  %v11299_v37 = vld [vmem:[%s18187_s7 + $0x334] sm:$0xf0]  ;;  %v11249_v36 = vld [vmem:[%s18187_s7 + $0x1ac] sm:$0xf]  ;;  %v8015_v38 = vld [vmem:[%s18187_s7 + $0x1b8] sm:$0xf0] }
 0x211   :  { %v8206_v50 = vor.u32 %v11299_v37, %v8205_v10  ;;  %v11201_v37 = vld [vmem:[%s18187_s7 + $0x2c] sm:$0xf] }
 0x212   :  { %2722 = vmatpush.bf16.msrb.mxu3 %v8286_v6  ;;  %v8461_v6 = vld [vmem:[%s18187_s7 + $0x528] sm:$0xf] }
 0x213   :  { %2748 = vmatpush.bf16.msra.mxu1 %v8542_v4  ;;  %2715 = vmatpush.bf16.msrb.mxu2 %v8062_v56  ;;  %v11403_v4 = vld [vmem:[%s18187_s7 + $0x674] sm:$0xf0]  ;;  %v8462_v53 = vor.u32 %v11363_v13, %v8461_v6  ;;  %v7823_v6 = vld [vmem:[%s18187_s7 + $0x38] sm:$0xf0]  ;;  %v8178_v13 = vor.u32 %v11289_v39, %v8175_v30  ;;  %v11273_v39 = vld [vmem:[%s18187_s7 + $0x26c] sm:$0xf] }
 0x214   :  { %2739 = vmatpush.bf16.msrb.mxu0 %v8350_v59  ;;  %v8622_v57 = vor.u32 %v11403_v4, %v8621_v48  ;;  %v11295_v56 = vld [vmem:[%s18187_s7 + $0x314] sm:$0xf0]  ;;  %v8445_v59 = vld [vmem:[%s18187_s7 + $0x508] sm:$0xf]  ;;  %v8111_v30 = vld [vmem:[%s18187_s7 + $0x278] sm:$0xf0] }
 0x215   :  { %v8190_v54 = vor.u32 %v11295_v56, %v8189_v52  ;;  %v8765_v48 = vld [vmem:[%s18187_s7 + $0x788] sm:$0xf]  ;;  %v11439_v4 = vld [vmem:[%s18187_s7 + $0x794] sm:$0xf0]  ;;  %v8159_v52 = vld [vmem:[%s18187_s7 + $0x2d8] sm:$0xf0] }
 0x216   :  { %2723 = vmatpush.bf16.msrb.mxu3 %v8270_v61  ;;  %2716 = vmatmul.bf16.vlgmr.msrb.gmra.mxu2 %v13167_v40  ;;  %v11359_v61 = vld [vmem:[%s18187_s7 + $0x514] sm:$0xf0]  ;;  %v11197_v56 = vld [vmem:[%s18187_s7 + $0xc] sm:$0xf] }
 0x217   :  { %2749 = vmatpush.bf16.msra.mxu1 %v8526_v1  ;;  %2760 = vmatpush.bf16.msra.mxu2 %v8686_v2  ;;  %v11399_v1 = vld [vmem:[%s18187_s7 + $0x654] sm:$0xf0]  ;;  %v11213_v2 = vld [vmem:[%s18187_s7 + $0x8c] sm:$0xf] }
 0x218   :  { %2740 = vmatpush.bf16.msrb.mxu0 %v8334_v17  ;;  %v8446_v17 = vor.u32 %v11359_v61, %v8445_v59  ;;  %v7874_v18 = vor.u32 %v11213_v2, %v7871_v3  ;;  %v7807_v59 = vld [vmem:[%s18187_s7 + $0x18] sm:$0xf0]  ;;  %v8002_v61 = vor.u32 %v11245_v49, %v7999_v15  ;;  %v11241_v2 = vld [vmem:[%s18187_s7 + $0x16c] sm:$0xf] }
 0x219   :  { %v11229_v49 = vld [vmem:[%s18187_s7 + $0x10c] sm:$0xf]  ;;  %v7935_v15 = vld [vmem:[%s18187_s7 + $0x118] sm:$0xf0] }
 0x21a   :  { %2724 = vmatpush.bf16.msrb.mxu3 %v8254_v12  ;;  %v8606_v12 = vor.u32 %v11399_v1, %v8605_v0  ;;  %v8749_v0 = vld [vmem:[%s18187_s7 + $0x768] sm:$0xf]  ;;  %v11435_v1 = vld [vmem:[%s18187_s7 + $0x774] sm:$0xf0] }
 0x21b   :  { %2750 = vmatpush.bf16.msra.mxu1 %v8510_v19  ;;  %2761 = vmatpush.bf16.msra.mxu2 %v8670_v22  ;;  %v8589_v19 = vld [vmem:[%s18187_s7 + $0x628] sm:$0xf]  ;;  %v11395_v22 = vld [vmem:[%s18187_s7 + $0x634] sm:$0xf0] }
 0x21c   :  { %2741 = vmatpush.bf16.msrb.mxu0 %v8318_v28  ;;  %v8590_v27 = vor.u32 %v11395_v22, %v8589_v19  ;;  %v8573_v28 = vld [vmem:[%s18187_s7 + $0x608] sm:$0xf] }
 0x21d   :  { %v8733_v22 = vld [vmem:[%s18187_s7 + $0x748] sm:$0xf] }
 0x21e   :  { %2725 = vmatpush.bf16.msrb.mxu3 %v8238_v25  ;;  %v7858_v25 = vor.u32 %v11209_v34, %v7855_v58  ;;  %v11431_v34 = vld [vmem:[%s18187_s7 + $0x754] sm:$0xf0]  ;;  %v8434_v58 = vor.u32 %v11353_v11, %v8431_v14 }
 0x21f   :  { %2751 = vmatpush.bf16.msra.mxu1 %v8494_v16  ;;  %2762 = vmatpush.bf16.msra.mxu2 %v8654_v32  ;;  %v8798_v16 = vor.u32 %v11447_v63, %v8797_v9  ;;  %v11391_v32 = vld [vmem:[%s18187_s7 + $0x614] sm:$0xf0]  ;;  %v7967_v9 = vld [vmem:[%s18187_s7 + $0x158] sm:$0xf0]  ;;  %v11277_v63 = vld [vmem:[%s18187_s7 + $0x28c] sm:$0xf] }
 0x220   :  { %2786 = vmatpush.bf16.msra.mxu0 %v7922_v20  ;;  %v8781_v20 = vld [vmem:[%s18187_s7 + $0x7a8] sm:$0xf] }
 0x221   :  { %2742 = vmatmul.bf16.vlgmr.msrb.gmra.mxu0 %v13216_v24 }
 0x222   :  { %2726 = vmatpush.bf16.msrb.mxu3 %v8222_v29  ;;  %v8574_v29 = vor.u32 %v11391_v32, %v8573_v28  ;;  %v14040_v28 = vld [vmem:[%s18190_s8] sm:$0xf]  ;;  %v8130_v32 = vor.u32 %v11277_v63, %v8127_v26 }
 0x223   :  { %2752 = vmatpush.bf16.msra.mxu1 %v8478_v41  ;;  %2763 = vmatpush.bf16.msra.mxu2 %v8638_v44  ;;  %v7842_v41 = vor.u32 %v11205_v43, %v7839_v33  ;;  %v8782_v44 = vor.u32 %v11443_v35, %v8781_v20  ;;  %v8717_v43 = vld [vmem:[%s18187_s7 + $0x728] sm:$0xf]  ;;  %v11427_v33 = vld [vmem:[%s18187_s7 + $0x734] sm:$0xf0] }
 0x224   :  { %2787 = vmatpush.bf16.msra.mxu0 %v7906_v46  ;;  %v8018_v46 = vor.u32 %v11249_v36, %v8015_v38  ;;  %v7951_v38 = vld [vmem:[%s18187_s7 + $0x138] sm:$0xf0] }
 0x226   :  { %2727 = vmatpush.bf16.msrb.mxu3 %v8206_v50  ;;  %v11285_v50 = vld [vmem:[%s18187_s7 + $0x2cc] sm:$0xf] }
 0x227   :  { %2753 = vmatpush.bf16.msra.mxu1 %v8462_v53  ;;  %2764 = vmatpush.bf16.msra.mxu2 %v8622_v57  ;;  %v7826_v53 = vor.u32 %v11201_v37, %v7823_v6  ;;  %v8766_v57 = vor.u32 %v11439_v4, %v8765_v48  ;;  %v8718_v37 = vor.u32 %v11427_v33, %v8717_v43  ;;  %v11423_v4 = vld [vmem:[%s18187_s7 + $0x714] sm:$0xf0]  ;;  %v11333_v43 = vld [vmem:[%s18187_s7 + $0x44c] sm:$0xf]  ;;  %v8351_v33 = vld [vmem:[%s18187_s7 + $0x458] sm:$0xf0] }
 0x228   :  { %2788 = vmatpush.bf16.msra.mxu0 %v7890_v62  ;;  %v8162_v62 = vor.u32 %v11285_v50, %v8159_v52  ;;  %v11269_v52 = vld [vmem:[%s18187_s7 + $0x24c] sm:$0xf] }
 0x22a   :  { %2728 = vmatpush.bf16.msrb.mxu3 %v8190_v54  ;;  %v13954_v10 = vpop.f32.mrf.mxu1  ;;  %v8143_v54 = vld [vmem:[%s18187_s7 + $0x2b8] sm:$0xf0] }
 0x22b   :  { %2754 = vmatpush.bf16.msra.mxu1 %v8446_v17  ;;  %2765 = vmatpush.bf16.msra.mxu2 %v8606_v12  ;;  %v7810_v17 = vor.u32 %v11197_v56, %v7807_v59  ;;  %v8750_v12 = vor.u32 %v11435_v1, %v8749_v0  ;;  %v8146_v19 = vor.u32 %v11281_v5, %v8143_v54  ;;  %v8383_v59 = vld [vmem:[%s18187_s7 + $0x498] sm:$0xf0]  ;;  %v11385_v1 = vld [vmem:[%s18187_s7 + $0x5ec] sm:$0xf] }
 0x22c   :  { %2789 = vmatpush.bf16.msra.mxu0 %v7874_v18 }
 0x22d   :  { %2729 = vmatmul.bf16.vlgmr.msrb.gmra.mxu3 %v13214_v23 }
 0x22e   :  { %2773 = vmatpush.bf16.msra.mxu3 %v8814_v42  ;;  %2755 = vmatmul.bf16.vlgmr.msra.gmra.mxu1 %v13218_v47  ;;  %v7986_v42 = vor.u32 %v11241_v2, %v7983_v51  ;;  %v8559_v2 = vld [vmem:[%s18187_s7 + $0x5f8] sm:$0xf0] }
 0x22f   :  { %2799 = vmatpush.bf16.msrb.mxu1 %v8050_v31  ;;  %2766 = vmatpush.bf16.msra.mxu2 %v8590_v27  ;;  %v11237_v31 = vld [vmem:[%s18187_s7 + $0x14c] sm:$0xf]  ;;  %v8415_v27 = vld [vmem:[%s18187_s7 + $0x4d8] sm:$0xf0] }
 0x230   :  { %2790 = vmatpush.bf16.msra.mxu0 %v7858_v25  ;;  %v13996_v3 = vpop.f32.mrf.mxu3  ;;  %v8734_v25 = vor.u32 %v11431_v34, %v8733_v22  ;;  %v8418_v20 = vor.u32 %v11349_v45, %v8415_v27  ;;  %v8367_v22 = vld [vmem:[%s18187_s7 + $0x478] sm:$0xf0]  ;;  %v11317_v34 = vld [vmem:[%s18187_s7 + $0x3cc] sm:$0xf] }
 0x231   :  { %v11261_v27 = vld [vmem:[%s18187_s7 + $0x20c] sm:$0xf] }
 0x232   :  { %2774 = vmatpush.bf16.msra.mxu3 %v8798_v16  ;;  %v2498_v18 = vpop.f32.mrf.mxu1  ;;  %v7970_v16 = vor.u32 %v11237_v31, %v7967_v9  ;;  %v8287_v31 = vld [vmem:[%s18187_s7 + $0x3d8] sm:$0xf0]  ;;  %v11381_v9 = vld [vmem:[%s18187_s7 + $0x5cc] sm:$0xf] }
 0x233   :  { %2800 = vmatpush.bf16.msrb.mxu1 %v8034_v60  ;;  %2767 = vmatpush.bf16.msra.mxu2 %v8574_v29  ;;  %v11233_v60 = vld [vmem:[%s18187_s7 + $0x12c] sm:$0xf]  ;;  %v1186_v29 = vperm.slane %v14040_v28, 0 }
 0x234   :  { %2791 = vmatpush.bf16.msra.mxu0 %v7842_v41  ;;  %v11345_v41 = vld [vmem:[%s18187_s7 + $0x4ac] sm:$0xf] }
 0x235   :  { %v2484_v56 = vadd.f32 %v13996_v3, %v1186_v29  ;;  %v7938_v3 = vor.u32 %v11229_v49, %v7935_v15  ;;  %v11337_v18 = vld [vmem:[%s18187_s7 + $0x46c] sm:$0xf]  ;;  %v8687_v29 = vld [vmem:[%s18187_s7 + $0x6f8] sm:$0xf0] }
 0x236   :  { %2775 = vmatpush.bf16.msra.mxu3 %v8782_v44  ;;  %2768 = vmatmul.bf16.vlgmr.msra.gmra.mxu2 %v13271_v55  ;;  %v8399_v44 = vld [vmem:[%s18187_s7 + $0x4b8] sm:$0xf0] }
 0x237   :  { %2801 = vmatpush.bf16.msrb.mxu1 %v8018_v46  ;;  %2812 = vmatpush.bf16.msrb.mxu2 %v8178_v13  ;;  %v8701_v46 = vld [vmem:[%s18187_s7 + $0x708] sm:$0xf]  ;;  %v7954_v13 = vor.u32 %v11233_v60, %v7951_v38  ;;  %v8402_v50 = vor.u32 %v11345_v41, %v8399_v44  ;;  %v11377_v38 = vld [vmem:[%s18187_s7 + $0x5ac] sm:$0xf]  ;;  %v8354_v44 = vor.u32 %v11333_v43, %v8351_v33 }
 0x238   :  { %2792 = vmatpush.bf16.msra.mxu0 %v7826_v53  ;;  %v2485_v35 = vpop.f32.mrf.mxu3  ;;  %v2509_v36 = vpop.f32.mrf.mxu2  ;;  %v8095_v53 = vld [vmem:[%s18187_s7 + $0x258] sm:$0xf0]  ;;  %v8702_v0 = vor.u32 %v11423_v4, %v8701_v46 }
 0x239   :  { %v8098_v51 = vor.u32 %v11269_v52, %v8095_v53  ;;  %v11313_v35 = vld [vmem:[%s18187_s7 + $0x3ac] sm:$0xf]  ;;  %v8255_v52 = vld [vmem:[%s18187_s7 + $0x398] sm:$0xf0] }
 0x23a   :  { %2776 = vmatpush.bf16.msra.mxu3 %v8766_v57  ;;  %v14068_v6 = vpop.f32.mrf.mxu0  ;;  %v11341_v57 = vld [vmem:[%s18187_s7 + $0x48c] sm:$0xf] }
 0x23b   :  { %2802 = vmatpush.bf16.msrb.mxu1 %v8002_v61  ;;  %2813 = vmatpush.bf16.msrb.mxu2 %v8162_v62  ;;  %v14073_v48 = vpop.f32.mrf.mxu1  ;;  %v11321_v61 = vld [vmem:[%s18187_s7 + $0x3ec] sm:$0xf]  ;;  %v8303_v62 = vld [vmem:[%s18187_s7 + $0x3f8] sm:$0xf0]  ;;  %v8386_v5 = vor.u32 %v11341_v57, %v8383_v59 }
 0x23c   :  { %2793 = vmatpush.bf16.msra.mxu0 %v7810_v17  ;;  %v8306_v54 = vor.u32 %v11321_v61, %v8303_v62  ;;  %v11265_v17 = vld [vmem:[%s18187_s7 + $0x22c] sm:$0xf]  ;;  %v8511_v57 = vld [vmem:[%s18187_s7 + $0x598] sm:$0xf0] }
 0x23d   :  { %v11373_v53 = vld [vmem:[%s18187_s7 + $0x58c] sm:$0xf] }
 0x23e   :  { %2777 = vmatpush.bf16.msra.mxu3 %v8750_v12  ;;  %v8079_v12 = vld [vmem:[%s18187_s7 + $0x238] sm:$0xf0] }
 0x23f   :  { %2803 = vmatpush.bf16.msrb.mxu1 %v7986_v42  ;;  %2814 = vmatpush.bf16.msrb.mxu2 %v8146_v19  ;;  %v2497_v42 = vadd.f32 %v13954_v10, %v2484_v56  ;;  %v8562_v19 = vor.u32 %v11385_v1, %v8559_v2  ;;  %v8543_v10 = vld [vmem:[%s18187_s7 + $0x5d8] sm:$0xf0]  ;;  %v8082_v26 = vor.u32 %v11265_v17, %v8079_v12  ;;  %v11325_v1 = vld [vmem:[%s18187_s7 + $0x40c] sm:$0xf] }
 0x240   :  { %2838 = vmatpush.bf16.msrb.mxu0 %v8434_v58  ;;  %v2511_v11 = vpop.f32.mrf.mxu2  ;;  %v2522_v14 = vpop.f32.mrf.mxu3  ;;  %v8671_v56 = vld [vmem:[%s18187_s7 + $0x6d8] sm:$0xf0]  ;;  %v11409_v17 = vld [vmem:[%s18187_s7 + $0x6ac] sm:$0xf] }
 0x241   :  { %2794 = vmatmul.bf16.vlgmr.msra.gmra.mxu0 %v13118_v7  ;;  %v8114_v7 = vor.u32 %v11273_v39, %v8111_v30  ;;  %v2510_v63 = vadd.f32 %v2509_v36, %v2497_v42  ;;  %v8271_v36 = vld [vmem:[%s18187_s7 + $0x3b8] sm:$0xf0]  ;;  %v11417_v30 = vld [vmem:[%s18187_s7 + $0x6ec] sm:$0xf]  ;;  %v9045_v42 = vld [vmem:[%s18191_s9 + $0x1c0] sm:$0xf] }
 0x242   :  { %2778 = vmatpush.bf16.msra.mxu3 %v8734_v25  ;;  %v2537_v58 = vpop.f32.mrf.mxu0  ;;  %v8370_v25 = vor.u32 %v11337_v18, %v8367_v22  ;;  %v8527_v39 = vld [vmem:[%s18187_s7 + $0x5b8] sm:$0xf0]  ;;  %v8690_v15 = vor.u32 %v11417_v30, %v8687_v29  ;;  %v11297_v30 = vld [vmem:[%s18187_s7 + $0x32c] sm:$0xf] }
 0x243   :  { %2804 = vmatpush.bf16.msrb.mxu1 %v7970_v16  ;;  %2815 = vmatpush.bf16.msrb.mxu2 %v8130_v32  ;;  %v2550_v45 = vpop.f32.mrf.mxu1  ;;  %v8290_v16 = vor.u32 %v11317_v34, %v8287_v31  ;;  %v8063_v32 = vld [vmem:[%s18187_s7 + $0x218] sm:$0xf0]  ;;  %v2523_v60 = vadd.f32 %v2522_v14, %v2510_v63  ;;  %v8530_v49 = vor.u32 %v11377_v38, %v8527_v39  ;;  %v11369_v14 = vld [vmem:[%s18187_s7 + $0x56c] sm:$0xf] }
 0x244   :  { %2839 = vmatpush.bf16.msrb.mxu0 %v8418_v20  ;;  %v8546_v20 = vor.u32 %v11381_v9, %v8543_v10  ;;  %v8066_v41 = vor.u32 %v11261_v27, %v8063_v32  ;;  %v8319_v2 = vld [vmem:[%s18187_s7 + $0x418] sm:$0xf0]  ;;  %v11301_v63 = vld [vmem:[%s18187_s7 + $0x34c] sm:$0xf] }
 0x245   :  { %v2536_v4 = vadd.f32 %v14068_v6, %v2523_v60  ;;  %v11413_v6 = vld [vmem:[%s18187_s7 + $0x6cc] sm:$0xf]  ;;  %v8239_v11 = vld [vmem:[%s18187_s7 + $0x378] sm:$0xf0] }
 0x246   :  { %2779 = vmatpush.bf16.msra.mxu3 %v8718_v37  ;;  %v8274_v37 = vor.u32 %v11313_v35, %v8271_v36  ;;  %v8655_v12 = vld [vmem:[%s18187_s7 + $0x6b8] sm:$0xf0]  ;;  %v11365_v45 = vld [vmem:[%s18187_s7 + $0x54c] sm:$0xf]  ;;  %v11504_v35 = vld [vmem:[%s18191_s9 + $0x19c] sm:$0xf0] }
 0x247   :  { %2805 = vmatpush.bf16.msrb.mxu1 %v7954_v13  ;;  %2816 = vmatpush.bf16.msrb.mxu2 %v8114_v7  ;;  %v11329_v13 = vld [vmem:[%s18187_s7 + $0x42c] sm:$0xf]  ;;  %v8335_v7 = vld [vmem:[%s18187_s7 + $0x438] sm:$0xf0]  ;;  %v8658_v9 = vor.u32 %v11409_v17, %v8655_v12 }
 0x248   :  { %2840 = vmatpush.bf16.msrb.mxu0 %v8402_v50  ;;  %v2524_v46 = vpop.f32.mrf.mxu3  ;;  %v11309_v50 = vld [vmem:[%s18187_s7 + $0x38c] sm:$0xf]  ;;  %v8338_v62 = vor.u32 %v11329_v13, %v8335_v7  ;;  %v8639_v32 = vld [vmem:[%s18187_s7 + $0x698] sm:$0xf0]  ;;  %v8981_v13 = vld [vmem:[%s18191_s9 + $0x140] sm:$0xf] }
 0x249   :  { %v8207_v29 = vld [vmem:[%s18187_s7 + $0x338] sm:$0xf0]  ;;  %v11401_v46 = vld [vmem:[%s18187_s7 + $0x66c] sm:$0xf]  ;;  %v11496_v7 = vld [vmem:[%s18191_s9 + $0x15c] sm:$0xf0] }
 0x24a   :  { %2780 = vmatpush.bf16.msra.mxu3 %v8702_v0  ;;  %v14191_v59 = vpop.f32.mrf.mxu0  ;;  %v8258_v0 = vor.u32 %v11309_v50, %v8255_v52 }
 0x24b   :  { %2806 = vmatpush.bf16.msrb.mxu1 %v7938_v3  ;;  %2817 = vmatpush.bf16.msrb.mxu2 %v8098_v51  ;;  %v14193_v61 = vpop.f32.mrf.mxu1  ;;  %v2549_v3 = vadd.f32 %v14073_v48, %v2536_v4  ;;  %v8514_v51 = vor.u32 %v11373_v53, %v8511_v57  ;;  %v8495_v48 = vld [vmem:[%s18187_s7 + $0x578] sm:$0xf0]  ;;  %v8210_v4 = vor.u32 %v11297_v30, %v8207_v29  ;;  %v11357_v57 = vld [vmem:[%s18187_s7 + $0x50c] sm:$0xf] }
 0x24c   :  { %2841 = vmatpush.bf16.msrb.mxu0 %v8386_v5  ;;  %v8674_v5 = vor.u32 %v11413_v6, %v8671_v56  ;;  %v8498_v58 = vor.u32 %v11369_v14, %v8495_v48  ;;  %v8191_v53 = vld [vmem:[%s18187_s7 + $0x318] sm:$0xf0]  ;;  %v8982_v56 = vor.u32 %v11496_v7, %v8981_v13  ;;  %v11576_v14 = vld [vmem:[%s18191_s9 + $0x3dc] sm:$0xf0] }
 0x24d   :  { %2781 = vmatmul.bf16.vlgmr.msra.gmra.mxu3 %v13331_v21  ;;  %v8447_v6 = vld [vmem:[%s18187_s7 + $0x518] sm:$0xf0]  ;;  %v11552_v13 = vld [vmem:[%s18191_s9 + $0x31c] sm:$0xf0] }
 0x24e   :  { %2825 = vmatpush.bf16.msrb.mxu3 %v8306_v54  ;;  %2807 = vmatmul.bf16.vlgmr.msrb.gmra.mxu1 %v13120_v8  ;;  %v2561_v8 = vpop.f32.mrf.mxu2  ;;  %v11305_v54 = vld [vmem:[%s18187_s7 + $0x36c] sm:$0xf]  ;;  %v8450_v48 = vor.u32 %v11357_v57, %v8447_v6  ;;  %v8751_v57 = vld [vmem:[%s18187_s7 + $0x778] sm:$0xf0]  ;;  %v9173_v6 = vld [vmem:[%s18191_s9 + $0x2c0] sm:$0xf] }
 0x24f   :  { %2851 = vmatpush.bf16.msra.mxu1 %v8562_v19  ;;  %2818 = vmatpush.bf16.msrb.mxu2 %v8082_v26  ;;  %v2562_v18 = vadd.f32 %v2561_v8, %v2549_v3  ;;  %v8322_v19 = vor.u32 %v11325_v1, %v8319_v2  ;;  %v8242_v22 = vor.u32 %v11305_v54, %v8239_v11  ;;  %v8223_v26 = vld [vmem:[%s18187_s7 + $0x358] sm:$0xf0]  ;;  %v8949_v1 = vld [vmem:[%s18191_s9 + $0x100] sm:$0xf]  ;;  %v11449_v3 = vld [vmem:[%s18187_s7 + $0x7ec] sm:$0xf] }
 0x250   :  { %2842 = vmatpush.bf16.msrb.mxu0 %v8370_v25  ;;  %v2574_v31 = vpop.f32.mrf.mxu3  ;;  %v8479_v25 = vld [vmem:[%s18187_s7 + $0x558] sm:$0xf0]  ;;  %v8226_v36 = vor.u32 %v11301_v63, %v8223_v26  ;;  %v11488_v2 = vld [vmem:[%s18191_s9 + $0x11c] sm:$0xf0] }
 0x251   :  { %v2575_v10 = vadd.f32 %v2574_v31, %v2562_v18  ;;  %v8482_v38 = vor.u32 %v11365_v45, %v8479_v25  ;;  %v8623_v8 = vld [vmem:[%s18187_s7 + $0x678] sm:$0xf0]  ;;  %v9301_v11 = vld [vmem:[%s18191_s9 + $0x3c0] sm:$0xf]  ;;  %v8950_v12 = vor.u32 %v11488_v2, %v8949_v1  ;;  %v11445_v31 = vld [vmem:[%s18187_s7 + $0x7cc] sm:$0xf] }
 0x252   :  { %2826 = vmatpush.bf16.msrb.mxu3 %v8290_v16  ;;  %v11405_v16 = vld [vmem:[%s18187_s7 + $0x68c] sm:$0xf]  ;;  %v2589_v33 = vpop.f32.mrf.mxu0  ;;  %v8626_v52 = vor.u32 %v11401_v46, %v8623_v8  ;;  %v8767_v46 = vld [vmem:[%s18187_s7 + $0x798] sm:$0xf0]  ;;  %v9205_v8 = vld [vmem:[%s18191_s9 + $0x300] sm:$0xf] }
 0x253   :  { %2852 = vmatpush.bf16.msra.mxu1 %v8546_v20  ;;  %2819 = vmatpush.bf16.msrb.mxu2 %v8066_v41  ;;  %v14245_v43 = vmax.f32 %v2575_v10, 0.0  ;;  %v2602_v60 = vpop.f32.mrf.mxu1  ;;  %v9013_v20 = vld [vmem:[%s18191_s9 + $0x180] sm:$0xf]  ;;  %v8642_v39 = vor.u32 %v11405_v16, %v8639_v32  ;;  %v11361_v41 = vld [vmem:[%s18187_s7 + $0x52c] sm:$0xf] }
 0x254   :  { %2843 = vmatpush.bf16.msrb.mxu0 %v8354_v44  ;;  %v9014_v44 = vor.u32 %v11504_v35, %v9013_v20  ;;  %v11568_v10 = vld [vmem:[%s18191_s9 + $0x39c] sm:$0xf0]  ;;  %v11389_v25 = vld [vmem:[%s18187_s7 + $0x60c] sm:$0xf]  ;;  %v8575_v16 = vld [vmem:[%s18187_s7 + $0x618] sm:$0xf0] }
 0x255   :  { %2894 = vst [vmem:[%s18192_s15] sm:$0xff] %v14245_v43  ;;  %v8885_v32 = vld [vmem:[%s18191_s9 + $0x80] sm:$0xf]  ;;  %v11441_v20 = vld [vmem:[%s18187_s7 + $0x7ac] sm:$0xf]  ;;  %v8783_v35 = vld [vmem:[%s18187_s7 + $0x7b8] sm:$0xf0] }
 0x256   :  { %2827 = vmatpush.bf16.msrb.mxu3 %v8274_v37  ;;  %2820 = vmatmul.bf16.vlgmr.msrb.gmra.mxu2 %v13167_v40  ;;  %v11512_v40 = vld [vmem:[%s18191_s9 + $0x1dc] sm:$0xf0]  ;;  %v2563_v34 = vpop.f32.mrf.mxu2  ;;  %v8463_v37 = vld [vmem:[%s18187_s7 + $0x538] sm:$0xf0]  ;;  %v8786_v29 = vor.u32 %v11441_v20, %v8783_v35 }
 0x257   :  { %2853 = vmatpush.bf16.msra.mxu1 %v8530_v49  ;;  %2864 = vmatpush.bf16.msra.mxu2 %v8690_v15  ;;  %v9046_v27 = vor.u32 %v11512_v40, %v9045_v42  ;;  %v11293_v15 = vld [vmem:[%s18187_s7 + $0x30c] sm:$0xf]  ;;  %v8466_v50 = vor.u32 %v11361_v41, %v8463_v37  ;;  %v8591_v40 = vld [vmem:[%s18187_s7 + $0x638] sm:$0xf0]  ;;  %v11480_v34 = vld [vmem:[%s18191_s9 + $0xdc] sm:$0xf0] }
 0x258   :  { %2844 = vmatpush.bf16.msrb.mxu0 %v8338_v62  ;;  %v2576_v49 = vpop.f32.mrf.mxu3  ;;  %v11397_v62 = vld [vmem:[%s18187_s7 + $0x64c] sm:$0xf]  ;;  %v8194_v54 = vor.u32 %v11293_v15, %v8191_v53  ;;  %v11472_v60 = vld [vmem:[%s18191_s9 + $0x9c] sm:$0xf0] }
 0x259   :  { %v11393_v42 = vld [vmem:[%s18187_s7 + $0x62c] sm:$0xf]  ;;  %v8886_v30 = vor.u32 %v11472_v60, %v8885_v32  ;;  %v8853_v41 = vld [vmem:[%s18191_s9 + $0x40] sm:$0xf] }
 0x25a   :  { %2828 = vmatpush.bf16.msrb.mxu3 %v8258_v0  ;;  %v8607_v0 = vld [vmem:[%s18187_s7 + $0x658] sm:$0xf0]  ;;  %v8594_v63 = vor.u32 %v11393_v42, %v8591_v40  ;;  %v11437_v37 = vld [vmem:[%s18187_s7 + $0x78c] sm:$0xf]  ;;  %v8821_v15 = vld [vmem:[%s18191_s9] sm:$0xf] }
 0x25b   :  { %2854 = vmatpush.bf16.msra.mxu1 %v8514_v51  ;;  %2865 = vmatpush.bf16.msra.mxu2 %v8674_v5  ;;  %v8815_v51 = vld [vmem:[%s18187_s7 + $0x7f8] sm:$0xf0]  ;;  %v8610_v17 = vor.u32 %v11397_v62, %v8607_v0  ;;  %v8770_v49 = vor.u32 %v11437_v37, %v8767_v46  ;;  %v11433_v53 = vld [vmem:[%s18187_s7 + $0x76c] sm:$0xf]  ;;  %v11508_v62 = vld [vmem:[%s18191_s9 + $0x1c4] sm:$0xf] }
 0x25c   :  { %2845 = vmatpush.bf16.msrb.mxu0 %v8322_v19  ;;  %v8818_v18 = vor.u32 %v11449_v3, %v8815_v51  ;;  %v8917_v19 = vld [vmem:[%s18191_s9 + $0xc0] sm:$0xf]  ;;  %v9047_v0 = vld [vmem:[%s18191_s9 + $0x1e0] sm:$0xf0]  ;;  %v8754_v2 = vor.u32 %v11433_v53, %v8751_v57  ;;  %v11425_v40 = vld [vmem:[%s18187_s7 + $0x72c] sm:$0xf] }
 0x25d   :  { %v8918_v45 = vor.u32 %v11480_v34, %v8917_v19  ;;  %v9050_v51 = vor.u32 %v11508_v62, %v9047_v0  ;;  %v8719_v19 = vld [vmem:[%s18187_s7 + $0x738] sm:$0xf0]  ;;  %v11421_v32 = vld [vmem:[%s18187_s7 + $0x70c] sm:$0xf]  ;;  %v9493_v53 = vld [vmem:[%s18191_s9 + $0x540] sm:$0xf] }
 0x25e   :  { %2829 = vmatpush.bf16.msrb.mxu3 %v8242_v22  ;;  %v14314_v5 = vpop.f32.mrf.mxu0  ;;  %v9302_v22 = vor.u32 %v11576_v14, %v9301_v11  ;;  %v8735_v11 = vld [vmem:[%s18187_s7 + $0x758] sm:$0xf0]  ;;  %v9141_v14 = vld [vmem:[%s18191_s9 + $0x280] sm:$0xf] }
 0x25f   :  { %2855 = vmatpush.bf16.msra.mxu1 %v8498_v58  ;;  %2866 = vmatpush.bf16.msra.mxu2 %v8658_v9  ;;  %v8799_v58 = vld [vmem:[%s18187_s7 + $0x7d8] sm:$0xf0]  ;;  %v9269_v9 = vld [vmem:[%s18191_s9 + $0x380] sm:$0xf] }
 0x260   :  { %4456 = vmatpush.bf16.msra.mxu0 %v9046_v27  ;;  %v8802_v27 = vor.u32 %v11445_v31, %v8799_v58  ;;  %v9270_v33 = vor.u32 %v11568_v10, %v9269_v9  ;;  %v9109_v58 = vld [vmem:[%s18191_s9 + $0x240] sm:$0xf]  ;;  %v11492_v10 = vld [vmem:[%s18191_s9 + $0x144] sm:$0xf] }
 0x261   :  { %2846 = vmatmul.bf16.vlgmr.msrb.gmra.mxu0 %v13216_v24  ;;  %v14285_v24 = vpop.f32.mrf.mxu2  ;;  %v11528_v9 = vld [vmem:[%s18191_s9 + $0x25c] sm:$0xf0] }
 0x262   :  { %2830 = vmatpush.bf16.msrb.mxu3 %v8226_v36  ;;  %v9110_v60 = vor.u32 %v11528_v9, %v9109_v58  ;;  %v11624_v57 = vld [vmem:[%s18191_s9 + $0x55c] sm:$0xf0] }
 0x263   :  { %2856 = vmatpush.bf16.msra.mxu1 %v8482_v38  ;;  %2867 = vmatpush.bf16.msra.mxu2 %v8642_v39  ;;  %v11560_v38 = vld [vmem:[%s18191_s9 + $0x35c] sm:$0xf0]  ;;  %v8578_v39 = vor.u32 %v11389_v25, %v8575_v16  ;;  %v8722_v25 = vor.u32 %v11425_v40, %v8719_v19  ;;  %v9207_v40 = vld [vmem:[%s18191_s9 + $0x320] sm:$0xf0] }
 0x264   :  { %4457 = vmatpush.bf16.msra.mxu0 %v9014_v44  ;;  %v11464_v44 = vld [vmem:[%s18191_s9 + $0x5c] sm:$0xf0] }
 0x265   :  { %v9429_v19 = vld [vmem:[%s18191_s9 + $0x4c0] sm:$0xf] }
 0x266   :  { %2831 = vmatpush.bf16.msrb.mxu3 %v8210_v4  ;;  %v2641_v36 = vpop.f32.mrf.mxu0  ;;  %v8854_v4 = vor.u32 %v11464_v44, %v8853_v41  ;;  %v11572_v41 = vld [vmem:[%s18191_s9 + $0x3c4] sm:$0xf] }
 0x267   :  { %2857 = vmatpush.bf16.msra.mxu1 %v8466_v50  ;;  %2868 = vmatpush.bf16.msra.mxu2 %v8626_v52  ;;  %v11456_v50 = vld [vmem:[%s18191_s9 + $0x1c] sm:$0xf0]  ;;  %v9206_v52 = vor.u32 %v11552_v13, %v9205_v8 }
 0x268   :  { %4458 = vmatpush.bf16.msra.mxu0 %v8982_v56  ;;  %v11544_v56 = vld [vmem:[%s18191_s9 + $0x2dc] sm:$0xf0]  ;;  %v8822_v1 = vor.u32 %v11456_v50, %v8821_v15  ;;  %v11564_v15 = vld [vmem:[%s18191_s9 + $0x384] sm:$0xf] }
 0x269   :  { %v2615_v26 = vpop.f32.mrf.mxu2  ;;  %v11520_v36 = vld [vmem:[%s18191_s9 + $0x21c] sm:$0xf0] }
 0x26a   :  { %2832 = vmatpush.bf16.msrb.mxu3 %v8194_v54  ;;  %v11429_v54 = vld [vmem:[%s18187_s7 + $0x74c] sm:$0xf]  ;;  %v11640_v26 = vld [vmem:[%s18191_s9 + $0x5dc] sm:$0xf0] }
 0x26b   :  { %2858 = vmatpush.bf16.msra.mxu1 %v8450_v48  ;;  %2869 = vmatpush.bf16.msra.mxu2 %v8610_v17  ;;  %v14390_v7 = vpop.f32.mrf.mxu1  ;;  %v11536_v48 = vld [vmem:[%s18191_s9 + $0x29c] sm:$0xf0]  ;;  %v11500_v17 = vld [vmem:[%s18191_s9 + $0x184] sm:$0xf]  ;;  %v8738_v42 = vor.u32 %v11429_v54, %v8735_v11 }
 0x26c   :  { %4459 = vmatpush.bf16.msra.mxu0 %v8950_v12  ;;  %v9015_v12 = vld [vmem:[%s18191_s9 + $0x1a0] sm:$0xf0]  ;;  %v9142_v34 = vor.u32 %v11536_v48, %v9141_v14  ;;  %v9461_v54 = vld [vmem:[%s18191_s9 + $0x500] sm:$0xf] }
 0x26d   :  { %2833 = vmatmul.bf16.vlgmr.msrb.gmra.mxu3 %v13214_v23  ;;  %v9237_v23 = vld [vmem:[%s18191_s9 + $0x340] sm:$0xf]  ;;  %v9018_v31 = vor.u32 %v11500_v17, %v9015_v12  ;;  %v8855_v12 = vld [vmem:[%s18191_s9 + $0x60] sm:$0xf0] }
 0x26e   :  { %2877 = vmatpush.bf16.msra.mxu3 %v8818_v18  ;;  %2859 = vmatmul.bf16.vlgmr.msra.gmra.mxu1 %v13218_v47  ;;  %v9238_v47 = vor.u32 %v11560_v38, %v9237_v23  ;;  %v11484_v23 = vld [vmem:[%s18191_s9 + $0x104] sm:$0xf]  ;;  %v11616_v11 = vld [vmem:[%s18191_s9 + $0x51c] sm:$0xf0] }
 0x26f   :  { %4469 = vmatpush.bf16.msrb.mxu1 %v9302_v22  ;;  %2870 = vmatpush.bf16.msra.mxu2 %v8594_v63  ;;  %v14445_v22 = vpack.c.bf16 %v14245_v43, %v14245_v43  ;;  %v8983_v43 = vld [vmem:[%s18191_s9 + $0x160] sm:$0xf0]  ;;  %v9557_v63 = vld [vmem:[%s18191_s9 + $0x5c0] sm:$0xf]  ;;  %v9462_v48 = vor.u32 %v11616_v11, %v9461_v54  ;;  %v11489_v54 = vld [vmem:[%s18191_s9 + $0x124] sm:$0xf0] }
 0x270   :  { %4460 = vmatpush.bf16.msra.mxu0 %v8918_v45  ;;  %v14417_v3 = vpop.f32.mrf.mxu3  ;;  %v1187_v45 = vperm.slane %v14040_v28, 1  ;;  %v8986_v20 = vor.u32 %v11492_v10, %v8983_v43  ;;  %v9077_v28 = vld [vmem:[%s18191_s9 + $0x200] sm:$0xf]  ;;  %v8951_v38 = vld [vmem:[%s18191_s9 + $0x120] sm:$0xf0] }
 0x271   :  { %v9078_v8 = vor.u32 %v11520_v36, %v9077_v28  ;;  %v8954_v13 = vor.u32 %v11484_v23, %v8951_v38  ;;  %v8823_v10 = vld [vmem:[%s18191_s9 + $0x20] sm:$0xf0]  ;;  %v9309_v11 = vld [vmem:[%s18191_s9 + $0x3c8] sm:$0xf] }
 0x272   :  { %2878 = vmatpush.bf16.msra.mxu3 %v8802_v27  ;;  %v9558_v27 = vor.u32 %v11640_v26, %v9557_v63  ;;  %v11540_v63 = vld [vmem:[%s18191_s9 + $0x2c4] sm:$0xf] }
 0x273   :  { %4470 = vmatpush.bf16.msrb.mxu1 %v9270_v33  ;;  %2871 = vmatpush.bf16.msra.mxu2 %v8578_v39  ;;  %v2654_v18 = vpop.f32.mrf.mxu1  ;;  %v8703_v33 = vld [vmem:[%s18187_s7 + $0x718] sm:$0xf0]  ;;  %v9525_v39 = vld [vmem:[%s18191_s9 + $0x580] sm:$0xf]  ;;  %v9175_v26 = vld [vmem:[%s18191_s9 + $0x2e0] sm:$0xf0] }
 0x274   :  { %4461 = vmatpush.bf16.msra.mxu0 %v8886_v30  ;;  %v11632_v30 = vld [vmem:[%s18191_s9 + $0x59c] sm:$0xf0]  ;;  %v8706_v46 = vor.u32 %v11421_v32, %v8703_v33  ;;  %v11548_v18 = vld [vmem:[%s18191_s9 + $0x304] sm:$0xf]  ;;  %v9178_v28 = vor.u32 %v11540_v63, %v9175_v26 }
 0x275   :  { %v9526_v44 = vor.u32 %v11632_v30, %v9525_v39  ;;  %v9210_v43 = vor.u32 %v11548_v18, %v9207_v40  ;;  %v11600_v32 = vld [vmem:[%s18191_s9 + $0x49c] sm:$0xf0]  ;;  %v11532_v23 = vld [vmem:[%s18191_s9 + $0x284] sm:$0xf]  ;;  %v9021_v39 = vld [vmem:[%s18191_s9 + $0x188] sm:$0xf] }
 0x276   :  { %2879 = vmatpush.bf16.msra.mxu3 %v8786_v29  ;;  %2872 = vmatmul.bf16.vlgmr.msra.gmra.mxu2 %v13271_v55  ;;  %v9174_v55 = vor.u32 %v11544_v56, %v9173_v6  ;;  %v2588_v29 = vadd.f32 %v14191_v59, %v1187_v45  ;;  %v11476_v59 = vld [vmem:[%s18191_s9 + $0xc4] sm:$0xf]  ;;  %v9494_v6 = vor.u32 %v11624_v57, %v9493_v53  ;;  %v9053_v45 = vld [vmem:[%s18191_s9 + $0x1c8] sm:$0xf]  ;;  %v11584_v53 = vld [vmem:[%s18191_s9 + $0x41c] sm:$0xf0] }
 0x277   :  { %4471 = vmatpush.bf16.msrb.mxu1 %v9238_v47  ;;  %4482 = vmatpush.bf16.msrb.mxu2 %v9558_v27  ;;  %v9303_v47 = vld [vmem:[%s18191_s9 + $0x3e0] sm:$0xf0]  ;;  %v11505_v30 = vld [vmem:[%s18191_s9 + $0x1a4] sm:$0xf0] }
 0x278   :  { %4462 = vmatpush.bf16.msra.mxu0 %v8854_v4  ;;  %v2628_v16 = vpop.f32.mrf.mxu3  ;;  %v9306_v4 = vor.u32 %v11572_v41, %v9303_v47  ;;  %v2601_v50 = vadd.f32 %v14193_v61, %v2588_v29  ;;  %v9143_v38 = vld [vmem:[%s18191_s9 + $0x2a0] sm:$0xf0]  ;;  %v9365_v29 = vld [vmem:[%s18191_s9 + $0x440] sm:$0xf]  ;;  %v8925_v40 = vld [vmem:[%s18191_s9 + $0xc8] sm:$0xf] }
 0x279   :  { %v14473_v35 = vpop.f32.mrf.mxu2  ;;  %v9397_v16 = vld [vmem:[%s18191_s9 + $0x480] sm:$0xf] }
 0x27a   :  { %2880 = vmatpush.bf16.msra.mxu3 %v8770_v49  ;;  %v8919_v49 = vld [vmem:[%s18191_s9 + $0xe0] sm:$0xf0]  ;;  %v2614_v56 = vadd.f32 %v14285_v24, %v2601_v50  ;;  %v9398_v33 = vor.u32 %v11600_v32, %v9397_v16  ;;  %v11592_v41 = vld [vmem:[%s18191_s9 + $0x45c] sm:$0xf0]  ;;  %v11561_v16 = vld [vmem:[%s18191_s9 + $0x364] sm:$0xf0] }
 0x27b   :  { %4472 = vmatpush.bf16.msrb.mxu1 %v9206_v52  ;;  %4483 = vmatpush.bf16.msrb.mxu2 %v9526_v44  ;;  %v9271_v52 = vld [vmem:[%s18191_s9 + $0x3a0] sm:$0xf0]  ;;  %v8922_v62 = vor.u32 %v11476_v59, %v8919_v49  ;;  %v9366_v47 = vor.u32 %v11592_v41, %v9365_v29  ;;  %v8989_v49 = vld [vmem:[%s18191_s9 + $0x148] sm:$0xf] }
 0x27c   :  { %4463 = vmatpush.bf16.msra.mxu0 %v8822_v1  ;;  %v9274_v0 = vor.u32 %v11564_v15, %v9271_v52  ;;  %v11468_v1 = vld [vmem:[%s18191_s9 + $0x84] sm:$0xf]  ;;  %v2627_v24 = vadd.f32 %v14417_v3, %v2614_v56  ;;  %v11497_v15 = vld [vmem:[%s18191_s9 + $0x164] sm:$0xf0]  ;;  %v9333_v52 = vld [vmem:[%s18191_s9 + $0x400] sm:$0xf] }
 0x27d   :  { %v9111_v59 = vld [vmem:[%s18191_s9 + $0x260] sm:$0xf0]  ;;  %v9334_v57 = vor.u32 %v11584_v53, %v9333_v52 }
 0x27e   :  { %2881 = vmatpush.bf16.msra.mxu3 %v8754_v2  ;;  %v14500_v37 = vpop.f32.mrf.mxu0  ;;  %v8887_v2 = vld [vmem:[%s18191_s9 + $0xa0] sm:$0xf0] }
 0x27f   :  { %4473 = vmatpush.bf16.msrb.mxu1 %v9174_v55  ;;  %4464 = vmatmul.bf16.vlgmr.msra.gmra.mxu0 %v14445_v22  ;;  %v11556_v55 = vld [vmem:[%s18191_s9 + $0x344] sm:$0xf]  ;;  %v8890_v17 = vor.u32 %v11468_v1, %v8887_v2 }
 0x280   :  { %4508 = vmatpush.bf16.msrb.mxu0 %v9050_v51  ;;  %4484 = vmatpush.bf16.msrb.mxu2 %v9494_v6  ;;  %v9239_v51 = vld [vmem:[%s18191_s9 + $0x360] sm:$0xf0] }
 0x281   :  { %v2667_v61 = vpop.f32.mrf.mxu2  ;;  %v9242_v3 = vor.u32 %v11556_v55, %v9239_v51  ;;  %v11636_v6 = vld [vmem:[%s18191_s9 + $0x5c4] sm:$0xf]  ;;  %v8957_v51 = vld [vmem:[%s18191_s9 + $0x108] sm:$0xf] }
 0x282   :  { %2882 = vmatpush.bf16.msra.mxu3 %v8738_v42  ;;  %v2640_v42 = vadd.f32 %v14314_v5, %v2627_v24  ;;  %v11452_v5 = vld [vmem:[%s18191_s9 + $0x4] sm:$0xf]  ;;  %v8958_v18 = vor.u32 %v11489_v54, %v8957_v51 }
 0x283   :  { %4474 = vmatpush.bf16.msrb.mxu1 %v9142_v34  ;;  %v11608_v34 = vld [vmem:[%s18191_s9 + $0x4dc] sm:$0xf0]  ;;  %v9559_v56 = vld [vmem:[%s18191_s9 + $0x5e0] sm:$0xf0] }
 0x284   :  { %4509 = vmatpush.bf16.msrb.mxu0 %v9018_v31  ;;  %4485 = vmatpush.bf16.msrb.mxu2 %v9462_v48  ;;  %v9430_v31 = vor.u32 %v11608_v34, %v9429_v19  ;;  %v2653_v27 = vadd.f32 %v14390_v7, %v2640_v42  ;;  %v11516_v2 = vld [vmem:[%s18191_s9 + $0x204] sm:$0xf]  ;;  %v11481_v19 = vld [vmem:[%s18191_s9 + $0xe4] sm:$0xf0] }
 0x285   :  { %v9079_v55 = vld [vmem:[%s18191_s9 + $0x220] sm:$0xf0]  ;;  %v9277_v34 = vld [vmem:[%s18191_s9 + $0x388] sm:$0xf] }
 0x286   :  { %2883 = vmatpush.bf16.msra.mxu3 %v8722_v25  ;;  %v2693_v14 = vpop.f32.mrf.mxu0  ;;  %v11513_v25 = vld [vmem:[%s18191_s9 + $0x1e4] sm:$0xf0]  ;;  %v11628_v48 = vld [vmem:[%s18191_s9 + $0x584] sm:$0xf] }
 0x287   :  { %4475 = vmatpush.bf16.msrb.mxu1 %v9110_v60  ;;  %v2666_v60 = vadd.f32 %v14473_v35, %v2653_v27  ;;  %v9054_v7 = vor.u32 %v11513_v25, %v9053_v45  ;;  %v11577_v14 = vld [vmem:[%s18191_s9 + $0x3e4] sm:$0xf0]  ;;  %v11612_v32 = vld [vmem:[%s18191_s9 + $0x504] sm:$0xf] }
 0x288   :  { %4510 = vmatpush.bf16.msrb.mxu0 %v8986_v20  ;;  %4486 = vmatpush.bf16.msrb.mxu2 %v9430_v31  ;;  %v8826_v20 = vor.u32 %v11452_v5, %v8823_v10  ;;  %v9310_v42 = vor.u32 %v11577_v14, %v9309_v11  ;;  %v11569_v31 = vld [vmem:[%s18191_s9 + $0x3a4] sm:$0xf0]  ;;  %v9495_v5 = vld [vmem:[%s18191_s9 + $0x560] sm:$0xf0] }
 0x289   :  { %v9278_v26 = vor.u32 %v11569_v31, %v9277_v34  ;;  %v8893_v45 = vld [vmem:[%s18191_s9 + $0x88] sm:$0xf]  ;;  %v9399_v52 = vld [vmem:[%s18191_s9 + $0x4a0] sm:$0xf0]  ;;  %v9813_v34 = vld [vmem:[%s18191_s9 + $0x7c0] sm:$0xf] }
 0x28a   :  { %2884 = vmatpush.bf16.msra.mxu3 %v8706_v46  ;;  %v11473_v27 = vld [vmem:[%s18191_s9 + $0xa4] sm:$0xf0]  ;;  %v9367_v51 = vld [vmem:[%s18191_s9 + $0x460] sm:$0xf0]  ;;  %v11704_v31 = vld [vmem:[%s18191_s9 + $0x7dc] sm:$0xf0] }
 0x28b   :  { %4476 = vmatpush.bf16.msrb.mxu1 %v9078_v8  ;;  %v14561_v58 = vpop.f32.mrf.mxu1  ;;  %v11524_v8 = vld [vmem:[%s18191_s9 + $0x244] sm:$0xf]  ;;  %v9245_v25 = vld [vmem:[%s18191_s9 + $0x348] sm:$0xf] }
 0x28c   :  { %4511 = vmatpush.bf16.msrb.mxu0 %v8954_v13  ;;  %4487 = vmatpush.bf16.msrb.mxu2 %v9398_v33  ;;  %v9146_v13 = vor.u32 %v11532_v23, %v9143_v38  ;;  %v9114_v61 = vor.u32 %v11524_v8, %v9111_v59  ;;  %v9463_v33 = vld [vmem:[%s18191_s9 + $0x520] sm:$0xf0]  ;;  %v11465_v23 = vld [vmem:[%s18191_s9 + $0x64] sm:$0xf0]  ;;  %v11509_v59 = vld [vmem:[%s18191_s9 + $0x1cc] sm:$0xf] }
 0x28d   :  { %2885 = vmatmul.bf16.vlgmr.msra.gmra.mxu3 %v13331_v21  ;;  %v11460_v21 = vld [vmem:[%s18191_s9 + $0x44] sm:$0xf]  ;;  %v9213_v38 = vld [vmem:[%s18191_s9 + $0x308] sm:$0xf] }
 0x28e   :  { %v8858_v9 = vor.u32 %v11460_v21, %v8855_v12  ;;  %v9082_v12 = vor.u32 %v11516_v2, %v9079_v55  ;;  %v9023_v2 = vld [vmem:[%s18191_s9 + $0x1a8] sm:$0xf0]  ;;  %v11588_v55 = vld [vmem:[%s18191_s9 + $0x444] sm:$0xf] }
 0x28f   :  { %4521 = vmatpush.bf16.msra.mxu1 %v9306_v4  ;;  %v9022_v4 = vor.u32 %v11505_v30, %v9021_v39  ;;  %v11553_v39 = vld [vmem:[%s18191_s9 + $0x324] sm:$0xf0]  ;;  %v9431_v30 = vld [vmem:[%s18191_s9 + $0x4e0] sm:$0xf0]  ;;  %v9370_v54 = vor.u32 %v11588_v55, %v9367_v51  ;;  %v11461_v55 = vld [vmem:[%s18191_s9 + $0x4c] sm:$0xf] }
 0x290   :  { %4512 = vmatpush.bf16.msrb.mxu0 %v8922_v62  ;;  %v2678_v36 = vpop.f32.mrf.mxu3  ;;  %4488 = vmatpush.bf16.msrb.mxu2 %v9366_v47  ;;  %v9562_v62 = vor.u32 %v11636_v6, %v9559_v56  ;;  %v8829_v47 = vld [vmem:[%s18191_s9 + $0x8] sm:$0xf]  ;;  %v9214_v8 = vor.u32 %v11553_v39, %v9213_v38  ;;  %v8863_v51 = vld [vmem:[%s18191_s9 + $0x68] sm:$0xf0] }
 0x291   :  { %v2679_v35 = vadd.f32 %v2678_v36, %v2666_v60  ;;  %v9466_v60 = vor.u32 %v11612_v32, %v9463_v33  ;;  %v8861_v36 = vld [vmem:[%s18191_s9 + $0x48] sm:$0xf]  ;;  %v11573_v32 = vld [vmem:[%s18191_s9 + $0x3cc] sm:$0xf] }
 0x292   :  { %v8862_v41 = vor.u32 %v11465_v23, %v8861_v36 }
 0x293   :  { %4522 = vmatpush.bf16.msra.mxu1 %v9274_v0  ;;  %v2891_v44 = vmax.f32 %v2679_v35, 0.0  ;;  %v2706_v46 = vpop.f32.mrf.mxu1  ;;  %v8990_v0 = vor.u32 %v11497_v15, %v8989_v49  ;;  %v11604_v35 = vld [vmem:[%s18191_s9 + $0x4c4] sm:$0xf]  ;;  %v9055_v49 = vld [vmem:[%s18191_s9 + $0x1e8] sm:$0xf0] }
 0x294   :  { %4513 = vmatpush.bf16.msrb.mxu0 %v8890_v17  ;;  %4489 = vmatpush.bf16.msrb.mxu2 %v9334_v57  ;;  %v9527_v17 = vld [vmem:[%s18191_s9 + $0x5a0] sm:$0xf0]  ;;  %v9434_v29 = vor.u32 %v11604_v35, %v9431_v30  ;;  %v9058_v56 = vor.u32 %v11509_v59, %v9055_v49  ;;  %v11477_v35 = vld [vmem:[%s18191_s9 + $0xcc] sm:$0xf] }
 0x295   :  { %2895 = vst [vmem:[%s18192_s15 + $0x8] sm:$0xff] %v2891_v44  ;;  %v14622_v50 = vpack.c.bf16 %v2891_v44, %v2891_v44  ;;  %v11457_v44 = vld [vmem:[%s18191_s9 + $0x24] sm:$0xf0]  ;;  %v11596_v15 = vld [vmem:[%s18191_s9 + $0x484] sm:$0xf] }
 0x296   :  { %v9402_v53 = vor.u32 %v11596_v15, %v9399_v52  ;;  %v8830_v57 = vor.u32 %v11457_v44, %v8829_v47  ;;  %v8927_v30 = vld [vmem:[%s18191_s9 + $0xe8] sm:$0xf0]  ;;  %v9749_v44 = vld [vmem:[%s18191_s9 + $0x740] sm:$0xf] }
 0x297   :  { %4523 = vmatpush.bf16.msra.mxu1 %v9242_v3  ;;  %v9530_v3 = vor.u32 %v11628_v48, %v9527_v17  ;;  %v9117_v17 = vld [vmem:[%s18191_s9 + $0x248] sm:$0xf]  ;;  %v9279_v47 = vld [vmem:[%s18191_s9 + $0x3a8] sm:$0xf0]  ;;  %v8930_v59 = vor.u32 %v11477_v35, %v8927_v30 }
 0x298   :  { %4514 = vmatpush.bf16.msrb.mxu0 %v8858_v9  ;;  %4477 = vmatmul.bf16.vlgmr.msrb.gmra.mxu1 %v14622_v50  ;;  %v2680_v1 = vpop.f32.mrf.mxu3  ;;  %v11620_v9 = vld [vmem:[%s18191_s9 + $0x544] sm:$0xf]  ;;  %v11469_v49 = vld [vmem:[%s18191_s9 + $0x8c] sm:$0xf] }
 0x299   :  { %v14644_v24 = vpop.f32.mrf.mxu2  ;;  %4534 = vmatpush.bf16.msra.mxu2 %v9562_v62  ;;  %v9498_v10 = vor.u32 %v11620_v9, %v9495_v5  ;;  %v9149_v62 = vld [vmem:[%s18191_s9 + $0x288] sm:$0xf]  ;;  %v9814_v9 = vor.u32 %v11704_v31, %v9813_v34  ;;  %v14795_v5 = vld [vmem:[%s18190_s8] sm:$0xf]  ;;  %v8895_v15 = vld [vmem:[%s18191_s9 + $0xa8] sm:$0xf0] }
 0x29a   :  { %v11557_v52 = vld [vmem:[%s18191_s9 + $0x34c] sm:$0xf]  ;;  %v11514_v31 = vld [vmem:[%s18191_s9 + $0x1ec] sm:$0xf0] }
 0x29b   :  { %4524 = vmatpush.bf16.msra.mxu1 %v9210_v43  ;;  %v8926_v43 = vor.u32 %v11481_v19, %v8925_v40  ;;  %v9335_v40 = vld [vmem:[%s18191_s9 + $0x420] sm:$0xf0]  ;;  %4495 = vmatpush.bf16.msrb.mxu3 %v9814_v9  ;;  %v9653_v9 = vld [vmem:[%s18191_s9 + $0x680] sm:$0xf]  ;;  %v11525_v35 = vld [vmem:[%s18191_s9 + $0x24c] sm:$0xf] }
 0x29c   :  { %4515 = vmatpush.bf16.msrb.mxu0 %v8826_v20 }
 0x29d   :  { %4535 = vmatpush.bf16.msra.mxu2 %v9530_v3  ;;  %v11529_v3 = vld [vmem:[%s18191_s9 + $0x264] sm:$0xf0] }
 0x29e   :  { %v14664_v21 = vpop.f32.mrf.mxu0 }
 0x29f   :  { %4525 = vmatpush.bf16.msra.mxu1 %v9178_v28  ;;  %4516 = vmatmul.bf16.vlgmr.msrb.gmra.mxu0 %v14445_v22  ;;  %v8894_v28 = vor.u32 %v11473_v27, %v8893_v45  ;;  %v11521_v45 = vld [vmem:[%s18191_s9 + $0x224] sm:$0xf0] }
 0x2a0   :  { %4560 = vmatpush.bf16.msra.mxu0 %v9054_v7  ;;  %v9246_v7 = vor.u32 %v11561_v16, %v9245_v25  ;;  %v11485_v25 = vld [vmem:[%s18191_s9 + $0x10c] sm:$0xf] }
 0x2a1   :  { %v2719_v63 = vpop.f32.mrf.mxu2  ;;  %4536 = vmatpush.bf16.msra.mxu2 %v9498_v10  ;;  %v1188_v10 = vperm.slane %v14795_v5, 2  ;;  %v8959_v16 = vld [vmem:[%s18191_s9 + $0x128] sm:$0xf0] }
 0x2a2   :  { %v8962_v23 = vor.u32 %v11485_v25, %v8959_v16  ;;  %v11533_v25 = vld [vmem:[%s18191_s9 + $0x28c] sm:$0xf] }
 0x2a3   :  { %4526 = vmatpush.bf16.msra.mxu1 %v9146_v13  ;;  %v9181_v13 = vld [vmem:[%s18191_s9 + $0x2c8] sm:$0xf]  ;;  %v9151_v16 = vld [vmem:[%s18191_s9 + $0x2a8] sm:$0xf0] }
 0x2a4   :  { %4561 = vmatpush.bf16.msra.mxu0 %v9022_v4  ;;  %v11545_v4 = vld [vmem:[%s18191_s9 + $0x2e4] sm:$0xf0]  ;;  %v9154_v30 = vor.u32 %v11533_v25, %v9151_v16 }
 0x2a5   :  { %4537 = vmatpush.bf16.msra.mxu2 %v9466_v60  ;;  %v9182_v6 = vor.u32 %v11545_v4, %v9181_v13  ;;  %v9311_v60 = vld [vmem:[%s18191_s9 + $0x3e8] sm:$0xf0] }
 0x2a6   :  { %v2745_v20 = vpop.f32.mrf.mxu0  ;;  %v9314_v39 = vor.u32 %v11573_v32, %v9311_v60  ;;  %v9029_v32 = vld [vmem:[%s18191_s9 + $0x190] sm:$0xf] }
 0x2a7   :  { %4527 = vmatpush.bf16.msra.mxu1 %v9114_v61  ;;  %v11537_v61 = vld [vmem:[%s18191_s9 + $0x2a4] sm:$0xf0]  ;;  %v9781_v20 = vld [vmem:[%s18191_s9 + $0x780] sm:$0xf]  ;;  %v11506_v60 = vld [vmem:[%s18191_s9 + $0x1ac] sm:$0xf0] }
 0x2a8   :  { %4562 = vmatpush.bf16.msra.mxu0 %v8990_v0  ;;  %v11501_v0 = vld [vmem:[%s18191_s9 + $0x18c] sm:$0xf]  ;;  %v9150_v14 = vor.u32 %v11537_v61, %v9149_v62 }
 0x2a9   :  { %4538 = vmatpush.bf16.msra.mxu2 %v9434_v29  ;;  %v9026_v48 = vor.u32 %v11501_v0, %v9023_v2  ;;  %v11565_v29 = vld [vmem:[%s18191_s9 + $0x38c] sm:$0xf] }
 0x2ab   :  { %4528 = vmatpush.bf16.msra.mxu1 %v9082_v12  ;;  %v14727_v46 = vpop.f32.mrf.mxu1  ;;  %v11493_v12 = vld [vmem:[%s18191_s9 + $0x14c] sm:$0xf] }
 0x2ac   :  { %4563 = vmatpush.bf16.msra.mxu0 %v8958_v18  ;;  %v8991_v18 = vld [vmem:[%s18191_s9 + $0x168] sm:$0xf0] }
 0x2ad   :  { %4539 = vmatpush.bf16.msra.mxu2 %v9402_v53  ;;  %v8994_v63 = vor.u32 %v11493_v12, %v8991_v18  ;;  %v11453_v12 = vld [vmem:[%s18191_s9 + $0xc] sm:$0xf] }
 0x2ae   :  { %4529 = vmatmul.bf16.vlgmr.msra.gmra.mxu1 %v14622_v50  ;;  %v8831_v18 = vld [vmem:[%s18191_s9 + $0x28] sm:$0xf0] }
 0x2af   :  { %4573 = vmatpush.bf16.msrb.mxu1 %v9310_v42  ;;  %v11580_v42 = vld [vmem:[%s18191_s9 + $0x404] sm:$0xf] }
 0x2b0   :  { %4564 = vmatpush.bf16.msra.mxu0 %v8926_v43  ;;  %v14756_v1 = vpop.f32.mrf.mxu3  ;;  %v9338_v19 = vor.u32 %v11580_v42, %v9335_v40  ;;  %v9118_v43 = vor.u32 %v11529_v3, %v9117_v17  ;;  %v8866_v3 = vor.u32 %v11461_v55, %v8863_v51  ;;  %v11541_v40 = vld [vmem:[%s18191_s9 + $0x2cc] sm:$0xf]  ;;  %v9317_v55 = vld [vmem:[%s18191_s9 + $0x3d0] sm:$0xf] }
 0x2b1   :  { %4540 = vmatpush.bf16.msra.mxu2 %v9370_v54  ;;  %v11549_v54 = vld [vmem:[%s18191_s9 + $0x30c] sm:$0xf] }
 0x2b3   :  { %4574 = vmatpush.bf16.msrb.mxu1 %v9278_v26  ;;  %v2758_v11 = vpop.f32.mrf.mxu1  ;;  %v9085_v26 = vld [vmem:[%s18191_s9 + $0x208] sm:$0xf] }
 0x2b4   :  { %4565 = vmatpush.bf16.msra.mxu0 %v8894_v28  ;;  %v11696_v28 = vld [vmem:[%s18191_s9 + $0x79c] sm:$0xf0]  ;;  %v9086_v36 = vor.u32 %v11521_v45, %v9085_v26  ;;  %v8834_v26 = vor.u32 %v11453_v12, %v8831_v18 }
 0x2b5   :  { %4541 = vmatpush.bf16.msra.mxu2 %v9338_v19  ;;  %v9685_v11 = vld [vmem:[%s18191_s9 + $0x6c0] sm:$0xf]  ;;  %v9061_v19 = vld [vmem:[%s18191_s9 + $0x1d0] sm:$0xf] }
 0x2b7   :  { %4575 = vmatpush.bf16.msrb.mxu1 %v9246_v7  ;;  %v9782_v7 = vor.u32 %v11696_v28, %v9781_v20  ;;  %v9621_v20 = vld [vmem:[%s18191_s9 + $0x640] sm:$0xf] }
 0x2b8   :  { %4566 = vmatpush.bf16.msra.mxu0 %v8862_v41  ;;  %v2732_v27 = vpop.f32.mrf.mxu3  ;;  %v2692_v41 = vadd.f32 %v14500_v37, %v1188_v10  ;;  %v9282_v37 = vor.u32 %v11565_v29, %v9279_v47  ;;  %v11664_v10 = vld [vmem:[%s18191_s9 + $0x69c] sm:$0xf0]  ;;  %v9030_v29 = vor.u32 %v11506_v60, %v9029_v32  ;;  %v8997_v47 = vld [vmem:[%s18191_s9 + $0x150] sm:$0xf] }
 0x2b9   :  { %v14813_v33 = vpop.f32.mrf.mxu2  ;;  %4496 = vmatpush.bf16.msrb.mxu3 %v9782_v7  ;;  %v9062_v27 = vor.u32 %v11514_v31, %v9061_v19  ;;  %v11656_v28 = vld [vmem:[%s18191_s9 + $0x65c] sm:$0xf0]  ;;  %v11482_v19 = vld [vmem:[%s18191_s9 + $0xec] sm:$0xf0] }
 0x2ba   :  { %v2705_v4 = vadd.f32 %v14561_v58, %v2692_v41  ;;  %v9119_v41 = vld [vmem:[%s18191_s9 + $0x268] sm:$0xf0]  ;;  %v9285_v31 = vld [vmem:[%s18191_s9 + $0x390] sm:$0xf] }
 0x2bb   :  { %4576 = vmatpush.bf16.msrb.mxu1 %v9214_v8  ;;  %v11688_v8 = vld [vmem:[%s18191_s9 + $0x75c] sm:$0xf0]  ;;  %v11474_v60 = vld [vmem:[%s18191_s9 + $0xac] sm:$0xf0] }
 0x2bc   :  { %4567 = vmatpush.bf16.msra.mxu0 %v8830_v57  ;;  %v9750_v13 = vor.u32 %v11688_v8, %v9749_v44  ;;  %v2718_v58 = vadd.f32 %v14644_v24, %v2705_v4  ;;  %v9247_v57 = vld [vmem:[%s18191_s9 + $0x368] sm:$0xf0]  ;;  %v8898_v24 = vor.u32 %v11469_v49, %v8895_v15  ;;  %v11498_v44 = vld [vmem:[%s18191_s9 + $0x16c] sm:$0xf0]  ;;  %v9589_v4 = vld [vmem:[%s18191_s9 + $0x600] sm:$0xf] }
 0x2bd   :  { %v9250_v2 = vor.u32 %v11557_v52, %v9247_v57  ;;  %v9533_v49 = vld [vmem:[%s18191_s9 + $0x588] sm:$0xf]  ;;  %v11700_v52 = vld [vmem:[%s18191_s9 + $0x7c4] sm:$0xf] }
 0x2be   :  { %v14824_v38 = vpop.f32.mrf.mxu0  ;;  %4497 = vmatpush.bf16.msrb.mxu3 %v9750_v13  ;;  %v2731_v61 = vadd.f32 %v14756_v1, %v2718_v58  ;;  %v9215_v1 = vld [vmem:[%s18191_s9 + $0x328] sm:$0xf0]  ;;  %v9815_v57 = vld [vmem:[%s18191_s9 + $0x7e0] sm:$0xf0] }
 0x2bf   :  { %4577 = vmatpush.bf16.msrb.mxu1 %v9182_v6  ;;  %4568 = vmatmul.bf16.vlgmr.msra.gmra.mxu0 %v14445_v22  ;;  %v9717_v6 = vld [vmem:[%s18191_s9 + $0x700] sm:$0xf]  ;;  %v9218_v42 = vor.u32 %v11549_v54, %v9215_v1  ;;  %v11578_v1 = vld [vmem:[%s18191_s9 + $0x3ec] sm:$0xf0] }
 0x2c0   :  { %4612 = vmatpush.bf16.msrb.mxu0 %v9058_v56  ;;  %v11680_v56 = vld [vmem:[%s18191_s9 + $0x71c] sm:$0xf0]  ;;  %v2744_v17 = vadd.f32 %v14664_v21, %v2731_v61  ;;  %v9183_v21 = vld [vmem:[%s18191_s9 + $0x2e8] sm:$0xf0] }
 0x2c1   :  { %v2771_v53 = vpop.f32.mrf.mxu2  ;;  %v9718_v62 = vor.u32 %v11680_v56, %v9717_v6  ;;  %v9186_v45 = vor.u32 %v11541_v40, %v9183_v21  ;;  %v9122_v6 = vor.u32 %v11525_v35, %v9119_v41  ;;  %v8998_v56 = vor.u32 %v11498_v44, %v8997_v47  ;;  %v9087_v61 = vld [vmem:[%s18191_s9 + $0x228] sm:$0xf0]  ;;  %v8933_v21 = vld [vmem:[%s18191_s9 + $0xd0] sm:$0xf]  ;;  %v11609_v35 = vld [vmem:[%s18191_s9 + $0x4e4] sm:$0xf0] }
 0x2c2   :  { %v11633_v53 = vld [vmem:[%s18191_s9 + $0x5a4] sm:$0xf0]  ;;  %v9318_v40 = vor.u32 %v11578_v1, %v9317_v55  ;;  %v8934_v16 = vor.u32 %v11482_v19, %v8933_v21  ;;  %v8869_v47 = vld [vmem:[%s18191_s9 + $0x50] sm:$0xf]  ;;  %v9063_v55 = vld [vmem:[%s18191_s9 + $0x1f0] sm:$0xf0] }
 0x2c3   :  { %4578 = vmatpush.bf16.msrb.mxu1 %v9150_v14  ;;  %4498 = vmatpush.bf16.msrb.mxu3 %v9718_v62  ;;  %v11672_v14 = vld [vmem:[%s18191_s9 + $0x6dc] sm:$0xf0]  ;;  %v11517_v62 = vld [vmem:[%s18191_s9 + $0x20c] sm:$0xf]  ;;  %v9534_v54 = vor.u32 %v11633_v53, %v9533_v49  ;;  %v11466_v44 = vld [vmem:[%s18191_s9 + $0x6c] sm:$0xf0] }
 0x2c4   :  { %4613 = vmatpush.bf16.msrb.mxu0 %v9026_v48  ;;  %v9686_v48 = vor.u32 %v11672_v14, %v9685_v11  ;;  %v11692_v11 = vld [vmem:[%s18191_s9 + $0x784] sm:$0xf]  ;;  %v9090_v18 = vor.u32 %v11517_v62, %v9087_v61  ;;  %v9189_v61 = vld [vmem:[%s18191_s9 + $0x2d0] sm:$0xf]  ;;  %v11502_v21 = vld [vmem:[%s18191_s9 + $0x194] sm:$0xf] }
 0x2c5   :  { %v9783_v14 = vld [vmem:[%s18191_s9 + $0x7a0] sm:$0xf0] }
 0x2c6   :  { %v2797_v0 = vpop.f32.mrf.mxu0  ;;  %v9786_v12 = vor.u32 %v11692_v11, %v9783_v14  ;;  %v9687_v49 = vld [vmem:[%s18191_s9 + $0x6e0] sm:$0xf0]  ;;  %v9373_v11 = vld [vmem:[%s18191_s9 + $0x448] sm:$0xf] }
 0x2c7   :  { %4579 = vmatpush.bf16.msrb.mxu1 %v9118_v43  ;;  %4499 = vmatpush.bf16.msrb.mxu3 %v9686_v48  ;;  %v9654_v43 = vor.u32 %v11664_v10, %v9653_v9  ;;  %v8965_v0 = vld [vmem:[%s18191_s9 + $0x110] sm:$0xf]  ;;  %v11593_v14 = vld [vmem:[%s18191_s9 + $0x464] sm:$0xf0] }
 0x2c8   :  { %4614 = vmatpush.bf16.msrb.mxu0 %v8994_v63  ;;  %v2757_v63 = vadd.f32 %v14727_v46, %v2744_v17  ;;  %v9501_v17 = vld [vmem:[%s18191_s9 + $0x548] sm:$0xf]  ;;  %v9374_v19 = vor.u32 %v11593_v14, %v9373_v11  ;;  %v11613_v11 = vld [vmem:[%s18191_s9 + $0x50c] sm:$0xf] }
 0x2c9   :  { %v9471_v14 = vld [vmem:[%s18191_s9 + $0x528] sm:$0xf0] }
 0x2ca   :  { %v2770_v46 = vadd.f32 %v14813_v33, %v2757_v63  ;;  %v9565_v33 = vld [vmem:[%s18191_s9 + $0x5c8] sm:$0xf]  ;;  %v11684_v63 = vld [vmem:[%s18191_s9 + $0x744] sm:$0xf] }
 0x2cb   :  { %4580 = vmatpush.bf16.msrb.mxu1 %v9086_v36  ;;  %v14901_v34 = vpop.f32.mrf.mxu1  ;;  %4500 = vmatpush.bf16.msrb.mxu3 %v9654_v43  ;;  %v9622_v36 = vor.u32 %v11656_v28, %v9621_v20  ;;  %v11570_v43 = vld [vmem:[%s18191_s9 + $0x3ac] sm:$0xf0] }
 0x2cc   :  { %4615 = vmatpush.bf16.msrb.mxu0 %v8962_v23  ;;  %v9286_v32 = vor.u32 %v11570_v43, %v9285_v31  ;;  %v9253_v20 = vld [vmem:[%s18191_s9 + $0x350] sm:$0xf]  ;;  %v9031_v31 = vld [vmem:[%s18191_s9 + $0x1b0] sm:$0xf0]  ;;  %v9623_v43 = vld [vmem:[%s18191_s9 + $0x660] sm:$0xf0] }
 0x2ce   :  { %4581 = vmatmul.bf16.vlgmr.msrb.gmra.mxu1 %v14622_v50 }
 0x2cf   :  { %4625 = vmatpush.bf16.msra.mxu1 %v9314_v39  ;;  %v11641_v39 = vld [vmem:[%s18191_s9 + $0x5e4] sm:$0xf0]  ;;  %4501 = vmatpush.bf16.msrb.mxu3 %v9622_v36  ;;  %v11676_v36 = vld [vmem:[%s18191_s9 + $0x704] sm:$0xf] }
 0x2d0   :  { %4616 = vmatpush.bf16.msrb.mxu0 %v8930_v59  ;;  %v2782_v7 = vpop.f32.mrf.mxu3  ;;  %v11648_v59 = vld [vmem:[%s18191_s9 + $0x61c] sm:$0xf0] }
 0x2d1   :  { %v2783_v23 = vadd.f32 %v2782_v7, %v2770_v46  ;;  %v9590_v15 = vor.u32 %v11648_v59, %v9589_v4  ;;  %v8901_v46 = vld [vmem:[%s18191_s9 + $0x90] sm:$0xf] }
 0x2d2   :  { %v11562_v7 = vld [vmem:[%s18191_s9 + $0x36c] sm:$0xf0] }
 0x2d3   :  { %4626 = vmatpush.bf16.msra.mxu1 %v9282_v37  ;;  %v2892_v8 = vmax.f32 %v2783_v23, 0.0  ;;  %v2810_v13 = vpop.f32.mrf.mxu1  ;;  %v9566_v37 = vor.u32 %v11641_v39, %v9565_v33  ;;  %4502 = vmatpush.bf16.msrb.mxu3 %v9590_v15  ;;  %v9719_v23 = vld [vmem:[%s18191_s9 + $0x720] sm:$0xf0]  ;;  %v9437_v39 = vld [vmem:[%s18191_s9 + $0x4c8] sm:$0xf]  ;;  %v9254_v41 = vor.u32 %v11562_v7, %v9253_v20 }
 0x2d4   :  { %4617 = vmatpush.bf16.msrb.mxu0 %v8898_v24  ;;  %v9818_v24 = vor.u32 %v11700_v52, %v9815_v57  ;;  %v9438_v4 = vor.u32 %v11609_v35, %v9437_v39  ;;  %v11554_v59 = vld [vmem:[%s18191_s9 + $0x32c] sm:$0xf0]  ;;  %v9405_v15 = vld [vmem:[%s18191_s9 + $0x488] sm:$0xf]  ;;  %v8870_v57 = vor.u32 %v11466_v44, %v8869_v47 }
 0x2d5   :  { %2896 = vst [vmem:[%s18192_s15 + $0x10] sm:$0xff] %v2892_v8  ;;  %v14966_v58 = vpack.c.bf16 %v2892_v8, %v2892_v8  ;;  %v9221_v8 = vld [vmem:[%s18191_s9 + $0x310] sm:$0xf]  ;;  %v11601_v52 = vld [vmem:[%s18191_s9 + $0x4a4] sm:$0xf0] }
 0x2d6   :  { %v9222_v62 = vor.u32 %v11554_v59, %v9221_v8  ;;  %v11530_v20 = vld [vmem:[%s18191_s9 + $0x26c] sm:$0xf0]  ;;  %v8967_v59 = vld [vmem:[%s18191_s9 + $0x130] sm:$0xf0] }
 0x2d7   :  { %4627 = vmatpush.bf16.msra.mxu1 %v9250_v2  ;;  %4490 = vmatmul.bf16.vlgmr.msrb.gmra.mxu2 %v14966_v58  ;;  %v11490_v2 = vld [vmem:[%s18191_s9 + $0x12c] sm:$0xf0] }
 0x2d8   :  { %4618 = vmatpush.bf16.msrb.mxu0 %v8866_v3  ;;  %4586 = vmatpush.bf16.msrb.mxu2 %v9566_v37  ;;  %v2784_v51 = vpop.f32.mrf.mxu3  ;;  %v11625_v3 = vld [vmem:[%s18191_s9 + $0x564] sm:$0xf0]  ;;  %v11668_v37 = vld [vmem:[%s18191_s9 + $0x6c4] sm:$0xf]  ;;  %v9093_v8 = vld [vmem:[%s18191_s9 + $0x210] sm:$0xf] }
 0x2d9   :  { %4547 = vmatpush.bf16.msra.mxu3 %v9818_v24  ;;  %v14999_v48 = vpop.f32.mrf.mxu2  ;;  %v9502_v10 = vor.u32 %v11625_v3, %v9501_v17  ;;  %v9690_v53 = vor.u32 %v11668_v37, %v9687_v49  ;;  %v11546_v24 = vld [vmem:[%s18191_s9 + $0x2ec] sm:$0xf0]  ;;  %v11660_v51 = vld [vmem:[%s18191_s9 + $0x684] sm:$0xf]  ;;  %v11574_v49 = vld [vmem:[%s18191_s9 + $0x3d4] sm:$0xf] }
 0x2db   :  { %4628 = vmatpush.bf16.msra.mxu1 %v9218_v42  ;;  %v8966_v42 = vor.u32 %v11490_v2, %v8965_v0  ;;  %v11510_v0 = vld [vmem:[%s18191_s9 + $0x1d4] sm:$0xf]  ;;  %v9406_v2 = vor.u32 %v11601_v52, %v9405_v15 }
 0x2dc   :  { %4619 = vmatpush.bf16.msrb.mxu0 %v8834_v26  ;;  %4587 = vmatpush.bf16.msrb.mxu2 %v9534_v54  ;;  %v9751_v26 = vld [vmem:[%s18191_s9 + $0x760] sm:$0xf0]  ;;  %v9319_v15 = vld [vmem:[%s18191_s9 + $0x3f0] sm:$0xf0] }
 0x2dd   :  { %4548 = vmatpush.bf16.msra.mxu3 %v9786_v12  ;;  %v9754_v25 = vor.u32 %v11684_v63, %v9751_v26  ;;  %v9655_v54 = vld [vmem:[%s18191_s9 + $0x6a0] sm:$0xf0]  ;;  %v9190_v12 = vor.u32 %v11546_v24, %v9189_v61  ;;  %v9341_v63 = vld [vmem:[%s18191_s9 + $0x408] sm:$0xf]  ;;  %v9322_v24 = vor.u32 %v11574_v49, %v9319_v15  ;;  %v9159_v49 = vld [vmem:[%s18191_s9 + $0x2b0] sm:$0xf0] }
 0x2de   :  { %v15016_v9 = vpop.f32.mrf.mxu0  ;;  %v9658_v17 = vor.u32 %v11660_v51, %v9655_v54  ;;  %v11585_v26 = vld [vmem:[%s18191_s9 + $0x424] sm:$0xf0]  ;;  %v9287_v51 = vld [vmem:[%s18191_s9 + $0x3b0] sm:$0xf0]  ;;  %v9037_v15 = vld [vmem:[%s18191_s9 + $0x198] sm:$0xf] }
 0x2df   :  { %4629 = vmatpush.bf16.msra.mxu1 %v9186_v45  ;;  %4620 = vmatmul.bf16.vlgmr.msrb.gmra.mxu0 %v14445_v22  ;;  %v9469_v45 = vld [vmem:[%s18191_s9 + $0x508] sm:$0xf]  ;;  %v9342_v7 = vor.u32 %v11585_v26, %v9341_v63 }
 0x2e0   :  { %4664 = vmatpush.bf16.msra.mxu0 %v9062_v27  ;;  %v11617_v27 = vld [vmem:[%s18191_s9 + $0x524] sm:$0xf0]  ;;  %4588 = vmatpush.bf16.msrb.mxu2 %v9502_v10  ;;  %v11652_v10 = vld [vmem:[%s18191_s9 + $0x644] sm:$0xf] }
 0x2e1   :  { %v9470_v28 = vor.u32 %v11617_v27, %v9469_v45  ;;  %4549 = vmatpush.bf16.msra.mxu3 %v9754_v25  ;;  %v2823_v33 = vpop.f32.mrf.mxu2  ;;  %v9626_v45 = vor.u32 %v11652_v10, %v9623_v43  ;;  %v11637_v25 = vld [vmem:[%s18191_s9 + $0x5cc] sm:$0xf] }
 0x2e2   :  { %v9591_v33 = vld [vmem:[%s18191_s9 + $0x620] sm:$0xf0] }
 0x2e3   :  { %4630 = vmatpush.bf16.msra.mxu1 %v9154_v30  ;;  %v9722_v30 = vor.u32 %v11676_v36, %v9719_v23  ;;  %v8999_v36 = vld [vmem:[%s18191_s9 + $0x170] sm:$0xf0]  ;;  %v11644_v23 = vld [vmem:[%s18191_s9 + $0x604] sm:$0xf] }
 0x2e4   :  { %4665 = vmatpush.bf16.msra.mxu0 %v9030_v29  ;;  %v8902_v29 = vor.u32 %v11474_v60, %v8901_v46  ;;  %4589 = vmatpush.bf16.msrb.mxu2 %v9470_v28  ;;  %v9034_v46 = vor.u32 %v11502_v21, %v9031_v31  ;;  %v9125_v60 = vld [vmem:[%s18191_s9 + $0x250] sm:$0xf]  ;;  %v11494_v28 = vld [vmem:[%s18191_s9 + $0x154] sm:$0xf]  ;;  %v9474_v21 = vor.u32 %v11613_v11, %v9471_v14  ;;  %v11605_v31 = vld [vmem:[%s18191_s9 + $0x4cc] sm:$0xf] }
 0x2e5   :  { %4550 = vmatpush.bf16.msra.mxu3 %v9722_v30  ;;  %v9594_v30 = vor.u32 %v11644_v23, %v9591_v33  ;;  %v9126_v47 = vor.u32 %v11530_v20, %v9125_v60  ;;  %v9002_v44 = vor.u32 %v11494_v28, %v8999_v36  ;;  %v11597_v20 = vld [vmem:[%s18191_s9 + $0x48c] sm:$0xf]  ;;  %v11454_v36 = vld [vmem:[%s18191_s9 + $0x14] sm:$0xf] }
 0x2e6   :  { %v2849_v13 = vpop.f32.mrf.mxu0  ;;  %v9407_v28 = vld [vmem:[%s18191_s9 + $0x4a8] sm:$0xf0]  ;;  %v8839_v23 = vld [vmem:[%s18191_s9 + $0x30] sm:$0xf0] }
 0x2e7   :  { %4631 = vmatpush.bf16.msra.mxu1 %v9122_v6  ;;  %v8837_v6 = vld [vmem:[%s18191_s9 + $0x10] sm:$0xf]  ;;  %4542 = vmatmul.bf16.vlgmr.msra.gmra.mxu2 %v14966_v58  ;;  %v11542_v33 = vld [vmem:[%s18191_s9 + $0x2d4] sm:$0xf] }
 0x2e8   :  { %4666 = vmatpush.bf16.msra.mxu0 %v8998_v56  ;;  %v11458_v56 = vld [vmem:[%s18191_s9 + $0x2c] sm:$0xf0]  ;;  %4590 = vmatpush.bf16.msrb.mxu2 %v9438_v4  ;;  %v11486_v4 = vld [vmem:[%s18191_s9 + $0x114] sm:$0xf] }
 0x2e9   :  { %4551 = vmatpush.bf16.msra.mxu3 %v9690_v53  ;;  %v8838_v3 = vor.u32 %v11458_v56, %v8837_v6  ;;  %v11522_v13 = vld [vmem:[%s18191_s9 + $0x22c] sm:$0xf0]  ;;  %v11621_v53 = vld [vmem:[%s18191_s9 + $0x54c] sm:$0xf]  ;;  %v1189_v6 = vperm.slane %v14795_v5, 3  ;;  %v8970_v61 = vor.u32 %v11486_v4, %v8967_v59 }
 0x2ea   :  { %v11566_v5 = vld [vmem:[%s18191_s9 + $0x394] sm:$0xf] }
 0x2eb   :  { %4632 = vmatpush.bf16.msra.mxu1 %v9090_v18  ;;  %v15107_v1 = vpop.f32.mrf.mxu1  ;;  %v9066_v18 = vor.u32 %v11510_v0, %v9063_v55  ;;  %v11478_v0 = vld [vmem:[%s18191_s9 + $0xd4] sm:$0xf] }
 0x2ec   :  { %4667 = vmatpush.bf16.msra.mxu0 %v8966_v42  ;;  %v9157_v42 = vld [vmem:[%s18191_s9 + $0x290] sm:$0xf]  ;;  %4591 = vmatpush.bf16.msrb.mxu2 %v9406_v2  ;;  %v8935_v2 = vld [vmem:[%s18191_s9 + $0xf0] sm:$0xf0] }
 0x2ed   :  { %4552 = vmatpush.bf16.msra.mxu3 %v9658_v17  ;;  %v2796_v17 = vadd.f32 %v14824_v38, %v1189_v6  ;;  %v11558_v38 = vld [vmem:[%s18191_s9 + $0x354] sm:$0xf]  ;;  %v9573_v6 = vld [vmem:[%s18191_s9 + $0x5d0] sm:$0xf] }
 0x2ee   :  { %4633 = vmatmul.bf16.vlgmr.msra.gmra.mxu1 %v14622_v50  ;;  %v11534_v4 = vld [vmem:[%s18191_s9 + $0x294] sm:$0xf] }
 0x2ef   :  { %4677 = vmatpush.bf16.msrb.mxu1 %v9318_v40  ;;  %v11538_v40 = vld [vmem:[%s18191_s9 + $0x2ac] sm:$0xf0]  ;;  %v9127_v11 = vld [vmem:[%s18191_s9 + $0x270] sm:$0xf0] }
 0x2f0   :  { %4668 = vmatpush.bf16.msra.mxu0 %v8934_v16  ;;  %v15139_v27 = vpop.f32.mrf.mxu3  ;;  %v9567_v16 = vld [vmem:[%s18191_s9 + $0x5e8] sm:$0xf0]  ;;  %4592 = vmatpush.bf16.msrb.mxu2 %v9374_v19  ;;  %v9255_v19 = vld [vmem:[%s18191_s9 + $0x370] sm:$0xf0] }
 0x2f1   :  { %4553 = vmatpush.bf16.msra.mxu3 %v9626_v45  ;;  %v9570_v35 = vor.u32 %v11637_v25, %v9567_v16  ;;  %v9258_v26 = vor.u32 %v11558_v38, %v9255_v19  ;;  %v11462_v45 = vld [vmem:[%s18191_s9 + $0x54] sm:$0xf]  ;;  %v9789_v19 = vld [vmem:[%s18191_s9 + $0x788] sm:$0xf] }
 0x2f2   :  { %v8871_v25 = vld [vmem:[%s18191_s9 + $0x70] sm:$0xf0] }
 0x2f3   :  { %4678 = vmatpush.bf16.msrb.mxu1 %v9286_v32  ;;  %v9158_v32 = vor.u32 %v11538_v40, %v9157_v42  ;;  %v2862_v39 = vpop.f32.mrf.mxu1  ;;  %v8903_v42 = vld [vmem:[%s18191_s9 + $0xb0] sm:$0xf0]  ;;  %v2809_v40 = vadd.f32 %v14901_v34, %v2796_v17  ;;  %v9439_v34 = vld [vmem:[%s18191_s9 + $0x4e8] sm:$0xf0]  ;;  %v9005_v17 = vld [vmem:[%s18191_s9 + $0x158] sm:$0xf] }
 0x2f4   :  { %4669 = vmatpush.bf16.msra.mxu0 %v8902_v29  ;;  %v11629_v29 = vld [vmem:[%s18191_s9 + $0x58c] sm:$0xf]  ;;  %4593 = vmatpush.bf16.msrb.mxu2 %v9342_v7 }
 0x2f5   :  { %4554 = vmatpush.bf16.msra.mxu3 %v9594_v30  ;;  %v2822_v10 = vadd.f32 %v14999_v48, %v2809_v40  ;;  %v11550_v48 = vld [vmem:[%s18191_s9 + $0x314] sm:$0xf]  ;;  %v11634_v40 = vld [vmem:[%s18191_s9 + $0x5ac] sm:$0xf0] }
 0x2f6   :  { %v9191_v30 = vld [vmem:[%s18191_s9 + $0x2f0] sm:$0xf0] }
 0x2f7   :  { %4679 = vmatpush.bf16.msrb.mxu1 %v9254_v41  ;;  %v9535_v41 = vld [vmem:[%s18191_s9 + $0x5a8] sm:$0xf0]  ;;  %4594 = vmatmul.bf16.vlgmr.msrb.gmra.mxu2 %v14966_v58  ;;  %v2835_v16 = vadd.f32 %v15139_v27, %v2822_v10  ;;  %v8874_v27 = vor.u32 %v11462_v45, %v8871_v25  ;;  %v11491_v25 = vld [vmem:[%s18191_s9 + $0x134] sm:$0xf0] }
 0x2f8   :  { %4670 = vmatpush.bf16.msra.mxu0 %v8870_v57  ;;  %4638 = vmatpush.bf16.msra.mxu2 %v9570_v35  ;;  %v9538_v37 = vor.u32 %v11629_v29, %v9535_v41  ;;  %v2836_v52 = vpop.f32.mrf.mxu3  ;;  %v9503_v57 = vld [vmem:[%s18191_s9 + $0x568] sm:$0xf0]  ;;  %v9410_v35 = vor.u32 %v11597_v20, %v9407_v28  ;;  %v9069_v29 = vld [vmem:[%s18191_s9 + $0x1d8] sm:$0xf] }
 0x2f9   :  { %v15197_v56 = vpop.f32.mrf.mxu2  ;;  %v9506_v55 = vor.u32 %v11621_v53, %v9503_v57  ;;  %v2848_v39 = vadd.f32 %v15016_v9, %v2835_v16  ;;  %v11515_v41 = vld [vmem:[%s18191_s9 + $0x1f4] sm:$0xf0]  ;;  %v9375_v9 = vld [vmem:[%s18191_s9 + $0x468] sm:$0xf0] }
 0x2fa   :  { %v11507_v52 = vld [vmem:[%s18191_s9 + $0x1b4] sm:$0xf0]  ;;  %v11581_v53 = vld [vmem:[%s18191_s9 + $0x40c] sm:$0xf] }
 0x2fb   :  { %4680 = vmatpush.bf16.msrb.mxu1 %v9222_v62  ;;  %v9094_v62 = vor.u32 %v11522_v13, %v9093_v8  ;;  %v9194_v8 = vor.u32 %v11542_v33, %v9191_v30  ;;  %v9070_v13 = vor.u32 %v11515_v41, %v9069_v29  ;;  %v2861_v59 = vadd.f32 %v15107_v1, %v2848_v39  ;;  %v9343_v1 = vld [vmem:[%s18191_s9 + $0x428] sm:$0xf0]  ;;  %v9325_v16 = vld [vmem:[%s18191_s9 + $0x3d8] sm:$0xf]  ;;  %v11689_v33 = vld [vmem:[%s18191_s9 + $0x764] sm:$0xf0] }
 0x2fc   :  { %4671 = vmatpush.bf16.msra.mxu0 %v8838_v3  ;;  %4639 = vmatpush.bf16.msra.mxu2 %v9538_v37  ;;  %v15212_v54 = vpop.f32.mrf.mxu0  ;;  %v8938_v3 = vor.u32 %v11478_v0, %v8935_v2  ;;  %v9038_v0 = vor.u32 %v11507_v52, %v9037_v15  ;;  %v9821_v2 = vld [vmem:[%s18191_s9 + $0x7c8] sm:$0xf]  ;;  %v8941_v39 = vld [vmem:[%s18191_s9 + $0xd8] sm:$0xf] }
 0x2fd   :  { %v2874_v57 = vadd.f32 %v15197_v56, %v2861_v59  ;;  %v9346_v56 = vor.u32 %v11581_v53, %v9343_v1  ;;  %v11483_v30 = vld [vmem:[%s18191_s9 + $0xf4] sm:$0xf0]  ;;  %v11681_v15 = vld [vmem:[%s18191_s9 + $0x724] sm:$0xf0] }
 0x2fe   :  { %v9293_v29 = vld [vmem:[%s18191_s9 + $0x398] sm:$0xf]  ;;  %v8942_v59 = vor.u32 %v11483_v30, %v8941_v39  ;;  %v11503_v30 = vld [vmem:[%s18191_s9 + $0x19c] sm:$0xf] }
 0x2ff   :  { %4681 = vmatpush.bf16.msrb.mxu1 %v9190_v12  ;;  %4672 = vmatmul.bf16.vlgmr.msra.gmra.mxu0 %v14445_v22  ;;  %v9290_v12 = vor.u32 %v11566_v5, %v9287_v51  ;;  %v11705_v5 = vld [vmem:[%s18191_s9 + $0x7e4] sm:$0xf0]  ;;  %v11526_v51 = vld [vmem:[%s18191_s9 + $0x254] sm:$0xf]  ;;  %v11571_v41 = vld [vmem:[%s18191_s9 + $0x3b4] sm:$0xf0] }
 0x300   :  { %4716 = vmatpush.bf16.msrb.mxu0 %v9066_v18  ;;  %v11470_v18 = vld [vmem:[%s18191_s9 + $0x94] sm:$0xf]  ;;  %4640 = vmatpush.bf16.msra.mxu2 %v9506_v55  ;;  %v9130_v38 = vor.u32 %v11526_v51, %v9127_v11  ;;  %v8909_v52 = vld [vmem:[%s18191_s9 + $0x98] sm:$0xf] }
 0x301   :  { %v2875_v43 = vpop.f32.mrf.mxu2  ;;  %v8906_v63 = vor.u32 %v11470_v18, %v8903_v42  ;;  %v9541_v42 = vld [vmem:[%s18191_s9 + $0x590] sm:$0xf]  ;;  %v11475_v1 = vld [vmem:[%s18191_s9 + $0xb4] sm:$0xf0] }
 0x302   :  { %v9542_v45 = vor.u32 %v11634_v40, %v9541_v42  ;;  %v11467_v11 = vld [vmem:[%s18191_s9 + $0x74] sm:$0xf0]  ;;  %v11602_v42 = vld [vmem:[%s18191_s9 + $0x4ac] sm:$0xf0] }
 0x303   :  { %4682 = vmatpush.bf16.msrb.mxu1 %v9158_v32  ;;  %v9442_v32 = vor.u32 %v11605_v31, %v9439_v34  ;;  %v11697_v31 = vld [vmem:[%s18191_s9 + $0x7a4] sm:$0xf0]  ;;  %v11518_v34 = vld [vmem:[%s18191_s9 + $0x214] sm:$0xf]  ;;  %v9165_v39 = vld [vmem:[%s18191_s9 + $0x298] sm:$0xf] }
 0x304   :  { %4717 = vmatpush.bf16.msrb.mxu0 %v9034_v46  ;;  %4641 = vmatpush.bf16.msra.mxu2 %v9474_v21  ;;  %v9223_v46 = vld [vmem:[%s18191_s9 + $0x330] sm:$0xf0]  ;;  %v4467_v60 = vpop.f32.mrf.mxu0  ;;  %v9822_v21 = vor.u32 %v11705_v5, %v9821_v2  ;;  %v9790_v28 = vor.u32 %v11697_v31, %v9789_v19  ;;  %v8877_v5 = vld [vmem:[%s18191_s9 + $0x58] sm:$0xf]  ;;  %v9661_v19 = vld [vmem:[%s18191_s9 + $0x688] sm:$0xf] }
 0x305   :  { %v9226_v7 = vor.u32 %v11550_v48, %v9223_v46  ;;  %v9509_v46 = vld [vmem:[%s18191_s9 + $0x550] sm:$0xf]  ;;  %v8878_v31 = vor.u32 %v11467_v11, %v8877_v5  ;;  %v11693_v11 = vld [vmem:[%s18191_s9 + $0x78c] sm:$0xf] }
 0x306   :  { %v11626_v60 = vld [vmem:[%s18191_s9 + $0x56c] sm:$0xf0] }
 0x307   :  { %4683 = vmatpush.bf16.msrb.mxu1 %v9126_v47  ;;  %v11589_v47 = vld [vmem:[%s18191_s9 + $0x44c] sm:$0xf] }
 0x308   :  { %4718 = vmatpush.bf16.msrb.mxu0 %v9002_v44  ;;  %4642 = vmatpush.bf16.msra.mxu2 %v9442_v32  ;;  %v8842_v44 = vor.u32 %v11454_v36, %v8839_v23  ;;  %v9378_v37 = vor.u32 %v11589_v47, %v9375_v9  ;;  %v11579_v32 = vld [vmem:[%s18191_s9 + $0x3f4] sm:$0xf0]  ;;  %v9757_v23 = vld [vmem:[%s18191_s9 + $0x748] sm:$0xf] }
 0x309   :  { %v9326_v36 = vor.u32 %v11579_v32, %v9325_v16  ;;  %v11547_v16 = vld [vmem:[%s18191_s9 + $0x2f4] sm:$0xf0]  ;;  %v11511_v32 = vld [vmem:[%s18191_s9 + $0x1dc] sm:$0xf] }
 0x30b   :  { %4684 = vmatpush.bf16.msrb.mxu1 %v9094_v62  ;;  %v11642_v62 = vld [vmem:[%s18191_s9 + $0x5ec] sm:$0xf0] }
 0x30c   :  { %4719 = vmatpush.bf16.msrb.mxu0 %v8970_v61  ;;  %4643 = vmatpush.bf16.msra.mxu2 %v9410_v35  ;;  %v9574_v14 = vor.u32 %v11642_v62, %v9573_v6  ;;  %v9510_v35 = vor.u32 %v11626_v60, %v9509_v46  ;;  %v11563_v6 = vld [vmem:[%s18191_s9 + $0x374] sm:$0xf0]  ;;  %v9445_v62 = vld [vmem:[%s18191_s9 + $0x4d0] sm:$0xf] }
 0x30d   :  { %v9381_v46 = vld [vmem:[%s18191_s9 + $0x450] sm:$0xf] }
 0x30e   :  { %4685 = vmatmul.bf16.vlgmr.msrb.gmra.mxu1 %v14622_v50  ;;  %v11594_v60 = vld [vmem:[%s18191_s9 + $0x46c] sm:$0xf0] }
 0x30f   :  { %4729 = vmatpush.bf16.msra.mxu1 %v9322_v24  ;;  %v9162_v24 = vor.u32 %v11534_v4, %v9159_v49  ;;  %v9725_v49 = vld [vmem:[%s18191_s9 + $0x708] sm:$0xf] }
 0x310   :  { %4720 = vmatpush.bf16.msrb.mxu0 %v8938_v3  ;;  %v2886_v61 = vpop.f32.mrf.mxu3  ;;  %4644 = vmatpush.bf16.msra.mxu2 %v9378_v37  ;;  %v11499_v3 = vld [vmem:[%s18191_s9 + $0x174] sm:$0xf0] }
 0x311   :  { %v2887_v55 = vadd.f32 %v2886_v61, %v2874_v57  ;;  %v9006_v43 = vor.u32 %v11499_v3, %v9005_v17  ;;  %v9261_v57 = vld [vmem:[%s18191_s9 + $0x358] sm:$0xf]  ;;  %v11610_v61 = vld [vmem:[%s18191_s9 + $0x4ec] sm:$0xf0] }
 0x312   :  { %v9262_v2 = vor.u32 %v11563_v6, %v9261_v57  ;;  %v9446_v51 = vor.u32 %v11610_v61, %v9445_v62  ;;  %v11555_v17 = vld [vmem:[%s18191_s9 + $0x334] sm:$0xf0]  ;;  %v9823_v57 = vld [vmem:[%s18191_s9 + $0x7e8] sm:$0xf0] }
 0x313   :  { %4730 = vmatpush.bf16.msra.mxu1 %v9290_v12  ;;  %v15334_v12 = vld [vmem:[%s18193_s10] sm:$0xff]  ;;  %v2893_v18 = vmax.f32 %v2887_v55, 0.0  ;;  %v9693_v55 = vld [vmem:[%s18191_s9 + $0x6c8] sm:$0xf]  ;;  %v9133_v6 = vld [vmem:[%s18191_s9 + $0x258] sm:$0xf] }
 0x314   :  { %4721 = vmatpush.bf16.msrb.mxu0 %v8906_v63  ;;  %4645 = vmatpush.bf16.msra.mxu2 %v9346_v56  ;;  %v9095_v63 = vld [vmem:[%s18191_s9 + $0x230] sm:$0xf0]  ;;  %v3160_v48 = vperm.slane %v15334_v12, 0  ;;  %v11673_v56 = vld [vmem:[%s18191_s9 + $0x6e4] sm:$0xf0]  ;;  %v3161_v40 = vperm.slane %v15334_v12, 1 }
 0x315   :  { %2897 = vst [vmem:[%s18192_s15 + $0x18] sm:$0xff] %v2893_v18  ;;  %v15354_v10 = vpack.c.bf16 %v2893_v18, %v2893_v18  ;;  %v4478_v4 = vpop.f32.mrf.mxu1  ;;  %v9413_v18 = vld [vmem:[%s18191_s9 + $0x490] sm:$0xf]  ;;  %v11531_v62 = vld [vmem:[%s18191_s9 + $0x274] sm:$0xf0] }
 0x316   :  { %v4466_v47 = vadd.f32 %v15212_v54, %v3160_v48  ;;  %v9294_v54 = vor.u32 %v11571_v41, %v9293_v29  ;;  %v9071_v48 = vld [vmem:[%s18191_s9 + $0x1f8] sm:$0xf0] }
 0x317   :  { %4731 = vmatpush.bf16.msra.mxu1 %v9258_v26  ;;  %v8973_v26 = vld [vmem:[%s18191_s9 + $0x118] sm:$0xf]  ;;  %4503 = vmatmul.bf16.vlgmr.msrb.gmra.mxu3 %v15354_v10  ;;  %v9039_v41 = vld [vmem:[%s18191_s9 + $0x1b8] sm:$0xf0] }
 0x318   :  { %4722 = vmatpush.bf16.msrb.mxu0 %v8874_v27  ;;  %4690 = vmatpush.bf16.msrb.mxu2 %v9574_v14  ;;  %v2888_v20 = vpop.f32.mrf.mxu3  ;;  %v9098_v27 = vor.u32 %v11518_v34, %v9095_v63  ;;  %v15407_v37 = vadd.f32 %v4478_v4, %v4466_v47  ;;  %v9229_v14 = vld [vmem:[%s18191_s9 + $0x318] sm:$0xf]  ;;  %v9349_v47 = vld [vmem:[%s18191_s9 + $0x410] sm:$0xf]  ;;  %v11638_v4 = vld [vmem:[%s18191_s9 + $0x5d4] sm:$0xf] }
 0x319   :  { %4599 = vmatpush.bf16.msrb.mxu3 %v9822_v21  ;;  %4646 = vmatmul.bf16.vlgmr.msra.gmra.mxu2 %v14966_v58  ;;  %v9694_v21 = vor.u32 %v11673_v56, %v9693_v55  ;;  %v9230_v34 = vor.u32 %v11555_v17, %v9229_v14  ;;  %v8845_v63 = vld [vmem:[%s18191_s9 + $0x18] sm:$0xf]  ;;  %v11630_v55 = vld [vmem:[%s18191_s9 + $0x594] sm:$0xf]  ;;  %v9791_v14 = vld [vmem:[%s18191_s9 + $0x7a8] sm:$0xf0] }
 0x31a   :  { %v9543_v56 = vld [vmem:[%s18191_s9 + $0x5b0] sm:$0xf0] }
 0x31b   :  { %4732 = vmatpush.bf16.msra.mxu1 %v9226_v7  ;;  %v8974_v7 = vor.u32 %v11491_v25, %v8973_v26  ;;  %v11459_v26 = vld [vmem:[%s18191_s9 + $0x34] sm:$0xf0] }
 0x31c   :  { %4723 = vmatpush.bf16.msrb.mxu0 %v8842_v44  ;;  %4691 = vmatpush.bf16.msrb.mxu2 %v9542_v45  ;;  %v15399_v9 = vpop.f32.mrf.mxu0  ;;  %v9477_v44 = vld [vmem:[%s18191_s9 + $0x510] sm:$0xf]  ;;  %v9414_v45 = vor.u32 %v11602_v42, %v9413_v18  ;;  %v9197_v25 = vld [vmem:[%s18191_s9 + $0x2d8] sm:$0xf]  ;;  %v11487_v42 = vld [vmem:[%s18191_s9 + $0x11c] sm:$0xf] }
 0x31d   :  { %4600 = vmatpush.bf16.msrb.mxu3 %v9790_v28  ;;  %v8846_v28 = vor.u32 %v11459_v26, %v8845_v63  ;;  %v4518_v29 = vadd.f32 %v15399_v9, %v3161_v40  ;;  %v9575_v9 = vld [vmem:[%s18191_s9 + $0x5f0] sm:$0xf0]  ;;  %v11523_v18 = vld [vmem:[%s18191_s9 + $0x234] sm:$0xf0]  ;;  %v9546_v40 = vor.u32 %v11630_v55, %v9543_v56  ;;  %v9794_v63 = vor.u32 %v11693_v11, %v9791_v14  ;;  %v9663_v11 = vld [vmem:[%s18191_s9 + $0x6a8] sm:$0xf0] }
 0x31e   :  { %v9578_v61 = vor.u32 %v11638_v4, %v9575_v9  ;;  %v9447_v4 = vld [vmem:[%s18191_s9 + $0x4f0] sm:$0xf0]  ;;  %v11455_v14 = vld [vmem:[%s18191_s9 + $0x1c] sm:$0xf] }
 0x31f   :  { %4733 = vmatpush.bf16.msra.mxu1 %v9194_v8  ;;  %4724 = vmatmul.bf16.vlgmr.msrb.gmra.mxu0 %v14445_v22  ;;  %v11618_v8 = vld [vmem:[%s18191_s9 + $0x52c] sm:$0xf0] }
 0x320   :  { %4768 = vmatpush.bf16.msra.mxu0 %v9070_v13  ;;  %v9758_v13 = vor.u32 %v11689_v33, %v9757_v23  ;;  %4692 = vmatpush.bf16.msrb.mxu2 %v9510_v35  ;;  %v9478_v53 = vor.u32 %v11618_v8, %v9477_v44  ;;  %v9074_v23 = vor.u32 %v11511_v32, %v9071_v48  ;;  %v11539_v35 = vld [vmem:[%s18191_s9 + $0x2b4] sm:$0xf0]  ;;  %v11586_v44 = vld [vmem:[%s18191_s9 + $0x42c] sm:$0xf0]  ;;  %v9759_v32 = vld [vmem:[%s18191_s9 + $0x768] sm:$0xf0] }
 0x321   :  { %v9382_v33 = vor.u32 %v11594_v60, %v9381_v46  ;;  %v11479_v48 = vld [vmem:[%s18191_s9 + $0xdc] sm:$0xf] }
 0x322   :  { %4601 = vmatpush.bf16.msrb.mxu3 %v9758_v13  ;;  %v8943_v60 = vld [vmem:[%s18191_s9 + $0xf8] sm:$0xf0] }
 0x323   :  { %4734 = vmatpush.bf16.msra.mxu1 %v9162_v24  ;;  %v9726_v24 = vor.u32 %v11681_v15, %v9725_v49  ;;  %v9597_v49 = vld [vmem:[%s18191_s9 + $0x608] sm:$0xf] }
 0x324   :  { %4769 = vmatpush.bf16.msra.mxu0 %v9038_v0  ;;  %v8910_v0 = vor.u32 %v11475_v1, %v8909_v52  ;;  %4693 = vmatpush.bf16.msrb.mxu2 %v9478_v53  ;;  %v4519_v3 = vpop.f32.mrf.mxu0  ;;  %v11649_v15 = vld [vmem:[%s18191_s9 + $0x624] sm:$0xf0]  ;;  %v11701_v52 = vld [vmem:[%s18191_s9 + $0x7cc] sm:$0xf]  ;;  %v9042_v53 = vor.u32 %v11503_v30, %v9039_v41  ;;  %v9350_v1 = vor.u32 %v11586_v44, %v9349_v47  ;;  %v8911_v47 = vld [vmem:[%s18191_s9 + $0xb8] sm:$0xf0] }
 0x325   :  { %v9826_v5 = vor.u32 %v11701_v52, %v9823_v57  ;;  %v9101_v3 = vld [vmem:[%s18191_s9 + $0x218] sm:$0xf]  ;;  %v9727_v30 = vld [vmem:[%s18191_s9 + $0x728] sm:$0xf0]  ;;  %v11559_v44 = vld [vmem:[%s18191_s9 + $0x35c] sm:$0xf] }
 0x326   :  { %4602 = vmatpush.bf16.msrb.mxu3 %v9726_v24  ;;  %v11495_v24 = vld [vmem:[%s18191_s9 + $0x15c] sm:$0xf]  ;;  %v9102_v26 = vor.u32 %v11523_v18, %v9101_v3  ;;  %v9695_v52 = vld [vmem:[%s18191_s9 + $0x6e8] sm:$0xf0] }
 0x327   :  { %4735 = vmatpush.bf16.msra.mxu1 %v9130_v38  ;;  %v4480_v38 = vpop.f32.mrf.mxu1  ;;  %4555 = vmatmul.bf16.vlgmr.msra.gmra.mxu3 %v15354_v10  ;;  %v8879_v57 = vld [vmem:[%s18191_s9 + $0x78] sm:$0xf0] }
 0x328   :  { %4770 = vmatpush.bf16.msra.mxu0 %v9006_v43  ;;  %v11665_v43 = vld [vmem:[%s18191_s9 + $0x6a4] sm:$0xf0]  ;;  %4694 = vmatpush.bf16.msrb.mxu2 %v9446_v51  ;;  %v9134_v51 = vor.u32 %v11531_v62, %v9133_v6  ;;  %v11575_v38 = vld [vmem:[%s18191_s9 + $0x3dc] sm:$0xf] }
 0x329   :  { %v9662_v20 = vor.u32 %v11665_v43, %v9661_v19  ;;  %v9327_v19 = vld [vmem:[%s18191_s9 + $0x3f8] sm:$0xf0]  ;;  %v9511_v43 = vld [vmem:[%s18191_s9 + $0x570] sm:$0xf0] }
 0x32a   :  { %4603 = vmatpush.bf16.msrb.mxu3 %v9694_v21  ;;  %v8975_v21 = vld [vmem:[%s18191_s9 + $0x138] sm:$0xf0] }
 0x32b   :  { %4736 = vmatpush.bf16.msra.mxu1 %v9098_v27  ;;  %v9198_v27 = vor.u32 %v11547_v16, %v9197_v25  ;;  %v9330_v25 = vor.u32 %v11575_v38, %v9327_v19  ;;  %v11685_v16 = vld [vmem:[%s18191_s9 + $0x74c] sm:$0xf]  ;;  %v11551_v6 = vld [vmem:[%s18191_s9 + $0x31c] sm:$0xf]  ;;  %v9383_v38 = vld [vmem:[%s18191_s9 + $0x470] sm:$0xf0] }
 0x32c   :  { %4771 = vmatpush.bf16.msra.mxu0 %v8974_v7  ;;  %v9629_v7 = vld [vmem:[%s18191_s9 + $0x648] sm:$0xf]  ;;  %4695 = vmatpush.bf16.msrb.mxu2 %v9414_v45  ;;  %v8978_v45 = vor.u32 %v11487_v42, %v8975_v21  ;;  %v9231_v62 = vld [vmem:[%s18191_s9 + $0x338] sm:$0xf0]  ;;  %v11590_v21 = vld [vmem:[%s18191_s9 + $0x454] sm:$0xf] }
 0x32d   :  { %v8847_v3 = vld [vmem:[%s18191_s9 + $0x38] sm:$0xf0] }
 0x32e   :  { %4737 = vmatmul.bf16.vlgmr.msra.gmra.mxu1 %v14622_v50  ;;  %4604 = vmatpush.bf16.msrb.mxu3 %v9662_v20  ;;  %v11567_v20 = vld [vmem:[%s18191_s9 + $0x39c] sm:$0xf] }
 0x32f   :  { %4781 = vmatpush.bf16.msrb.mxu1 %v9326_v36  ;;  %v11657_v36 = vld [vmem:[%s18191_s9 + $0x664] sm:$0xf0]  ;;  %v4530_v13 = vpop.f32.mrf.mxu1  ;;  %v11543_v18 = vld [vmem:[%s18191_s9 + $0x2dc] sm:$0xf] }
 0x330   :  { %4772 = vmatpush.bf16.msra.mxu0 %v8942_v59  ;;  %v9630_v8 = vor.u32 %v11657_v36, %v9629_v7  ;;  %v15521_v59 = vadd.f32 %v4530_v13, %v4518_v29  ;;  %4696 = vmatpush.bf16.msrb.mxu2 %v9382_v33  ;;  %v11614_v7 = vld [vmem:[%s18191_s9 + $0x514] sm:$0xf]  ;;  %v8946_v33 = vor.u32 %v11479_v48, %v8943_v60  ;;  %v11471_v29 = vld [vmem:[%s18191_s9 + $0x9c] sm:$0xf] }
 0x331   :  { %v9479_v36 = vld [vmem:[%s18191_s9 + $0x530] sm:$0xf0]  ;;  %v9199_v42 = vld [vmem:[%s18191_s9 + $0x2f8] sm:$0xf0] }
 0x332   :  { %4605 = vmatpush.bf16.msrb.mxu3 %v9630_v8  ;;  %v9482_v41 = vor.u32 %v11614_v7, %v9479_v36  ;;  %v9263_v8 = vld [vmem:[%s18191_s9 + $0x378] sm:$0xf0]  ;;  %v11606_v13 = vld [vmem:[%s18191_s9 + $0x4d4] sm:$0xf]  ;;  %v11645_v7 = vld [vmem:[%s18191_s9 + $0x60c] sm:$0xf] }
 0x333   :  { %4782 = vmatpush.bf16.msrb.mxu1 %v9294_v54  ;;  %v9166_v54 = vor.u32 %v11539_v35, %v9165_v39  ;;  %v11677_v35 = vld [vmem:[%s18191_s9 + $0x70c] sm:$0xf]  ;;  %v11582_v48 = vld [vmem:[%s18191_s9 + $0x414] sm:$0xf] }
 0x334   :  { %4773 = vmatpush.bf16.msra.mxu0 %v8910_v0  ;;  %v9007_v0 = vld [vmem:[%s18191_s9 + $0x178] sm:$0xf0]  ;;  %4697 = vmatpush.bf16.msrb.mxu2 %v9350_v1  ;;  %v9730_v9 = vor.u32 %v11677_v35, %v9727_v30  ;;  %v9450_v1 = vor.u32 %v11606_v13, %v9447_v4  ;;  %v9599_v36 = vld [vmem:[%s18191_s9 + $0x628] sm:$0xf0] }
 0x335   :  { %v9010_v17 = vor.u32 %v11495_v24, %v9007_v0  ;;  %v11598_v0 = vld [vmem:[%s18191_s9 + $0x494] sm:$0xf]  ;;  %v11527_v35 = vld [vmem:[%s18191_s9 + $0x25c] sm:$0xf] }
 0x336   :  { %v9135_v30 = vld [vmem:[%s18191_s9 + $0x278] sm:$0xf0] }
 0x337   :  { %4783 = vmatpush.bf16.msrb.mxu1 %v9262_v2  ;;  %v9598_v2 = vor.u32 %v11649_v15, %v9597_v49  ;;  %4698 = vmatmul.bf16.vlgmr.msrb.gmra.mxu2 %v14966_v58  ;;  %v9266_v49 = vor.u32 %v11559_v44, %v9263_v8  ;;  %v11669_v15 = vld [vmem:[%s18191_s9 + $0x6cc] sm:$0xf]  ;;  %v9549_v44 = vld [vmem:[%s18191_s9 + $0x598] sm:$0xf]  ;;  %v9138_v4 = vor.u32 %v11527_v35, %v9135_v30  ;;  %v9605_v35 = vld [vmem:[%s18191_s9 + $0x610] sm:$0xf] }
 0x338   :  { %4774 = vmatpush.bf16.msra.mxu0 %v8878_v31  ;;  %4742 = vmatpush.bf16.msra.mxu2 %v9578_v61  ;;  %v4532_v31 = vpop.f32.mrf.mxu1  ;;  %v3162_v61 = vperm.slane %v15334_v12, 2  ;;  %v9698_v55 = vor.u32 %v11669_v15, %v9695_v52  ;;  %v11635_v8 = vld [vmem:[%s18191_s9 + $0x5b4] sm:$0xf0]  ;;  %v11650_v30 = vld [vmem:[%s18191_s9 + $0x62c] sm:$0xf0] }
 0x339   :  { %4606 = vmatpush.bf16.msrb.mxu3 %v9598_v2  ;;  %v9415_v2 = vld [vmem:[%s18191_s9 + $0x4b0] sm:$0xf0]  ;;  %v9550_v15 = vor.u32 %v11635_v8, %v9549_v44  ;;  %v9517_v52 = vld [vmem:[%s18191_s9 + $0x558] sm:$0xf] }
 0x33b   :  { %4784 = vmatpush.bf16.msrb.mxu1 %v9230_v34  ;;  %v11622_v34 = vld [vmem:[%s18191_s9 + $0x554] sm:$0xf] }
 0x33c   :  { %4775 = vmatpush.bf16.msra.mxu0 %v8846_v28  ;;  %4607 = vmatmul.bf16.vlgmr.msrb.gmra.mxu3 %v15354_v10  ;;  %v9514_v46 = vor.u32 %v11622_v34, %v9511_v43  ;;  %v9295_v28 = vld [vmem:[%s18191_s9 + $0x3b8] sm:$0xf0]  ;;  %v8850_v43 = vor.u32 %v11455_v14, %v8847_v3  ;;  %v11611_v14 = vld [vmem:[%s18191_s9 + $0x4f4] sm:$0xf0]  ;;  %v9701_v3 = vld [vmem:[%s18191_s9 + $0x6d0] sm:$0xf] }
 0x33d   :  { %4651 = vmatpush.bf16.msra.mxu3 %v9826_v5  ;;  %4743 = vmatpush.bf16.msra.mxu2 %v9546_v40  ;;  %v9298_v39 = vor.u32 %v11567_v20, %v9295_v28  ;;  %v9234_v5 = vor.u32 %v11551_v6, %v9231_v62  ;;  %v9581_v20 = vld [vmem:[%s18191_s9 + $0x5d8] sm:$0xf]  ;;  %v9765_v6 = vld [vmem:[%s18191_s9 + $0x750] sm:$0xf] }
 0x33e   :  { %v11643_v28 = vld [vmem:[%s18191_s9 + $0x5f4] sm:$0xf0]  ;;  %v11690_v62 = vld [vmem:[%s18191_s9 + $0x76c] sm:$0xf0] }
 0x33f   :  { %4785 = vmatpush.bf16.msrb.mxu1 %v9198_v27  ;;  %4776 = vmatmul.bf16.vlgmr.msra.gmra.mxu0 %v14445_v22  ;;  %v4569_v27 = vpop.f32.mrf.mxu0 }
 0x340   :  { %4820 = vmatpush.bf16.msrb.mxu0 %v9074_v23  ;;  %v9762_v23 = vor.u32 %v11685_v16, %v9759_v32  ;;  %v4570_v40 = vadd.f32 %v4569_v27, %v3162_v61  ;;  %v11535_v16 = vld [vmem:[%s18191_s9 + $0x29c] sm:$0xf] }
 0x341   :  { %4652 = vmatpush.bf16.msra.mxu3 %v9794_v63  ;;  %4744 = vmatpush.bf16.msra.mxu2 %v9514_v46  ;;  %v9202_v63 = vor.u32 %v11543_v18, %v9199_v42  ;;  %v9167_v32 = vld [vmem:[%s18191_s9 + $0x2b8] sm:$0xf0]  ;;  %v9351_v46 = vld [vmem:[%s18191_s9 + $0x430] sm:$0xf0]  ;;  %v11674_v18 = vld [vmem:[%s18191_s9 + $0x6ec] sm:$0xf0] }
 0x342   :  { %v9170_v27 = vor.u32 %v11535_v16, %v9167_v32  ;;  %v3163_v42 = vperm.slane %v15334_v12, 3  ;;  %v9389_v16 = vld [vmem:[%s18191_s9 + $0x458] sm:$0xf] }
 0x343   :  { %4786 = vmatpush.bf16.msrb.mxu1 %v9166_v54  ;;  %v8914_v54 = vor.u32 %v11471_v29, %v8911_v47  ;;  %v9582_v29 = vor.u32 %v11643_v28, %v9581_v20  ;;  %v9602_v47 = vor.u32 %v11645_v7, %v9599_v36  ;;  %v11658_v20 = vld [vmem:[%s18191_s9 + $0x66c] sm:$0xf0]  ;;  %v11587_v7 = vld [vmem:[%s18191_s9 + $0x434] sm:$0xf0] }
 0x344   :  { %4821 = vmatpush.bf16.msrb.mxu0 %v9042_v53  ;;  %v11463_v53 = vld [vmem:[%s18191_s9 + $0x5c] sm:$0xf] }
 0x345   :  { %4653 = vmatpush.bf16.msra.mxu3 %v9762_v23  ;;  %4745 = vmatpush.bf16.msra.mxu2 %v9482_v41  ;;  %v8882_v56 = vor.u32 %v11463_v53, %v8879_v57  ;;  %v9829_v23 = vld [vmem:[%s18191_s9 + $0x7d0] sm:$0xf]  ;;  %v11627_v53 = vld [vmem:[%s18191_s9 + $0x574] sm:$0xf0] }
 0x346   :  { %v9518_v61 = vor.u32 %v11627_v53, %v9517_v52  ;;  %v11623_v53 = vld [vmem:[%s18191_s9 + $0x55c] sm:$0xf] }
 0x347   :  { %4787 = vmatpush.bf16.msrb.mxu1 %v9134_v51  ;;  %v4571_v24 = vpop.f32.mrf.mxu0  ;;  %v11661_v51 = vld [vmem:[%s18191_s9 + $0x68c] sm:$0xf] }
 0x348   :  { %4822 = vmatpush.bf16.msrb.mxu0 %v9010_v17  ;;  %v9418_v17 = vor.u32 %v11598_v0, %v9415_v2  ;;  %v9666_v31 = vor.u32 %v11661_v51, %v9663_v11  ;;  %v9485_v0 = vld [vmem:[%s18191_s9 + $0x518] sm:$0xf] }
 0x349   :  { %4654 = vmatpush.bf16.msra.mxu3 %v9730_v9  ;;  %4746 = vmatpush.bf16.msra.mxu2 %v9450_v1  ;;  %v9797_v9 = vld [vmem:[%s18191_s9 + $0x790] sm:$0xf]  ;;  %v11619_v2 = vld [vmem:[%s18191_s9 + $0x534] sm:$0xf0] }
 0x34a   :  { %v9486_v51 = vor.u32 %v11619_v2, %v9485_v0  ;;  %v9453_v11 = vld [vmem:[%s18191_s9 + $0x4d8] sm:$0xf]  ;;  %v9487_v2 = vld [vmem:[%s18191_s9 + $0x538] sm:$0xf0] }
 0x34b   :  { %4788 = vmatpush.bf16.msrb.mxu1 %v9102_v26  ;;  %v4582_v19 = vpop.f32.mrf.mxu1  ;;  %v11653_v26 = vld [vmem:[%s18191_s9 + $0x64c] sm:$0xf] }
 0x34c   :  { %4823 = vmatpush.bf16.msrb.mxu0 %v8978_v45  ;;  %v15684_v34 = vadd.f32 %v4582_v19, %v4570_v40  ;;  %v9631_v45 = vld [vmem:[%s18191_s9 + $0x668] sm:$0xf0] }
 0x34d   :  { %4655 = vmatpush.bf16.msra.mxu3 %v9698_v55  ;;  %4747 = vmatpush.bf16.msra.mxu2 %v9418_v17  ;;  %v9634_v60 = vor.u32 %v11653_v26, %v9631_v45  ;;  %v9766_v55 = vor.u32 %v11690_v62, %v9765_v6  ;;  %v11666_v26 = vld [vmem:[%s18191_s9 + $0x6ac] sm:$0xf0]  ;;  %v11686_v62 = vld [vmem:[%s18191_s9 + $0x754] sm:$0xf] }
 0x34e   :  { %4789 = vmatmul.bf16.vlgmr.msrb.gmra.mxu1 %v14622_v50 }
 0x34f   :  { %4833 = vmatpush.bf16.msra.mxu1 %v9330_v25  ;;  %v9386_v25 = vor.u32 %v11590_v21, %v9383_v38  ;;  %v9421_v21 = vld [vmem:[%s18191_s9 + $0x498] sm:$0xf] }
 0x350   :  { %4824 = vmatpush.bf16.msrb.mxu0 %v8946_v33  ;;  %v9354_v33 = vor.u32 %v11582_v48, %v9351_v46  ;;  %v11603_v38 = vld [vmem:[%s18191_s9 + $0x4b4] sm:$0xf0] }
 0x351   :  { %4656 = vmatpush.bf16.msra.mxu3 %v9666_v31  ;;  %4748 = vmatpush.bf16.msra.mxu2 %v9386_v25  ;;  %v9702_v31 = vor.u32 %v11674_v18, %v9701_v3  ;;  %v9422_v45 = vor.u32 %v11603_v38, %v9421_v21  ;;  %v11670_v18 = vld [vmem:[%s18191_s9 + $0x6d4] sm:$0xf]  ;;  %v11599_v38 = vld [vmem:[%s18191_s9 + $0x49c] sm:$0xf] }
 0x353   :  { %4834 = vmatpush.bf16.msra.mxu1 %v9298_v39  ;;  %v11706_v39 = vld [vmem:[%s18191_s9 + $0x7ec] sm:$0xf0]  ;;  %v4584_v41 = vpop.f32.mrf.mxu1 }
 0x354   :  { %4825 = vmatpush.bf16.msrb.mxu0 %v8914_v54  ;;  %v9830_v13 = vor.u32 %v11706_v39, %v9829_v23  ;;  %v11519_v54 = vld [vmem:[%s18191_s9 + $0x21c] sm:$0xf]  ;;  %v11702_v41 = vld [vmem:[%s18191_s9 + $0x7d4] sm:$0xf] }
 0x355   :  { %4657 = vmatpush.bf16.msra.mxu3 %v9634_v60  ;;  %4749 = vmatpush.bf16.msra.mxu2 %v9354_v33  ;;  %v9637_v60 = vld [vmem:[%s18191_s9 + $0x650] sm:$0xf]  ;;  %v11639_v33 = vld [vmem:[%s18191_s9 + $0x5dc] sm:$0xf] }
 0x356   :  { %v9638_v23 = vor.u32 %v11658_v20, %v9637_v60  ;;  %v9583_v39 = vld [vmem:[%s18191_s9 + $0x5f8] sm:$0xf0] }
 0x357   :  { %4835 = vmatpush.bf16.msra.mxu1 %v9266_v49  ;;  %v9103_v49 = vld [vmem:[%s18191_s9 + $0x238] sm:$0xf0]  ;;  %v9586_v44 = vor.u32 %v11639_v33, %v9583_v39  ;;  %v11646_v39 = vld [vmem:[%s18191_s9 + $0x614] sm:$0xf] }
 0x358   :  { %4826 = vmatpush.bf16.msrb.mxu0 %v8882_v56  ;;  %v9106_v57 = vor.u32 %v11519_v54, %v9103_v49  ;;  %4750 = vmatmul.bf16.vlgmr.msra.gmra.mxu2 %v14966_v58  ;;  %v9733_v56 = vld [vmem:[%s18191_s9 + $0x710] sm:$0xf]  ;;  %v11694_v54 = vld [vmem:[%s18191_s9 + $0x794] sm:$0xf]  ;;  %v9359_v33 = vld [vmem:[%s18191_s9 + $0x438] sm:$0xf0] }
 0x359   :  { %4794 = vmatpush.bf16.msrb.mxu2 %v9582_v29  ;;  %4658 = vmatpush.bf16.msra.mxu3 %v9602_v47  ;;  %v9831_v47 = vld [vmem:[%s18191_s9 + $0x7f0] sm:$0xf0] }
 0x35a   :  { %v4491_v19 = vpop.f32.mrf.mxu2  ;;  %v9799_v49 = vld [vmem:[%s18191_s9 + $0x7b0] sm:$0xf0] }
 0x35b   :  { %4836 = vmatpush.bf16.msra.mxu1 %v9234_v5  ;;  %v11682_v5 = vld [vmem:[%s18191_s9 + $0x72c] sm:$0xf0]  ;;  %v9802_v6 = vor.u32 %v11694_v54, %v9799_v49  ;;  %v9773_v54 = vld [vmem:[%s18191_s9 + $0x758] sm:$0xf] }
 0x35c   :  { %4827 = vmatpush.bf16.msrb.mxu0 %v8850_v43  ;;  %4659 = vmatmul.bf16.vlgmr.msra.gmra.mxu3 %v15354_v10  ;;  %v4621_v24 = vpop.f32.mrf.mxu0  ;;  %v9734_v17 = vor.u32 %v11682_v5, %v9733_v56  ;;  %v15794_v43 = vadd.f32 %v4491_v19, %v15407_v37  ;;  %v11595_v37 = vld [vmem:[%s18191_s9 + $0x474] sm:$0xf0]  ;;  %v11678_v56 = vld [vmem:[%s18191_s9 + $0x714] sm:$0xf]  ;;  %v9423_v19 = vld [vmem:[%s18191_s9 + $0x4b8] sm:$0xf0] }
 0x35d   :  { %4703 = vmatpush.bf16.msrb.mxu3 %v9830_v13  ;;  %4795 = vmatpush.bf16.msrb.mxu2 %v9550_v15  ;;  %v4622_v25 = vadd.f32 %v4621_v24, %v3163_v42  ;;  %v9390_v28 = vor.u32 %v11595_v37, %v9389_v16  ;;  %v9606_v13 = vor.u32 %v11650_v30, %v9605_v35  ;;  %v9735_v5 = vld [vmem:[%s18191_s9 + $0x730] sm:$0xf0]  ;;  %v11591_v16 = vld [vmem:[%s18191_s9 + $0x45c] sm:$0xf]  ;;  %v11691_v49 = vld [vmem:[%s18191_s9 + $0x774] sm:$0xf0] }
 0x35e   :  { %v9738_v3 = vor.u32 %v11678_v56, %v9735_v5  ;;  %v9391_v37 = vld [vmem:[%s18191_s9 + $0x478] sm:$0xf0]  ;;  %v9607_v35 = vld [vmem:[%s18191_s9 + $0x630] sm:$0xf0] }
 0x35f   :  { %4837 = vmatpush.bf16.msra.mxu1 %v9202_v63  ;;  %4828 = vmatmul.bf16.vlgmr.msrb.gmra.mxu0 %v14445_v22  ;;  %v11698_v22 = vld [vmem:[%s18191_s9 + $0x7ac] sm:$0xf0] }
 0x360   :  { %v9798_v1 = vor.u32 %v11698_v22, %v9797_v9  ;;  %v9669_v63 = vld [vmem:[%s18191_s9 + $0x690] sm:$0xf]  ;;  %v9551_v9 = vld [vmem:[%s18191_s9 + $0x5b8] sm:$0xf0]  ;;  %v9834_v22 = vor.u32 %v11702_v41, %v9831_v47  ;;  %v11707_v41 = vld [vmem:[%s18191_s9 + $0x7f4] sm:$0xf0] }
 0x361   :  { %4796 = vmatpush.bf16.msrb.mxu2 %v9518_v61  ;;  %v9670_v48 = vor.u32 %v11666_v26, %v9669_v63  ;;  %v9767_v61 = vld [vmem:[%s18191_s9 + $0x770] sm:$0xf0] }
 0x362   :  { %4704 = vmatpush.bf16.msrb.mxu3 %v9798_v1  ;;  %v4493_v36 = vpop.f32.mrf.mxu2  ;;  %v9519_v1 = vld [vmem:[%s18191_s9 + $0x578] sm:$0xf0]  ;;  %v11662_v63 = vld [vmem:[%s18191_s9 + $0x694] sm:$0xf] }
 0x363   :  { %4838 = vmatpush.bf16.msra.mxu1 %v9170_v27  ;;  %v9357_v27 = vld [vmem:[%s18191_s9 + $0x418] sm:$0xf]  ;;  %v9522_v24 = vor.u32 %v11623_v53, %v9519_v1  ;;  %v9671_v26 = vld [vmem:[%s18191_s9 + $0x6b0] sm:$0xf0]  ;;  %v9394_v36 = vor.u32 %v11591_v16, %v9391_v37 }
 0x364   :  { %v4623_v40 = vpop.f32.mrf.mxu0  ;;  %v9358_v29 = vor.u32 %v11587_v7, %v9357_v27  ;;  %v9674_v60 = vor.u32 %v11662_v63, %v9671_v26  ;;  %v11654_v27 = vld [vmem:[%s18191_s9 + $0x654] sm:$0xf]  ;;  %v9741_v53 = vld [vmem:[%s18191_s9 + $0x718] sm:$0xf]  ;;  %v11770_v26 = vld [vmem:[%s18194_s11 + $0x1ec] sm:$0xf0] }
 0x365   :  { %4797 = vmatpush.bf16.msrb.mxu2 %v9486_v51  ;;  %v3164_v40 = vperm.slane %v15334_v12, 4  ;;  %v9639_v7 = vld [vmem:[%s18191_s9 + $0x670] sm:$0xf0] }
 0x366   :  { %4705 = vmatpush.bf16.msrb.mxu3 %v9766_v55  ;;  %v9770_v55 = vor.u32 %v11686_v62, %v9767_v61  ;;  %v11675_v62 = vld [vmem:[%s18191_s9 + $0x6f4] sm:$0xf0]  ;;  %v3165_v61 = vperm.slane %v15334_v12, 5 }
 0x367   :  { %4839 = vmatpush.bf16.msra.mxu1 %v9138_v4  ;;  %v11631_v4 = vld [vmem:[%s18191_s9 + $0x59c] sm:$0xf]  ;;  %v9645_v12 = vld [vmem:[%s18191_s9 + $0x658] sm:$0xf] }
 0x368   :  { %v9554_v15 = vor.u32 %v11631_v4, %v9551_v9  ;;  %v9805_v4 = vld [vmem:[%s18191_s9 + $0x798] sm:$0xf] }
 0x369   :  { %v11699_v9 = vld [vmem:[%s18191_s9 + $0x7b4] sm:$0xf0] }
 0x36a   :  { %4706 = vmatpush.bf16.msrb.mxu3 %v9734_v17  ;;  %v4543_v52 = vpop.f32.mrf.mxu2  ;;  %v9455_v17 = vld [vmem:[%s18191_s9 + $0x4f8] sm:$0xf0] }
 0x36b   :  { %4840 = vmatpush.bf16.msra.mxu1 %v9106_v57  ;;  %v4634_v32 = vpop.f32.mrf.mxu1  ;;  %v15859_v57 = vadd.f32 %v4543_v52, %v15521_v59  ;;  %v11615_v59 = vld [vmem:[%s18191_s9 + $0x51c] sm:$0xf]  ;;  %v9774_v52 = vor.u32 %v11691_v49, %v9773_v54  ;;  %v10053_v54 = vld [vmem:[%s18194_s11 + $0x1a0] sm:$0xf] }
 0x36c   :  { %v15808_v46 = vadd.f32 %v4634_v32, %v4622_v25  ;;  %v9490_v51 = vor.u32 %v11615_v59, %v9487_v2  ;;  %v9677_v59 = vld [vmem:[%s18191_s9 + $0x698] sm:$0xf] }
 0x36d   :  { %v11667_v2 = vld [vmem:[%s18191_s9 + $0x6b4] sm:$0xf0] }
 0x36e   :  { %4841 = vmatmul.bf16.vlgmr.msra.gmra.mxu1 %v14622_v50  ;;  %v9454_v50 = vor.u32 %v11611_v14, %v9453_v11  ;;  %4707 = vmatpush.bf16.msrb.mxu3 %v9702_v31  ;;  %v11607_v14 = vld [vmem:[%s18191_s9 + $0x4dc] sm:$0xf] }
 0x36f   :  { %v9458_v42 = vor.u32 %v11607_v14, %v9455_v17  ;;  %v11659_v17 = vld [vmem:[%s18191_s9 + $0x674] sm:$0xf0] }
 0x370   :  { %4798 = vmatpush.bf16.msrb.mxu2 %v9454_v50  ;;  %v9703_v50 = vld [vmem:[%s18191_s9 + $0x6f0] sm:$0xf0] }
 0x371   :  { %v9706_v31 = vor.u32 %v11670_v18, %v9703_v50  ;;  %v9613_v18 = vld [vmem:[%s18191_s9 + $0x618] sm:$0xf] }
 0x372   :  { %4708 = vmatpush.bf16.msrb.mxu3 %v9670_v48  ;;  %v4545_v11 = vpop.f32.mrf.mxu2  ;;  %v11651_v50 = vld [vmem:[%s18191_s9 + $0x634] sm:$0xf0] }
 0x373   :  { %v4636_v8 = vpop.f32.mrf.mxu1  ;;  %v9678_v11 = vor.u32 %v11667_v2, %v9677_v59  ;;  %v9743_v59 = vld [vmem:[%s18191_s9 + $0x738] sm:$0xf0]  ;;  %v9909_v2 = vld [vmem:[%s18194_s11 + $0x80] sm:$0xf] }
 0x374   :  { %4799 = vmatpush.bf16.msrb.mxu2 %v9422_v45  ;;  %v9426_v45 = vor.u32 %v11599_v38, %v9423_v19  ;;  %v9610_v8 = vor.u32 %v11646_v39, %v9607_v35  ;;  %v9957_v38 = vld [vmem:[%s18194_s11 + $0xe0] sm:$0xf]  ;;  %v11738_v19 = vld [vmem:[%s18194_s11 + $0xec] sm:$0xf0] }
 0x375   :  { %v9958_v63 = vor.u32 %v11738_v19, %v9957_v38  ;;  %v11766_v35 = vld [vmem:[%s18194_s11 + $0x1cc] sm:$0xf0]  ;;  %v9893_v19 = vld [vmem:[%s18194_s11 + $0x60] sm:$0xf] }
 0x376   :  { %4709 = vmatpush.bf16.msrb.mxu3 %v9638_v23  ;;  %v11583_v23 = vld [vmem:[%s18191_s9 + $0x41c] sm:$0xf] }
 0x377   :  { %v9362_v30 = vor.u32 %v11583_v23, %v9359_v33  ;;  %5315 = vmatpush.bf16.msra.mxu0 %v9958_v63  ;;  %v9941_v23 = vld [vmem:[%s18194_s11 + $0xc0] sm:$0xf]  ;;  %v11734_v33 = vld [vmem:[%s18194_s11 + $0xcc] sm:$0xf0] }
 0x378   :  { %4800 = vmatpush.bf16.msrb.mxu2 %v9390_v28  ;;  %v9942_v39 = vor.u32 %v11734_v33, %v9941_v23  ;;  %v10021_v63 = vld [vmem:[%s18194_s11 + $0x160] sm:$0xf]  ;;  %v9679_v23 = vld [vmem:[%s18191_s9 + $0x6b8] sm:$0xf0] }
 0x379   :  { %v9877_v33 = vld [vmem:[%s18194_s11 + $0x40] sm:$0xf] }
 0x37a   :  { %4710 = vmatpush.bf16.msrb.mxu3 %v9606_v13  ;;  %v4595_v48 = vpop.f32.mrf.mxu2 }
 0x37b   :  { %v15915_v28 = vadd.f32 %v4595_v48, %v15684_v34  ;;  %v9642_v34 = vor.u32 %v11654_v27, %v9639_v7  ;;  %v11695_v7 = vld [vmem:[%s18191_s9 + $0x79c] sm:$0xf]  ;;  %5316 = vmatpush.bf16.msra.mxu0 %v9942_v39  ;;  %v10005_v39 = vld [vmem:[%s18194_s11 + $0x140] sm:$0xf] }
 0x37c   :  { %4801 = vmatpush.bf16.msrb.mxu2 %v9358_v29  ;;  %v4673_v0 = vpop.f32.mrf.mxu0  ;;  %v9837_v29 = vld [vmem:[%s18191_s9 + $0x7d8] sm:$0xf] }
 0x37d   :  { %4711 = vmatmul.bf16.vlgmr.msrb.gmra.mxu3 %v15354_v10  ;;  %v4674_v25 = vadd.f32 %v4673_v0, %v3164_v40  ;;  %v9838_v13 = vor.u32 %v11707_v41, %v9837_v29  ;;  %v9839_v40 = vld [vmem:[%s18191_s9 + $0x7f8] sm:$0xf0]  ;;  %v9943_v29 = vld [vmem:[%s18194_s11 + $0xd0] sm:$0xf0] }
 0x37e   :  { %4755 = vmatpush.bf16.msra.mxu3 %v9834_v22  ;;  %v9806_v22 = vor.u32 %v11699_v9, %v9805_v4  ;;  %v9775_v4 = vld [vmem:[%s18191_s9 + $0x778] sm:$0xf0] }
 0x37f   :  { %4802 = vmatmul.bf16.vlgmr.msrb.gmra.mxu2 %v14966_v58 }
 0x380   :  { %4846 = vmatpush.bf16.msra.mxu2 %v9586_v44 }
 0x382   :  { %4756 = vmatpush.bf16.msra.mxu3 %v9802_v6  ;;  %v4597_v44 = vpop.f32.mrf.mxu2  ;;  %v9709_v6 = vld [vmem:[%s18191_s9 + $0x6d8] sm:$0xf] }
 0x383   :  { %v9710_v0 = vor.u32 %v11675_v62, %v9709_v6 }
 0x384   :  { %4847 = vmatpush.bf16.msra.mxu2 %v9554_v15  ;;  %v4675_v21 = vpop.f32.mrf.mxu0 }
 0x386   :  { %4757 = vmatpush.bf16.msra.mxu3 %v9770_v55 }
 0x388   :  { %4848 = vmatpush.bf16.msra.mxu2 %v9522_v24 }
 0x38a   :  { %4758 = vmatpush.bf16.msra.mxu3 %v9738_v3  ;;  %v9646_v3 = vor.u32 %v11659_v17, %v9645_v12  ;;  %v11758_v12 = vld [vmem:[%s18194_s11 + $0x18c] sm:$0xf0]  ;;  %v11724_v17 = vld [vmem:[%s18194_s11 + $0x84] sm:$0xf] }
 0x38b   :  { %v4686_v32 = vpop.f32.mrf.mxu1 }
 0x38c   :  { %4849 = vmatpush.bf16.msra.mxu2 %v9490_v51  ;;  %v15912_v20 = vadd.f32 %v4686_v32, %v4674_v25  ;;  %v9959_v25 = vld [vmem:[%s18194_s11 + $0xf0] sm:$0xf0]  ;;  %v9614_v32 = vor.u32 %v11651_v50, %v9613_v18 }
 0x38e   :  { %4759 = vmatpush.bf16.msra.mxu3 %v9706_v31  ;;  %v10085_v31 = vld [vmem:[%s18194_s11 + $0x1e0] sm:$0xf] }
 0x38f   :  { %v10086_v48 = vor.u32 %v11770_v26, %v10085_v31  ;;  %v11722_v31 = vld [vmem:[%s18194_s11 + $0x6c] sm:$0xf0] }
 0x390   :  { %4850 = vmatpush.bf16.msra.mxu2 %v9458_v42  ;;  %v11703_v42 = vld [vmem:[%s18191_s9 + $0x7dc] sm:$0xf]  ;;  %v9894_v26 = vor.u32 %v11722_v31, %v9893_v19 }
 0x391   :  { %v9842_v27 = vor.u32 %v11703_v42, %v9839_v40  ;;  %5334 = vmatpush.bf16.msrb.mxu1 %v10086_v48  ;;  %v11671_v40 = vld [vmem:[%s18191_s9 + $0x6dc] sm:$0xf] }
 0x392   :  { %4760 = vmatpush.bf16.msra.mxu3 %v9674_v60 }
 0x393   :  { %v4688_v47 = vpop.f32.mrf.mxu1 }
 0x394   :  { %4851 = vmatpush.bf16.msra.mxu2 %v9426_v45  ;;  %v11736_v45 = vld [vmem:[%s18194_s11 + $0xe4] sm:$0xf] }
 0x395   :  { %v9962_v60 = vor.u32 %v11736_v45, %v9959_v25  ;;  %v11754_v45 = vld [vmem:[%s18194_s11 + $0x16c] sm:$0xf0]  ;;  %v11720_v25 = vld [vmem:[%s18194_s11 + $0x64] sm:$0xf] }
 0x396   :  { %4761 = vmatpush.bf16.msra.mxu3 %v9642_v34  ;;  %v10069_v34 = vld [vmem:[%s18194_s11 + $0x1c0] sm:$0xf]  ;;  %v10022_v48 = vor.u32 %v11754_v45, %v10021_v63  ;;  %v10071_v45 = vld [vmem:[%s18194_s11 + $0x1d0] sm:$0xf0] }
 0x397   :  { %v10070_v41 = vor.u32 %v11766_v35, %v10069_v34  ;;  %v11718_v34 = vld [vmem:[%s18194_s11 + $0x4c] sm:$0xf0] }
 0x398   :  { %4852 = vmatpush.bf16.msra.mxu2 %v9394_v36  ;;  %v9807_v36 = vld [vmem:[%s18191_s9 + $0x7b8] sm:$0xf0]  ;;  %v9878_v35 = vor.u32 %v11718_v34, %v9877_v33 }
 0x399   :  { %5335 = vmatpush.bf16.msrb.mxu1 %v10070_v41  ;;  %v9879_v41 = vld [vmem:[%s18194_s11 + $0x50] sm:$0xf0] }
 0x39a   :  { %4762 = vmatpush.bf16.msra.mxu3 %v9610_v8  ;;  %v4504_v55 = vpop.f32.mrf.mxu3  ;;  %v9810_v8 = vor.u32 %v11695_v7, %v9807_v36  ;;  %v11663_v36 = vld [vmem:[%s18191_s9 + $0x69c] sm:$0xf] }
 0x39b   :  { %v4505_v44 = vadd.f32 %v4504_v55, %v15794_v43  ;;  %v11730_v43 = vld [vmem:[%s18194_s11 + $0xac] sm:$0xf0] }
 0x39c   :  { %4853 = vmatpush.bf16.msra.mxu2 %v9362_v30  ;;  %v4725_v15 = vpop.f32.mrf.mxu0  ;;  %v15974_v51 = vpop.f32.mrf.mxu2  ;;  %v11732_v30 = vld [vmem:[%s18194_s11 + $0xc4] sm:$0xf]  ;;  %v11726_v55 = vld [vmem:[%s18194_s11 + $0x8c] sm:$0xf0] }
 0x39d   :  { %4763 = vmatmul.bf16.vlgmr.msra.gmra.mxu3 %v15354_v10  ;;  %v4726_v56 = vadd.f32 %v4725_v15, %v3165_v61  ;;  %v9946_v47 = vor.u32 %v11732_v30, %v9943_v29  ;;  %v4872_v62 = vmax.f32 %v4505_v44, 0.0  ;;  %v11750_v30 = vld [vmem:[%s18194_s11 + $0x14c] sm:$0xf0]  ;;  %v11716_v29 = vld [vmem:[%s18194_s11 + $0x44] sm:$0xf] }
 0x39e   :  { %4807 = vmatpush.bf16.msrb.mxu3 %v9838_v13  ;;  %v11687_v13 = vld [vmem:[%s18191_s9 + $0x75c] sm:$0xf]  ;;  %v10006_v44 = vor.u32 %v11750_v30, %v10005_v39  ;;  %v10007_v30 = vld [vmem:[%s18194_s11 + $0x150] sm:$0xf0] }
 0x39f   :  { %4854 = vmatmul.bf16.vlgmr.msra.gmra.mxu2 %v14966_v58  ;;  %v11683_v58 = vld [vmem:[%s18191_s9 + $0x734] sm:$0xf0] }
 0x3a0   :  { %v9742_v1 = vor.u32 %v11683_v58, %v9741_v53  ;;  %5353 = vmatpush.bf16.msrb.mxu2 %v9962_v60  ;;  %v11728_v53 = vld [vmem:[%s18194_s11 + $0xa4] sm:$0xf]  ;;  %v9927_v58 = vld [vmem:[%s18194_s11 + $0xb0] sm:$0xf0] }
 0x3a1   :  { %v9930_v6 = vor.u32 %v11728_v53, %v9927_v58  ;;  %v11714_v53 = vld [vmem:[%s18194_s11 + $0x2c] sm:$0xf0]  ;;  %v9989_v58 = vld [vmem:[%s18194_s11 + $0x120] sm:$0xf] }
 0x3a2   :  { %4808 = vmatpush.bf16.msrb.mxu3 %v9806_v22  ;;  %v4506_v21 = vpop.f32.mrf.mxu3  ;;  %v9925_v22 = vld [vmem:[%s18194_s11 + $0xa0] sm:$0xf] }
 0x3a3   :  { %v9926_v15 = vor.u32 %v11730_v43, %v9925_v22  ;;  %v9711_v21 = vld [vmem:[%s18191_s9 + $0x6f8] sm:$0xf0] }
 0x3a4   :  { %v4727_v24 = vpop.f32.mrf.mxu0  ;;  %v4649_v37 = vpop.f32.mrf.mxu2  ;;  %5354 = vmatpush.bf16.msrb.mxu2 %v9946_v47  ;;  %v9714_v7 = vor.u32 %v11671_v40, %v9711_v21  ;;  %v11655_v22 = vld [vmem:[%s18191_s9 + $0x65c] sm:$0xf] }
 0x3a5   :  { %v9778_v24 = vor.u32 %v11687_v13, %v9775_v4  ;;  %5317 = vmatpush.bf16.msra.mxu0 %v9926_v15  ;;  %v16118_v37 = vld [vmem:[%s18193_s10] sm:$0xff]  ;;  %v9647_v43 = vld [vmem:[%s18191_s9 + $0x678] sm:$0xf0] }
 0x3a6   :  { %4809 = vmatpush.bf16.msrb.mxu3 %v9774_v52  ;;  %v11762_v52 = vld [vmem:[%s18194_s11 + $0x1ac] sm:$0xf0]  ;;  %v3167_v33 = vperm.slane %v16118_v37, 7 }
 0x3a8   :  { %5355 = vmatpush.bf16.msrb.mxu2 %v9930_v6  ;;  %v11712_v6 = vld [vmem:[%s18194_s11 + $0x24] sm:$0xf] }
 0x3aa   :  { %4810 = vmatpush.bf16.msrb.mxu3 %v9742_v1  ;;  %v4556_v9 = vpop.f32.mrf.mxu3  ;;  %v10054_v1 = vor.u32 %v11762_v52, %v10053_v54  ;;  %v9861_v52 = vld [vmem:[%s18194_s11 + $0x20] sm:$0xf] }
 0x3ab   :  { %v4738_v5 = vpop.f32.mrf.mxu1  ;;  %v4557_v49 = vadd.f32 %v4556_v9, %v15859_v57  ;;  %v9682_v9 = vor.u32 %v11663_v36, %v9679_v23  ;;  %v11752_v23 = vld [vmem:[%s18194_s11 + $0x164] sm:$0xf] }
 0x3ac   :  { %v15976_v14 = vadd.f32 %v4738_v5, %v4726_v56  ;;  %5336 = vmatpush.bf16.msrb.mxu1 %v10054_v1  ;;  %v10037_v56 = vld [vmem:[%s18194_s11 + $0x180] sm:$0xf]  ;;  %v9862_v1 = vor.u32 %v11714_v53, %v9861_v52  ;;  %v11740_v52 = vld [vmem:[%s18194_s11 + $0x104] sm:$0xf] }
 0x3ad   :  { %v4873_v61 = vmax.f32 %v4557_v49, 0.0  ;;  %v10038_v18 = vor.u32 %v11758_v12, %v10037_v56  ;;  %v9845_v56 = vld [vmem:[%s18194_s11] sm:$0xf] }
 0x3ae   :  { %4811 = vmatpush.bf16.msrb.mxu3 %v9710_v0  ;;  %v11679_v0 = vld [vmem:[%s18191_s9 + $0x71c] sm:$0xf]  ;;  %v9973_v12 = vld [vmem:[%s18194_s11 + $0x100] sm:$0xf] }
 0x3af   :  { %v16080_v5 = vpack.c.bf16 %v4873_v61, %v4872_v62  ;;  %v9746_v42 = vor.u32 %v11679_v0, %v9743_v59  ;;  %v9863_v62 = vld [vmem:[%s18194_s11 + $0x30] sm:$0xf0]  ;;  %v11647_v61 = vld [vmem:[%s18191_s9 + $0x61c] sm:$0xf]  ;;  %v9650_v0 = vor.u32 %v11655_v22, %v9647_v43  ;;  %v11744_v22 = vld [vmem:[%s18194_s11 + $0x124] sm:$0xf] }
 0x3b0   :  { %5337 = vmatpush.bf16.msrb.mxu1 %v10038_v18  ;;  %v9615_v59 = vld [vmem:[%s18191_s9 + $0x638] sm:$0xf0]  ;;  %v11708_v18 = vld [vmem:[%s18194_s11 + $0x4] sm:$0xf] }
 0x3b1   :  { %v9618_v19 = vor.u32 %v11647_v61, %v9615_v59  ;;  %v4885_v53 = vunpack.c.l.b16 %v16080_v5 }
 0x3b2   :  { %4812 = vmatpush.bf16.msrb.mxu3 %v9678_v11  ;;  %v9910_v11 = vor.u32 %v11726_v55, %v9909_v2  ;;  %v4558_v38 = vpop.f32.mrf.mxu3  ;;  %v11768_v2 = vld [vmem:[%s18194_s11 + $0x1e4] sm:$0xf]  ;;  %v10087_v55 = vld [vmem:[%s18194_s11 + $0x1f0] sm:$0xf0] }
 0x3b3   :  { %v4740_v16 = vpop.f32.mrf.mxu1  ;;  %v10090_v63 = vor.u32 %v11768_v2, %v10087_v55 }
 0x3b4   :  { %5318 = vmatpush.bf16.msra.mxu0 %v9910_v11  ;;  %v9895_v16 = vld [vmem:[%s18194_s11 + $0x70] sm:$0xf0]  ;;  %5338 = vmatpush.bf16.msrb.mxu1 %v10022_v48  ;;  %v11710_v11 = vld [vmem:[%s18194_s11 + $0xc] sm:$0xf0] }
 0x3b5   :  { %v9898_v60 = vor.u32 %v11720_v25, %v9895_v16  ;;  %v11760_v16 = vld [vmem:[%s18194_s11 + $0x1a4] sm:$0xf] }
 0x3b6   :  { %4813 = vmatpush.bf16.msrb.mxu3 %v9646_v3  ;;  %v9911_v3 = vld [vmem:[%s18194_s11 + $0x90] sm:$0xf0] }
 0x3b7   :  { %v9914_v50 = vor.u32 %v11724_v17, %v9911_v3  ;;  %v9846_v17 = vor.u32 %v11710_v11, %v9845_v56  ;;  %v11742_v3 = vld [vmem:[%s18194_s11 + $0x10c] sm:$0xf0] }
 0x3b8   :  { %5319 = vmatpush.bf16.msra.mxu0 %v9894_v26  ;;  %5339 = vmatpush.bf16.msrb.mxu1 %v10006_v44  ;;  %v11764_v26 = vld [vmem:[%s18194_s11 + $0x1c4] sm:$0xf] }
 0x3b9   :  { %5356 = vmatpush.bf16.msrb.mxu2 %v9914_v50  ;;  %v9847_v50 = vld [vmem:[%s18194_s11 + $0x10] sm:$0xf0]  ;;  %v10074_v25 = vor.u32 %v11764_v26, %v10071_v45 }
 0x3ba   :  { %4814 = vmatpush.bf16.msrb.mxu3 %v9614_v32  ;;  %v3166_v32 = vperm.slane %v16118_v37, 6  ;;  %v4699_v4 = vpop.f32.mrf.mxu2  ;;  %v9850_v40 = vor.u32 %v11708_v18, %v9847_v50 }
 0x3bb   :  { %v16154_v49 = vadd.f32 %v4699_v4, %v15912_v20  ;;  %v11746_v20 = vld [vmem:[%s18194_s11 + $0x12c] sm:$0xf0] }
 0x3bc   :  { %v4777_v57 = vpop.f32.mrf.mxu0  ;;  %5320 = vmatpush.bf16.msra.mxu0 %v9878_v35  ;;  %v11748_v35 = vld [vmem:[%s18194_s11 + $0x144] sm:$0xf] }
 0x3bd   :  { %4815 = vmatmul.bf16.vlgmr.msrb.gmra.mxu3 %v15354_v10  ;;  %5357 = vmatpush.bf16.msrb.mxu2 %v9898_v60  ;;  %v4778_v47 = vadd.f32 %v4777_v57, %v3166_v32  ;;  %v9990_v57 = vor.u32 %v11746_v20, %v9989_v58  ;;  %v10055_v32 = vld [vmem:[%s18194_s11 + $0x1b0] sm:$0xf0]  ;;  %v4886_v58 = vunpack.c.h.b16 %v16080_v5 }
 0x3be   :  { %4859 = vmatpush.bf16.msra.mxu3 %v9842_v27  ;;  %v10058_v60 = vor.u32 %v11760_v16, %v10055_v32  ;;  %v9949_v16 = vld [vmem:[%s18194_s11 + $0xc8] sm:$0xf]  ;;  %v11735_v32 = vld [vmem:[%s18194_s11 + $0xd4] sm:$0xf0] }
 0x3bf   :  { %v16156_v15 = vpop.f32.mrf.mxu3  ;;  %5340 = vmatpush.bf16.msrb.mxu1 %v9990_v57  ;;  %v4888_v59 = vpack.c.b16 %v4886_v58, %v4886_v58 }
 0x3c0   :  { %5321 = vmatpush.bf16.msra.mxu0 %v9862_v1 }
 0x3c2   :  { %4860 = vmatpush.bf16.msra.mxu3 %v9810_v8  ;;  %v9882_v8 = vor.u32 %v11716_v29, %v9879_v41  ;;  %v4701_v38 = vpop.f32.mrf.mxu2  ;;  %v4648_v41 = vadd.f32 %v15974_v51, %v15808_v46  ;;  %v9991_v46 = vld [vmem:[%s18194_s11 + $0x130] sm:$0xf0] }
 0x3c4   :  { %v4779_v27 = vpop.f32.mrf.mxu0  ;;  %5358 = vmatpush.bf16.msrb.mxu2 %v9882_v8  ;;  %5322 = vmatpush.bf16.msra.mxu0 %v9846_v17  ;;  %v10010_v8 = vor.u32 %v11748_v35, %v10007_v30  ;;  %v11769_v35 = vld [vmem:[%s18194_s11 + $0x1ec] sm:$0xf]  ;;  %v10061_v30 = vld [vmem:[%s18194_s11 + $0x1a8] sm:$0xf] }
 0x3c5   :  { %v11756_v27 = vld [vmem:[%s18194_s11 + $0x184] sm:$0xf] }
 0x3c6   :  { %4861 = vmatpush.bf16.msra.mxu3 %v9778_v24  ;;  %v9866_v24 = vor.u32 %v11712_v6, %v9863_v62 }
 0x3c7   :  { %v4610_v31 = vpop.f32.mrf.mxu3 }
 0x3c8   :  { %5359 = vmatpush.bf16.msrb.mxu2 %v9866_v24 }
 0x3ca   :  { %4862 = vmatpush.bf16.msra.mxu3 %v9746_v42  ;;  %v9974_v42 = vor.u32 %v11742_v3, %v9973_v12 }
 0x3cb   :  { %v4790_v13 = vpop.f32.mrf.mxu1 }
 0x3cc   :  { %v16151_v54 = vadd.f32 %v4790_v13, %v4778_v47  ;;  %5341 = vmatpush.bf16.msrb.mxu1 %v9974_v42  ;;  %5360 = vmatpush.bf16.msrb.mxu2 %v9850_v40  ;;  %v4609_v47 = vadd.f32 %v16156_v15, %v15915_v28  ;;  %v9994_v15 = vor.u32 %v11744_v22, %v9991_v46  ;;  %v10045_v22 = vld [vmem:[%s18194_s11 + $0x188] sm:$0xf]  ;;  %v11759_v46 = vld [vmem:[%s18194_s11 + $0x194] sm:$0xf0] }
 0x3ce   :  { %4863 = vmatpush.bf16.msra.mxu3 %v9714_v7  ;;  %v10039_v7 = vld [vmem:[%s18194_s11 + $0x190] sm:$0xf0]  ;;  %v4874_v43 = vmax.f32 %v4609_v47, 0.0  ;;  %v10095_v47 = vld [vmem:[%s18194_s11 + $0x1f8] sm:$0xf0] }
 0x3cf   :  { %v10042_v36 = vor.u32 %v11756_v27, %v10039_v7  ;;  %v11767_v27 = vld [vmem:[%s18194_s11 + $0x1d4] sm:$0xf0] }
 0x3d2   :  { %4864 = vmatpush.bf16.msra.mxu3 %v9682_v9 }
 0x3d3   :  { %v4792_v21 = vpop.f32.mrf.mxu1 }
 0x3d6   :  { %4865 = vmatpush.bf16.msra.mxu3 %v9650_v0  ;;  %v4887_v0 = vpack.c.b16 %v4885_v53, %v4885_v53  ;;  %v10079_v53 = vld [vmem:[%s18194_s11 + $0x1d8] sm:$0xf0] }
 0x3da   :  { %4866 = vmatpush.bf16.msra.mxu3 %v9618_v19 }
 0x3db   :  { %v4751_v37 = vpop.f32.mrf.mxu2 }
 0x3dc   :  { %v4829_v48 = vpop.f32.mrf.mxu0  ;;  %v4752_v9 = vadd.f32 %v4751_v37, %v15976_v14  ;;  %v9975_v14 = vld [vmem:[%s18194_s11 + $0x110] sm:$0xf0] }
 0x3dd   :  { %4867 = vmatmul.bf16.vlgmr.msra.gmra.mxu3 %v15354_v10  ;;  %v10023_v10 = vld [vmem:[%s18194_s11 + $0x170] sm:$0xf0]  ;;  %v4830_v29 = vadd.f32 %v4829_v48, %v3167_v33  ;;  %v9978_v57 = vor.u32 %v11740_v52, %v9975_v14  ;;  %v11765_v52 = vld [vmem:[%s18194_s11 + $0x1cc] sm:$0xf] }
 0x3de   :  { %5372 = vmatpush.bf16.msrb.mxu3 %v10090_v63  ;;  %v10026_v39 = vor.u32 %v11752_v23, %v10023_v10  ;;  %v9965_v63 = vld [vmem:[%s18194_s11 + $0xe8] sm:$0xf]  ;;  %v11731_v10 = vld [vmem:[%s18194_s11 + $0xb4] sm:$0xf0]  ;;  %v10082_v58 = vor.u32 %v11765_v52, %v10079_v53  ;;  %v10149_v53 = vld [vmem:[%s18195_s13 + $0x60] sm:$0xf] }
 0x3df   :  { %v4660_v4 = vpop.f32.mrf.mxu3  ;;  %v9933_v23 = vld [vmem:[%s18194_s11 + $0xa8] sm:$0xf] }
 0x3e0   :  { %v4661_v51 = vadd.f32 %v4660_v4, %v4648_v41  ;;  %v9934_v37 = vor.u32 %v11731_v10, %v9933_v23  ;;  %v9917_v4 = vld [vmem:[%s18194_s11 + $0x88] sm:$0xf]  ;;  %v9903_v23 = vld [vmem:[%s18194_s11 + $0x78] sm:$0xf0]  ;;  %v11753_v10 = vld [vmem:[%s18194_s11 + $0x16c] sm:$0xf] }
 0x3e2   :  { %5373 = vmatpush.bf16.msrb.mxu3 %v10074_v25  ;;  %v4875_v28 = vmax.f32 %v4661_v51, 0.0  ;;  %v11771_v25 = vld [vmem:[%s18194_s11 + $0x1f4] sm:$0xf0] }
 0x3e3   :  { %v4753_v61 = vpop.f32.mrf.mxu2 }
 0x3e4   :  { %v4831_v34 = vpop.f32.mrf.mxu0  ;;  %v4881_v1 = vpack.c.bf16 %v4875_v28, %v4874_v43  ;;  %v10046_v43 = vor.u32 %v11759_v46, %v10045_v22  ;;  %v11733_v28 = vld [vmem:[%s18194_s11 + $0xcc] sm:$0xf]  ;;  %v11755_v61 = vld [vmem:[%s18194_s11 + $0x174] sm:$0xf0] }
 0x3e5   :  { %v11737_v34 = vld [vmem:[%s18194_s11 + $0xec] sm:$0xf]  ;;  %v11803_v22 = vld [vmem:[%s18195_s13 + $0xf4] sm:$0xf0] }
 0x3e6   :  { %5374 = vmatpush.bf16.msrb.mxu3 %v10058_v60  ;;  %v4890_v20 = vunpack.c.l.b16 %v4881_v1  ;;  %v4891_v6 = vunpack.c.h.b16 %v4881_v1  ;;  %v10077_v60 = vld [vmem:[%s18194_s11 + $0x1c8] sm:$0xf]  ;;  %v11717_v46 = vld [vmem:[%s18194_s11 + $0x4c] sm:$0xf] }
 0x3e7   :  { %v4662_v24 = vpop.f32.mrf.mxu3  ;;  %v10078_v33 = vor.u32 %v11767_v27, %v10077_v60  ;;  %v9901_v1 = vld [vmem:[%s18194_s11 + $0x68] sm:$0xf]  ;;  %v11747_v60 = vld [vmem:[%s18194_s11 + $0x134] sm:$0xf0] }
 0x3e8   :  { %v4892_v2 = vpack.c.b16 %v4890_v20, %v4890_v20  ;;  %v4893_v55 = vpack.c.b16 %v4891_v6, %v4891_v6  ;;  %v11723_v20 = vld [vmem:[%s18194_s11 + $0x74] sm:$0xf0]  ;;  %v10029_v6 = vld [vmem:[%s18194_s11 + $0x168] sm:$0xf] }
 0x3e9   :  { %v10030_v24 = vor.u32 %v11755_v61, %v10029_v6  ;;  %v11801_v6 = vld [vmem:[%s18195_s13 + $0xe4] sm:$0xf0]  ;;  %v11713_v61 = vld [vmem:[%s18194_s11 + $0x2c] sm:$0xf] }
 0x3ea   :  { %5375 = vmatpush.bf16.msrb.mxu3 %v10042_v36  ;;  %v16260_v56 = vsel %vm4904_vm2, %v4887_v0, %v4892_v2  ;;  %v16263_v11 = vsel %vm4904_vm2, %v4888_v59, %v4893_v55  ;;  %v9950_v36 = vor.u32 %v11735_v32, %v9949_v16  ;;  %v11729_v0 = vld [vmem:[%s18194_s11 + $0xac] sm:$0xf]  ;;  %v9935_v59 = vld [vmem:[%s18194_s11 + $0xb8] sm:$0xf0]  ;;  %v11715_v16 = vld [vmem:[%s18194_s11 + $0x34] sm:$0xf0] }
 0x3eb   :  { %v4842_v44 = vpop.f32.mrf.mxu1  ;;  %5323 = vmatmul.bf16.vlgmr.msra.gmra.mxu0 %v16260_v56  ;;  %5342 = vmatmul.bf16.vlgmr.msrb.gmra.mxu1 %v16263_v11  ;;  %v11761_v2 = vld [vmem:[%s18194_s11 + $0x1ac] sm:$0xf]  ;;  %v9938_v55 = vor.u32 %v11729_v0, %v9935_v59  ;;  %v9997_v32 = vld [vmem:[%s18194_s11 + $0x128] sm:$0xf] }
 0x3ec   :  { %v16242_v13 = vadd.f32 %v4842_v44, %v4830_v29  ;;  %5361 = vmatmul.bf16.vlgmr.msrb.gmra.mxu2 %v16260_v56  ;;  %v11763_v29 = vld [vmem:[%s18194_s11 + $0x1b4] sm:$0xf0]  ;;  %v10098_v44 = vor.u32 %v11769_v35, %v10095_v47  ;;  %v9853_v35 = vld [vmem:[%s18194_s11 + $0x8] sm:$0xf]  ;;  %v11745_v59 = vld [vmem:[%s18194_s11 + $0x12c] sm:$0xf] }
 0x3ed   :  { %v11743_v47 = vld [vmem:[%s18194_s11 + $0x114] sm:$0xf0] }
 0x3ee   :  { %5376 = vmatpush.bf16.msrb.mxu3 %v10026_v39  ;;  %v9967_v39 = vld [vmem:[%s18194_s11 + $0xf8] sm:$0xf0] }
 0x3ef   :  { %v9970_v41 = vor.u32 %v11737_v34, %v9967_v39  ;;  %v10031_v34 = vld [vmem:[%s18194_s11 + $0x178] sm:$0xf0] }
 0x3f0   :  { %v10034_v39 = vor.u32 %v11753_v10, %v10031_v34 }
 0x3f1   :  { %5429 = vmatpush.bf16.msra.mxu2 %v9970_v41 }
 0x3f2   :  { %5377 = vmatpush.bf16.msrb.mxu3 %v10010_v8  ;;  %v10062_v8 = vor.u32 %v11763_v29, %v10061_v30  ;;  %v11711_v30 = vld [vmem:[%s18194_s11 + $0x14] sm:$0xf0]  ;;  %v9981_v29 = vld [vmem:[%s18194_s11 + $0x108] sm:$0xf] }
 0x3f3   :  { %v4844_v62 = vpop.f32.mrf.mxu1  ;;  %v9854_v41 = vor.u32 %v11711_v30, %v9853_v35  ;;  %v10117_v30 = vld [vmem:[%s18195_s13 + $0x20] sm:$0xf] }
 0x3f4   :  { %v9902_v62 = vor.u32 %v11723_v20, %v9901_v1  ;;  %v10213_v1 = vld [vmem:[%s18195_s13 + $0xe0] sm:$0xf] }
 0x3f6   :  { %5378 = vmatpush.bf16.msrb.mxu3 %v9994_v15  ;;  %v9951_v15 = vld [vmem:[%s18194_s11 + $0xd8] sm:$0xf0] }
 0x3f7   :  { %v9954_v14 = vor.u32 %v11733_v28, %v9951_v15  ;;  %v11749_v28 = vld [vmem:[%s18194_s11 + $0x14c] sm:$0xf]  ;;  %v10015_v15 = vld [vmem:[%s18194_s11 + $0x158] sm:$0xf0] }
 0x3f9   :  { %5430 = vmatpush.bf16.msra.mxu2 %v9954_v14  ;;  %v10018_v14 = vor.u32 %v11749_v28, %v10015_v15 }
 0x3fa   :  { %5379 = vmatpush.bf16.msrb.mxu3 %v9978_v57 }
 0x3fd   :  { %5380 = vmatmul.bf16.vlgmr.msrb.gmra.mxu3 %v16263_v11  ;;  %5431 = vmatpush.bf16.msra.mxu2 %v9938_v55 }
 0x3fe   :  { %5448 = vmatpush.bf16.msra.mxu3 %v10098_v44  ;;  %v10157_v44 = vld [vmem:[%s18195_s13 + $0x70] sm:$0xf] }
 0x400   :  { %v4712_v17 = vpop.f32.mrf.mxu3 }
 0x401   :  { %v4713_v3 = vadd.f32 %v4712_v17, %v16154_v49  ;;  %v10093_v49 = vld [vmem:[%s18194_s11 + $0x1e8] sm:$0xf] }
 0x402   :  { %v4803_v5 = vpop.f32.mrf.mxu2  ;;  %v10094_v48 = vor.u32 %v11771_v25, %v10093_v49  ;;  %5449 = vmatpush.bf16.msra.mxu3 %v10082_v58  ;;  %v9869_v25 = vld [vmem:[%s18194_s11 + $0x28] sm:$0xf] }
 0x403   :  { %v16270_v12 = vadd.f32 %v4803_v5, %v16151_v54  ;;  %v4876_v38 = vmax.f32 %v4713_v3, 0.0  ;;  %v11739_v54 = vld [vmem:[%s18194_s11 + $0xf4] sm:$0xf0]  ;;  %v10063_v5 = vld [vmem:[%s18194_s11 + $0x1b8] sm:$0xf0] }
 0x404   :  { %v9966_v45 = vor.u32 %v11739_v54, %v9965_v63  ;;  %5410 = vmatpush.bf16.msra.mxu1 %v10094_v48  ;;  %v10066_v17 = vor.u32 %v11761_v2, %v10063_v5  ;;  %v9885_v3 = vld [vmem:[%s18194_s11 + $0x48] sm:$0xf]  ;;  %v9919_v63 = vld [vmem:[%s18194_s11 + $0x98] sm:$0xf0]  ;;  %v11757_v54 = vld [vmem:[%s18194_s11 + $0x18c] sm:$0xf]  ;;  %v9870_v48 = vor.u32 %v11715_v16, %v9869_v25 }
 0x405   :  { %v11785_v58 = vld [vmem:[%s18195_s13 + $0x64] sm:$0xf0]  ;;  %v9999_v2 = vld [vmem:[%s18194_s11 + $0x138] sm:$0xf0]  ;;  %v10141_v5 = vld [vmem:[%s18195_s13 + $0x50] sm:$0xf] }
 0x406   :  { %5391 = vmatpush.bf16.msrb.mxu0 %v9966_v45  ;;  %5450 = vmatpush.bf16.msra.mxu3 %v10066_v17  ;;  %v10150_v20 = vor.u32 %v11785_v58, %v10149_v53  ;;  %v10002_v55 = vor.u32 %v11745_v59, %v9999_v2  ;;  %v11783_v17 = vld [vmem:[%s18195_s13 + $0x54] sm:$0xf0]  ;;  %v10197_v16 = vld [vmem:[%s18195_s13 + $0xc0] sm:$0xf]  ;;  %v10413_v2 = vld [vmem:[%s18195_s13 + $0x270] sm:$0xf] }
 0x408   :  { %v4714_v50 = vpop.f32.mrf.mxu3  ;;  %5411 = vmatpush.bf16.msra.mxu1 %v10078_v33 }
 0x409   :  { %v10013_v50 = vld [vmem:[%s18194_s11 + $0x148] sm:$0xf] }
 0x40a   :  { %v4805_v18 = vpop.f32.mrf.mxu2  ;;  %5392 = vmatpush.bf16.msrb.mxu0 %v9950_v36  ;;  %v11721_v36 = vld [vmem:[%s18194_s11 + $0x6c] sm:$0xf] }
 0x40b   :  { %v11719_v18 = vld [vmem:[%s18194_s11 + $0x54] sm:$0xf0]  ;;  %v9906_v33 = vor.u32 %v11721_v36, %v9903_v23 }
 0x40c   :  { %5412 = vmatpush.bf16.msra.mxu1 %v10062_v8  ;;  %v9982_v8 = vor.u32 %v11743_v47, %v9981_v29 }
 0x40e   :  { %5393 = vmatpush.bf16.msrb.mxu0 %v9934_v37  ;;  %v11787_v37 = vld [vmem:[%s18195_s13 + $0x74] sm:$0xf0] }
 0x410   :  { %5413 = vmatpush.bf16.msra.mxu1 %v10046_v43  ;;  %v9887_v43 = vld [vmem:[%s18194_s11 + $0x58] sm:$0xf0] }
 0x411   :  { %v9890_v52 = vor.u32 %v11717_v46, %v9887_v43 }
 0x414   :  { %5414 = vmatpush.bf16.msra.mxu1 %v10030_v24  ;;  %v9871_v24 = vld [vmem:[%s18194_s11 + $0x38] sm:$0xf0] }
 0x415   :  { %v9874_v0 = vor.u32 %v11713_v61, %v9871_v24 }
 0x420   :  { %v4764_v40 = vpop.f32.mrf.mxu3 }
 0x421   :  { %v4765_v21 = vadd.f32 %v4764_v40, %v4752_v9  ;;  %v11727_v9 = vld [vmem:[%s18194_s11 + $0x94] sm:$0xf0]  ;;  %v9886_v40 = vor.u32 %v11719_v18, %v9885_v3  ;;  %v10205_v3 = vld [vmem:[%s18195_s13 + $0xd0] sm:$0xf]  ;;  %v10142_v18 = vor.u32 %v11783_v17, %v10141_v5 }
 0x422   :  { %v16273_v42 = vpop.f32.mrf.mxu2  ;;  %v9918_v51 = vor.u32 %v11727_v9, %v9917_v4  ;;  %v10158_v4 = vor.u32 %v11787_v37, %v10157_v44  ;;  %v10221_v9 = vld [vmem:[%s18195_s13 + $0xf0] sm:$0xf]  ;;  %v11867_v17 = vld [vmem:[%s18195_s13 + $0x2f4] sm:$0xf0] }
 0x423   :  { %v4877_v19 = vmax.f32 %v4765_v21, 0.0  ;;  %v11751_v21 = vld [vmem:[%s18194_s11 + $0x154] sm:$0xf0]  ;;  %v4856_v36 = vadd.f32 %v16273_v42, %v16242_v13  ;;  %v11777_v13 = vld [vmem:[%s18195_s13 + $0x24] sm:$0xf0] }
 0x424   :  { %5394 = vmatpush.bf16.msrb.mxu0 %v9918_v51  ;;  %v10222_v51 = vor.u32 %v11803_v22, %v10221_v9  ;;  %v10118_v29 = vor.u32 %v11777_v13, %v10117_v30  ;;  %v11775_v9 = vld [vmem:[%s18195_s13 + $0x14] sm:$0xf0]  ;;  %v10173_v22 = vld [vmem:[%s18195_s13 + $0x90] sm:$0xf] }
 0x425   :  { %v16275_v31 = vpack.c.bf16 %v4877_v19, %v4876_v38  ;;  %v10014_v38 = vor.u32 %v11751_v21, %v10013_v50  ;;  %v11725_v19 = vld [vmem:[%s18194_s11 + $0x8c] sm:$0xf]  ;;  %v11799_v50 = vld [vmem:[%s18195_s13 + $0xd4] sm:$0xf0]  ;;  %v9855_v21 = vld [vmem:[%s18194_s11 + $0x18] sm:$0xf0] }
 0x426   :  { %v9922_v49 = vor.u32 %v11725_v19, %v9919_v63  ;;  %v11741_v63 = vld [vmem:[%s18194_s11 + $0x10c] sm:$0xf]  ;;  %v10477_v5 = vld [vmem:[%s18195_s13 + $0x2f0] sm:$0xf]  ;;  %v11843_v30 = vld [vmem:[%s18195_s13 + $0x234] sm:$0xf0] }
 0x427   :  { %5415 = vmatpush.bf16.msra.mxu1 %v10014_v38  ;;  %v10206_v38 = vor.u32 %v11799_v50, %v10205_v3  ;;  %v4895_v44 = vunpack.c.l.b16 %v16275_v31  ;;  %v4896_v37 = vunpack.c.h.b16 %v16275_v31  ;;  %v11791_v31 = vld [vmem:[%s18195_s13 + $0x94] sm:$0xf0]  ;;  %v10405_v50 = vld [vmem:[%s18195_s13 + $0x260] sm:$0xf]  ;;  %v10445_v13 = vld [vmem:[%s18195_s13 + $0x2b0] sm:$0xf] }
 0x428   :  { %v4766_v7 = vpop.f32.mrf.mxu3  ;;  %5395 = vmatpush.bf16.msrb.mxu0 %v9902_v62  ;;  %5432 = vmatpush.bf16.msra.mxu2 %v9922_v49  ;;  %v10214_v62 = vor.u32 %v11801_v6, %v10213_v1  ;;  %v10174_v15 = vor.u32 %v11791_v31, %v10173_v22  ;;  %v10101_v1 = vld [vmem:[%s18195_s13] sm:$0xf]  ;;  %v11839_v31 = vld [vmem:[%s18195_s13 + $0x214] sm:$0xf0] }
 0x429   :  { %v9998_v7 = vor.u32 %v11747_v60, %v9997_v32  ;;  %v11797_v32 = vld [vmem:[%s18195_s13 + $0xc4] sm:$0xf0]  ;;  %v10125_v60 = vld [vmem:[%s18195_s13 + $0x30] sm:$0xf]  ;;  %v10165_v6 = vld [vmem:[%s18195_s13 + $0x80] sm:$0xf] }
 0x42a   :  { %v4857_v26 = vpop.f32.mrf.mxu2 }
 0x42b   :  { %v10047_v26 = vld [vmem:[%s18194_s11 + $0x198] sm:$0xf0]  ;;  %5416 = vmatpush.bf16.msra.mxu1 %v9998_v7  ;;  %v10189_v7 = vld [vmem:[%s18195_s13 + $0xb0] sm:$0xf] }
 0x42c   :  { %5396 = vmatpush.bf16.msrb.mxu0 %v9886_v40  ;;  %v10050_v45 = vor.u32 %v11757_v54, %v10047_v26  ;;  %5433 = vmatpush.bf16.msra.mxu2 %v9906_v33  ;;  %v11709_v40 = vld [vmem:[%s18194_s11 + $0xc] sm:$0xf]  ;;  %v9983_v54 = vld [vmem:[%s18194_s11 + $0x118] sm:$0xf0]  ;;  %v10133_v26 = vld [vmem:[%s18195_s13 + $0x40] sm:$0xf] }
 0x42d   :  { %v9858_v19 = vor.u32 %v11709_v40, %v9855_v21  ;;  %v9986_v49 = vor.u32 %v11741_v63, %v9983_v54  ;;  %v11795_v33 = vld [vmem:[%s18195_s13 + $0xb4] sm:$0xf0]  ;;  %v11849_v40 = vld [vmem:[%s18195_s13 + $0x264] sm:$0xf0]  ;;  %v10469_v21 = vld [vmem:[%s18195_s13 + $0x2e0] sm:$0xf] }
 0x42e   :  { %5451 = vmatpush.bf16.msra.mxu3 %v10050_v45  ;;  %v11781_v45 = vld [vmem:[%s18195_s13 + $0x44] sm:$0xf0]  ;;  %v10397_v54 = vld [vmem:[%s18195_s13 + $0x250] sm:$0xf] }
 0x42f   :  { %5417 = vmatpush.bf16.msra.mxu1 %v9982_v8  ;;  %v10134_v25 = vor.u32 %v11781_v45, %v10133_v26  ;;  %v10461_v26 = vld [vmem:[%s18195_s13 + $0x2d0] sm:$0xf] }
 0x430   :  { %5397 = vmatpush.bf16.msrb.mxu0 %v9870_v48  ;;  %5434 = vmatpush.bf16.msra.mxu2 %v9890_v52  ;;  %v10198_v48 = vor.u32 %v11797_v32, %v10197_v16  ;;  %v4897_v52 = vpack.c.b16 %v4895_v44, %v4895_v44  ;;  %v10389_v32 = vld [vmem:[%s18195_s13 + $0x240] sm:$0xf] }
 0x432   :  { %5452 = vmatpush.bf16.msra.mxu3 %v10034_v39  ;;  %v10190_v39 = vor.u32 %v11795_v33, %v10189_v7  ;;  %v11861_v7 = vld [vmem:[%s18195_s13 + $0x2c4] sm:$0xf0] }
 0x433   :  { %7078 = vmatpush.bf16.msrb.mxu1 %v10222_v51 }
 0x434   :  { %5398 = vmatpush.bf16.msrb.mxu0 %v9854_v41  ;;  %5435 = vmatpush.bf16.msra.mxu2 %v9874_v0  ;;  %v11793_v41 = vld [vmem:[%s18195_s13 + $0xa4] sm:$0xf0] }
 0x435   :  { %v11789_v0 = vld [vmem:[%s18195_s13 + $0x84] sm:$0xf0] }
 0x436   :  { %5453 = vmatpush.bf16.msra.mxu3 %v10018_v14  ;;  %v4898_v14 = vpack.c.b16 %v4896_v37, %v4896_v37  ;;  %v10166_v59 = vor.u32 %v11789_v0, %v10165_v6  ;;  %v11841_v37 = vld [vmem:[%s18195_s13 + $0x224] sm:$0xf0] }
 0x437   :  { %7079 = vmatpush.bf16.msrb.mxu1 %v10214_v62  ;;  %v11853_v0 = vld [vmem:[%s18195_s13 + $0x284] sm:$0xf0] }
 0x438   :  { %7065 = vmatpush.bf16.msra.mxu0 %v10158_v4  ;;  %5436 = vmatpush.bf16.msra.mxu2 %v9858_v19  ;;  %v10109_v4 = vld [vmem:[%s18195_s13 + $0x10] sm:$0xf]  ;;  %v10406_v19 = vor.u32 %v11849_v40, %v10405_v50 }
 0x439   :  { %v10110_v43 = vor.u32 %v11775_v9, %v10109_v4  ;;  %v11857_v4 = vld [vmem:[%s18195_s13 + $0x2a4] sm:$0xf0] }
 0x43a   :  { %5454 = vmatpush.bf16.msra.mxu3 %v10002_v55  ;;  %v11851_v55 = vld [vmem:[%s18195_s13 + $0x274] sm:$0xf0] }
 0x43b   :  { %7080 = vmatpush.bf16.msrb.mxu1 %v10206_v38  ;;  %v10414_v3 = vor.u32 %v11851_v55, %v10413_v2  ;;  %v11865_v38 = vld [vmem:[%s18195_s13 + $0x2e4] sm:$0xf0]  ;;  %v10277_v2 = vld [vmem:[%s18195_s13 + $0x160] sm:$0xf] }
 0x43c   :  { %7066 = vmatpush.bf16.msra.mxu0 %v10150_v20  ;;  %v11773_v20 = vld [vmem:[%s18195_s13 + $0x4] sm:$0xf0]  ;;  %v10470_v63 = vor.u32 %v11865_v38, %v10469_v21  ;;  %v10669_v21 = vld [vmem:[%s18195_s13 + $0x470] sm:$0xf]  ;;  %v11915_v38 = vld [vmem:[%s18195_s13 + $0x474] sm:$0xf0] }
 0x43d   :  { %v10102_v24 = vor.u32 %v11773_v20, %v10101_v1  ;;  %v11837_v1 = vld [vmem:[%s18195_s13 + $0x204] sm:$0xf0]  ;;  %v11819_v20 = vld [vmem:[%s18195_s13 + $0x174] sm:$0xf0] }
 0x43e   :  { %5455 = vmatpush.bf16.msra.mxu3 %v9986_v49  ;;  %v11847_v49 = vld [vmem:[%s18195_s13 + $0x254] sm:$0xf0]  ;;  %v11817_v55 = vld [vmem:[%s18195_s13 + $0x164] sm:$0xf0] }
 0x43f   :  { %7081 = vmatpush.bf16.msrb.mxu1 %v10198_v48 }
 0x440   :  { %v16361_v57 = vpop.f32.mrf.mxu3  ;;  %7067 = vmatpush.bf16.msra.mxu0 %v10142_v18  ;;  %v10478_v18 = vor.u32 %v11867_v17, %v10477_v5  ;;  %v10349_v5 = vld [vmem:[%s18195_s13 + $0x1f0] sm:$0xf]  ;;  %v11835_v17 = vld [vmem:[%s18195_s13 + $0x1f4] sm:$0xf0] }
 0x441   :  { %v4817_v23 = vadd.f32 %v16361_v57, %v16270_v12  ;;  %v10181_v12 = vld [vmem:[%s18195_s13 + $0xa0] sm:$0xf] }
 0x442   :  { %v10182_v47 = vor.u32 %v11793_v41, %v10181_v12  ;;  %v11859_v12 = vld [vmem:[%s18195_s13 + $0x2b4] sm:$0xf0] }
 0x443   :  { %7082 = vmatpush.bf16.msrb.mxu1 %v10190_v39  ;;  %v4878_v42 = vmax.f32 %v4817_v23, 0.0  ;;  %v10381_v39 = vld [vmem:[%s18195_s13 + $0x230] sm:$0xf]  ;;  %v10446_v41 = vor.u32 %v11859_v12, %v10445_v13  ;;  %v10725_v13 = vld [vmem:[%s18195_s13 + $0x4e0] sm:$0xf] }
 0x444   :  { %7068 = vmatpush.bf16.msra.mxu0 %v10134_v25  ;;  %v10398_v25 = vor.u32 %v11847_v49, %v10397_v54  ;;  %v11929_v12 = vld [vmem:[%s18195_s13 + $0x4e4] sm:$0xf0] }
 0x447   :  { %7083 = vmatpush.bf16.msrb.mxu1 %v10182_v47  ;;  %v10373_v47 = vld [vmem:[%s18195_s13 + $0x220] sm:$0xf] }
 0x448   :  { %v4818_v27 = vpop.f32.mrf.mxu3 }
 0x449   :  { %v11779_v27 = vld [vmem:[%s18195_s13 + $0x34] sm:$0xf0] }
 0x44a   :  { %v10126_v10 = vor.u32 %v11779_v27, %v10125_v60  ;;  %v11845_v60 = vld [vmem:[%s18195_s13 + $0x244] sm:$0xf0]  ;;  %v10453_v27 = vld [vmem:[%s18195_s13 + $0x2c0] sm:$0xf] }
 0x44b   :  { %7084 = vmatpush.bf16.msrb.mxu1 %v10174_v15  ;;  %v10390_v33 = vor.u32 %v11845_v60, %v10389_v32  ;;  %v11855_v15 = vld [vmem:[%s18195_s13 + $0x294] sm:$0xf0]  ;;  %v10269_v32 = vld [vmem:[%s18195_s13 + $0x150] sm:$0xf] }
 0x44c   :  { %7069 = vmatpush.bf16.msra.mxu0 %v10126_v10 }
 0x44f   :  { %7085 = vmatpush.bf16.msrb.mxu1 %v10166_v59 }
 0x450   :  { %7070 = vmatpush.bf16.msra.mxu0 %v10118_v29  ;;  %v10382_v29 = vor.u32 %v11843_v30, %v10381_v39  ;;  %v11831_v39 = vld [vmem:[%s18195_s13 + $0x1d4] sm:$0xf0]  ;;  %v11913_v30 = vld [vmem:[%s18195_s13 + $0x464] sm:$0xf0] }
 0x454   :  { %7071 = vmatpush.bf16.msra.mxu0 %v10110_v43  ;;  %v10365_v43 = vld [vmem:[%s18195_s13 + $0x210] sm:$0xf] }
 0x458   :  { %7072 = vmatpush.bf16.msra.mxu0 %v10102_v24  ;;  %v10421_v24 = vld [vmem:[%s18195_s13 + $0x280] sm:$0xf] }
 0x460   :  { %v4868_v34 = vpop.f32.mrf.mxu3 }
 0x461   :  { %v4869_v35 = vadd.f32 %v4868_v34, %v4856_v36  ;;  %v10454_v34 = vor.u32 %v11861_v7, %v10453_v27  ;;  %v10333_v7 = vld [vmem:[%s18195_s13 + $0x1d0] sm:$0xf] }
 0x463   :  { %v4879_v57 = vmax.f32 %v4869_v35, 0.0 }
 0x465   :  { %v4883_v8 = vpack.c.bf16 %v4879_v57, %v4878_v42 }
 0x467   :  { %v4900_v46 = vunpack.c.l.b16 %v4883_v8  ;;  %v4901_v51 = vunpack.c.h.b16 %v4883_v8  ;;  %v10437_v8 = vld [vmem:[%s18195_s13 + $0x2a0] sm:$0xf] }
 0x468   :  { %v4870_v28 = vpop.f32.mrf.mxu3  ;;  %v5324_v23 = vpop.f32.mrf.mxu0 }
 0x469   :  { %v4902_v53 = vpack.c.b16 %v4900_v46, %v4900_v46  ;;  %v4903_v58 = vpack.c.b16 %v4901_v51, %v4901_v51  ;;  %v5343_v44 = vpop.f32.mrf.mxu1  ;;  %v10374_v46 = vor.u32 %v11841_v37, %v10373_v47  ;;  %v10438_v51 = vor.u32 %v11857_v4, %v10437_v8  ;;  %v10429_v28 = vld [vmem:[%s18195_s13 + $0x290] sm:$0xf]  ;;  %v10325_v37 = vld [vmem:[%s18195_s13 + $0x1c0] sm:$0xf]  ;;  %v11829_v8 = vld [vmem:[%s18195_s13 + $0x1c4] sm:$0xf0] }
 0x46a   :  { %v10334_v47 = vor.u32 %v11831_v39, %v10333_v7  ;;  %v11905_v7 = vld [vmem:[%s18195_s13 + $0x424] sm:$0xf0]  ;;  %v10621_v39 = vld [vmem:[%s18195_s13 + $0x410] sm:$0xf] }
 0x46b   :  { %v16571_v62 = vsel %vm4904_vm2, %v4897_v52, %v4902_v53  ;;  %v16574_v61 = vsel %vm4904_vm2, %v4898_v14, %v4903_v58  ;;  %v10285_v14 = vld [vmem:[%s18195_s13 + $0x170] sm:$0xf]  ;;  %v10366_v53 = vor.u32 %v11839_v31, %v10365_v43  ;;  %v10357_v58 = vld [vmem:[%s18195_s13 + $0x200] sm:$0xf]  ;;  %v11927_v31 = vld [vmem:[%s18195_s13 + $0x4d4] sm:$0xf0] }
 0x46c   :  { %5328 = vmatmul.bf16.gmra.mxu0 %v16571_v62  ;;  %5347 = vmatmul.bf16.gmra.mxu1 %v16574_v61  ;;  %v10286_v59 = vor.u32 %v11819_v20, %v10285_v14  ;;  %v10358_v49 = vor.u32 %v11837_v1, %v10357_v58  ;;  %v10717_v43 = vld [vmem:[%s18195_s13 + $0x4d0] sm:$0xf]  ;;  %v10326_v14 = vor.u32 %v11829_v8, %v10325_v37  ;;  %v11827_v1 = vld [vmem:[%s18195_s13 + $0x1b4] sm:$0xf0]  ;;  %v10677_v37 = vld [vmem:[%s18195_s13 + $0x480] sm:$0xf] }
 0x46d   :  { %5366 = vmatmul.bf16.gmra.mxu2 %v16571_v62  ;;  %5385 = vmatmul.bf16.gmra.mxu3 %v16574_v61  ;;  %v10317_v58 = vld [vmem:[%s18195_s13 + $0x1b0] sm:$0xf]  ;;  %v11917_v8 = vld [vmem:[%s18195_s13 + $0x484] sm:$0xf0] }
 0x46e   :  { %7091 = vmatpush.bf16.msrb.mxu2 %v10286_v59  ;;  %v10709_v59 = vld [vmem:[%s18195_s13 + $0x4c0] sm:$0xf] }
 0x46f   :  { %v5362_v48 = vpop.f32.mrf.mxu2 }
 0x470   :  { %v5326_v50 = vpop.f32.mrf.mxu0 }
 0x47c   :  { %5399 = vmatmul.bf16.vlgmr.msrb.gmra.mxu0 %v16260_v56  ;;  %5418 = vmatmul.bf16.vlgmr.msra.gmra.mxu1 %v16263_v11 }
 0x47d   :  { %5437 = vmatmul.bf16.vlgmr.msra.gmra.mxu2 %v16260_v56  ;;  %5456 = vmatmul.bf16.vlgmr.msra.gmra.mxu3 %v16263_v11  ;;  %v11863_v56 = vld [vmem:[%s18195_s13 + $0x2d4] sm:$0xf0]  ;;  %v16626_v11 = vld [vmem:[%s18196_s12] sm:$0xf] }
 0x47e   :  { %7117 = vmatpush.bf16.msrb.mxu0 %v10414_v3  ;;  %7130 = vmatpush.bf16.msra.mxu1 %v10478_v18  ;;  %v16629_v45 = vperm.slane %v16626_v11, 1  ;;  %v10462_v16 = vor.u32 %v11863_v56, %v10461_v26  ;;  %v16644_v36 = vperm.slane %v16626_v11, 0  ;;  %v10278_v3 = vor.u32 %v11817_v55, %v10277_v2  ;;  %v11931_v56 = vld [vmem:[%s18195_s13 + $0x4f4] sm:$0xf0]  ;;  %v11925_v2 = vld [vmem:[%s18195_s13 + $0x4c4] sm:$0xf0] }
 0x47f   :  { %v10350_v18 = vor.u32 %v11835_v17, %v10349_v5  ;;  %v10422_v26 = vor.u32 %v11853_v0, %v10421_v24  ;;  %v11909_v0 = vld [vmem:[%s18195_s13 + $0x444] sm:$0xf0]  ;;  %v10245_v5 = vld [vmem:[%s18195_s13 + $0x120] sm:$0xf] }
 0x480   :  { %v5363_v10 = vadd.f32 %v5362_v48, %v16629_v45  ;;  %v5381_v35 = vpop.f32.mrf.mxu3  ;;  %v5325_v42 = vadd.f32 %v5324_v23, %v16644_v36  ;;  %v11815_v48 = vld [vmem:[%s18195_s13 + $0x154] sm:$0xf0]  ;;  %v5327_v27 = vadd.f32 %v5326_v50, %v16644_v36  ;;  %7092 = vmatpush.bf16.msrb.mxu2 %v10278_v3  ;;  %v11809_v17 = vld [vmem:[%s18195_s13 + $0x124] sm:$0xf0]  ;;  %v10318_v3 = vor.u32 %v11827_v1, %v10317_v58  ;;  %v10909_v58 = vld [vmem:[%s18195_s13 + $0x650] sm:$0xf] }
 0x481   :  { %7104 = vmatpush.bf16.msrb.mxu3 %v10350_v18  ;;  %v10309_v18 = vld [vmem:[%s18195_s13 + $0x1a0] sm:$0xf]  ;;  %v11825_v50 = vld [vmem:[%s18195_s13 + $0x1a4] sm:$0xf0] }
 0x482   :  { %7118 = vmatpush.bf16.msrb.mxu0 %v10406_v19  ;;  %7131 = vmatpush.bf16.msra.mxu1 %v10470_v63  ;;  %v5382_v57 = vadd.f32 %v5381_v35, %v5363_v10  ;;  %v5344_v9 = vadd.f32 %v5343_v44, %v5325_v42  ;;  %v10733_v19 = vld [vmem:[%s18195_s13 + $0x4f0] sm:$0xf]  ;;  %v10670_v10 = vor.u32 %v11915_v38, %v10669_v21 }
 0x483   :  { %v10270_v42 = vor.u32 %v11815_v48, %v10269_v32  ;;  %v10637_v21 = vld [vmem:[%s18195_s13 + $0x430] sm:$0xf]  ;;  %v10710_v38 = vor.u32 %v11925_v2, %v10709_v59  ;;  %v10629_v48 = vld [vmem:[%s18195_s13 + $0x420] sm:$0xf] }
 0x484   :  { %v5468_v22 = vmax.f32 %v5382_v57, 0.0  ;;  %v5467_v52 = vmax.f32 %v5344_v9, 0.0  ;;  %v5345_v57 = vpop.f32.mrf.mxu1  ;;  %v10901_v2 = vld [vmem:[%s18195_s13 + $0x640] sm:$0xf] }
 0x485   :  { %v5346_v44 = vadd.f32 %v5345_v57, %v5327_v27  ;;  %7093 = vmatpush.bf16.msrb.mxu2 %v10270_v42  ;;  %v11919_v42 = vld [vmem:[%s18195_s13 + $0x494] sm:$0xf0] }
 0x486   :  { %7119 = vmatpush.bf16.msrb.mxu0 %v10398_v25  ;;  %7132 = vmatpush.bf16.msra.mxu1 %v10462_v16  ;;  %v16700_v6 = vpack.c.bf16 %v5468_v22, %v5467_v52  ;;  %v10341_v25 = vld [vmem:[%s18195_s13 + $0x1e0] sm:$0xf]  ;;  %v11833_v16 = vld [vmem:[%s18195_s13 + $0x1e4] sm:$0xf0]  ;;  %v10653_v22 = vld [vmem:[%s18195_s13 + $0x450] sm:$0xf] }
 0x487   :  { %v10342_v60 = vor.u32 %v11833_v16, %v10341_v25  ;;  %v11811_v52 = vld [vmem:[%s18195_s13 + $0x134] sm:$0xf0]  ;;  %v10310_v16 = vor.u32 %v11825_v50, %v10309_v18  ;;  %v10301_v18 = vld [vmem:[%s18195_s13 + $0x190] sm:$0xf] }
 0x488   :  { %v5492_v63 = vunpack.c.h.b16 %v16700_v6  ;;  %v5383_v54 = vpop.f32.mrf.mxu3  ;;  %v11807_v25 = vld [vmem:[%s18195_s13 + $0x114] sm:$0xf0] }
 0x489   :  { %7105 = vmatpush.bf16.msrb.mxu3 %v10342_v60 }
 0x48a   :  { %7120 = vmatpush.bf16.msrb.mxu0 %v10390_v33  ;;  %7133 = vmatpush.bf16.msra.mxu1 %v10454_v34  ;;  %v10661_v33 = vld [vmem:[%s18195_s13 + $0x460] sm:$0xf]  ;;  %v10734_v34 = vor.u32 %v11931_v56, %v10733_v19  ;;  %v16756_v35 = vpack.c.b16 %v5492_v63, %v5492_v63  ;;  %v11907_v63 = vld [vmem:[%s18195_s13 + $0x434] sm:$0xf0]  ;;  %v10237_v56 = vld [vmem:[%s18195_s13 + $0x110] sm:$0xf] }
 0x48b   :  { %v10662_v9 = vor.u32 %v11913_v30, %v10661_v33  ;;  %v10638_v32 = vor.u32 %v11907_v63, %v10637_v21  ;;  %v10238_v33 = vor.u32 %v11807_v25, %v10237_v56  ;;  %v10541_v21 = vld [vmem:[%s18195_s13 + $0x370] sm:$0xf]  ;;  %v11989_v25 = vld [vmem:[%s18195_s13 + $0x6c4] sm:$0xf0] }
 0x48c   :  { %5404 = vmatmul.bf16.gmra.mxu0 %v16571_v62  ;;  %5423 = vmatmul.bf16.gmra.mxu1 %v16574_v61 }
 0x48d   :  { %5442 = vmatmul.bf16.gmra.mxu2 %v16571_v62  ;;  %5461 = vmatmul.bf16.gmra.mxu3 %v16574_v61  ;;  %v5364_v62 = vpop.f32.mrf.mxu2  ;;  %v10430_v61 = vor.u32 %v11855_v15, %v10429_v28  ;;  %v10253_v15 = vld [vmem:[%s18195_s13 + $0x130] sm:$0xf] }
 0x48e   :  { %7121 = vmatpush.bf16.msrb.mxu0 %v10382_v29  ;;  %7134 = vmatpush.bf16.msra.mxu1 %v10446_v41  ;;  %v5365_v40 = vadd.f32 %v5364_v62, %v16629_v45  ;;  %v10261_v29 = vld [vmem:[%s18195_s13 + $0x140] sm:$0xf]  ;;  %v11813_v41 = vld [vmem:[%s18195_s13 + $0x144] sm:$0xf0]  ;;  %v10254_v55 = vor.u32 %v11811_v52, %v10253_v15 }
 0x48f   :  { %v10262_v28 = vor.u32 %v11813_v41, %v10261_v29  ;;  %7106 = vmatpush.bf16.msrb.mxu3 %v10334_v47  ;;  %v10645_v62 = vld [vmem:[%s18195_s13 + $0x440] sm:$0xf]  ;;  %v11901_v41 = vld [vmem:[%s18195_s13 + $0x404] sm:$0xf0] }
 0x490   :  { %v5384_v23 = vadd.f32 %v5383_v54, %v5365_v40  ;;  %v10646_v40 = vor.u32 %v11909_v0, %v10645_v62  ;;  %v10701_v54 = vld [vmem:[%s18195_s13 + $0x4b0] sm:$0xf]  ;;  %v10613_v29 = vld [vmem:[%s18195_s13 + $0x400] sm:$0xf]  ;;  %v11977_v15 = vld [vmem:[%s18195_s13 + $0x664] sm:$0xf0] }
 0x491   :  { %7094 = vmatpush.bf16.msrb.mxu2 %v10262_v28  ;;  %v10981_v52 = vld [vmem:[%s18195_s13 + $0x6e0] sm:$0xf]  ;;  %v10973_v62 = vld [vmem:[%s18195_s13 + $0x6d0] sm:$0xf] }
 0x492   :  { %7122 = vmatpush.bf16.msrb.mxu0 %v10374_v46  ;;  %7135 = vmatpush.bf16.msra.mxu1 %v10438_v51  ;;  %v5472_v4 = vmax.f32 %v5384_v23, 0.0  ;;  %v10726_v46 = vor.u32 %v11929_v12, %v10725_v13  ;;  %v11911_v51 = vld [vmem:[%s18195_s13 + $0x454] sm:$0xf0]  ;;  %v10693_v23 = vld [vmem:[%s18195_s13 + $0x4a0] sm:$0xf] }
 0x493   :  { %v10654_v20 = vor.u32 %v11911_v51, %v10653_v22  ;;  %7107 = vmatpush.bf16.msrb.mxu3 %v10326_v14  ;;  %v11903_v13 = vld [vmem:[%s18195_s13 + $0x414] sm:$0xf0]  ;;  %v10685_v12 = vld [vmem:[%s18195_s13 + $0x490] sm:$0xf]  ;;  %v10678_v51 = vor.u32 %v11917_v8, %v10677_v37  ;;  %v11993_v14 = vld [vmem:[%s18195_s13 + $0x6e4] sm:$0xf0] }
 0x494   :  { %v10622_v57 = vor.u32 %v11903_v13, %v10621_v39  ;;  %v10686_v47 = vor.u32 %v11919_v42, %v10685_v12  ;;  %v11995_v22 = vld [vmem:[%s18195_s13 + $0x6f4] sm:$0xf0]  ;;  %v10982_v1 = vor.u32 %v11993_v14, %v10981_v52  ;;  %v10885_v39 = vld [vmem:[%s18195_s13 + $0x620] sm:$0xf]  ;;  %v10957_v42 = vld [vmem:[%s18195_s13 + $0x6b0] sm:$0xf] }
 0x495   :  { %7095 = vmatpush.bf16.msrb.mxu2 %v10254_v55  ;;  %v11973_v55 = vld [vmem:[%s18195_s13 + $0x644] sm:$0xf0]  ;;  %v10589_v52 = vld [vmem:[%s18195_s13 + $0x3d0] sm:$0xf] }
 0x496   :  { %7123 = vmatpush.bf16.msrb.mxu0 %v10366_v53  ;;  %7136 = vmatpush.bf16.msra.mxu1 %v10430_v61  ;;  %v5471_v53 = vmax.f32 %v5346_v44, 0.0  ;;  %v10718_v61 = vor.u32 %v11927_v31, %v10717_v43  ;;  %v10925_v44 = vld [vmem:[%s18195_s13 + $0x670] sm:$0xf]  ;;  %v10917_v31 = vld [vmem:[%s18195_s13 + $0x660] sm:$0xf] }
 0x497   :  { %7108 = vmatpush.bf16.msrb.mxu3 %v10318_v3  ;;  %v11805_v3 = vld [vmem:[%s18195_s13 + $0x104] sm:$0xf0] }
 0x498   :  { %v16808_v24 = vpack.c.bf16 %v5472_v4, %v5471_v53  ;;  %v11979_v4 = vld [vmem:[%s18195_s13 + $0x674] sm:$0xf0]  ;;  %v10918_v53 = vor.u32 %v11977_v15, %v10917_v31  ;;  %v11897_v8 = vld [vmem:[%s18195_s13 + $0x3e4] sm:$0xf0] }
 0x499   :  { %v10926_v43 = vor.u32 %v11979_v4, %v10925_v44  ;;  %v10597_v44 = vld [vmem:[%s18195_s13 + $0x3e0] sm:$0xf]  ;;  %v10877_v4 = vld [vmem:[%s18195_s13 + $0x610] sm:$0xf]  ;;  %v11877_v15 = vld [vmem:[%s18195_s13 + $0x344] sm:$0xf0] }
 0x49a   :  { %7124 = vmatpush.bf16.msrb.mxu0 %v10358_v49  ;;  %7137 = vmatpush.bf16.msra.mxu1 %v10422_v26  ;;  %v5500_v19 = vunpack.c.h.b16 %v16808_v24  ;;  %v11923_v49 = vld [vmem:[%s18195_s13 + $0x4b4] sm:$0xf0]  ;;  %v10246_v26 = vor.u32 %v11809_v17, %v10245_v5  ;;  %v10902_v5 = vor.u32 %v11973_v55, %v10901_v2  ;;  %v10229_v17 = vld [vmem:[%s18195_s13 + $0x100] sm:$0xf]  ;;  %v10509_v2 = vld [vmem:[%s18195_s13 + $0x330] sm:$0xf] }
 0x49b   :  { %v10702_v60 = vor.u32 %v11923_v49, %v10701_v54  ;;  %7109 = vmatpush.bf16.msrb.mxu3 %v10310_v16  ;;  %v10230_v50 = vor.u32 %v11805_v3, %v10229_v17  ;;  %v10893_v54 = vld [vmem:[%s18195_s13 + $0x630] sm:$0xf]  ;;  %v11971_v49 = vld [vmem:[%s18195_s13 + $0x634] sm:$0xf0]  ;;  %v10581_v17 = vld [vmem:[%s18195_s13 + $0x3c0] sm:$0xf] }
 0x49c   :  { %7073 = vmatmul.bf16.vlgmr.msra.gmra.mxu0 %v16700_v6  ;;  %7086 = vmatmul.bf16.vlgmr.msrb.gmra.mxu1 %v16756_v35  ;;  %v16853_v27 = vpack.c.b16 %v5500_v19, %v5500_v19  ;;  %v10894_v56 = vor.u32 %v11971_v49, %v10893_v54  ;;  %v11875_v55 = vld [vmem:[%s18195_s13 + $0x334] sm:$0xf0]  ;;  %v11893_v3 = vld [vmem:[%s18195_s13 + $0x3c4] sm:$0xf0] }
 0x49d   :  { %7096 = vmatpush.bf16.msrb.mxu2 %v10246_v26  ;;  %v10965_v26 = vld [vmem:[%s18195_s13 + $0x6c0] sm:$0xf]  ;;  %v11891_v49 = vld [vmem:[%s18195_s13 + $0x3b4] sm:$0xf0] }
 0x49e   :  { %7169 = vmatpush.bf16.msra.mxu0 %v10670_v10  ;;  %7182 = vmatpush.bf16.msrb.mxu1 %v10734_v34  ;;  %v11921_v10 = vld [vmem:[%s18195_s13 + $0x4a4] sm:$0xf0]  ;;  %v10630_v34 = vor.u32 %v11905_v7, %v10629_v48  ;;  %v10966_v16 = vor.u32 %v11989_v25, %v10965_v26  ;;  %v10533_v7 = vld [vmem:[%s18195_s13 + $0x360] sm:$0xf]  ;;  %v11871_v25 = vld [vmem:[%s18195_s13 + $0x314] sm:$0xf0] }
 0x49f   :  { %v10694_v30 = vor.u32 %v11921_v10, %v10693_v23  ;;  %v11821_v48 = vld [vmem:[%s18195_s13 + $0x184] sm:$0xf0]  ;;  %v10605_v10 = vld [vmem:[%s18195_s13 + $0x3f0] sm:$0xf] }
 0x4a0   :  { %v11881_v23 = vld [vmem:[%s18195_s13 + $0x364] sm:$0xf0] }
 0x4a1   :  { %7097 = vmatpush.bf16.msrb.mxu2 %v10238_v33  ;;  %v10534_v33 = vor.u32 %v11881_v23, %v10533_v7  ;;  %v10485_v7 = vld [vmem:[%s18195_s13 + $0x300] sm:$0xf]  ;;  %v11869_v23 = vld [vmem:[%s18195_s13 + $0x304] sm:$0xf0] }
 0x4a2   :  { %7170 = vmatpush.bf16.msra.mxu0 %v10662_v9  ;;  %7183 = vmatpush.bf16.msrb.mxu1 %v10726_v46  ;;  %v10989_v9 = vld [vmem:[%s18195_s13 + $0x6f0] sm:$0xf]  ;;  %v10614_v46 = vor.u32 %v11901_v41, %v10613_v29 }
 0x4a3   :  { %v10990_v28 = vor.u32 %v11995_v22, %v10989_v9  ;;  %v10525_v41 = vld [vmem:[%s18195_s13 + $0x350] sm:$0xf]  ;;  %v11967_v9 = vld [vmem:[%s18195_s13 + $0x614] sm:$0xf0]  ;;  %v10598_v22 = vor.u32 %v11897_v8, %v10597_v44 }
 0x4a5   :  { %7098 = vmatpush.bf16.msrb.mxu2 %v10230_v50  ;;  %v10582_v50 = vor.u32 %v11893_v3, %v10581_v17  ;;  %v11782_v17 = vld [vmem:[%s18195_s13 + $0x54] sm:$0xf] }
 0x4a6   :  { %7171 = vmatpush.bf16.msra.mxu0 %v10654_v20  ;;  %7184 = vmatpush.bf16.msrb.mxu1 %v10718_v61  ;;  %v11975_v20 = vld [vmem:[%s18195_s13 + $0x654] sm:$0xf0] }
 0x4a7   :  { %v11991_v61 = vld [vmem:[%s18195_s13 + $0x6d4] sm:$0xf0]  ;;  %v10910_v0 = vor.u32 %v11975_v20, %v10909_v58  ;;  %v10869_v58 = vld [vmem:[%s18195_s13 + $0x600] sm:$0xf] }
 0x4a8   :  { %v10974_v59 = vor.u32 %v11991_v61, %v10973_v62  ;;  %v10941_v61 = vld [vmem:[%s18195_s13 + $0x690] sm:$0xf] }
 0x4aa   :  { %7172 = vmatpush.bf16.msra.mxu0 %v10646_v40  ;;  %7185 = vmatpush.bf16.msrb.mxu1 %v10710_v38  ;;  %v11823_v40 = vld [vmem:[%s18195_s13 + $0x194] sm:$0xf0] }
 0x4ab   :  { %v11883_v38 = vld [vmem:[%s18195_s13 + $0x374] sm:$0xf0]  ;;  %v10302_v19 = vor.u32 %v11823_v40, %v10301_v18  ;;  %v10933_v18 = vld [vmem:[%s18195_s13 + $0x680] sm:$0xf]  ;;  %v11981_v40 = vld [vmem:[%s18195_s13 + $0x684] sm:$0xf0] }
 0x4ac   :  { %7125 = vmatmul.bf16.vlgmr.msrb.gmra.mxu0 %v16808_v24  ;;  %7138 = vmatmul.bf16.vlgmr.msra.gmra.mxu1 %v16853_v27  ;;  %v10542_v63 = vor.u32 %v11883_v38, %v10541_v21  ;;  %v10934_v21 = vor.u32 %v11981_v40, %v10933_v18  ;;  %v10501_v38 = vld [vmem:[%s18195_s13 + $0x320] sm:$0xf] }
 0x4ad   :  { %7110 = vmatpush.bf16.msrb.mxu3 %v10302_v19  ;;  %v11873_v19 = vld [vmem:[%s18195_s13 + $0x324] sm:$0xf0] }
 0x4ae   :  { %7173 = vmatpush.bf16.msra.mxu0 %v10638_v32  ;;  %7186 = vmatpush.bf16.msrb.mxu1 %v10702_v60  ;;  %v10293_v32 = vld [vmem:[%s18195_s13 + $0x180] sm:$0xf]  ;;  %v10502_v54 = vor.u32 %v11873_v19, %v10501_v38  ;;  %v17146_v38 = vperm.slane %v16626_v11, 3 }
 0x4af   :  { %7143 = vmatpush.bf16.msra.mxu2 %v10542_v63  ;;  %v10294_v60 = vor.u32 %v11821_v48, %v10293_v32  ;;  %v10573_v63 = vld [vmem:[%s18195_s13 + $0x3b0] sm:$0xf]  ;;  %v11889_v48 = vld [vmem:[%s18195_s13 + $0x3a4] sm:$0xf0] }
 0x4b0   :  { %v10574_v26 = vor.u32 %v11891_v49, %v10573_v63  ;;  %v10135_v49 = vld [vmem:[%s18195_s13 + $0x48] sm:$0xf0] }
 0x4b1   :  { %7111 = vmatpush.bf16.msrb.mxu3 %v10294_v60 }
 0x4b2   :  { %7174 = vmatpush.bf16.msra.mxu0 %v10630_v34  ;;  %7187 = vmatpush.bf16.msrb.mxu1 %v10694_v30  ;;  %v11899_v34 = vld [vmem:[%s18195_s13 + $0x3f4] sm:$0xf0]  ;;  %v11969_v30 = vld [vmem:[%s18195_s13 + $0x624] sm:$0xf0] }
 0x4b3   :  { %v10606_v13 = vor.u32 %v11899_v34, %v10605_v10  ;;  %v10886_v12 = vor.u32 %v11969_v30, %v10885_v39  ;;  %7144 = vmatpush.bf16.msra.mxu2 %v10534_v33  ;;  %v10557_v10 = vld [vmem:[%s18195_s13 + $0x390] sm:$0xf]  ;;  %v10486_v33 = vor.u32 %v11869_v23, %v10485_v7  ;;  %v11887_v34 = vld [vmem:[%s18195_s13 + $0x394] sm:$0xf0] }
 0x4b4   :  { %v10558_v39 = vor.u32 %v11887_v34, %v10557_v10  ;;  %v10797_v34 = vld [vmem:[%s18195_s13 + $0x570] sm:$0xf] }
 0x4b5   :  { %7156 = vmatpush.bf16.msra.mxu3 %v10606_v13 }
 0x4b6   :  { %7175 = vmatpush.bf16.msra.mxu0 %v10622_v57  ;;  %7188 = vmatpush.bf16.msrb.mxu1 %v10686_v47  ;;  %v11987_v57 = vld [vmem:[%s18195_s13 + $0x6b4] sm:$0xf0] }
 0x4b7   :  { %v10958_v29 = vor.u32 %v11987_v57, %v10957_v42  ;;  %v11879_v47 = vld [vmem:[%s18195_s13 + $0x354] sm:$0xf0]  ;;  %v11885_v42 = vld [vmem:[%s18195_s13 + $0x384] sm:$0xf0] }
 0x4b8   :  { %v10526_v37 = vor.u32 %v11879_v47, %v10525_v41 }
 0x4b9   :  { %7157 = vmatpush.bf16.msra.mxu3 %v10598_v22  ;;  %v11786_v22 = vld [vmem:[%s18195_s13 + $0x74] sm:$0xf] }
 0x4ba   :  { %7176 = vmatpush.bf16.msra.mxu0 %v10614_v46  ;;  %7189 = vmatpush.bf16.msrb.mxu1 %v10678_v51  ;;  %v10878_v46 = vor.u32 %v11967_v9, %v10877_v4  ;;  %v10949_v51 = vld [vmem:[%s18195_s13 + $0x6a0] sm:$0xf] }
 0x4bb   :  { %7145 = vmatpush.bf16.msra.mxu2 %v10526_v37 }
 0x4be   :  { %7221 = vmatpush.bf16.msrb.mxu0 %v10926_v43  ;;  %7234 = vmatpush.bf16.msra.mxu1 %v10990_v28  ;;  %v11985_v43 = vld [vmem:[%s18195_s13 + $0x6a4] sm:$0xf0]  ;;  %v10517_v28 = vld [vmem:[%s18195_s13 + $0x340] sm:$0xf] }
 0x4bf   :  { %v10950_v31 = vor.u32 %v11985_v43, %v10949_v51  ;;  %v10518_v14 = vor.u32 %v11877_v15, %v10517_v28  ;;  %v11784_v28 = vld [vmem:[%s18195_s13 + $0x64] sm:$0xf] }
 0x4c1   :  { %7146 = vmatpush.bf16.msra.mxu2 %v10518_v14  ;;  %v11802_v14 = vld [vmem:[%s18195_s13 + $0xf4] sm:$0xf] }
 0x4c2   :  { %7222 = vmatpush.bf16.msrb.mxu0 %v10918_v53  ;;  %7235 = vmatpush.bf16.msra.mxu1 %v10982_v1  ;;  %v11895_v53 = vld [vmem:[%s18195_s13 + $0x3d4] sm:$0xf0]  ;;  %v11965_v1 = vld [vmem:[%s18195_s13 + $0x604] sm:$0xf0] }
 0x4c3   :  { %v10590_v20 = vor.u32 %v11895_v53, %v10589_v52  ;;  %v10870_v62 = vor.u32 %v11965_v1, %v10869_v58  ;;  %v10151_v52 = vld [vmem:[%s18195_s13 + $0x68] sm:$0xf0]  ;;  %v10223_v53 = vld [vmem:[%s18195_s13 + $0xf8] sm:$0xf0] }
 0x4c5   :  { %7158 = vmatpush.bf16.msra.mxu3 %v10590_v20 }
 0x4c6   :  { %7223 = vmatpush.bf16.msrb.mxu0 %v10910_v0  ;;  %7236 = vmatpush.bf16.msra.mxu1 %v10974_v59  ;;  %v11983_v0 = vld [vmem:[%s18195_s13 + $0x694] sm:$0xf0] }
 0x4c7   :  { %v10942_v59 = vor.u32 %v11983_v0, %v10941_v61  ;;  %v17127_v0 = vperm.slane %v16626_v11, 2  ;;  %v10207_v11 = vld [vmem:[%s18195_s13 + $0xd8] sm:$0xf0] }
 0x4c9   :  { %7159 = vmatpush.bf16.msra.mxu3 %v10582_v50  ;;  %v10215_v50 = vld [vmem:[%s18195_s13 + $0xe8] sm:$0xf0] }
 0x4ca   :  { %7224 = vmatpush.bf16.msrb.mxu0 %v10902_v5  ;;  %7237 = vmatpush.bf16.msra.mxu1 %v10966_v16  ;;  %v10510_v5 = vor.u32 %v11875_v55, %v10509_v2  ;;  %v10565_v16 = vld [vmem:[%s18195_s13 + $0x3a0] sm:$0xf]  ;;  %v10154_v55 = vor.u32 %v11784_v28, %v10151_v52  ;;  %v10119_v28 = vld [vmem:[%s18195_s13 + $0x28] sm:$0xf0] }
 0x4cb   :  { %v10566_v60 = vor.u32 %v11889_v48, %v10565_v16 }
 0x4cc   :  { %7147 = vmatpush.bf16.msra.mxu2 %v10510_v5  ;;  %v10226_v5 = vor.u32 %v11802_v14, %v10223_v53  ;;  %v11794_v14 = vld [vmem:[%s18195_s13 + $0xb4] sm:$0xf]  ;;  %v10191_v53 = vld [vmem:[%s18195_s13 + $0xb8] sm:$0xf0] }
 0x4cd   :  { %7160 = vmatpush.bf16.msra.mxu3 %v10574_v26 }
 0x4ce   :  { %7225 = vmatpush.bf16.msrb.mxu0 %v10894_v56  ;;  %7238 = vmatpush.bf16.msra.mxu1 %v10958_v29  ;;  %v10493_v56 = vld [vmem:[%s18195_s13 + $0x310] sm:$0xf] }
 0x4cf   :  { %v10494_v32 = vor.u32 %v11871_v25, %v10493_v56  ;;  %v11798_v56 = vld [vmem:[%s18195_s13 + $0xd4] sm:$0xf] }
 0x4d0   :  { %7148 = vmatpush.bf16.msra.mxu2 %v10502_v54  ;;  %v11780_v54 = vld [vmem:[%s18195_s13 + $0x44] sm:$0xf] }
 0x4d1   :  { %7161 = vmatpush.bf16.msra.mxu3 %v10566_v60  ;;  %v10138_v10 = vor.u32 %v11780_v54, %v10135_v49  ;;  %v10111_v54 = vld [vmem:[%s18195_s13 + $0x18] sm:$0xf0]  ;;  %v11792_v49 = vld [vmem:[%s18195_s13 + $0xa4] sm:$0xf] }
 0x4d2   :  { %7226 = vmatpush.bf16.msrb.mxu0 %v10886_v12  ;;  %7239 = vmatpush.bf16.msra.mxu1 %v10950_v31  ;;  %v10549_v12 = vld [vmem:[%s18195_s13 + $0x380] sm:$0xf] }
 0x4d3   :  { %v10550_v57 = vor.u32 %v11885_v42, %v10549_v12  ;;  %v11778_v12 = vld [vmem:[%s18195_s13 + $0x34] sm:$0xf]  ;;  %v10127_v42 = vld [vmem:[%s18195_s13 + $0x38] sm:$0xf0] }
 0x4d4   :  { %7149 = vmatpush.bf16.msra.mxu2 %v10494_v32 }
 0x4d5   :  { %7162 = vmatpush.bf16.msra.mxu3 %v10558_v39 }
 0x4d6   :  { %7227 = vmatpush.bf16.msrb.mxu0 %v10878_v46  ;;  %7240 = vmatpush.bf16.msra.mxu1 %v10942_v59  ;;  %v10159_v46 = vld [vmem:[%s18195_s13 + $0x78] sm:$0xf0] }
 0x4d7   :  { %v10162_v31 = vor.u32 %v11786_v22, %v10159_v46 }
 0x4d8   :  { %7150 = vmatpush.bf16.msra.mxu2 %v10486_v33  ;;  %v10210_v33 = vor.u32 %v11798_v56, %v10207_v11 }
 0x4d9   :  { %7163 = vmatpush.bf16.msra.mxu3 %v10550_v57  ;;  %v11796_v57 = vld [vmem:[%s18195_s13 + $0xc4] sm:$0xf] }
 0x4da   :  { %7228 = vmatpush.bf16.msrb.mxu0 %v10870_v62  ;;  %7241 = vmatpush.bf16.msra.mxu1 %v10934_v21 }
 0x4e9   :  { %v5329_v30 = vpop.f32.mrf.mxu0  ;;  %v5348_v13 = vpop.f32.mrf.mxu1 }
 0x4ea   :  { %v5330_v29 = vadd.f32 %v5329_v30, %v16644_v36 }
 0x4ec   :  { %v5349_v44 = vadd.f32 %v5348_v13, %v5330_v29  ;;  %v11947_v13 = vld [vmem:[%s18195_s13 + $0x574] sm:$0xf0]  ;;  %v10199_v29 = vld [vmem:[%s18195_s13 + $0xc8] sm:$0xf0] }
 0x4ee   :  { %v5475_v51 = vmax.f32 %v5349_v44, 0.0  ;;  %v10798_v44 = vor.u32 %v11947_v13, %v10797_v34  ;;  %v10103_v34 = vld [vmem:[%s18195_s13 + $0x8] sm:$0xf0]  ;;  %v10175_v13 = vld [vmem:[%s18195_s13 + $0x98] sm:$0xf0] }
 0x4f0   :  { %v5367_v41 = vpop.f32.mrf.mxu2  ;;  %v5386_v47 = vpop.f32.mrf.mxu3 }
 0x4f1   :  { %v5368_v37 = vadd.f32 %v5367_v41, %v16629_v45  ;;  %v5331_v8 = vpop.f32.mrf.mxu0  ;;  %v5350_v4 = vpop.f32.mrf.mxu1 }
 0x4f2   :  { %v5332_v62 = vadd.f32 %v5331_v8, %v16644_v36  ;;  %v11800_v36 = vld [vmem:[%s18195_s13 + $0xe4] sm:$0xf]  ;;  %v10789_v8 = vld [vmem:[%s18195_s13 + $0x560] sm:$0xf] }
 0x4f3   :  { %v5387_v9 = vadd.f32 %v5386_v47, %v5368_v37  ;;  %v10218_v63 = vor.u32 %v11800_v36, %v10215_v50  ;;  %v10130_v37 = vor.u32 %v11778_v12, %v10127_v42 }
 0x4f4   :  { %v5351_v40 = vadd.f32 %v5350_v4, %v5332_v62  ;;  %v11945_v4 = vld [vmem:[%s18195_s13 + $0x564] sm:$0xf0] }
 0x4f5   :  { %v5476_v43 = vmax.f32 %v5387_v9, 0.0  ;;  %v10861_v9 = vld [vmem:[%s18195_s13 + $0x5f0] sm:$0xf] }
 0x4f6   :  { %v5479_v32 = vmax.f32 %v5351_v40, 0.0  ;;  %v10194_v40 = vor.u32 %v11794_v14, %v10191_v53  ;;  %v11788_v14 = vld [vmem:[%s18195_s13 + $0x84] sm:$0xf]  ;;  %v10167_v53 = vld [vmem:[%s18195_s13 + $0x88] sm:$0xf0] }
 0x4f7   :  { %v17111_v15 = vpack.c.bf16 %v5476_v43, %v5475_v51  ;;  %v10202_v51 = vor.u32 %v11796_v57, %v10199_v29  ;;  %v11963_v43 = vld [vmem:[%s18195_s13 + $0x5f4] sm:$0xf0]  ;;  %v11850_v29 = vld [vmem:[%s18195_s13 + $0x274] sm:$0xf] }
 0x4f8   :  { %v5369_v58 = vpop.f32.mrf.mxu2  ;;  %v5388_v1 = vpop.f32.mrf.mxu3 }
 0x4f9   :  { %v5508_v20 = vunpack.c.h.b16 %v17111_v15  ;;  %v5370_v61 = vadd.f32 %v5369_v58, %v16629_v45  ;;  %7177 = vmatmul.bf16.vlgmr.msra.gmra.mxu0 %v17111_v15  ;;  %v5400_v59 = vpop.f32.mrf.mxu0  ;;  %v5419_v2 = vpop.f32.mrf.mxu1  ;;  %v10143_v45 = vld [vmem:[%s18195_s13 + $0x58] sm:$0xf0] }
 0x4fa   :  { %7273 = vmatpush.bf16.msra.mxu0 %v10162_v31  ;;  %v5401_v21 = vadd.f32 %v5400_v59, %v17127_v0  ;;  %v10146_v19 = vor.u32 %v11782_v17, %v10143_v45  ;;  %v11776_v31 = vld [vmem:[%s18195_s13 + $0x24] sm:$0xf]  ;;  %v10781_v17 = vld [vmem:[%s18195_s13 + $0x550] sm:$0xf] }
 0x4fb   :  { %v17132_v3 = vpack.c.b16 %v5508_v20, %v5508_v20  ;;  %v5389_v18 = vadd.f32 %v5388_v1, %v5370_v61 }
 0x4fc   :  { %v5420_v48 = vadd.f32 %v5419_v2, %v5401_v21  ;;  %v10790_v2 = vor.u32 %v11945_v4, %v10789_v8  ;;  %v10853_v21 = vld [vmem:[%s18195_s13 + $0x5e0] sm:$0xf]  ;;  %v11939_v8 = vld [vmem:[%s18195_s13 + $0x534] sm:$0xf0] }
 0x4fd   :  { %7190 = vmatmul.bf16.vlgmr.msrb.gmra.mxu1 %v17132_v3  ;;  %v5480_v26 = vmax.f32 %v5389_v18, 0.0  ;;  %v11943_v18 = vld [vmem:[%s18195_s13 + $0x554] sm:$0xf0] }
 0x4fe   :  { %7274 = vmatpush.bf16.msra.mxu0 %v10154_v55  ;;  %7286 = vmatpush.bf16.msrb.mxu1 %v10226_v5  ;;  %v5469_v41 = vmax.f32 %v5420_v48, 0.0  ;;  %v10862_v55 = vor.u32 %v11963_v43, %v10861_v9  ;;  %v10122_v5 = vor.u32 %v11776_v31, %v10119_v28  ;;  %v10782_v11 = vor.u32 %v11943_v18, %v10781_v17  ;;  %v10845_v48 = vld [vmem:[%s18195_s13 + $0x5d0] sm:$0xf]  ;;  %v11957_v43 = vld [vmem:[%s18195_s13 + $0x5c4] sm:$0xf0] }
 0x4ff   :  { %v17164_v39 = vpack.c.bf16 %v5480_v26, %v5479_v32  ;;  %v10183_v26 = vld [vmem:[%s18195_s13 + $0xa8] sm:$0xf0]  ;;  %v11941_v32 = vld [vmem:[%s18195_s13 + $0x544] sm:$0xf0]  ;;  %v5779_v31 = vld [vmem:[%s18197_s14] sm:$0x3] }
 0x500   :  { %v5438_v25 = vpop.f32.mrf.mxu2  ;;  %v5457_v16 = vpop.f32.mrf.mxu3  ;;  %v10757_v17 = vld [vmem:[%s18195_s13 + $0x520] sm:$0xf] }
 0x501   :  { %v5439_v60 = vadd.f32 %v5438_v25, %v17146_v38  ;;  %v5402_v7 = vpop.f32.mrf.mxu0  ;;  %v5421_v23 = vpop.f32.mrf.mxu1  ;;  %v5516_v22 = vunpack.c.h.b16 %v17164_v39 }
 0x502   :  { %7275 = vmatpush.bf16.msra.mxu0 %v10146_v19  ;;  %7287 = vmatpush.bf16.msrb.mxu1 %v10218_v63  ;;  %v5403_v1 = vadd.f32 %v5402_v7, %v17127_v0  ;;  %v11961_v19 = vld [vmem:[%s18195_s13 + $0x5e4] sm:$0xf0]  ;;  %v11774_v63 = vld [vmem:[%s18195_s13 + $0x14] sm:$0xf] }
 0x503   :  { %v5458_v30 = vadd.f32 %v5457_v16, %v5439_v60  ;;  %v17223_v45 = vpack.c.b16 %v5516_v22, %v5516_v22  ;;  %v10854_v25 = vor.u32 %v11961_v19, %v10853_v21  ;;  %v10773_v16 = vld [vmem:[%s18195_s13 + $0x540] sm:$0xf]  ;;  %v10114_v7 = vor.u32 %v11774_v63, %v10111_v54  ;;  %v11937_v21 = vld [vmem:[%s18195_s13 + $0x524] sm:$0xf0]  ;;  %v10829_v19 = vld [vmem:[%s18195_s13 + $0x5b0] sm:$0xf] }
 0x504   :  { %v5422_v56 = vadd.f32 %v5421_v23, %v5403_v1  ;;  %v10186_v23 = vor.u32 %v11792_v49, %v10183_v26  ;;  %v10407_v1 = vld [vmem:[%s18195_s13 + $0x268] sm:$0xf0]  ;;  %v11955_v63 = vld [vmem:[%s18195_s13 + $0x5b4] sm:$0xf0]  ;;  %v11846_v26 = vld [vmem:[%s18195_s13 + $0x254] sm:$0xf] }
 0x505   :  { %v5470_v47 = vmax.f32 %v5458_v30, 0.0  ;;  %v11790_v30 = vld [vmem:[%s18195_s13 + $0x94] sm:$0xf] }
 0x506   :  { %7276 = vmatpush.bf16.msra.mxu0 %v10138_v10  ;;  %7288 = vmatpush.bf16.msrb.mxu1 %v10210_v33  ;;  %v11959_v10 = vld [vmem:[%s18195_s13 + $0x5d4] sm:$0xf0]  ;;  %v11772_v33 = vld [vmem:[%s18195_s13 + $0x4] sm:$0xf]  ;;  %v5473_v12 = vmax.f32 %v5422_v56, 0.0  ;;  %v10178_v22 = vor.u32 %v11790_v30, %v10175_v13 }
 0x507   :  { %v17191_v46 = vpack.c.bf16 %v5470_v47, %v5469_v41  ;;  %v10415_v41 = vld [vmem:[%s18195_s13 + $0x278] sm:$0xf0]  ;;  %v10774_v47 = vor.u32 %v11941_v32, %v10773_v16  ;;  %v10106_v9 = vor.u32 %v11772_v33, %v10103_v34  ;;  %v11864_v32 = vld [vmem:[%s18195_s13 + $0x2e4] sm:$0xf]  ;;  %v11935_v30 = vld [vmem:[%s18195_s13 + $0x514] sm:$0xf0] }
 0x508   :  { %v5440_v52 = vpop.f32.mrf.mxu2  ;;  %v5459_v59 = vpop.f32.mrf.mxu3  ;;  %v10399_v16 = vld [vmem:[%s18195_s13 + $0x258] sm:$0xf0]  ;;  %v10821_v13 = vld [vmem:[%s18195_s13 + $0x5a0] sm:$0xf] }
 0x509   :  { %v5496_v58 = vunpack.c.h.b16 %v17191_v46  ;;  %v5441_v20 = vadd.f32 %v5440_v52, %v17146_v38  ;;  %7099 = vmatmul.bf16.vlgmr.msrb.gmra.mxu2 %v17191_v46  ;;  %7229 = vmatmul.bf16.vlgmr.msrb.gmra.mxu0 %v17164_v39  ;;  %v17213_v62 = vpop.f32.mrf.mxu0  ;;  %v17215_v61 = vpop.f32.mrf.mxu1  ;;  %v10418_v52 = vor.u32 %v11850_v29, %v10415_v41  ;;  %v10402_v41 = vor.u32 %v11846_v26, %v10399_v16  ;;  %v11840_v16 = vld [vmem:[%s18195_s13 + $0x224] sm:$0xf] }
 0x50a   :  { %7195 = vmatpush.bf16.msrb.mxu2 %v10798_v44  ;;  %7277 = vmatpush.bf16.msra.mxu0 %v10130_v37  ;;  %v10846_v44 = vor.u32 %v11959_v10, %v10845_v48  ;;  %v10765_v37 = vld [vmem:[%s18195_s13 + $0x530] sm:$0xf]  ;;  %v5406_v56 = vadd.f32 %v17213_v62, %v17127_v0  ;;  %v10471_v48 = vld [vmem:[%s18195_s13 + $0x2e8] sm:$0xf0] }
 0x50b   :  { %v17225_v36 = vpack.c.b16 %v5496_v58, %v5496_v58  ;;  %v5460_v50 = vadd.f32 %v5459_v59, %v5441_v20  ;;  %7289 = vmatpush.bf16.msrb.mxu1 %v10202_v51  ;;  %v10837_v51 = vld [vmem:[%s18195_s13 + $0x5c0] sm:$0xf]  ;;  %v11848_v58 = vld [vmem:[%s18195_s13 + $0x264] sm:$0xf]  ;;  %v11866_v20 = vld [vmem:[%s18195_s13 + $0x2f4] sm:$0xf] }
 0x50c   :  { %v10479_v59 = vld [vmem:[%s18195_s13 + $0x2f8] sm:$0xf0]  ;;  %v10410_v54 = vor.u32 %v11848_v58, %v10407_v1  ;;  %v10749_v10 = vld [vmem:[%s18195_s13 + $0x510] sm:$0xf]  ;;  %v12011_v1 = vld [vmem:[%s18195_s13 + $0x774] sm:$0xf0] }
 0x50d   :  { %7112 = vmatmul.bf16.vlgmr.msrb.gmra.mxu3 %v17225_v36  ;;  %7242 = vmatmul.bf16.vlgmr.msra.gmra.mxu1 %v17223_v45  ;;  %v5474_v60 = vmax.f32 %v5460_v50, 0.0  ;;  %v10482_v49 = vor.u32 %v11866_v20, %v10479_v59  ;;  %v10383_v20 = vld [vmem:[%s18195_s13 + $0x238] sm:$0xf0] }
 0x50e   :  { %7196 = vmatpush.bf16.msrb.mxu2 %v10790_v2  ;;  %7208 = vmatpush.bf16.msrb.mxu3 %v10862_v55  ;;  %v10766_v2 = vor.u32 %v11939_v8, %v10765_v37  ;;  %v10838_v55 = vor.u32 %v11957_v43, %v10837_v51  ;;  %v10391_v37 = vld [vmem:[%s18195_s13 + $0x248] sm:$0xf0]  ;;  %v11862_v8 = vld [vmem:[%s18195_s13 + $0x2d4] sm:$0xf]  ;;  %v11933_v43 = vld [vmem:[%s18195_s13 + $0x504] sm:$0xf0] }
 0x50f   :  { %7278 = vmatpush.bf16.msra.mxu0 %v10122_v5  ;;  %7290 = vmatpush.bf16.msrb.mxu1 %v10194_v40  ;;  %v17287_v4 = vpack.c.bf16 %v5474_v60, %v5473_v12  ;;  %v5781_v5 = vperm.slane %v5779_v31, 0  ;;  %v10170_v40 = vor.u32 %v11788_v14, %v10167_v53  ;;  %v11953_v12 = vld [vmem:[%s18195_s13 + $0x5a4] sm:$0xf0]  ;;  %v10813_v31 = vld [vmem:[%s18195_s13 + $0x590] sm:$0xf] }
 0x510   :  { %v5443_v28 = vpop.f32.mrf.mxu2  ;;  %v5462_v60 = vpop.f32.mrf.mxu3  ;;  %v10822_v51 = vor.u32 %v11953_v12, %v10821_v13  ;;  %v11053_v14 = vld [vmem:[%s18195_s13 + $0x770] sm:$0xf] }
 0x511   :  { %v17271_v42 = vpop.f32.mrf.mxu0  ;;  %v17273_v57 = vpop.f32.mrf.mxu1  ;;  %v5504_v18 = vunpack.c.h.b16 %v17287_v4  ;;  %v5444_v50 = vadd.f32 %v5443_v28, %v17146_v38 }
 0x512   :  { %7197 = vmatpush.bf16.msrb.mxu2 %v10782_v11  ;;  %7209 = vmatpush.bf16.msrb.mxu3 %v10854_v25 }
 0x513   :  { %7279 = vmatpush.bf16.msra.mxu0 %v10114_v7  ;;  %7291 = vmatpush.bf16.msrb.mxu1 %v10186_v23  ;;  %v10758_v7 = vor.u32 %v11937_v21, %v10757_v17  ;;  %v10830_v23 = vor.u32 %v11955_v63, %v10829_v19  ;;  %v17348_v33 = vpack.c.b16 %v5504_v18, %v5504_v18  ;;  %v10455_v17 = vld [vmem:[%s18195_s13 + $0x2c8] sm:$0xf0]  ;;  %v11949_v63 = vld [vmem:[%s18195_s13 + $0x584] sm:$0xf0] }
 0x514   :  { %v5463_v34 = vadd.f32 %v5462_v60, %v5444_v50  ;;  %v11054_v19 = vor.u32 %v12011_v1, %v11053_v14  ;;  %v10447_v60 = vld [vmem:[%s18195_s13 + $0x2b8] sm:$0xf0]  ;;  %v11836_v1 = vld [vmem:[%s18195_s13 + $0x204] sm:$0xf] }
 0x516   :  { %7198 = vmatpush.bf16.msrb.mxu2 %v10774_v47  ;;  %7210 = vmatpush.bf16.msrb.mxu3 %v10846_v44  ;;  %v10474_v47 = vor.u32 %v11864_v32, %v10471_v48  ;;  %v5425_v44 = vadd.f32 %v17215_v61, %v5406_v56  ;;  %v10741_v61 = vld [vmem:[%s18195_s13 + $0x500] sm:$0xf]  ;;  %v5478_v28 = vmax.f32 %v5463_v34, 0.0  ;;  %v10375_v32 = vld [vmem:[%s18195_s13 + $0x228] sm:$0xf0] }
 0x517   :  { %7280 = vmatpush.bf16.msra.mxu0 %v10106_v9  ;;  %7292 = vmatpush.bf16.msrb.mxu1 %v10178_v22  ;;  %v10463_v9 = vld [vmem:[%s18195_s13 + $0x2d8] sm:$0xf0]  ;;  %v10750_v22 = vor.u32 %v11935_v30, %v10749_v10  ;;  %v10742_v18 = vor.u32 %v11933_v43, %v10741_v61  ;;  %v11858_v48 = vld [vmem:[%s18195_s13 + $0x2b4] sm:$0xf]  ;;  %v11037_v34 = vld [vmem:[%s18195_s13 + $0x750] sm:$0xf]  ;;  %v10378_v13 = vor.u32 %v11840_v16, %v10375_v32 }
 0x518   :  { %v10466_v58 = vor.u32 %v11862_v8, %v10463_v9  ;;  %v5477_v59 = vmax.f32 %v5425_v44, 0.0  ;;  %v12007_v30 = vld [vmem:[%s18195_s13 + $0x754] sm:$0xf0]  ;;  %v10450_v12 = vor.u32 %v11858_v48, %v10447_v60  ;;  %v10367_v8 = vld [vmem:[%s18195_s13 + $0x218] sm:$0xf0] }
 0x519   :  { %7151 = vmatmul.bf16.vlgmr.msra.gmra.mxu2 %v17287_v4  ;;  %v7074_v11 = vpop.f32.mrf.mxu0  ;;  %v7087_v25 = vpop.f32.mrf.mxu1  ;;  %v11856_v9 = vld [vmem:[%s18195_s13 + $0x2a4] sm:$0xf]  ;;  %v11038_v61 = vor.u32 %v12007_v30, %v11037_v34  ;;  %v10423_v16 = vld [vmem:[%s18195_s13 + $0x288] sm:$0xf0]  ;;  %v11930_v60 = vld [vmem:[%s18195_s13 + $0x4f4] sm:$0xf] }
 0x51a   :  { %7199 = vmatpush.bf16.msrb.mxu2 %v10766_v2  ;;  %7211 = vmatpush.bf16.msrb.mxu3 %v10838_v55  ;;  %v7075_v62 = vadd.f32 %v7074_v11, %v5781_v5  ;;  %v11860_v5 = vld [vmem:[%s18195_s13 + $0x2c4] sm:$0xf]  ;;  %v17410_v21 = vpack.c.bf16 %v5478_v28, %v5477_v59  ;;  %v11117_v11 = vld [vmem:[%s18195_s13 + $0x7f0] sm:$0xf]  ;;  %v12005_v28 = vld [vmem:[%s18195_s13 + $0x744] sm:$0xf0] }
 0x51b   :  { %7325 = vmatpush.bf16.msrb.mxu0 %v10418_v52  ;;  %7293 = vmatpush.bf16.msrb.mxu1 %v10170_v40  ;;  %v11951_v52 = vld [vmem:[%s18195_s13 + $0x594] sm:$0xf0]  ;;  %v10805_v40 = vld [vmem:[%s18195_s13 + $0x580] sm:$0xf]  ;;  %v10458_v56 = vor.u32 %v11860_v5, %v10455_v17  ;;  %v10431_v59 = vld [vmem:[%s18195_s13 + $0x298] sm:$0xf0] }
 0x51c   :  { %7281 = vmatmul.bf16.vlgmr.msra.gmra.mxu0 %v16700_v6  ;;  %v17360_v29 = vadd.f32 %v7087_v25, %v7075_v62  ;;  %v11844_v6 = vld [vmem:[%s18195_s13 + $0x244] sm:$0xf]  ;;  %v10814_v50 = vor.u32 %v11951_v52, %v10813_v31  ;;  %v12027_v25 = vld [vmem:[%s18195_s13 + $0x7f4] sm:$0xf0]  ;;  %v10806_v62 = vor.u32 %v11949_v63, %v10805_v40  ;;  %v11029_v31 = vld [vmem:[%s18195_s13 + $0x740] sm:$0xf] }
 0x51d   :  { %7164 = vmatmul.bf16.vlgmr.msra.gmra.mxu3 %v17348_v33  ;;  %v10394_v53 = vor.u32 %v11844_v6, %v10391_v37  ;;  %v11118_v10 = vor.u32 %v12027_v25, %v11117_v11  ;;  %v11838_v6 = vld [vmem:[%s18195_s13 + $0x214] sm:$0xf]  ;;  %v11030_v5 = vor.u32 %v12005_v28, %v11029_v31  ;;  %v12003_v63 = vld [vmem:[%s18195_s13 + $0x734] sm:$0xf0]  ;;  %v11852_v25 = vld [vmem:[%s18195_s13 + $0x284] sm:$0xf] }
 0x51e   :  { %7200 = vmatpush.bf16.msrb.mxu2 %v10758_v7  ;;  %7212 = vmatpush.bf16.msrb.mxu3 %v10830_v23  ;;  %v5512_v7 = vunpack.c.h.b16 %v17410_v21  ;;  %v10370_v52 = vor.u32 %v11838_v6, %v10367_v8  ;;  %v11912_v32 = vld [vmem:[%s18195_s13 + $0x464] sm:$0xf]  ;;  %v10663_v48 = vld [vmem:[%s18195_s13 + $0x468] sm:$0xf0]  ;;  %v10426_v34 = vor.u32 %v11852_v25, %v10423_v16  ;;  %v11013_v30 = vld [vmem:[%s18195_s13 + $0x720] sm:$0xf]  ;;  %v5464_v8 = vpop.f32.mrf.mxu3 }
 0x51f   :  { %7326 = vmatpush.bf16.msrb.mxu0 %v10410_v54  ;;  %7338 = vmatpush.bf16.msra.mxu1 %v10482_v49  ;;  %v11045_v54 = vld [vmem:[%s18195_s13 + $0x760] sm:$0xf]  ;;  %v12009_v49 = vld [vmem:[%s18195_s13 + $0x764] sm:$0xf0]  ;;  %v11910_v6 = vld [vmem:[%s18195_s13 + $0x454] sm:$0xf] }
 0x520   :  { %7294 = vmatmul.bf16.vlgmr.msrb.gmra.mxu1 %v16756_v35  ;;  %v11842_v35 = vld [vmem:[%s18195_s13 + $0x234] sm:$0xf]  ;;  %v11046_v23 = vor.u32 %v12009_v49, %v11045_v54  ;;  %v11093_v54 = vld [vmem:[%s18195_s13 + $0x7c0] sm:$0xf]  ;;  %v12021_v49 = vld [vmem:[%s18195_s13 + $0x7c4] sm:$0xf0] }
 0x521   :  { %v7076_v2 = vpop.f32.mrf.mxu0  ;;  %v7089_v55 = vpop.f32.mrf.mxu1  ;;  %v10386_v26 = vor.u32 %v11842_v35, %v10383_v20  ;;  %v10359_v35 = vld [vmem:[%s18195_s13 + $0x208] sm:$0xf0]  ;;  %v11854_v20 = vld [vmem:[%s18195_s13 + $0x294] sm:$0xf] }
 0x522   :  { %7201 = vmatpush.bf16.msrb.mxu2 %v10750_v22  ;;  %7213 = vmatpush.bf16.msrb.mxu3 %v10822_v51  ;;  %v10439_v22 = vld [vmem:[%s18195_s13 + $0x2a8] sm:$0xf0]  ;;  %v17469_v51 = vpack.c.b16 %v5512_v7, %v5512_v7  ;;  %v11914_v2 = vld [vmem:[%s18195_s13 + $0x474] sm:$0xf]  ;;  %v10671_v55 = vld [vmem:[%s18195_s13 + $0x478] sm:$0xf0]  ;;  %v10362_v40 = vor.u32 %v11836_v1, %v10359_v35 }
 0x523   :  { %7327 = vmatpush.bf16.msrb.mxu0 %v10402_v41  ;;  %7339 = vmatpush.bf16.msra.mxu1 %v10474_v47  ;;  %v11109_v41 = vld [vmem:[%s18195_s13 + $0x7e0] sm:$0xf]  ;;  %v12025_v47 = vld [vmem:[%s18195_s13 + $0x7e4] sm:$0xf0]  ;;  %v10442_v14 = vor.u32 %v11856_v9, %v10439_v22  ;;  %v10674_v11 = vor.u32 %v11914_v2, %v10671_v55  ;;  %v10655_v9 = vld [vmem:[%s18195_s13 + $0x458] sm:$0xf0] }
 0x524   :  { %v11110_v43 = vor.u32 %v12025_v47, %v11109_v41  ;;  %v12019_v47 = vld [vmem:[%s18195_s13 + $0x7b4] sm:$0xf0]  ;;  %v11928_v22 = vld [vmem:[%s18195_s13 + $0x4e4] sm:$0xf]  ;;  %v10647_v35 = vld [vmem:[%s18195_s13 + $0x448] sm:$0xf0] }
 0x525   :  { %v11908_v1 = vld [vmem:[%s18195_s13 + $0x444] sm:$0xf] }
 0x526   :  { %7202 = vmatpush.bf16.msrb.mxu2 %v10742_v18  ;;  %7214 = vmatpush.bf16.msrb.mxu3 %v10814_v50  ;;  %v11021_v18 = vld [vmem:[%s18195_s13 + $0x730] sm:$0xf]  ;;  %v5445_v50 = vpop.f32.mrf.mxu2 }
 0x527   :  { %7328 = vmatpush.bf16.msrb.mxu0 %v10394_v53  ;;  %7340 = vmatpush.bf16.msra.mxu1 %v10466_v58  ;;  %v11101_v53 = vld [vmem:[%s18195_s13 + $0x7d0] sm:$0xf]  ;;  %v12023_v58 = vld [vmem:[%s18195_s13 + $0x7d4] sm:$0xf0]  ;;  %v5446_v7 = vadd.f32 %v5445_v50, %v17146_v38  ;;  %v11997_v50 = vld [vmem:[%s18195_s13 + $0x704] sm:$0xf0] }
 0x528   :  { %v11102_v17 = vor.u32 %v12023_v58, %v11101_v53  ;;  %v11085_v38 = vld [vmem:[%s18195_s13 + $0x7b0] sm:$0xf]  ;;  %v11999_v53 = vld [vmem:[%s18195_s13 + $0x714] sm:$0xf0]  ;;  %v10658_v58 = vor.u32 %v11910_v6, %v10655_v9  ;;  %v10703_v6 = vld [vmem:[%s18195_s13 + $0x4b8] sm:$0xf0] }
 0x529   :  { %7203 = vmatmul.bf16.vlgmr.msrb.gmra.mxu2 %v17410_v21  ;;  %v17456_v44 = vpop.f32.mrf.mxu0  ;;  %v17458_v37 = vpop.f32.mrf.mxu1  ;;  %v5465_v31 = vadd.f32 %v5464_v8, %v5446_v7 }
 0x52a   :  { %7247 = vmatpush.bf16.msra.mxu2 %v11054_v19  ;;  %7215 = vmatpush.bf16.msrb.mxu3 %v10806_v62  ;;  %v10434_v19 = vor.u32 %v11854_v20, %v10431_v59  ;;  %v10735_v62 = vld [vmem:[%s18195_s13 + $0x4f8] sm:$0xf0]  ;;  %v11926_v20 = vld [vmem:[%s18195_s13 + $0x4d4] sm:$0xf] }
 0x52b   :  { %7329 = vmatpush.bf16.msrb.mxu0 %v10386_v26  ;;  %7341 = vmatpush.bf16.msra.mxu1 %v10458_v56  ;;  %v10738_v41 = vor.u32 %v11930_v60, %v10735_v62  ;;  %v10719_v59 = vld [vmem:[%s18195_s13 + $0x4d8] sm:$0xf0]  ;;  %v5482_v55 = vmax.f32 %v5465_v31, 0.0  ;;  %v11061_v60 = vld [vmem:[%s18195_s13 + $0x780] sm:$0xf] }
 0x52c   :  { %v12013_v62 = vld [vmem:[%s18195_s13 + $0x784] sm:$0xf0]  ;;  %v11814_v31 = vld [vmem:[%s18195_s13 + $0x154] sm:$0xf] }
 0x52d   :  { %7216 = vmatmul.bf16.vlgmr.msrb.gmra.mxu3 %v17469_v51  ;;  %v11062_v8 = vor.u32 %v12013_v62, %v11061_v60  ;;  %v11916_v60 = vld [vmem:[%s18195_s13 + $0x484] sm:$0xf]  ;;  %v10679_v62 = vld [vmem:[%s18195_s13 + $0x488] sm:$0xf0] }
 0x52e   :  { %7248 = vmatpush.bf16.msra.mxu2 %v11046_v23  ;;  %7260 = vmatpush.bf16.msra.mxu3 %v11118_v10  ;;  %v11022_v23 = vor.u32 %v12003_v63, %v11021_v18  ;;  %v11094_v10 = vor.u32 %v12021_v49, %v11093_v54  ;;  %v11818_v63 = vld [vmem:[%s18195_s13 + $0x174] sm:$0xf]  ;;  %v10287_v54 = vld [vmem:[%s18195_s13 + $0x178] sm:$0xf0] }
 0x52f   :  { %7330 = vmatpush.bf16.msrb.mxu0 %v10378_v13  ;;  %7342 = vmatpush.bf16.msra.mxu1 %v10450_v12  ;;  %v12001_v13 = vld [vmem:[%s18195_s13 + $0x724] sm:$0xf0]  ;;  %v10666_v12 = vor.u32 %v11912_v32, %v10663_v48  ;;  %v11906_v49 = vld [vmem:[%s18195_s13 + $0x434] sm:$0xf]  ;;  %v10290_v48 = vor.u32 %v11818_v63, %v10287_v54  ;;  %v10927_v63 = vld [vmem:[%s18195_s13 + $0x678] sm:$0xf0] }
 0x530   :  { %v11014_v28 = vor.u32 %v12001_v13, %v11013_v30  ;;  %v10279_v30 = vld [vmem:[%s18195_s13 + $0x168] sm:$0xf0]  ;;  %v11834_v13 = vld [vmem:[%s18195_s13 + $0x1f4] sm:$0xf] }
 0x531   :  { %v7128_v26 = vpop.f32.mrf.mxu0  ;;  %v7141_v56 = vpop.f32.mrf.mxu1 }
 0x532   :  { %7249 = vmatpush.bf16.msra.mxu2 %v11038_v61  ;;  %7261 = vmatpush.bf16.msra.mxu3 %v11110_v43  ;;  %v10727_v61 = vld [vmem:[%s18195_s13 + $0x4e8] sm:$0xf0]  ;;  %v5408_v43 = vadd.f32 %v17271_v42, %v17127_v0  ;;  %v12017_v42 = vld [vmem:[%s18195_s13 + $0x7a4] sm:$0xf0]  ;;  %v10639_v26 = vld [vmem:[%s18195_s13 + $0x438] sm:$0xf0] }
 0x533   :  { %7331 = vmatpush.bf16.msrb.mxu0 %v10370_v52  ;;  %7343 = vmatpush.bf16.msra.mxu1 %v10442_v14  ;;  %v11086_v52 = vor.u32 %v12019_v47, %v11085_v38  ;;  %v11005_v14 = vld [vmem:[%s18195_s13 + $0x710] sm:$0xf]  ;;  %v10730_v0 = vor.u32 %v11928_v22, %v10727_v61  ;;  %v11924_v56 = vld [vmem:[%s18195_s13 + $0x4c4] sm:$0xf]  ;;  %v10631_v38 = vld [vmem:[%s18195_s13 + $0x428] sm:$0xf0] }
 0x534   :  { %v5427_v2 = vadd.f32 %v17273_v57, %v5408_v43  ;;  %v10650_v57 = vor.u32 %v11908_v1, %v10647_v35  ;;  %v11922_v47 = vld [vmem:[%s18195_s13 + $0x4b4] sm:$0xf]  ;;  %v11812_v35 = vld [vmem:[%s18195_s13 + $0x144] sm:$0xf] }
 0x536   :  { %7250 = vmatpush.bf16.msra.mxu2 %v11030_v5  ;;  %7262 = vmatpush.bf16.msra.mxu3 %v11102_v17  ;;  %v11006_v5 = vor.u32 %v11999_v53, %v11005_v14  ;;  %v10997_v17 = vld [vmem:[%s18195_s13 + $0x700] sm:$0xf]  ;;  %v5481_v25 = vmax.f32 %v5427_v2, 0.0  ;;  %v10706_v14 = vor.u32 %v11922_v47, %v10703_v6  ;;  %v10343_v53 = vld [vmem:[%s18195_s13 + $0x1e8] sm:$0xf0]  ;;  %v10682_v47 = vor.u32 %v11916_v60, %v10679_v62 }
 0x537   :  { %7332 = vmatpush.bf16.msrb.mxu0 %v10362_v40  ;;  %7344 = vmatpush.bf16.msra.mxu1 %v10434_v19  ;;  %v11069_v40 = vld [vmem:[%s18195_s13 + $0x790] sm:$0xf]  ;;  %v10722_v19 = vor.u32 %v11926_v20, %v10719_v59  ;;  %v10998_v16 = vor.u32 %v11997_v50, %v10997_v17  ;;  %v10335_v17 = vld [vmem:[%s18195_s13 + $0x1d8] sm:$0xf0]  ;;  %v11900_v50 = vld [vmem:[%s18195_s13 + $0x404] sm:$0xf] }
 0x538   :  { %v17622_v7 = vpack.c.bf16 %v5482_v55, %v5481_v25  ;;  %v10263_v55 = vld [vmem:[%s18195_s13 + $0x148] sm:$0xf0]  ;;  %v11880_v60 = vld [vmem:[%s18195_s13 + $0x364] sm:$0xf] }
 0x539   :  { %v10266_v54 = vor.u32 %v11812_v35, %v10263_v55  ;;  %v10903_v35 = vld [vmem:[%s18195_s13 + $0x648] sm:$0xf0]  ;;  %v10975_v55 = vld [vmem:[%s18195_s13 + $0x6d8] sm:$0xf0] }
 0x53a   :  { %7333 = vmatmul.bf16.vlgmr.msrb.gmra.mxu0 %v16808_v24  ;;  %7251 = vmatpush.bf16.msra.mxu2 %v11022_v23  ;;  %v11077_v24 = vld [vmem:[%s18195_s13 + $0x7a0] sm:$0xf]  ;;  %v10642_v23 = vor.u32 %v11906_v49, %v10639_v26  ;;  %v5520_v22 = vunpack.c.h.b16 %v17622_v7  ;;  %v10535_v62 = vld [vmem:[%s18195_s13 + $0x368] sm:$0xf0] }
 0x53b   :  { %7377 = vmatpush.bf16.msra.mxu0 %v10674_v11  ;;  %7263 = vmatpush.bf16.msra.mxu3 %v11094_v10  ;;  %v11078_v18 = vor.u32 %v12017_v42, %v11077_v24  ;;  %v10711_v11 = vld [vmem:[%s18195_s13 + $0x4c8] sm:$0xf0]  ;;  %v11920_v24 = vld [vmem:[%s18195_s13 + $0x4a4] sm:$0xf] }
 0x53c   :  { %7345 = vmatpush.bf16.msra.mxu1 %v10426_v34  ;;  %v10714_v10 = vor.u32 %v11924_v56, %v10711_v11  ;;  %v11816_v34 = vld [vmem:[%s18195_s13 + $0x164] sm:$0xf]  ;;  %v10695_v42 = vld [vmem:[%s18195_s13 + $0x4a8] sm:$0xf0]  ;;  %v17677_v20 = vpack.c.b16 %v5520_v22, %v5520_v22  ;;  %v11810_v56 = vld [vmem:[%s18195_s13 + $0x134] sm:$0xf] }
 0x53d   :  { %v10282_v9 = vor.u32 %v11816_v34, %v10279_v30  ;;  %v10255_v11 = vld [vmem:[%s18195_s13 + $0x138] sm:$0xf0]  ;;  %v11994_v30 = vld [vmem:[%s18195_s13 + $0x6f4] sm:$0xf] }
 0x53e   :  { %7252 = vmatpush.bf16.msra.mxu2 %v11014_v28  ;;  %v10271_v28 = vld [vmem:[%s18195_s13 + $0x158] sm:$0xf0]  ;;  %v10258_v34 = vor.u32 %v11810_v56, %v10255_v11  ;;  %v10967_v56 = vld [vmem:[%s18195_s13 + $0x6c8] sm:$0xf0] }
 0x53f   :  { %7378 = vmatpush.bf16.msra.mxu0 %v10666_v12  ;;  %7346 = vmatmul.bf16.vlgmr.msra.gmra.mxu1 %v16853_v27  ;;  %v12015_v27 = vld [vmem:[%s18195_s13 + $0x794] sm:$0xf0]  ;;  %v10351_v12 = vld [vmem:[%s18195_s13 + $0x1f8] sm:$0xf0]  ;;  %v10274_v1 = vor.u32 %v11814_v31, %v10271_v28  ;;  %v11992_v28 = vld [vmem:[%s18195_s13 + $0x6e4] sm:$0xf] }
 0x540   :  { %7390 = vmatpush.bf16.msrb.mxu1 %v10738_v41  ;;  %7264 = vmatpush.bf16.msra.mxu3 %v11086_v52  ;;  %v11070_v32 = vor.u32 %v12015_v27, %v11069_v40  ;;  %v11904_v41 = vld [vmem:[%s18195_s13 + $0x424] sm:$0xf]  ;;  %v10354_v61 = vor.u32 %v11834_v13, %v10351_v12  ;;  %v10615_v40 = vld [vmem:[%s18195_s13 + $0x408] sm:$0xf0]  ;;  %v11918_v27 = vld [vmem:[%s18195_s13 + $0x494] sm:$0xf] }
 0x541   :  { %v10634_v43 = vor.u32 %v11904_v41, %v10631_v38  ;;  %v11832_v52 = vld [vmem:[%s18195_s13 + $0x1e4] sm:$0xf]  ;;  %v10618_v26 = vor.u32 %v11900_v50, %v10615_v40  ;;  %v10991_v13 = vld [vmem:[%s18195_s13 + $0x6f8] sm:$0xf0]  ;;  %v10247_v38 = vld [vmem:[%s18195_s13 + $0x128] sm:$0xf0] }
 0x542   :  { %7253 = vmatpush.bf16.msra.mxu2 %v11006_v5  ;;  %v10346_v59 = vor.u32 %v11832_v52, %v10343_v53  ;;  %v11830_v5 = vld [vmem:[%s18195_s13 + $0x1d4] sm:$0xf]  ;;  %v11808_v41 = vld [vmem:[%s18195_s13 + $0x124] sm:$0xf]  ;;  %v10994_v22 = vor.u32 %v11994_v30, %v10991_v13  ;;  %v10983_v52 = vld [vmem:[%s18195_s13 + $0x6e8] sm:$0xf0] }
 0x543   :  { %7379 = vmatpush.bf16.msra.mxu0 %v10658_v58  ;;  %v11902_v58 = vld [vmem:[%s18195_s13 + $0x414] sm:$0xf]  ;;  %v10338_v49 = vor.u32 %v11830_v5, %v10335_v17  ;;  %v10250_v31 = vor.u32 %v11808_v41, %v10247_v38  ;;  %v11804_v17 = vld [vmem:[%s18195_s13 + $0x104] sm:$0xf]  ;;  %v10887_v13 = vld [vmem:[%s18195_s13 + $0x628] sm:$0xf0] }
 0x544   :  { %7391 = vmatpush.bf16.msrb.mxu1 %v10730_v0  ;;  %7265 = vmatpush.bf16.msra.mxu3 %v11078_v18  ;;  %v10623_v0 = vld [vmem:[%s18195_s13 + $0x418] sm:$0xf0]  ;;  %v10698_v18 = vor.u32 %v11920_v24, %v10695_v42  ;;  %v11806_v53 = vld [vmem:[%s18195_s13 + $0x114] sm:$0xf]  ;;  %v10311_v24 = vld [vmem:[%s18195_s13 + $0x1a8] sm:$0xf0]  ;;  %v10986_v42 = vor.u32 %v11992_v28, %v10983_v52 }
 0x545   :  { %v10626_v2 = vor.u32 %v11902_v58, %v10623_v0  ;;  %v11824_v0 = vld [vmem:[%s18195_s13 + $0x1a4] sm:$0xf]  ;;  %v11822_v50 = vld [vmem:[%s18195_s13 + $0x194] sm:$0xf]  ;;  %v10959_v41 = vld [vmem:[%s18195_s13 + $0x6b8] sm:$0xf0] }
 0x546   :  { %7254 = vmatpush.bf16.msra.mxu2 %v10998_v16  ;;  %v10314_v5 = vor.u32 %v11824_v0, %v10311_v24  ;;  %v11968_v30 = vld [vmem:[%s18195_s13 + $0x624] sm:$0xf]  ;;  %v11966_v28 = vld [vmem:[%s18195_s13 + $0x614] sm:$0xf]  ;;  %v10879_v52 = vld [vmem:[%s18195_s13 + $0x618] sm:$0xf0] }
 0x547   :  { %7380 = vmatpush.bf16.msra.mxu0 %v10650_v57  ;;  %v10687_v57 = vld [vmem:[%s18195_s13 + $0x498] sm:$0xf0]  ;;  %v11876_v0 = vld [vmem:[%s18195_s13 + $0x344] sm:$0xf]  ;;  %v10519_v24 = vld [vmem:[%s18195_s13 + $0x348] sm:$0xf0] }
 0x548   :  { %7392 = vmatpush.bf16.msrb.mxu1 %v10722_v19  ;;  %7266 = vmatpush.bf16.msra.mxu3 %v11070_v32  ;;  %v11978_v19 = vld [vmem:[%s18195_s13 + $0x674] sm:$0xf]  ;;  %v10690_v25 = vor.u32 %v11918_v27, %v10687_v57  ;;  %v11828_v32 = vld [vmem:[%s18195_s13 + $0x1c4] sm:$0xf]  ;;  %v10543_v57 = vld [vmem:[%s18195_s13 + $0x378] sm:$0xf0] }
 0x549   :  { %7255 = vmatmul.bf16.vlgmr.msra.gmra.mxu2 %v17622_v7  ;;  %v10930_v16 = vor.u32 %v11978_v19, %v10927_v63  ;;  %v11882_v27 = vld [vmem:[%s18195_s13 + $0x374] sm:$0xf] }
 0x54a   :  { %7299 = vmatpush.bf16.msrb.mxu2 %v10290_v48  ;;  %v10327_v48 = vld [vmem:[%s18195_s13 + $0x1c8] sm:$0xf0]  ;;  %v11970_v63 = vld [vmem:[%s18195_s13 + $0x634] sm:$0xf] }
 0x54b   :  { %7381 = vmatpush.bf16.msra.mxu0 %v10642_v23  ;;  %v11976_v23 = vld [vmem:[%s18195_s13 + $0x664] sm:$0xf]  ;;  %v10330_v12 = vor.u32 %v11828_v32, %v10327_v48  ;;  %v10295_v32 = vld [vmem:[%s18195_s13 + $0x188] sm:$0xf0] }
 0x54c   :  { %7393 = vmatpush.bf16.msrb.mxu1 %v10714_v10  ;;  %7267 = vmatpush.bf16.msra.mxu3 %v11062_v8  ;;  %v10919_v10 = vld [vmem:[%s18195_s13 + $0x668] sm:$0xf0]  ;;  %v11826_v8 = vld [vmem:[%s18195_s13 + $0x1b4] sm:$0xf] }
 0x54d   :  { %v10922_v6 = vor.u32 %v11976_v23, %v10919_v10  ;;  %v11898_v23 = vld [vmem:[%s18195_s13 + $0x3f4] sm:$0xf] }
 0x54e   :  { %7300 = vmatpush.bf16.msrb.mxu2 %v10282_v9  ;;  %v10319_v9 = vld [vmem:[%s18195_s13 + $0x1b8] sm:$0xf0] }
 0x54f   :  { %7382 = vmatpush.bf16.msra.mxu0 %v10634_v43  ;;  %7268 = vmatmul.bf16.vlgmr.msra.gmra.mxu3 %v17677_v20  ;;  %v10911_v43 = vld [vmem:[%s18195_s13 + $0x658] sm:$0xf0] }
 0x550   :  { %7312 = vmatpush.bf16.msrb.mxu3 %v10354_v61  ;;  %7394 = vmatpush.bf16.msrb.mxu1 %v10706_v14  ;;  %v11974_v61 = vld [vmem:[%s18195_s13 + $0x654] sm:$0xf]  ;;  %v10322_v14 = vor.u32 %v11826_v8, %v10319_v9  ;;  %v10890_v8 = vor.u32 %v11968_v30, %v10887_v13  ;;  %v11868_v13 = vld [vmem:[%s18195_s13 + $0x304] sm:$0xf] }
 0x551   :  { %v10914_v58 = vor.u32 %v11974_v61, %v10911_v43  ;;  %v11878_v9 = vld [vmem:[%s18195_s13 + $0x354] sm:$0xf]  ;;  %v11896_v61 = vld [vmem:[%s18195_s13 + $0x3e4] sm:$0xf] }
 0x552   :  { %7301 = vmatpush.bf16.msrb.mxu2 %v10274_v1  ;;  %v11972_v1 = vld [vmem:[%s18195_s13 + $0x644] sm:$0xf] }
 0x553   :  { %7383 = vmatpush.bf16.msra.mxu0 %v10626_v2  ;;  %v11990_v2 = vld [vmem:[%s18195_s13 + $0x6d4] sm:$0xf]  ;;  %v10906_v40 = vor.u32 %v11972_v1, %v10903_v35  ;;  %v10591_v35 = vld [vmem:[%s18195_s13 + $0x3d8] sm:$0xf0] }
 0x554   :  { %7313 = vmatpush.bf16.msrb.mxu3 %v10346_v59  ;;  %7395 = vmatpush.bf16.msrb.mxu1 %v10698_v18  ;;  %v10231_v18 = vld [vmem:[%s18195_s13 + $0x108] sm:$0xf0]  ;;  %v10978_v19 = vor.u32 %v11990_v2, %v10975_v55  ;;  %v11982_v55 = vld [vmem:[%s18195_s13 + $0x694] sm:$0xf] }
 0x555   :  { %v10871_v2 = vld [vmem:[%s18195_s13 + $0x608] sm:$0xf0] }
 0x556   :  { %7302 = vmatpush.bf16.msrb.mxu2 %v10266_v54  ;;  %v10895_v54 = vld [vmem:[%s18195_s13 + $0x638] sm:$0xf0] }
 0x557   :  { %7384 = vmatpush.bf16.msra.mxu0 %v10618_v26  ;;  %v11988_v26 = vld [vmem:[%s18195_s13 + $0x6c4] sm:$0xf]  ;;  %v10898_v48 = vor.u32 %v11970_v63, %v10895_v54  ;;  %v10935_v63 = vld [vmem:[%s18195_s13 + $0x688] sm:$0xf0] }
 0x558   :  { %7314 = vmatpush.bf16.msrb.mxu3 %v10338_v49  ;;  %7396 = vmatpush.bf16.msrb.mxu1 %v10690_v25  ;;  %v10234_v49 = vor.u32 %v11804_v17, %v10231_v18  ;;  %v10546_v25 = vor.u32 %v11882_v27, %v10543_v57  ;;  %v10970_v10 = vor.u32 %v11988_v26, %v10967_v56  ;;  %v11892_v27 = vld [vmem:[%s18195_s13 + $0x3c4] sm:$0xf]  ;;  %v10583_v57 = vld [vmem:[%s18195_s13 + $0x3c8] sm:$0xf0] }
 0x559   :  { %v10522_v17 = vor.u32 %v11876_v0, %v10519_v24  ;;  %v11872_v26 = vld [vmem:[%s18195_s13 + $0x324] sm:$0xf]  ;;  %v10503_v56 = vld [vmem:[%s18195_s13 + $0x328] sm:$0xf0]  ;;  %v11942_v0 = vld [vmem:[%s18195_s13 + $0x554] sm:$0xf] }
 0x55a   :  { %7385 = vmatmul.bf16.vlgmr.msra.gmra.mxu0 %v17111_v15  ;;  %7303 = vmatpush.bf16.msrb.mxu2 %v10258_v34  ;;  %v10239_v15 = vld [vmem:[%s18195_s13 + $0x118] sm:$0xf0] }
 0x55b   :  { %7429 = vmatpush.bf16.msrb.mxu0 %v10930_v16  ;;  %v10242_v59 = vor.u32 %v11806_v53, %v10239_v15  ;;  %v11820_v16 = vld [vmem:[%s18195_s13 + $0x184] sm:$0xf]  ;;  %v10607_v34 = vld [vmem:[%s18195_s13 + $0x3f8] sm:$0xf0] }
 0x55c   :  { %7315 = vmatpush.bf16.msrb.mxu3 %v10330_v12  ;;  %7397 = vmatpush.bf16.msrb.mxu1 %v10682_v47  ;;  %v11986_v12 = vld [vmem:[%s18195_s13 + $0x6b4] sm:$0xf]  ;;  %v10298_v38 = vor.u32 %v11820_v16, %v10295_v32  ;;  %v10538_v47 = vor.u32 %v11880_v60, %v10535_v62  ;;  %v10575_v16 = vld [vmem:[%s18195_s13 + $0x3b8] sm:$0xf0]  ;;  %v10506_v32 = vor.u32 %v11872_v26, %v10503_v56 }
 0x55d   :  { %v10962_v43 = vor.u32 %v11986_v12, %v10959_v41  ;;  %v11870_v60 = vld [vmem:[%s18195_s13 + $0x314] sm:$0xf]  ;;  %v10495_v62 = vld [vmem:[%s18195_s13 + $0x318] sm:$0xf0]  ;;  %v10487_v12 = vld [vmem:[%s18195_s13 + $0x308] sm:$0xf0] }
 0x55e   :  { %7304 = vmatpush.bf16.msrb.mxu2 %v10250_v31  ;;  %v10599_v31 = vld [vmem:[%s18195_s13 + $0x3e8] sm:$0xf0]  ;;  %v11886_v41 = vld [vmem:[%s18195_s13 + $0x394] sm:$0xf]  ;;  %v10783_v24 = vld [vmem:[%s18195_s13 + $0x558] sm:$0xf0] }
 0x55f   :  { %7430 = vmatpush.bf16.msrb.mxu0 %v10922_v6  ;;  %7398 = vmatmul.bf16.vlgmr.msrb.gmra.mxu1 %v17132_v3  ;;  %v10303_v3 = vld [vmem:[%s18195_s13 + $0x198] sm:$0xf0]  ;;  %v10610_v6 = vor.u32 %v11898_v23, %v10607_v34  ;;  %v10602_v15 = vor.u32 %v11896_v61, %v10599_v31  ;;  %v11888_v23 = vld [vmem:[%s18195_s13 + $0x3a4] sm:$0xf]  ;;  %v11954_v56 = vld [vmem:[%s18195_s13 + $0x5b4] sm:$0xf] }
 0x560   :  { %7442 = vmatpush.bf16.msra.mxu1 %v10994_v22  ;;  %7316 = vmatpush.bf16.msrb.mxu3 %v10322_v14  ;;  %v10306_v11 = vor.u32 %v11822_v50, %v10303_v3  ;;  %v10527_v22 = vld [vmem:[%s18195_s13 + $0x358] sm:$0xf0]  ;;  %v11984_v14 = vld [vmem:[%s18195_s13 + $0x6a4] sm:$0xf] }
 0x561   :  { %v10530_v53 = vor.u32 %v11878_v9, %v10527_v22  ;;  %v11884_v61 = vld [vmem:[%s18195_s13 + $0x384] sm:$0xf] }
 0x562   :  { %7305 = vmatpush.bf16.msrb.mxu2 %v10242_v59  ;;  %v11964_v59 = vld [vmem:[%s18195_s13 + $0x604] sm:$0xf] }
 0x563   :  { %7431 = vmatpush.bf16.msrb.mxu0 %v10914_v58  ;;  %v10882_v58 = vor.u32 %v11966_v28, %v10879_v52  ;;  %v10874_v50 = vor.u32 %v11964_v59, %v10871_v2  ;;  %v11944_v31 = vld [vmem:[%s18195_s13 + $0x564] sm:$0xf]  ;;  %v10791_v28 = vld [vmem:[%s18195_s13 + $0x568] sm:$0xf0]  ;;  %v11962_v52 = vld [vmem:[%s18195_s13 + $0x5f4] sm:$0xf]  ;;  %v10786_v59 = vor.u32 %v11942_v0, %v10783_v24 }
 0x564   :  { %7443 = vmatpush.bf16.msra.mxu1 %v10986_v42  ;;  %7317 = vmatpush.bf16.msrb.mxu3 %v10314_v5  ;;  %v11894_v42 = vld [vmem:[%s18195_s13 + $0x3d4] sm:$0xf]  ;;  %v10943_v5 = vld [vmem:[%s18195_s13 + $0x698] sm:$0xf0]  ;;  %v11047_v0 = vld [vmem:[%s18195_s13 + $0x768] sm:$0xf0] }
 0x565   :  { %v10594_v18 = vor.u32 %v11894_v42, %v10591_v35  ;;  %v10946_v3 = vor.u32 %v11982_v55, %v10943_v5  ;;  %v11960_v42 = vld [vmem:[%s18195_s13 + $0x5e4] sm:$0xf]  ;;  %v11958_v5 = vld [vmem:[%s18195_s13 + $0x5d4] sm:$0xf] }
 0x566   :  { %7306 = vmatpush.bf16.msrb.mxu2 %v10234_v49  ;;  %v10586_v49 = vor.u32 %v11892_v27, %v10583_v57  ;;  %v11940_v55 = vld [vmem:[%s18195_s13 + $0x544] sm:$0xf]  ;;  %v12026_v24 = vld [vmem:[%s18195_s13 + $0x7f4] sm:$0xf] }
 0x567   :  { %7432 = vmatpush.bf16.msrb.mxu0 %v10906_v40  ;;  %v11874_v40 = vld [vmem:[%s18195_s13 + $0x334] sm:$0xf]  ;;  %v11956_v27 = vld [vmem:[%s18195_s13 + $0x5c4] sm:$0xf] }
 0x568   :  { %7444 = vmatpush.bf16.msra.mxu1 %v10978_v19  ;;  %7318 = vmatpush.bf16.msrb.mxu3 %v10306_v11  ;;  %v11980_v19 = vld [vmem:[%s18195_s13 + $0x684] sm:$0xf] }
 0x569   :  { %7307 = vmatmul.bf16.vlgmr.msrb.gmra.mxu2 %v17191_v46  ;;  %v10951_v46 = vld [vmem:[%s18195_s13 + $0x6a8] sm:$0xf0]  ;;  %v10938_v11 = vor.u32 %v11980_v19, %v10935_v63 }
 0x56a   :  { %7351 = vmatpush.bf16.msra.mxu2 %v10546_v25  ;;  %v10954_v1 = vor.u32 %v11984_v14, %v10951_v46  ;;  %v11890_v25 = vld [vmem:[%s18195_s13 + $0x3b4] sm:$0xf]  ;;  %v10863_v14 = vld [vmem:[%s18195_s13 + $0x5f8] sm:$0xf0] }
 0x56b   :  { %7433 = vmatpush.bf16.msrb.mxu0 %v10898_v48  ;;  %v10578_v48 = vor.u32 %v11890_v25, %v10575_v16 }
 0x56c   :  { %7445 = vmatpush.bf16.msra.mxu1 %v10970_v10  ;;  %7319 = vmatpush.bf16.msrb.mxu3 %v10298_v38  ;;  %v10498_v10 = vor.u32 %v11870_v60, %v10495_v62  ;;  %v11946_v38 = vld [vmem:[%s18195_s13 + $0x574] sm:$0xf]  ;;  %v10751_v62 = vld [vmem:[%s18195_s13 + $0x518] sm:$0xf0] }
 0x56d   :  { %v11934_v60 = vld [vmem:[%s18195_s13 + $0x514] sm:$0xf] }
 0x56e   :  { %7352 = vmatpush.bf16.msra.mxu2 %v10538_v47  ;;  %v10799_v47 = vld [vmem:[%s18195_s13 + $0x578] sm:$0xf0] }
 0x56f   :  { %7434 = vmatpush.bf16.msrb.mxu0 %v10890_v8  ;;  %7320 = vmatmul.bf16.vlgmr.msrb.gmra.mxu3 %v17225_v36  ;;  %v10511_v36 = vld [vmem:[%s18195_s13 + $0x338] sm:$0xf0]  ;;  %v10802_v22 = vor.u32 %v11946_v38, %v10799_v47  ;;  %v11950_v38 = vld [vmem:[%s18195_s13 + $0x594] sm:$0xf] }
 0x570   :  { %7364 = vmatpush.bf16.msra.mxu3 %v10610_v6  ;;  %7446 = vmatpush.bf16.msra.mxu1 %v10962_v43  ;;  %v10514_v54 = vor.u32 %v11874_v40, %v10511_v36  ;;  %v10490_v6 = vor.u32 %v11868_v13, %v10487_v12  ;;  %v10551_v43 = vld [vmem:[%s18195_s13 + $0x388] sm:$0xf0]  ;;  %v11938_v36 = vld [vmem:[%s18195_s13 + $0x534] sm:$0xf]  ;;  %v10754_v13 = vor.u32 %v11934_v60, %v10751_v62  ;;  %v11023_v62 = vld [vmem:[%s18195_s13 + $0x738] sm:$0xf0] }
 0x571   :  { %v12002_v60 = vld [vmem:[%s18195_s13 + $0x734] sm:$0xf] }
 0x572   :  { %7353 = vmatpush.bf16.msra.mxu2 %v10530_v53  ;;  %v10554_v53 = vor.u32 %v11884_v61, %v10551_v43 }
 0x573   :  { %7435 = vmatpush.bf16.msrb.mxu0 %v10882_v58  ;;  %v10866_v58 = vor.u32 %v11962_v52, %v10863_v14 }
 0x574   :  { %7365 = vmatpush.bf16.msra.mxu3 %v10602_v15  ;;  %7447 = vmatpush.bf16.msra.mxu1 %v10954_v1  ;;  %v10794_v15 = vor.u32 %v11944_v31, %v10791_v28  ;;  %v10855_v1 = vld [vmem:[%s18195_s13 + $0x5e8] sm:$0xf0]  ;;  %v12070_v31 = vld [vmem:[%s18197_s14] sm:$0x3] }
 0x575   :  { %v10858_v2 = vor.u32 %v11960_v42, %v10855_v1  ;;  %v5782_v28 = vperm.slane %v12070_v31, 1  ;;  %v11119_v42 = vld [vmem:[%s18195_s13 + $0x7f8] sm:$0xf0] }
 0x576   :  { %7354 = vmatpush.bf16.msra.mxu2 %v10522_v17  ;;  %v17941_v34 = vpop.f32.mrf.mxu0  ;;  %v10847_v17 = vld [vmem:[%s18195_s13 + $0x5d8] sm:$0xf0] }
 0x577   :  { %7436 = vmatpush.bf16.msrb.mxu0 %v10874_v50  ;;  %v10850_v40 = vor.u32 %v11958_v5, %v10847_v17  ;;  %v11122_v5 = vor.u32 %v12026_v24, %v11119_v42  ;;  %v12006_v17 = vld [vmem:[%s18195_s13 + $0x754] sm:$0xf] }
 0x578   :  { %7366 = vmatpush.bf16.msra.mxu3 %v10594_v18  ;;  %7448 = vmatpush.bf16.msra.mxu1 %v10946_v3  ;;  %v10767_v3 = vld [vmem:[%s18195_s13 + $0x538] sm:$0xf0] }
 0x579   :  { %v10770_v19 = vor.u32 %v11938_v36, %v10767_v3  ;;  %v11111_v3 = vld [vmem:[%s18195_s13 + $0x7e8] sm:$0xf0] }
 0x57a   :  { %7437 = vmatmul.bf16.vlgmr.msrb.gmra.mxu0 %v17164_v39  ;;  %7355 = vmatpush.bf16.msra.mxu2 %v10514_v54  ;;  %v10567_v39 = vld [vmem:[%s18195_s13 + $0x3a8] sm:$0xf0]  ;;  %v17961_v8 = vpop.f32.mrf.mxu1  ;;  %v11936_v54 = vld [vmem:[%s18195_s13 + $0x524] sm:$0xf] }
 0x57b   :  { %v10570_v30 = vor.u32 %v11888_v23, %v10567_v39  ;;  %v11952_v39 = vld [vmem:[%s18195_s13 + $0x5a4] sm:$0xf] }
 0x57c   :  { %7367 = vmatpush.bf16.msra.mxu3 %v10586_v49  ;;  %7449 = vmatpush.bf16.msra.mxu1 %v10938_v11  ;;  %v10759_v49 = vld [vmem:[%s18195_s13 + $0x528] sm:$0xf0]  ;;  %v10831_v11 = vld [vmem:[%s18195_s13 + $0x5b8] sm:$0xf0] }
 0x57e   :  { %7356 = vmatpush.bf16.msra.mxu2 %v10506_v32  ;;  %v7180_v46 = vpop.f32.mrf.mxu0  ;;  %v10762_v32 = vor.u32 %v11936_v54, %v10759_v49  ;;  %v12004_v54 = vld [vmem:[%s18195_s13 + $0x744] sm:$0xf] }
 0x57f   :  { %7450 = vmatmul.bf16.vlgmr.msra.gmra.mxu1 %v17223_v45  ;;  %v10559_v45 = vld [vmem:[%s18195_s13 + $0x398] sm:$0xf0]  ;;  %v11948_v46 = vld [vmem:[%s18195_s13 + $0x584] sm:$0xf] }
 0x580   :  { %7368 = vmatpush.bf16.msra.mxu3 %v10578_v48  ;;  %v10562_v9 = vor.u32 %v11886_v41, %v10559_v45  ;;  %v10834_v48 = vor.u32 %v11954_v56, %v10831_v11  ;;  %v11932_v41 = vld [vmem:[%s18195_s13 + $0x504] sm:$0xf]  ;;  %v10743_v45 = vld [vmem:[%s18195_s13 + $0x508] sm:$0xf0]  ;;  %v11103_v56 = vld [vmem:[%s18195_s13 + $0x7d8] sm:$0xf0] }
 0x581   :  { %v10746_v61 = vor.u32 %v11932_v41, %v10743_v45 }
 0x582   :  { %7357 = vmatpush.bf16.msra.mxu2 %v10498_v10  ;;  %v7193_v35 = vpop.f32.mrf.mxu1 }
 0x584   :  { %7369 = vmatpush.bf16.msra.mxu3 %v10570_v30 }
 0x586   :  { %7358 = vmatpush.bf16.msra.mxu2 %v10490_v6  ;;  %v18007_v18 = vpop.f32.mrf.mxu0  ;;  %v10815_v6 = vld [vmem:[%s18195_s13 + $0x598] sm:$0xf0] }
 0x587   :  { %v10818_v52 = vor.u32 %v11950_v38, %v10815_v6  ;;  %v11007_v6 = vld [vmem:[%s18195_s13 + $0x718] sm:$0xf0] }
 0x588   :  { %7370 = vmatpush.bf16.msra.mxu3 %v10562_v9  ;;  %v12010_v9 = vld [vmem:[%s18195_s13 + $0x774] sm:$0xf] }
 0x589   :  { %7359 = vmatmul.bf16.vlgmr.msra.gmra.mxu2 %v17287_v4  ;;  %v10775_v4 = vld [vmem:[%s18195_s13 + $0x548] sm:$0xf0] }
 0x58a   :  { %7403 = vmatpush.bf16.msrb.mxu2 %v10802_v22  ;;  %v10778_v50 = vor.u32 %v11940_v55, %v10775_v4  ;;  %v18021_v57 = vpop.f32.mrf.mxu1  ;;  %v11055_v22 = vld [vmem:[%s18195_s13 + $0x778] sm:$0xf0] }
 0x58b   :  { %v11058_v14 = vor.u32 %v12010_v9, %v11055_v22  ;;  %v12016_v22 = vld [vmem:[%s18195_s13 + $0x7a4] sm:$0xf] }
 0x58c   :  { %7371 = vmatpush.bf16.msra.mxu3 %v10554_v53  ;;  %v7100_v26 = vpop.f32.mrf.mxu2  ;;  %v10807_v53 = vld [vmem:[%s18195_s13 + $0x588] sm:$0xf0] }
 0x58d   :  { %v7101_v25 = vadd.f32 %v7100_v26, %v17360_v29  ;;  %v10823_v29 = vld [vmem:[%s18195_s13 + $0x5a8] sm:$0xf0]  ;;  %v10810_v1 = vor.u32 %v11948_v46, %v10807_v53  ;;  %v12022_v26 = vld [vmem:[%s18195_s13 + $0x7d4] sm:$0xf] }
 0x58e   :  { %7404 = vmatpush.bf16.msrb.mxu2 %v10794_v15  ;;  %v7232_v16 = vpop.f32.mrf.mxu0  ;;  %v10826_v12 = vor.u32 %v11952_v39, %v10823_v29  ;;  %v11026_v39 = vor.u32 %v12002_v60, %v11023_v62  ;;  %v12014_v53 = vld [vmem:[%s18195_s13 + $0x794] sm:$0xf] }
 0x58f   :  { %7372 = vmatmul.bf16.vlgmr.msra.gmra.mxu3 %v17348_v33  ;;  %v10839_v33 = vld [vmem:[%s18195_s13 + $0x5c8] sm:$0xf0] }
 0x590   :  { %7416 = vmatpush.bf16.msrb.mxu3 %v10866_v58  ;;  %v10842_v63 = vor.u32 %v11956_v27, %v10839_v33  ;;  %v7113_v23 = vpop.f32.mrf.mxu3 }
 0x591   :  { %v7114_v10 = vadd.f32 %v7113_v23, %v7101_v25 }
 0x592   :  { %7405 = vmatpush.bf16.msrb.mxu2 %v10786_v59  ;;  %v7245_v30 = vpop.f32.mrf.mxu1 }
 0x593   :  { %v7127_v43 = vadd.f32 %v17456_v44, %v7114_v10  ;;  %v12008_v44 = vld [vmem:[%s18195_s13 + $0x764] sm:$0xf] }
 0x594   :  { %7417 = vmatpush.bf16.msrb.mxu3 %v10858_v2  ;;  %v7102_v47 = vpop.f32.mrf.mxu2  ;;  %v11050_v2 = vor.u32 %v12008_v44, %v11047_v0  ;;  %v12000_v30 = vld [vmem:[%s18195_s13 + $0x724] sm:$0xf] }
 0x595   :  { %v7140_v59 = vadd.f32 %v17458_v37, %v7127_v43  ;;  %v12024_v37 = vld [vmem:[%s18195_s13 + $0x7e4] sm:$0xf]  ;;  %v11998_v47 = vld [vmem:[%s18195_s13 + $0x714] sm:$0xf] }
 0x596   :  { %7406 = vmatpush.bf16.msrb.mxu2 %v10778_v50  ;;  %v11039_v50 = vld [vmem:[%s18195_s13 + $0x758] sm:$0xf0]  ;;  %v11010_v43 = vor.u32 %v11998_v47, %v11007_v6 }
 0x597   :  { %v11042_v27 = vor.u32 %v12006_v17, %v11039_v50 }
 0x598   :  { %7418 = vmatpush.bf16.msrb.mxu3 %v10850_v40  ;;  %v7115_v58 = vpop.f32.mrf.mxu3 }
 0x599   :  { %v7282_v15 = vpop.f32.mrf.mxu0 }
 0x59a   :  { %7407 = vmatpush.bf16.msrb.mxu2 %v10770_v19  ;;  %v7283_v35 = vadd.f32 %v7282_v15, %v5782_v28  ;;  %v11071_v15 = vld [vmem:[%s18195_s13 + $0x798] sm:$0xf0] }
 0x59b   :  { %v11074_v42 = vor.u32 %v12014_v53, %v11071_v15 }
 0x59c   :  { %7419 = vmatpush.bf16.msrb.mxu3 %v10842_v63  ;;  %v7152_v4 = vpop.f32.mrf.mxu2  ;;  %v11114_v63 = vor.u32 %v12024_v37, %v11111_v3 }
 0x59d   :  { %v7295_v55 = vpop.f32.mrf.mxu1  ;;  %v7153_v36 = vadd.f32 %v7152_v4, %v7140_v59 }
 0x59e   :  { %7408 = vmatpush.bf16.msrb.mxu2 %v10762_v32  ;;  %v18095_v40 = vadd.f32 %v7295_v55, %v7283_v35  ;;  %v11063_v35 = vld [vmem:[%s18195_s13 + $0x788] sm:$0xf0] }
 0x5a0   :  { %7420 = vmatpush.bf16.msrb.mxu3 %v10834_v48  ;;  %v7165_v19 = vpop.f32.mrf.mxu3  ;;  %v11106_v48 = vor.u32 %v12022_v26, %v11103_v56 }
 0x5a1   :  { %v7284_v33 = vpop.f32.mrf.mxu0  ;;  %v7166_v49 = vadd.f32 %v7165_v19, %v7153_v36 }
 0x5a2   :  { %7409 = vmatpush.bf16.msrb.mxu2 %v10754_v13  ;;  %v11015_v13 = vld [vmem:[%s18195_s13 + $0x728] sm:$0xf0] }
 0x5a3   :  { %v7179_v11 = vadd.f32 %v17941_v34, %v7166_v49  ;;  %v11095_v34 = vld [vmem:[%s18195_s13 + $0x7c8] sm:$0xf0]  ;;  %v11018_v41 = vor.u32 %v12000_v30, %v11015_v13 }
 0x5a4   :  { %7421 = vmatpush.bf16.msrb.mxu3 %v10826_v12  ;;  %v7154_v32 = vpop.f32.mrf.mxu2  ;;  %v12018_v12 = vld [vmem:[%s18195_s13 + $0x7b4] sm:$0xf] }
 0x5a5   :  { %v7297_v16 = vpop.f32.mrf.mxu1  ;;  %v7192_v23 = vadd.f32 %v17961_v8, %v7179_v11  ;;  %v11087_v8 = vld [vmem:[%s18195_s13 + $0x7b8] sm:$0xf0] }
 0x5a6   :  { %7410 = vmatpush.bf16.msrb.mxu2 %v10746_v61  ;;  %v11090_v38 = vor.u32 %v12018_v12, %v11087_v8  ;;  %v11079_v61 = vld [vmem:[%s18195_s13 + $0x7a8] sm:$0xf0] }
 0x5a7   :  { %v11082_v28 = vor.u32 %v12016_v22, %v11079_v61 }
 0x5a8   :  { %7422 = vmatpush.bf16.msrb.mxu3 %v10818_v52  ;;  %v7167_v29 = vpop.f32.mrf.mxu3  ;;  %v11996_v52 = vld [vmem:[%s18195_s13 + $0x704] sm:$0xf] }
 0x5a9   :  { %7411 = vmatmul.bf16.vlgmr.msrb.gmra.mxu2 %v17410_v21  ;;  %v11031_v21 = vld [vmem:[%s18195_s13 + $0x748] sm:$0xf0] }
 0x5aa   :  { %7455 = vmatpush.bf16.msra.mxu2 %v11058_v14  ;;  %v11034_v25 = vor.u32 %v12004_v54, %v11031_v21  ;;  %v10999_v14 = vld [vmem:[%s18195_s13 + $0x708] sm:$0xf0] }
 0x5ab   :  { %v11002_v44 = vor.u32 %v11996_v52, %v10999_v14 }
 0x5ac   :  { %7423 = vmatpush.bf16.msrb.mxu3 %v10810_v1  ;;  %v7204_v45 = vpop.f32.mrf.mxu2  ;;  %v12012_v1 = vld [vmem:[%s18195_s13 + $0x784] sm:$0xf] }
 0x5ad   :  { %v7205_v9 = vadd.f32 %v7204_v45, %v7192_v23  ;;  %v11066_v55 = vor.u32 %v12012_v1, %v11063_v35 }
 0x5ae   :  { %7456 = vmatpush.bf16.msra.mxu2 %v11050_v2 }
 0x5af   :  { %7424 = vmatmul.bf16.vlgmr.msrb.gmra.mxu3 %v17469_v51  ;;  %v12020_v51 = vld [vmem:[%s18195_s13 + $0x7c4] sm:$0xf] }
 0x5b0   :  { %7468 = vmatpush.bf16.msra.mxu3 %v11122_v5  ;;  %v11098_v10 = vor.u32 %v12020_v51, %v11095_v34  ;;  %v7217_v31 = vpop.f32.mrf.mxu3 }
 0x5b1   :  { %v7218_v46 = vadd.f32 %v7217_v31, %v7205_v9 }
 0x5b2   :  { %7457 = vmatpush.bf16.msra.mxu2 %v11042_v27 }
 0x5b3   :  { %v7231_v58 = vadd.f32 %v18007_v18, %v7218_v46 }
 0x5b4   :  { %7469 = vmatpush.bf16.msra.mxu3 %v11114_v63  ;;  %v7206_v24 = vpop.f32.mrf.mxu2 }
 0x5b5   :  { %v7244_v59 = vadd.f32 %v18021_v57, %v7231_v58 }
 0x5b6   :  { %7458 = vmatpush.bf16.msra.mxu2 %v11034_v25 }
 0x5b7   :  { %v7334_v0 = vpop.f32.mrf.mxu0 }
 0x5b8   :  { %7470 = vmatpush.bf16.msra.mxu3 %v11106_v48  ;;  %v7219_v18 = vpop.f32.mrf.mxu3 }
 0x5ba   :  { %7459 = vmatpush.bf16.msra.mxu2 %v11026_v39 }
 0x5bc   :  { %7471 = vmatpush.bf16.msra.mxu3 %v11098_v10  ;;  %v7347_v2 = vpop.f32.mrf.mxu1 }
 0x5be   :  { %7460 = vmatpush.bf16.msra.mxu2 %v11018_v41 }
 0x5bf   :  { %v7336_v4 = vpop.f32.mrf.mxu0 }
 0x5c0   :  { %7472 = vmatpush.bf16.msra.mxu3 %v11090_v38 }
 0x5c2   :  { %7461 = vmatpush.bf16.msra.mxu2 %v11010_v43 }
 0x5c4   :  { %7473 = vmatpush.bf16.msra.mxu3 %v11082_v28  ;;  %v7349_v5 = vpop.f32.mrf.mxu1 }
 0x5c6   :  { %7462 = vmatpush.bf16.msra.mxu2 %v11002_v44 }
 0x5c8   :  { %7474 = vmatpush.bf16.msra.mxu3 %v11074_v42 }
 0x5c9   :  { %7463 = vmatmul.bf16.vlgmr.msra.gmra.mxu2 %v17622_v7 }
 0x5cc   :  { %7475 = vmatpush.bf16.msra.mxu3 %v11066_v55  ;;  %v7256_v17 = vpop.f32.mrf.mxu2 }
 0x5cd   :  { %v7257_v50 = vadd.f32 %v7256_v17, %v7244_v59 }
 0x5cf   :  { %7476 = vmatmul.bf16.vlgmr.msra.gmra.mxu3 %v17677_v20 }
 0x5d2   :  { %v7269_v36 = vpop.f32.mrf.mxu3 }
 0x5d3   :  { %v7270_v37 = vadd.f32 %v7269_v36, %v7257_v50 }
 0x5d4   :  { %v7258_v27 = vpop.f32.mrf.mxu2 }
 0x5d5   :  { %v7481_v61 = vmax.f32 %v7270_v37, 0.0 }
 0x5d7   :  { %v7386_v3 = vpop.f32.mrf.mxu0 }
 0x5da   :  { %v7271_v57 = vpop.f32.mrf.mxu3 }
 0x5dc   :  { %v7399_v33 = vpop.f32.mrf.mxu1 }
 0x5df   :  { %v7388_v19 = vpop.f32.mrf.mxu0 }
 0x5e4   :  { %v7401_v63 = vpop.f32.mrf.mxu1 }
 0x5ec   :  { %v7308_v54 = vpop.f32.mrf.mxu2 }
 0x5ed   :  { %v7309_v21 = vadd.f32 %v7308_v54, %v18095_v40 }
 0x5f2   :  { %v7321_v49 = vpop.f32.mrf.mxu3 }
 0x5f3   :  { %v7322_v7 = vadd.f32 %v7321_v49, %v7309_v21 }
 0x5f4   :  { %v7310_v11 = vpop.f32.mrf.mxu2 }
 0x5f5   :  { %v7335_v26 = vadd.f32 %v7334_v0, %v7322_v7 }
 0x5f7   :  { %v7438_v56 = vpop.f32.mrf.mxu0  ;;  %v7348_v20 = vadd.f32 %v7347_v2, %v7335_v26 }
 0x5fa   :  { %v7323_v16 = vpop.f32.mrf.mxu3 }
 0x5fc   :  { %v7451_v25 = vpop.f32.mrf.mxu1 }
 0x5ff   :  { %v7440_v32 = vpop.f32.mrf.mxu0 }
 0x604   :  { %v7453_v48 = vpop.f32.mrf.mxu1 }
 0x60c   :  { %v7360_v60 = vpop.f32.mrf.mxu2 }
 0x60d   :  { %v7361_v62 = vadd.f32 %v7360_v60, %v7348_v20 }
 0x612   :  { %v7373_v51 = vpop.f32.mrf.mxu3 }
 0x613   :  { %v7374_v34 = vadd.f32 %v7373_v51, %v7361_v62 }
 0x614   :  { %v7362_v39 = vpop.f32.mrf.mxu2 }
 0x615   :  { %v7387_v23 = vadd.f32 %v7386_v3, %v7374_v34 }
 0x617   :  { %v7400_v29 = vadd.f32 %v7399_v33, %v7387_v23 }
 0x61a   :  { %v7375_v10 = vpop.f32.mrf.mxu3 }
 0x62c   :  { %v7412_v30 = vpop.f32.mrf.mxu2 }
 0x62d   :  { %v7413_v40 = vadd.f32 %v7412_v30, %v7400_v29 }
 0x632   :  { %v7425_v13 = vpop.f32.mrf.mxu3 }
 0x633   :  { %v7426_v12 = vadd.f32 %v7425_v13, %v7413_v40 }
 0x634   :  { %v7414_v41 = vpop.f32.mrf.mxu2 }
 0x635   :  { %v7439_v8 = vadd.f32 %v7438_v56, %v7426_v12 }
 0x637   :  { %v7452_v45 = vadd.f32 %v7451_v25, %v7439_v8 }
 0x63a   :  { %v7427_v38 = vpop.f32.mrf.mxu3 }
 0x64c   :  { %v7464_v47 = vpop.f32.mrf.mxu2 }
 0x64d   :  { %v7465_v6 = vadd.f32 %v7464_v47, %v7452_v45 }
 0x652   :  { %v7477_v9 = vpop.f32.mrf.mxu3 }
 0x653   :  { %v7478_v22 = vadd.f32 %v7477_v9, %v7465_v6 }
 0x654   :  { %v7466_v31 = vpop.f32.mrf.mxu2 }
 0x655   :  { %v7482_v43 = vmax.f32 %v7478_v22, 0.0 }
 0x657   :  { %v7483_v28 = vpack.c.bf16 %v7482_v43, %v7481_v61 }
 0x659   :  { %7486 = vst.msk [vmem:[%s18198_s16] sm:$0xff] %vm7485_vm4, %v7483_v28 }
 0x65a   :  { %v7479_v52 = vpop.f32.mrf.mxu3 }

</bundles_post_ra>
